<compile_context>
chip_gen: v5e
topology: v5e:2x2
jax: 0.10.0
libtpu: 0.0.40
codegen_flags: <defaults>
</compile_context>

<pallas_src>
import functools

import jax
import jax.numpy as jnp
from jax.experimental import pallas as pl
from jax.experimental.pallas import tpu as pltpu

# ---- geometry fixed by the PyTorch module (fc1 expects 9216 = 64*12*12 -> 28x28 input) ----
XW = 1024    # padded flat-input width               (needs >= Y1W + 58)
Y1W = 960    # conv1 output width (flat, stride 28)  (needs >= Y2P + 58)
Y2W = 840    # conv2 logically-needed lanes per image
Y2P = 896    # 128-aligned per-image lane stride used in the conv2/pool stage (>= MW + 29)
MW = 784     # flat spatial extent consumed by the pooling-window max
NPOOL = 144  # 12*12 pooled positions per channel


def _round_up(x, m):
    return ((x + m - 1) // m) * m


# ------------------------------- Pallas kernels ------------------------------------

def _conv_block_kernel(x_ref, w1_ref, b1_ref, w2_ref, b2_ref, sel_ref,
                       o_ref, a_ref, m_ref, *, nb):
    """Fused conv1 -> ReLU -> conv2 -> ReLU -> 2x2 maxpool for `nb` images per step."""
    w1 = w1_ref[...]                                        # (32, 9)   f32
    b1 = b1_ref[...][None]                                  # (1, 32, 1) f32

    # conv1 (+bias, ReLU): hoist the sublane broadcast of x ONCE, then 9 shift-and-adds
    # (flat spatial shift = di*28 + dj).  f32 on the VPU (v5e has no bf16 VPU).
    xb = jnp.broadcast_to(x_ref[...], (nb, 32, XW))         # (nb, 32, XW) f32, hoisted
    acc = w1[:, 0][None, :, None] * xb[:, :, 0:Y1W]
    for t in range(1, 9):
        off = (t // 3) * 28 + (t % 3)
        acc = acc + w1[:, t][None, :, None] * xb[:, :, off:off + Y1W]
    y1 = jnp.maximum(acc + b1, 0.0).astype(jnp.bfloat16)    # (nb, 32, Y1W)

    # conv2 LHS: store the 9 shifted taps of every image straight into the VMEM scratch
    # (rows = tap*32+cin to match the packed w2, lanes = image block at 128-aligned Y2P).
    for b in range(nb):
        y1b = y1[b]                                          # (32, Y1W)
        for t in range(9):
            off = (t // 3) * 28 + (t % 3)
            a_ref[t * 32:(t + 1) * 32, b * Y2P:(b + 1) * Y2P] = y1b[:, off:off + Y2P]

    # conv2 (+bias, ReLU): one MXU matmul over all images (N = nb*Y2P lanes), then cast to
    # bf16 immediately so the pooling views/bufs move half the bytes.
    y2 = jnp.dot(w2_ref[...], a_ref[...], preferred_element_type=jnp.float32)
    y2 = jnp.maximum(y2 + b2_ref[...], 0.0).astype(jnp.bfloat16)      # (64, nb*Y2P)

    # 2x2/stride-2 max-pool: elementwise max of the 4 window offsets (0, +1, +28, +29),
    # images stacked along sublanes so the compaction matmul has M = nb*64.
    for b in range(nb):
        base = b * Y2P
        m_ref[b * 64:(b + 1) * 64, :] = jnp.maximum(
            jnp.maximum(y2[:, base:base + MW], y2[:, base + 1:base + 1 + MW]),
            jnp.maximum(y2[:, base + 28:base + 28 + MW], y2[:, base + 29:base + 29 + MW]))

    # compact the strided valid lanes into dense (nb*64, 144) with one 0/1 matmul.
    pooled = jnp.dot(m_ref[...], sel_ref[...],
                     preferred_element_type=jnp.float32).astype(jnp.bfloat16)
    for b in range(nb):
        o_ref[b] = pooled[b * 64:(b + 1) * 64, :]


def _fc_kernel(f_ref, w1_ref, b1_ref, w2_ref, b2_ref, o_ref):
    """Fused fc1 + ReLU + fc2(padded to 128 lanes) + log_softmax; f32 softmax math."""
    h = jnp.dot(f_ref[...], w1_ref[...], preferred_element_type=jnp.float32)
    h = jnp.maximum(h + b1_ref[...], 0.0)                                   # (TM, 128)
    z = jnp.dot(h.astype(jnp.bfloat16), w2_ref[...],
                preferred_element_type=jnp.float32) + b2_ref[...]           # (TM, 128)
    mx = jnp.max(z, axis=-1, keepdims=True)
    lse = mx + jnp.log(jnp.sum(jnp.exp(z - mx), axis=-1, keepdims=True))
    o_ref[...] = z - lse


# --------------------------------- wrappers -----------------------------------------

def conv_block(x_pad, w1, b1, w2, b2, sel, *, nb):
    B = x_pad.shape[0]
    assert B % nb == 0, "caller pads the batch to a multiple of nb"
    kernel = functools.partial(_conv_block_kernel, nb=nb)
    return pl.pallas_call(
        kernel,
        out_shape=jax.ShapeDtypeStruct((B, 64, NPOOL), jnp.bfloat16),
        grid=(B // nb,),
        in_specs=[
            pl.BlockSpec((nb, 1, XW), lambda i: (i, 0, 0)),        # nb images per step
            pl.BlockSpec((32, 9), lambda i: (0, 0)),               # weights stay resident
            pl.BlockSpec((32, 1), lambda i: (0, 0)),
            pl.BlockSpec((64, 288), lambda i: (0, 0)),
            pl.BlockSpec((64, 1), lambda i: (0, 0)),
            pl.BlockSpec((MW, NPOOL), lambda i: (0, 0),
                         pipeline_mode=pl.Buffered(1)),            # constant -> 1 buffer
        ],
        out_specs=pl.BlockSpec((nb, 64, NPOOL), lambda i: (i, 0, 0)),
        scratch_shapes=[
            pltpu.VMEM((288, nb * Y2P), jnp.bfloat16),             # conv2 LHS
            pltpu.VMEM((nb * 64, MW), jnp.bfloat16),               # pooled-window max
        ],
        compiler_params=pltpu.CompilerParams(
            dimension_semantics=("parallel",)),                    # shards steps across TCs
    )(x_pad, w1, b1, w2, b2, sel)


def fc_block(feats, w1fc, b1fc, w2fc, b2fc):
    M = feats.shape[0]
    # Bounded M-tile (never the whole batch): TM <= 128, batch padded to a multiple of TM,
    # and >= 2 grid steps whenever possible so v7x's two TensorCores both get work.
    if M >= 256:
        TM = 128
    elif M >= 16:
        TM = _round_up((M + 1) // 2, 8)
    else:
        TM = _round_up(max(M, 1), 8)
    Mp = _round_up(M, TM)
    if Mp != M:
        feats = jnp.pad(feats, ((0, Mp - M), (0, 0)))
    out = pl.pallas_call(
        _fc_kernel,
        out_shape=jax.ShapeDtypeStruct((Mp, 128), jnp.float32),
        grid=(Mp // TM,),
        in_specs=[
            pl.BlockSpec((TM, 9216), lambda i: (i, 0)),
            pl.BlockSpec((9216, 128), lambda i: (0, 0),
                         pipeline_mode=pl.Buffered(1)),            # 2.36 MB weight, 1 buffer
            pl.BlockSpec((1, 128), lambda i: (0, 0)),
            pl.BlockSpec((128, 128), lambda i: (0, 0)),
            pl.BlockSpec((1, 128), lambda i: (0, 0)),
        ],
        out_specs=pl.BlockSpec((TM, 128), lambda i: (i, 0)),
        compiler_params=pltpu.CompilerParams(
            dimension_semantics=("parallel",)),
    )(feats, w1fc, b1fc, w2fc, b2fc)
    return out[:M]


# --------------------------- params & forward (glue) --------------------------------

def init_params(key):
    """PyTorch-layout parameters (same shapes as the nn.Module)."""
    ks = jax.random.split(key, 8)
    s = 0.02
    return {
        "conv1_w": s * jax.random.normal(ks[0], (32, 1, 3, 3), jnp.float32),
        "conv1_b": s * jax.random.normal(ks[1], (32,), jnp.float32),
        "conv2_w": s * jax.random.normal(ks[2], (64, 32, 3, 3), jnp.float32),
        "conv2_b": s * jax.random.normal(ks[3], (64,), jnp.float32),
        "fc1_w":   s * jax.random.normal(ks[4], (128, 9216), jnp.float32),
        "fc1_b":   s * jax.random.normal(ks[5], (128,), jnp.float32),
        "fc2_w":   s * jax.random.normal(ks[6], (10, 128), jnp.float32),
        "fc2_b":   s * jax.random.normal(ks[7], (10,), jnp.float32),
    }


def prepare_params(params):
    """One-time repack outside the hot path: pre-transposed, lane-friendly, bf16 MXU weights."""
    w1 = params["conv1_w"].reshape(32, 9).astype(jnp.float32)
    b1 = params["conv1_b"].reshape(32, 1).astype(jnp.float32)
    # conv2 weight -> (oc, di, dj, cin) -> (64, 288); K order matches the in-kernel tap stores.
    w2 = params["conv2_w"].transpose(0, 2, 3, 1).reshape(64, 288).astype(jnp.bfloat16)
    b2 = params["conv2_b"].reshape(64, 1).astype(jnp.float32)
    # fc1 input order == torch.flatten(C,H,W) order produced by kernel A -> plain transpose.
    w1fc = params["fc1_w"].T.astype(jnp.bfloat16)                        # (9216, 128)
    b1fc = params["fc1_b"].reshape(1, 128).astype(jnp.float32)
    # fc2 padded 10 -> 128 output lanes (lane-dense store); pad lanes get a -1e30 bias so
    # they contribute nothing to the log-softmax normalization.
    w2fc = jnp.zeros((128, 128), jnp.bfloat16).at[:, :10].set(
        params["fc2_w"].T.astype(jnp.bfloat16))
    b2fc = jnp.full((1, 128), -1e30, jnp.float32).at[0, :10].set(
        params["fc2_b"].astype(jnp.float32))
    # constant 0/1 matrix: pooled slot s = 12*ph + pw  <-  flat lane 56*ph + 2*pw
    s = jnp.arange(NPOOL)
    src = 56 * (s // 12) + 2 * (s % 12)
    sel = (jnp.arange(MW)[:, None] == src[None, :]).astype(jnp.bfloat16)  # (784, 144)
    return dict(w1=w1, b1=b1, w2=w2, b2=b2,
                w1fc=w1fc, b1fc=b1fc, w2fc=w2fc, b2fc=b2fc, sel=sel)


def mnist_forward(x, p):
    """x: (B, 1, 28, 28) f32 -> (B, 10) log-probabilities (dropout = identity, eval mode)."""
    B = x.shape[0]
    # Images per conv grid step: 4 keeps the per-step working set within v5e's 16 MiB default
    # scoped VMEM, while the thresholds keep >= 2 "parallel" steps for v7x's two TensorCores.
    NB = 4 if B >= 8 else (2 if B >= 4 else 1)
    Bp = _round_up(B, NB)
    # flatten spatial (stride 28), zero-pad lanes so shifted in-kernel views stay in-bounds,
    # zero-pad the batch to a multiple of NB (pad images are finite and sliced away at the end)
    xf = x.reshape(B, 1, 28 * 28).astype(jnp.float32)
    xf = jnp.pad(xf, ((0, Bp - B), (0, 0), (0, XW - 28 * 28)))
    pooled = conv_block(xf, p["w1"], p["b1"], p["w2"], p["b2"], p["sel"], nb=NB)
    feats = pooled.reshape(Bp, 64 * NPOOL)    # contiguous -> free; equals torch flatten order
    # NOTE: for latency-critical tiny batches the fc stage could be fused into kernel A's
    # epilogue (keeping w1fc resident); the two-kernel split is kept for large-B throughput.
    logits = fc_block(feats, p["w1fc"], p["b1fc"], p["w2fc"], p["b2fc"])  # (Bp, 128) f32
    return logits[:B, :10]


# ----------------------------- pure-JAX reference ------------------------------------

def mnist_reference(x, params):
    """f32 XLA reference matching the PyTorch module (eval mode)."""
    dn = ("NCHW", "OIHW", "NCHW")
    y = jax.lax.conv_general_dilated(x, params["conv1_w"], (1, 1), "VALID",
                                     dimension_numbers=dn)
    y = jax.nn.relu(y + params["conv1_b"][None, :, None, None])
    y = jax.lax.conv_general_dilated(y, params["conv2_w"], (1, 1), "VALID",
                                     dimension_numbers=dn)
    y = jax.nn.relu(y + params["conv2_b"][None, :, None, None])
    y = jax.lax.reduce_window(y, -jnp.inf, jax.lax.max,
                              (1, 1, 2, 2), (1, 1, 2, 2), "VALID")
    y = y.reshape(y.shape[0], -1)
    y = jax.nn.relu(y @ params["fc1_w"].T + params["fc1_b"])
    y = y @ params["fc2_w"].T + params["fc2_b"]
    return jax.nn.log_softmax(y, axis=-1)


# ------------------------------------ main ------------------------------------------

if __name__ == "__main__":
    key = jax.random.PRNGKey(0)
    k_x, k_p = jax.random.split(key)
    # MNIST geometry is forced by fc1 (9216 = 64*12*12) -> 28x28 input; small batch = 2.
    x = jax.random.normal(k_x, (2, 1, 28, 28), jnp.float32)
    params = init_params(k_p)
    prep = prepare_params(params)          # one-time weight repack, outside the hot path

    fwd = jax.jit(mnist_forward)
    out = jax.block_until_ready(fwd(x, prep))

    assert out.shape == (2, 10)
    assert bool(jnp.all(jnp.isfinite(out)))
    # log_softmax rows should exponentiate-and-sum to ~1
    assert bool(jnp.allclose(jnp.sum(jnp.exp(out), axis=1), 1.0, atol=1e-4))
    # match the f32 XLA reference (bf16 MXU operands -> small, bounded drift)
    ref = mnist_reference(x, params)
    assert bool(jnp.allclose(out, ref, atol=2e-2)), "mismatch vs f32 reference"
    print("KERNEL_OK")
</pallas_src>

<mosaic_0001>
module attributes {stable_mosaic.version = 11 : i64} {
  func.func @_conv_block_kernel(%arg0: i32, %arg1: memref<1x1x1024xf32, #tpu.memory_space<vmem>>, %arg2: memref<32x9xf32, #tpu.memory_space<vmem>>, %arg3: memref<32x1xf32, #tpu.memory_space<vmem>>, %arg4: memref<64x288xbf16, #tpu.memory_space<vmem>>, %arg5: memref<64x1xf32, #tpu.memory_space<vmem>>, %arg6: memref<784x144xbf16, #tpu.memory_space<vmem>>, %arg7: memref<1x64x144xbf16, #tpu.memory_space<vmem>>, %arg8: memref<288x896xbf16, #tpu.memory_space<vmem>>, %arg9: memref<64x784xbf16, #tpu.memory_space<vmem>>) attributes {dimension_semantics = [#tpu.dimension_semantics<parallel>], iteration_bounds = array<i64: 2>, scalar_prefetch = 0 : i64, scratch_operands = 2 : i64, tpu.core_type = #tpu.core_type<tc>, window_params = [{transform_indices = @transform_0, window_bounds = array<i64: 1, 1, 1024>}, {pipeline_mode = #tpu.pipeline_mode<synchronous>, transform_indices = @transform_1, window_bounds = array<i64: 32, 9>}, {pipeline_mode = #tpu.pipeline_mode<synchronous>, transform_indices = @transform_2, window_bounds = array<i64: 32, 1>}, {pipeline_mode = #tpu.pipeline_mode<synchronous>, transform_indices = @transform_3, window_bounds = array<i64: 64, 288>}, {pipeline_mode = #tpu.pipeline_mode<synchronous>, transform_indices = @transform_4, window_bounds = array<i64: 64, 1>}, {pipeline_mode = #tpu.pipeline_mode<synchronous>, transform_indices = @transform_5, window_bounds = array<i64: 784, 144>}, {transform_indices = @transform_6, window_bounds = array<i64: 1, 64, 144>}]} {
    %c0 = arith.constant 0 : index
    %c0_0 = arith.constant 0 : index
    %0 = vector.load %arg2[%c0, %c0_0] : memref<32x9xf32, #tpu.memory_space<vmem>>, vector<32x9xf32>
    %c0_1 = arith.constant 0 : index
    %c0_2 = arith.constant 0 : index
    %1 = vector.load %arg3[%c0_1, %c0_2] : memref<32x1xf32, #tpu.memory_space<vmem>>, vector<32x1xf32>
    %2 = vector.shape_cast %1 : vector<32x1xf32> to vector<1x32x1xf32>
    %c0_3 = arith.constant 0 : index
    %c0_4 = arith.constant 0 : index
    %c0_5 = arith.constant 0 : index
    %3 = vector.load %arg1[%c0_3, %c0_4, %c0_5] : memref<1x1x1024xf32, #tpu.memory_space<vmem>>, vector<1x1x1024xf32>
    %4 = vector.shape_cast %3 : vector<1x1x1024xf32> to vector<1x1x1024xf32>
    %5 = vector.broadcast %4 : vector<1x1x1024xf32> to vector<1x32x1024xf32>
    %6 = vector.extract_strided_slice %0 {offsets = [0, 0], sizes = [32, 1], strides = [1, 1]} : vector<32x9xf32> to vector<32x1xf32>
    %7 = vector.shape_cast %6 : vector<32x1xf32> to vector<32xf32>
    %8 = vector.shape_cast %7 : vector<32xf32> to vector<1x32x1xf32>
    %9 = vector.extract_strided_slice %5 {offsets = [0, 0, 0], sizes = [1, 32, 960], strides = [1, 1, 1]} : vector<1x32x1024xf32> to vector<1x32x960xf32>
    %10 = vector.broadcast %8 : vector<1x32x1xf32> to vector<1x32x960xf32>
    %11 = arith.mulf %10, %9 : vector<1x32x960xf32>
    %12 = vector.extract_strided_slice %0 {offsets = [0, 1], sizes = [32, 1], strides = [1, 1]} : vector<32x9xf32> to vector<32x1xf32>
    %13 = vector.shape_cast %12 : vector<32x1xf32> to vector<32xf32>
    %14 = vector.shape_cast %13 : vector<32xf32> to vector<1x32x1xf32>
    %15 = vector.extract_strided_slice %5 {offsets = [0, 0, 1], sizes = [1, 32, 960], strides = [1, 1, 1]} : vector<1x32x1024xf32> to vector<1x32x960xf32>
    %16 = vector.broadcast %14 : vector<1x32x1xf32> to vector<1x32x960xf32>
    %17 = arith.mulf %16, %15 : vector<1x32x960xf32>
    %18 = arith.addf %11, %17 : vector<1x32x960xf32>
    %19 = vector.extract_strided_slice %0 {offsets = [0, 2], sizes = [32, 1], strides = [1, 1]} : vector<32x9xf32> to vector<32x1xf32>
    %20 = vector.shape_cast %19 : vector<32x1xf32> to vector<32xf32>
    %21 = vector.shape_cast %20 : vector<32xf32> to vector<1x32x1xf32>
    %22 = vector.extract_strided_slice %5 {offsets = [0, 0, 2], sizes = [1, 32, 960], strides = [1, 1, 1]} : vector<1x32x1024xf32> to vector<1x32x960xf32>
    %23 = vector.broadcast %21 : vector<1x32x1xf32> to vector<1x32x960xf32>
    %24 = arith.mulf %23, %22 : vector<1x32x960xf32>
    %25 = arith.addf %18, %24 : vector<1x32x960xf32>
    %26 = vector.extract_strided_slice %0 {offsets = [0, 3], sizes = [32, 1], strides = [1, 1]} : vector<32x9xf32> to vector<32x1xf32>
    %27 = vector.shape_cast %26 : vector<32x1xf32> to vector<32xf32>
    %28 = vector.shape_cast %27 : vector<32xf32> to vector<1x32x1xf32>
    %29 = vector.extract_strided_slice %5 {offsets = [0, 0, 28], sizes = [1, 32, 960], strides = [1, 1, 1]} : vector<1x32x1024xf32> to vector<1x32x960xf32>
    %30 = vector.broadcast %28 : vector<1x32x1xf32> to vector<1x32x960xf32>
    %31 = arith.mulf %30, %29 : vector<1x32x960xf32>
    %32 = arith.addf %25, %31 : vector<1x32x960xf32>
    %33 = vector.extract_strided_slice %0 {offsets = [0, 4], sizes = [32, 1], strides = [1, 1]} : vector<32x9xf32> to vector<32x1xf32>
    %34 = vector.shape_cast %33 : vector<32x1xf32> to vector<32xf32>
    %35 = vector.shape_cast %34 : vector<32xf32> to vector<1x32x1xf32>
    %36 = vector.extract_strided_slice %5 {offsets = [0, 0, 29], sizes = [1, 32, 960], strides = [1, 1, 1]} : vector<1x32x1024xf32> to vector<1x32x960xf32>
    %37 = vector.broadcast %35 : vector<1x32x1xf32> to vector<1x32x960xf32>
    %38 = arith.mulf %37, %36 : vector<1x32x960xf32>
    %39 = arith.addf %32, %38 : vector<1x32x960xf32>
    %40 = vector.extract_strided_slice %0 {offsets = [0, 5], sizes = [32, 1], strides = [1, 1]} : vector<32x9xf32> to vector<32x1xf32>
    %41 = vector.shape_cast %40 : vector<32x1xf32> to vector<32xf32>
    %42 = vector.shape_cast %41 : vector<32xf32> to vector<1x32x1xf32>
    %43 = vector.extract_strided_slice %5 {offsets = [0, 0, 30], sizes = [1, 32, 960], strides = [1, 1, 1]} : vector<1x32x1024xf32> to vector<1x32x960xf32>
    %44 = vector.broadcast %42 : vector<1x32x1xf32> to vector<1x32x960xf32>
    %45 = arith.mulf %44, %43 : vector<1x32x960xf32>
    %46 = arith.addf %39, %45 : vector<1x32x960xf32>
    %47 = vector.extract_strided_slice %0 {offsets = [0, 6], sizes = [32, 1], strides = [1, 1]} : vector<32x9xf32> to vector<32x1xf32>
    %48 = vector.shape_cast %47 : vector<32x1xf32> to vector<32xf32>
    %49 = vector.shape_cast %48 : vector<32xf32> to vector<1x32x1xf32>
    %50 = vector.extract_strided_slice %5 {offsets = [0, 0, 56], sizes = [1, 32, 960], strides = [1, 1, 1]} : vector<1x32x1024xf32> to vector<1x32x960xf32>
    %51 = vector.broadcast %49 : vector<1x32x1xf32> to vector<1x32x960xf32>
    %52 = arith.mulf %51, %50 : vector<1x32x960xf32>
    %53 = arith.addf %46, %52 : vector<1x32x960xf32>
    %54 = vector.extract_strided_slice %0 {offsets = [0, 7], sizes = [32, 1], strides = [1, 1]} : vector<32x9xf32> to vector<32x1xf32>
    %55 = vector.shape_cast %54 : vector<32x1xf32> to vector<32xf32>
    %56 = vector.shape_cast %55 : vector<32xf32> to vector<1x32x1xf32>
    %57 = vector.extract_strided_slice %5 {offsets = [0, 0, 57], sizes = [1, 32, 960], strides = [1, 1, 1]} : vector<1x32x1024xf32> to vector<1x32x960xf32>
    %58 = vector.broadcast %56 : vector<1x32x1xf32> to vector<1x32x960xf32>
    %59 = arith.mulf %58, %57 : vector<1x32x960xf32>
    %60 = arith.addf %53, %59 : vector<1x32x960xf32>
    %61 = vector.extract_strided_slice %0 {offsets = [0, 8], sizes = [32, 1], strides = [1, 1]} : vector<32x9xf32> to vector<32x1xf32>
    %62 = vector.shape_cast %61 : vector<32x1xf32> to vector<32xf32>
    %63 = vector.shape_cast %62 : vector<32xf32> to vector<1x32x1xf32>
    %64 = vector.extract_strided_slice %5 {offsets = [0, 0, 58], sizes = [1, 32, 960], strides = [1, 1, 1]} : vector<1x32x1024xf32> to vector<1x32x960xf32>
    %65 = vector.broadcast %63 : vector<1x32x1xf32> to vector<1x32x960xf32>
    %66 = arith.mulf %65, %64 : vector<1x32x960xf32>
    %67 = arith.addf %60, %66 : vector<1x32x960xf32>
    %68 = vector.broadcast %2 : vector<1x32x1xf32> to vector<1x32x960xf32>
    %69 = arith.addf %67, %68 : vector<1x32x960xf32>
    %cst = arith.constant 0.000000e+00 : f32
    %70 = vector.broadcast %cst : f32 to vector<1x32x960xf32>
    %71 = arith.maximumf %69, %70 : vector<1x32x960xf32>
    %72 = arith.truncf %71 : vector<1x32x960xf32> to vector<1x32x960xbf16>
    %73 = vector.shape_cast %72 : vector<1x32x960xbf16> to vector<32x960xbf16>
    %74 = vector.extract_strided_slice %73 {offsets = [0, 0], sizes = [32, 896], strides = [1, 1]} : vector<32x960xbf16> to vector<32x896xbf16>
    %c0_6 = arith.constant 0 : index
    %c0_7 = arith.constant 0 : index
    %75 = vector.load %arg8[%c0_6, %c0_7] : memref<288x896xbf16, #tpu.memory_space<vmem>>, vector<32x896xbf16>
    tpu.vector_store %arg8[%c0_6, %c0_7], %74 {strides = array<i32>} : memref<288x896xbf16, #tpu.memory_space<vmem>>, vector<32x896xbf16>,
    %76 = vector.extract_strided_slice %73 {offsets = [0, 1], sizes = [32, 896], strides = [1, 1]} : vector<32x960xbf16> to vector<32x896xbf16>
    %c32 = arith.constant 32 : index
    %c0_8 = arith.constant 0 : index
    %77 = vector.load %arg8[%c32, %c0_8] : memref<288x896xbf16, #tpu.memory_space<vmem>>, vector<32x896xbf16>
    tpu.vector_store %arg8[%c32, %c0_8], %76 {strides = array<i32>} : memref<288x896xbf16, #tpu.memory_space<vmem>>, vector<32x896xbf16>,
    %78 = vector.extract_strided_slice %73 {offsets = [0, 2], sizes = [32, 896], strides = [1, 1]} : vector<32x960xbf16> to vector<32x896xbf16>
    %c64 = arith.constant 64 : index
    %c0_9 = arith.constant 0 : index
    %79 = vector.load %arg8[%c64, %c0_9] : memref<288x896xbf16, #tpu.memory_space<vmem>>, vector<32x896xbf16>
    tpu.vector_store %arg8[%c64, %c0_9], %78 {strides = array<i32>} : memref<288x896xbf16, #tpu.memory_space<vmem>>, vector<32x896xbf16>,
    %80 = vector.extract_strided_slice %73 {offsets = [0, 28], sizes = [32, 896], strides = [1, 1]} : vector<32x960xbf16> to vector<32x896xbf16>
    %c96 = arith.constant 96 : index
    %c0_10 = arith.constant 0 : index
    %81 = vector.load %arg8[%c96, %c0_10] : memref<288x896xbf16, #tpu.memory_space<vmem>>, vector<32x896xbf16>
    tpu.vector_store %arg8[%c96, %c0_10], %80 {strides = array<i32>} : memref<288x896xbf16, #tpu.memory_space<vmem>>, vector<32x896xbf16>,
    %82 = vector.extract_strided_slice %73 {offsets = [0, 29], sizes = [32, 896], strides = [1, 1]} : vector<32x960xbf16> to vector<32x896xbf16>
    %c128 = arith.constant 128 : index
    %c0_11 = arith.constant 0 : index
    %83 = vector.load %arg8[%c128, %c0_11] : memref<288x896xbf16, #tpu.memory_space<vmem>>, vector<32x896xbf16>
    tpu.vector_store %arg8[%c128, %c0_11], %82 {strides = array<i32>} : memref<288x896xbf16, #tpu.memory_space<vmem>>, vector<32x896xbf16>,
    %84 = vector.extract_strided_slice %73 {offsets = [0, 30], sizes = [32, 896], strides = [1, 1]} : vector<32x960xbf16> to vector<32x896xbf16>
    %c160 = arith.constant 160 : index
    %c0_12 = arith.constant 0 : index
    %85 = vector.load %arg8[%c160, %c0_12] : memref<288x896xbf16, #tpu.memory_space<vmem>>, vector<32x896xbf16>
    tpu.vector_store %arg8[%c160, %c0_12], %84 {strides = array<i32>} : memref<288x896xbf16, #tpu.memory_space<vmem>>, vector<32x896xbf16>,
    %86 = vector.extract_strided_slice %73 {offsets = [0, 56], sizes = [32, 896], strides = [1, 1]} : vector<32x960xbf16> to vector<32x896xbf16>
    %c192 = arith.constant 192 : index
    %c0_13 = arith.constant 0 : index
    %87 = vector.load %arg8[%c192, %c0_13] : memref<288x896xbf16, #tpu.memory_space<vmem>>, vector<32x896xbf16>
    tpu.vector_store %arg8[%c192, %c0_13], %86 {strides = array<i32>} : memref<288x896xbf16, #tpu.memory_space<vmem>>, vector<32x896xbf16>,
    %88 = vector.extract_strided_slice %73 {offsets = [0, 57], sizes = [32, 896], strides = [1, 1]} : vector<32x960xbf16> to vector<32x896xbf16>
    %c224 = arith.constant 224 : index
    %c0_14 = arith.constant 0 : index
    %89 = vector.load %arg8[%c224, %c0_14] : memref<288x896xbf16, #tpu.memory_space<vmem>>, vector<32x896xbf16>
    tpu.vector_store %arg8[%c224, %c0_14], %88 {strides = array<i32>} : memref<288x896xbf16, #tpu.memory_space<vmem>>, vector<32x896xbf16>,
    %90 = vector.extract_strided_slice %73 {offsets = [0, 58], sizes = [32, 896], strides = [1, 1]} : vector<32x960xbf16> to vector<32x896xbf16>
    %c256 = arith.constant 256 : index
    %c0_15 = arith.constant 0 : index
    %91 = vector.load %arg8[%c256, %c0_15] : memref<288x896xbf16, #tpu.memory_space<vmem>>, vector<32x896xbf16>
    tpu.vector_store %arg8[%c256, %c0_15], %90 {strides = array<i32>} : memref<288x896xbf16, #tpu.memory_space<vmem>>, vector<32x896xbf16>,
    %c0_16 = arith.constant 0 : index
    %c0_17 = arith.constant 0 : index
    %92 = vector.load %arg4[%c0_16, %c0_17] : memref<64x288xbf16, #tpu.memory_space<vmem>>, vector<64x288xbf16>
    %c0_18 = arith.constant 0 : index
    %c0_19 = arith.constant 0 : index
    %93 = vector.load %arg8[%c0_18, %c0_19] : memref<288x896xbf16, #tpu.memory_space<vmem>>, vector<288x896xbf16>
    %cst_20 = arith.constant dense<0.000000e+00> : vector<64x896xf32>
    %94 = tpu.matmul %92, %93, %cst_20 {dimension_numbers = #tpu.dot_dimension_numbers<[1], [0], [0], [1], [0, 0, 1, 1], [], []>} : vector<64x288xbf16>, vector<288x896xbf16>, vector<64x896xf32> -> vector<64x896xf32>
    %c0_21 = arith.constant 0 : index
    %c0_22 = arith.constant 0 : index
    %95 = vector.load %arg5[%c0_21, %c0_22] : memref<64x1xf32, #tpu.memory_space<vmem>>, vector<64x1xf32>
    %96 = vector.broadcast %95 : vector<64x1xf32> to vector<64x896xf32>
    %97 = arith.addf %94, %96 : vector<64x896xf32>
    %cst_23 = arith.constant 0.000000e+00 : f32
    %98 = vector.broadcast %cst_23 : f32 to vector<64x896xf32>
    %99 = arith.maximumf %97, %98 : vector<64x896xf32>
    %100 = arith.truncf %99 : vector<64x896xf32> to vector<64x896xbf16>
    %101 = vector.extract_strided_slice %100 {offsets = [0, 0], sizes = [64, 784], strides = [1, 1]} : vector<64x896xbf16> to vector<64x784xbf16>
    %102 = vector.extract_strided_slice %100 {offsets = [0, 1], sizes = [64, 784], strides = [1, 1]} : vector<64x896xbf16> to vector<64x784xbf16>
    %103 = arith.maximumf %101, %102 : vector<64x784xbf16>
    %104 = vector.extract_strided_slice %100 {offsets = [0, 28], sizes = [64, 784], strides = [1, 1]} : vector<64x896xbf16> to vector<64x784xbf16>
    %105 = vector.extract_strided_slice %100 {offsets = [0, 29], sizes = [64, 784], strides = [1, 1]} : vector<64x896xbf16> to vector<64x784xbf16>
    %106 = arith.maximumf %104, %105 : vector<64x784xbf16>
    %107 = arith.maximumf %103, %106 : vector<64x784xbf16>
    %c0_24 = arith.constant 0 : index
    %c0_25 = arith.constant 0 : index
    %108 = vector.load %arg9[%c0_24, %c0_25] : memref<64x784xbf16, #tpu.memory_space<vmem>>, vector<64x784xbf16>
    tpu.vector_store %arg9[%c0_24, %c0_25], %107 {strides = array<i32>} : memref<64x784xbf16, #tpu.memory_space<vmem>>, vector<64x784xbf16>,
    %c0_26 = arith.constant 0 : index
    %c0_27 = arith.constant 0 : index
    %109 = vector.load %arg9[%c0_26, %c0_27] : memref<64x784xbf16, #tpu.memory_space<vmem>>, vector<64x784xbf16>
    %c0_28 = arith.constant 0 : index
    %c0_29 = arith.constant 0 : index
    %110 = vector.load %arg6[%c0_28, %c0_29] : memref<784x144xbf16, #tpu.memory_space<vmem>>, vector<784x144xbf16>
    %cst_30 = arith.constant dense<0.000000e+00> : vector<64x144xf32>
    %111 = tpu.matmul %109, %110, %cst_30 {dimension_numbers = #tpu.dot_dimension_numbers<[1], [0], [0], [1], [0, 0, 1, 1], [], []>} : vector<64x784xbf16>, vector<784x144xbf16>, vector<64x144xf32> -> vector<64x144xf32>
    %112 = arith.truncf %111 : vector<64x144xf32> to vector<64x144xbf16>
    %c0_31 = arith.constant 0 : index
    %c0_32 = arith.constant 0 : index
    %c0_33 = arith.constant 0 : index
    %113 = vector.load %arg7[%c0_31, %c0_32, %c0_33] : memref<1x64x144xbf16, #tpu.memory_space<vmem>>, vector<1x64x144xbf16>
    %114 = vector.shape_cast %113 : vector<1x64x144xbf16> to vector<64x144xbf16>
    %115 = vector.shape_cast %112 : vector<64x144xbf16> to vector<1x64x144xbf16>
    tpu.vector_store %arg7[%c0_31, %c0_32, %c0_33], %115 {strides = array<i32>} : memref<1x64x144xbf16, #tpu.memory_space<vmem>>, vector<1x64x144xbf16>,
    return
  }
  func.func @transform_0(%arg0: i32) -> (i32, i32, i32) {
    %c0_i32 = arith.constant 0 : i32
    %c0_i32_0 = arith.constant 0 : i32
    %c0_i32_1 = arith.constant 0 : i32
    return %arg0, %c0_i32, %c0_i32_0 : i32, i32, i32
  }
  func.func @transform_1(%arg0: i32) -> (i32, i32) {
    %c0_i32 = arith.constant 0 : i32
    %c0_i32_0 = arith.constant 0 : i32
    %c0_i32_1 = arith.constant 0 : i32
    return %c0_i32, %c0_i32_0 : i32, i32
  }
  func.func @transform_2(%arg0: i32) -> (i32, i32) {
    %c0_i32 = arith.constant 0 : i32
    %c0_i32_0 = arith.constant 0 : i32
    %c0_i32_1 = arith.constant 0 : i32
    return %c0_i32, %c0_i32_0 : i32, i32
  }
  func.func @transform_3(%arg0: i32) -> (i32, i32) {
    %c0_i32 = arith.constant 0 : i32
    %c0_i32_0 = arith.constant 0 : i32
    %c0_i32_1 = arith.constant 0 : i32
    return %c0_i32, %c0_i32_0 : i32, i32
  }
  func.func @transform_4(%arg0: i32) -> (i32, i32) {
    %c0_i32 = arith.constant 0 : i32
    %c0_i32_0 = arith.constant 0 : i32
    %c0_i32_1 = arith.constant 0 : i32
    return %c0_i32, %c0_i32_0 : i32, i32
  }
  func.func @transform_5(%arg0: i32) -> (i32, i32) {
    %c0_i32 = arith.constant 0 : i32
    %c0_i32_0 = arith.constant 0 : i32
    %c0_i32_1 = arith.constant 0 : i32
    return %c0_i32, %c0_i32_0 : i32, i32
  }
  func.func @transform_6(%arg0: i32) -> (i32, i32, i32) {
    %c0_i32 = arith.constant 0 : i32
    %c0_i32_0 = arith.constant 0 : i32
    %c0_i32_1 = arith.constant 0 : i32
    return %arg0, %c0_i32, %c0_i32_0 : i32, i32, i32
  }
}

module attributes {stable_mosaic.version = 11 : i64} {
  func.func @_fc_kernel(%arg0: i32, %arg1: memref<8x9216xbf16, #tpu.memory_space<vmem>>, %arg2: memref<9216x128xbf16, #tpu.memory_space<vmem>>, %arg3: memref<1x128xf32, #tpu.memory_space<vmem>>, %arg4: memref<128x128xbf16, #tpu.memory_space<vmem>>, %arg5: memref<1x128xf32, #tpu.memory_space<vmem>>, %arg6: memref<8x128xf32, #tpu.memory_space<vmem>>) attributes {dimension_semantics = [#tpu.dimension_semantics<parallel>], iteration_bounds = array<i64: 1>, scalar_prefetch = 0 : i64, scratch_operands = 0 : i64, tpu.core_type = #tpu.core_type<tc>, window_params = [{transform_indices = @transform_0, window_bounds = array<i64: 8, 9216>}, {pipeline_mode = #tpu.pipeline_mode<synchronous>, transform_indices = @transform_1, window_bounds = array<i64: 9216, 128>}, {pipeline_mode = #tpu.pipeline_mode<synchronous>, transform_indices = @transform_2, window_bounds = array<i64: 1, 128>}, {pipeline_mode = #tpu.pipeline_mode<synchronous>, transform_indices = @transform_3, window_bounds = array<i64: 128, 128>}, {pipeline_mode = #tpu.pipeline_mode<synchronous>, transform_indices = @transform_4, window_bounds = array<i64: 1, 128>}, {transform_indices = @transform_5, window_bounds = array<i64: 8, 128>}]} {
    %c0 = arith.constant 0 : index
    %c0_0 = arith.constant 0 : index
    %0 = vector.load %arg1[%c0, %c0_0] : memref<8x9216xbf16, #tpu.memory_space<vmem>>, vector<8x9216xbf16>
    %c0_1 = arith.constant 0 : index
    %c0_2 = arith.constant 0 : index
    %1 = vector.load %arg2[%c0_1, %c0_2] : memref<9216x128xbf16, #tpu.memory_space<vmem>>, vector<9216x128xbf16>
    %cst = arith.constant dense<0.000000e+00> : vector<8x128xf32>
    %2 = tpu.matmul %0, %1, %cst {dimension_numbers = #tpu.dot_dimension_numbers<[1], [0], [0], [1], [0, 0, 1, 1], [], []>} : vector<8x9216xbf16>, vector<9216x128xbf16>, vector<8x128xf32> -> vector<8x128xf32>
    %c0_3 = arith.constant 0 : index
    %c0_4 = arith.constant 0 : index
    %3 = vector.load %arg3[%c0_3, %c0_4] : memref<1x128xf32, #tpu.memory_space<vmem>>, vector<1x128xf32>
    %4 = vector.broadcast %3 : vector<1x128xf32> to vector<8x128xf32>
    %5 = arith.addf %2, %4 : vector<8x128xf32>
    %cst_5 = arith.constant 0.000000e+00 : f32
    %6 = vector.broadcast %cst_5 : f32 to vector<8x128xf32>
    %7 = arith.maximumf %5, %6 : vector<8x128xf32>
    %8 = arith.truncf %7 : vector<8x128xf32> to vector<8x128xbf16>
    %c0_6 = arith.constant 0 : index
    %c0_7 = arith.constant 0 : index
    %9 = vector.load %arg4[%c0_6, %c0_7] : memref<128x128xbf16, #tpu.memory_space<vmem>>, vector<128x128xbf16>
    %cst_8 = arith.constant dense<0.000000e+00> : vector<8x128xf32>
    %10 = tpu.matmul %8, %9, %cst_8 {dimension_numbers = #tpu.dot_dimension_numbers<[1], [0], [0], [1], [0, 0, 1, 1], [], []>} : vector<8x128xbf16>, vector<128x128xbf16>, vector<8x128xf32> -> vector<8x128xf32>
    %c0_9 = arith.constant 0 : index
    %c0_10 = arith.constant 0 : index
    %11 = vector.load %arg5[%c0_9, %c0_10] : memref<1x128xf32, #tpu.memory_space<vmem>>, vector<1x128xf32>
    %12 = vector.broadcast %11 : vector<1x128xf32> to vector<8x128xf32>
    %13 = arith.addf %10, %12 : vector<8x128xf32>
    %cst_11 = arith.constant dense<0xFF800000> : vector<8xf32>
    %14 = vector.multi_reduction <maximumf>, %13, %cst_11 [1] : vector<8x128xf32> to vector<8xf32>
    %15 = vector.shape_cast %14 : vector<8xf32> to vector<8x1xf32>
    %16 = vector.broadcast %15 : vector<8x1xf32> to vector<8x128xf32>
    %17 = arith.subf %13, %16 : vector<8x128xf32>
    %18 = math.exp %17 : vector<8x128xf32>
    %cst_12 = arith.constant dense<0.000000e+00> : vector<8xf32>
    %19 = vector.multi_reduction <add>, %18, %cst_12 [1] : vector<8x128xf32> to vector<8xf32>
    %20 = vector.shape_cast %19 : vector<8xf32> to vector<8x1xf32>
    %21 = math.log %20 : vector<8x1xf32>
    %22 = arith.addf %15, %21 : vector<8x1xf32>
    %23 = vector.broadcast %22 : vector<8x1xf32> to vector<8x128xf32>
    %24 = arith.subf %13, %23 : vector<8x128xf32>
    %c0_13 = arith.constant 0 : index
    %c0_14 = arith.constant 0 : index
    %25 = vector.load %arg6[%c0_13, %c0_14] : memref<8x128xf32, #tpu.memory_space<vmem>>, vector<8x128xf32>
    tpu.vector_store %arg6[%c0_13, %c0_14], %24 {strides = array<i32>} : memref<8x128xf32, #tpu.memory_space<vmem>>, vector<8x128xf32>,
    return
  }
  func.func @transform_0(%arg0: i32) -> (i32, i32) {
    %c0_i32 = arith.constant 0 : i32
    %c0_i32_0 = arith.constant 0 : i32
    return %arg0, %c0_i32 : i32, i32
  }
  func.func @transform_1(%arg0: i32) -> (i32, i32) {
    %c0_i32 = arith.constant 0 : i32
    %c0_i32_0 = arith.constant 0 : i32
    %c0_i32_1 = arith.constant 0 : i32
    return %c0_i32, %c0_i32_0 : i32, i32
  }
  func.func @transform_2(%arg0: i32) -> (i32, i32) {
    %c0_i32 = arith.constant 0 : i32
    %c0_i32_0 = arith.constant 0 : i32
    %c0_i32_1 = arith.constant 0 : i32
    return %c0_i32, %c0_i32_0 : i32, i32
  }
  func.func @transform_3(%arg0: i32) -> (i32, i32) {
    %c0_i32 = arith.constant 0 : i32
    %c0_i32_0 = arith.constant 0 : i32
    %c0_i32_1 = arith.constant 0 : i32
    return %c0_i32, %c0_i32_0 : i32, i32
  }
  func.func @transform_4(%arg0: i32) -> (i32, i32) {
    %c0_i32 = arith.constant 0 : i32
    %c0_i32_0 = arith.constant 0 : i32
    %c0_i32_1 = arith.constant 0 : i32
    return %c0_i32, %c0_i32_0 : i32, i32
  }
  func.func @transform_5(%arg0: i32) -> (i32, i32) {
    %c0_i32 = arith.constant 0 : i32
    %c0_i32_0 = arith.constant 0 : i32
    return %arg0, %c0_i32 : i32, i32
  }
}

</mosaic_0001>

<bundles_post_ra>
// kernel: mnist_forward.2
= control target key start
LH: loop header
LB: loop body
LE: loop exit
PB: predicated region body
PF: predicated region fallthrough
CT: control target
= control target key end

     0   :  { %11 = vsyncpa [#allocation5], 0  ;;  %s8828_s21 = smov 0   ;;  %s14351_s0 = inlined_call_operand.vmem [shape: f32[2,1,1024], index: 0, kind: input, shape index: {}]   ;;  %s14352_s1 = inlined_call_operand.vmem [shape: f32[32,9], index: 1, kind: input, shape index: {}]   ;;  %s14353_s2 = inlined_call_operand.vmem [shape: f32[32,1], index: 2, kind: input, shape index: {}]   ;;  %s14354_s3 = inlined_call_operand.hbm [shape: bf16[64,288], index: 3, kind: input, shape index: {}]   ;;  %s14355_s4 = inlined_call_operand.vmem [shape: f32[64,1], index: 4, kind: input, shape index: {}]   ;;  %s14356_s5 = inlined_call_operand.vmem [shape: bf16[784,144], index: 5, kind: input, shape index: {}]   ;;  %s14357_s6 = inlined_call_operand.vmem [shape: bf16[2,64,144], index: 6, kind: output, shape index: {}]  }
   0x1 LB: > { %s196_s24 = sshll.u32 %s14354_s3, 4  ;;  %s8837_s25 = sadd.s32 4294967295, %s8771_s21   ;;  %s8771_s21 = sphi %s8828_s21, %s17_s21   ;;  %s197_s24 = int_to_ptr.hbm [resolvable:$true] %s196_s24 }
   0x2   : > { %p7004_p0 = scmp.ge.s32.totalorder %s8771_s21, 1  ;;  %p179_p1 = scmp.lt.s32.totalorder %s8771_s21, 3 }
   0x3   : > { %p8389_p2 = scmp.eq.s32.totalorder %s8837_s25, 0  ;;  %s8773_s26 = smov [#allocation4]  }
   0x4   : > { %p180_p3 = pnand %p7004_p0, %p179_p1  ;;  %s198_s27 = sshll.u32 %s8773_s26, 4  ;;  %s199_s27 = int_to_ptr.vmem [resolvable:$true] %s198_s27 }
   0x5   : > { %s8774_s28 = smov 192   ;;  %s8775_s29 = smov 12  }
   0x6   : > { %p8385_p4 = pneg %p180_p3  ;;  %227 = sbr.rel (%p180_p3) target bundleno = 3075 (0xc03), region = 44 }
   0x8   : > { %p8386_p5 = pnand %p8389_p2, %p8385_p4 }
   0xa   : > { %8388 = dma.hbm_to_vmem [thread:$0]  (!%p8386_p5), %s197_s24, 1536, %s199_s27, [#allocation5], %s8774_s28, %s8774_s28, %s8775_s29  }
   0xb   : > { %8766 = dma.done.wait (%p8389_p2), [#allocation5], 1536  }
   0xc   : > { %8768 = vsyncadd (%p8389_p2), [#allocation5], 4294965760  ;;  %v8776_v0 = vmov 1   ;;  %v14358_v1 = vmov 0   ;;  %v8846_v2 = vld [vmem:[%s14352_s1] sm:$0xff]  ;;  %v8851_v3 = vld [vmem:[%s14352_s1 + $0x10] sm:$0xff] }
   0xd   : > { %8420 = vset.pattern.permute.xlu2 %v8776_v0  ;;  %8419 = vset.pattern.permute.xlu1 %v14358_v1  ;;  %v8859_v4 = vld [vmem:[%s14352_s1 + $0x8] sm:$0xff]  ;;  %v8864_v5 = vld [vmem:[%s14352_s1 + $0x18] sm:$0xff]  ;;  %v8778_v6 = vmov 2   ;;  %p257_p6 = scmp.lt.s32.totalorder %s8837_s25, 1  ;;  %s8779_s18 = smov 127   ;;  %vm489_vm0 = vcmask 1039360  }
   0xe   : > { %8421 = vset.pattern.permute.xlu0 %v8776_v0  ;;  %346 = vperm.xlu2 %8420, %v8846_v2   ;;  %s8780_s19 = smov 126   ;;  %s8782_s20 = smov 100   ;;  %vm726_vm1 = vcmask 1031168   ;;  %vm963_vm2 = vcmask 818176   ;;  %vm1200_vm3 = vcmask 809984   ;;  %vm1437_vm4 = vcmask 801792  }
   0xf   : > { %305 = vperm.xlu1 %8419, %v8851_v3   ;;  %354 = vperm.xlu0 %8421, %v8851_v3   ;;  %s15639_s25 = smov (!%p257_p6, %s8837_s25), 1  ;;  %s8784_s22 = smov 99   ;;  %vm1674_vm5 = vcmask 588800   ;;  %vm1911_vm6 = vcmask 580608   ;;  %vm2148_vm7 = vcmask 572416   ;;  %vm2421_vm8 = vcmask 1043456  }
  0x10   : > { %s7009_s14 = sshll.u32 %s15639_s25, 3  ;;  %s8786_s23 = smov 98   ;;  %vm4162_vm9 = vcmask 261120   ;;  %vm5707_vm10 = vcmask 125952   ;;  %vm6497_vm11 = vcmask 130048   ;;  %vm6925_vm12 = vcmask 130052  }
  0x11   : > { %s260_s17 = scalar_lea.vmem %s14351_s0, %s7009_s14  ;;  %s8788_s9 = smov 72   ;;  %vm14295_vm13 = vmor %vm6925_vm12, %vm2421_vm8 }
  0x12   : > { %v275_v7 = vld [vmem:[%s260_s17] sm:$0xff]  ;;  %s8791_s10 = smov 71   ;;  %s8792_s11 = smov 70  }
  0x13   : > { %v8881_v8 = vperm.slane %v275_v7, 3  ;;  %v8883_v9 = vperm.slane %v275_v7, 1  ;;  %v8885_v10 = vperm.slane %v275_v7, 0  ;;  %v8893_v15 = vperm.slane %v275_v7, 6 }
  0x14   : > { %v8895_v16 = vperm.slane %v275_v7, 4  ;;  %v8897_v17 = vperm.slane %v275_v7, 2  ;;  %v8905_v21 = vperm.slane %v275_v7, 7  ;;  %v8907_v23 = vperm.slane %v275_v7, 5 }
  0x15   : > { %14797 = vst [vmem:[#allocation7_spill] sm:$0xff] %v8883_v9 }
  0x16   : > { %350 = vperm.xlu2 %8420, %v8859_v4   ;;  %14798 = vst [vmem:[#allocation8_spill] sm:$0xff] %v8885_v10 }
  0x17   : > { %310 = vperm.xlu1 %8419, %v8864_v5   ;;  %8424 = vset.pattern.permute.xlu0 %v8778_v6  ;;  %14799 = vst [vmem:[#allocation9_spill] sm:$0xff] %v8893_v15 }
  0x18   : > { %587 = vperm.xlu0 %8424, %v8859_v4   ;;  %14800 = vst [vmem:[#allocation10_spill] sm:$0xff] %v8895_v16 }
  0x19   : > { %14801 = vst [vmem:[#allocation11_spill] sm:$0xff] %v8905_v21 }
  0x1a   : > { %14802 = vst [vmem:[#allocation12_spill] sm:$0xff] %v8907_v23 }
  0x1e   : > { %8423 = vset.pattern.permute.xlu2 %v8778_v6 }
  0x1f   : > { %8422 = vset.pattern.permute.xlu1 %v8776_v0  ;;  %583 = vperm.xlu2 %8423, %v8846_v2  }
  0x20   : > { %358 = vperm.xlu1 %8422, %v8864_v5  }
  0x27   : > { %595 = vperm.xlu2 %8423, %v8864_v5  }
  0x28   : > { %8425 = vset.pattern.permute.xlu1 %v8778_v6 }
  0x29   : > { %591 = vperm.xlu1 %8425, %v8851_v3  }
  0x68   : > { %v347_v11 = vpop.permute.xlu2 %346 }
  0x69   : > { %v364_v12 = vmul.f32 %v347_v11, %v8881_v8  ;;  %v362_v13 = vmul.f32 %v347_v11, %v8883_v9  ;;  %v361_v14 = vmul.f32 %v347_v11, %v8885_v10  ;;  %v367_v18 = vmul.f32 %v347_v11, %v8893_v15 }
  0x6a   : > { %v365_v19 = vmul.f32 %v347_v11, %v8895_v16  ;;  %v363_v20 = vmul.f32 %v347_v11, %v8897_v17  ;;  %v368_v24 = vmul.f32 %v347_v11, %v8905_v21  ;;  %v366_v26 = vmul.f32 %v347_v11, %v8907_v23 }
  0x6b   : > { %431 = vrot.lane.b32.xlu0 %v364_v12, %s8779_s18  ;;  %427 = vrot.lane.b32.xlu1 %v362_v13, %s8779_s18 }
  0x6c   : > { %425 = vrot.lane.b32.xlu2 %v361_v14, %s8779_s18 }
  0x70   : > { %v351_v22 = vpop.permute.xlu2 %350 }
  0x71   : > { %v370_v25 = vmul.f32 %v351_v22, %v8883_v9  ;;  %v371_v27 = vmul.f32 %v351_v22, %v8897_v17  ;;  %v373_v28 = vmul.f32 %v351_v22, %v8895_v16  ;;  %v369_v29 = vmul.f32 %v351_v22, %v8885_v10 }
  0x72   : > { %v374_v30 = vmul.f32 %v351_v22, %v8907_v23  ;;  %v376_v31 = vmul.f32 %v351_v22, %v8905_v21  ;;  %v372_v33 = vmul.f32 %v351_v22, %v8881_v8  ;;  %v375_v37 = vmul.f32 %v351_v22, %v8893_v15 }
  0x73   : > { %437 = vrot.lane.b32.xlu0 %v367_v18, %s8779_s18  ;;  %433 = vrot.lane.b32.xlu1 %v365_v19, %s8779_s18 }
  0x74   : > { %429 = vrot.lane.b32.xlu2 %v363_v20, %s8779_s18 }
  0x79   : > { %v584_v52 = vpop.permute.xlu2 %583 }
  0x7a   : > { %v600_v53 = vmul.f32 %v584_v52, %v8897_v17  ;;  %v603_v57 = vmul.f32 %v584_v52, %v8907_v23  ;;  %v598_v58 = vmul.f32 %v584_v52, %v8885_v10  ;;  %v599_v59 = vmul.f32 %v584_v52, %v8883_v9 }
  0x7b   : > { %439 = vrot.lane.b32.xlu1 %v368_v24, %s8779_s18  ;;  %443 = vrot.lane.b32.xlu0 %v370_v25, %s8779_s18  ;;  %v601_v63 = vmul.f32 %v584_v52, %v8881_v8  ;;  %v602_v0 = vmul.f32 %v584_v52, %v8895_v16  ;;  %v604_v11 = vmul.f32 %v584_v52, %v8893_v15 }
  0x7c   : > { %435 = vrot.lane.b32.xlu2 %v366_v26, %s8779_s18  ;;  %v605_v12 = vmul.f32 %v584_v52, %v8905_v21 }
  0x81   : > { %v8923_v32 = vpop.permute.xlu1 %305  ;;  %v355_v34 = vpop.permute.xlu0 %354 }
  0x82   : > { %14803 = vst [vmem:[#allocation13_spill] sm:$0xff] %v8923_v32  ;;  %v377_v35 = vmul.f32 %v355_v34, %v8885_v10  ;;  %v379_v36 = vmul.f32 %v355_v34, %v8897_v17  ;;  %v380_v39 = vmul.f32 %v355_v34, %v8881_v8  ;;  %v382_v40 = vmul.f32 %v355_v34, %v8907_v23  ;;  %v8967_v56 = vpop.permute.xlu2 %595 }
  0x83   : > { %445 = vrot.lane.b32.xlu1 %v371_v27, %s8779_s18  ;;  %449 = vrot.lane.b32.xlu0 %v373_v28, %s8779_s18  ;;  %v378_v41 = vmul.f32 %v355_v34, %v8883_v9  ;;  %v383_v44 = vmul.f32 %v355_v34, %v8893_v15  ;;  %v381_v45 = vmul.f32 %v355_v34, %v8895_v16 }
  0x84   : > { %441 = vrot.lane.b32.xlu2 %v369_v29, %s8779_s18  ;;  %v384_v48 = vmul.f32 %v355_v34, %v8905_v21  ;;  %v622_v52 = vmul.f32 %v8967_v56, %v8885_v10 }
  0x89   : > { %v8934_v38 = vpop.permute.xlu1 %310 }
  0x8a   : > { %14804 = vst [vmem:[#allocation14_spill] sm:$0xff] %v8934_v38  ;;  %v588_v60 = vpop.permute.xlu0 %587 }
  0x8b   : > { %451 = vrot.lane.b32.xlu1 %v374_v30, %s8779_s18  ;;  %455 = vrot.lane.b32.xlu0 %v376_v31, %s8779_s18  ;;  %v606_v62 = vmul.f32 %v588_v60, %v8885_v10  ;;  %v609_v7 = vmul.f32 %v588_v60, %v8881_v8  ;;  %v612_v14 = vmul.f32 %v588_v60, %v8893_v15  ;;  %v8781_v31 = vmov 3  }
  0x8c   : > { %447 = vrot.lane.b32.xlu2 %v372_v33, %s8779_s18  ;;  %v607_v18 = vmul.f32 %v588_v60, %v8883_v9  ;;  %v608_v20 = vmul.f32 %v588_v60, %v8897_v17  ;;  %v610_v26 = vmul.f32 %v588_v60, %v8895_v16  ;;  %v611_v27 = vmul.f32 %v588_v60, %v8907_v23 }
  0x8d   : > { %8426 = vset.pattern.permute.xlu0 %v8781_v31  ;;  %8427 = vset.pattern.permute.xlu1 %v8781_v31  ;;  %v613_v34 = vmul.f32 %v588_v60, %v8905_v21 }
  0x8e   : > { %8428 = vset.pattern.permute.xlu2 %v8781_v31 }
  0x92   : > { %v359_v42 = vpop.permute.xlu1 %358 }
  0x93   : > { %457 = vrot.lane.b32.xlu1 %v377_v35, %s8779_s18  ;;  %461 = vrot.lane.b32.xlu0 %v379_v36, %s8779_s18  ;;  %v385_v43 = vmul.f32 %v359_v42, %v8885_v10  ;;  %v386_v46 = vmul.f32 %v359_v42, %v8883_v9  ;;  %v388_v47 = vmul.f32 %v359_v42, %v8881_v8 }
  0x94   : > { %453 = vrot.lane.b32.xlu2 %v375_v37, %s8779_s18  ;;  %v389_v49 = vmul.f32 %v359_v42, %v8895_v16  ;;  %v391_v50 = vmul.f32 %v359_v42, %v8893_v15  ;;  %v387_v51 = vmul.f32 %v359_v42, %v8897_v17  ;;  %v392_v54 = vmul.f32 %v359_v42, %v8905_v21 }
  0x95   : > { %v390_v55 = vmul.f32 %v359_v42, %v8907_v23 }
  0x9b   : > { %463 = vrot.lane.b32.xlu1 %v380_v39, %s8779_s18  ;;  %467 = vrot.lane.b32.xlu0 %v382_v40, %s8779_s18  ;;  %v592_v13 = vpop.permute.xlu1 %591 }
  0x9c   : > { %459 = vrot.lane.b32.xlu2 %v378_v41, %s8779_s18  ;;  %v615_v25 = vmul.f32 %v592_v13, %v8883_v9  ;;  %v618_v33 = vmul.f32 %v592_v13, %v8895_v16  ;;  %v614_v35 = vmul.f32 %v592_v13, %v8885_v10  ;;  %v621_v40 = vmul.f32 %v592_v13, %v8905_v21 }
  0x9d   : > { %v616_v41 = vmul.f32 %v592_v13, %v8897_v17  ;;  %v617_v42 = vmul.f32 %v592_v13, %v8881_v8 }
  0xa3   : > { %469 = vrot.lane.b32.xlu1 %v383_v44, %s8779_s18  ;;  %473 = vrot.lane.b32.xlu0 %v385_v43, %s8779_s18 }
  0xa4   : > { %465 = vrot.lane.b32.xlu2 %v381_v45, %s8779_s18 }
  0xab   : > { %475 = vrot.lane.b32.xlu1 %v386_v46, %s8779_s18  ;;  %479 = vrot.lane.b32.xlu0 %v388_v47, %s8779_s18  ;;  %v619_v46 = vmul.f32 %v592_v13, %v8907_v23  ;;  %v624_v47 = vmul.f32 %v8967_v56, %v8897_v17 }
  0xac   : > { %471 = vrot.lane.b32.xlu2 %v384_v48, %s8779_s18  ;;  %v620_v48 = vmul.f32 %v592_v13, %v8893_v15 }
  0xb3   : > { %481 = vrot.lane.b32.xlu1 %v389_v49, %s8779_s18  ;;  %485 = vrot.lane.b32.xlu0 %v391_v50, %s8779_s18 }
  0xb4   : > { %477 = vrot.lane.b32.xlu2 %v387_v51, %s8779_s18  ;;  %v627_v51 = vmul.f32 %v8967_v56, %v8907_v23 }
  0xbb   : > { %487 = vrot.lane.b32.xlu1 %v392_v54, %s8779_s18  ;;  %666 = vrot.lane.b32.xlu0 %v600_v53, %s8780_s19  ;;  %v623_v54 = vmul.f32 %v8967_v56, %v8883_v9 }
  0xbc   : > { %483 = vrot.lane.b32.xlu2 %v390_v55, %s8779_s18 }
  0xc3   : > { %672 = vrot.lane.b32.xlu0 %v603_v57, %s8780_s19  ;;  %662 = vrot.lane.b32.xlu1 %v598_v58, %s8780_s19  ;;  %v625_v58 = vmul.f32 %v8967_v56, %v8881_v8 }
  0xc4   : > { %664 = vrot.lane.b32.xlu2 %v599_v59, %s8780_s19  ;;  %v626_v59 = vmul.f32 %v8967_v56, %v8895_v16 }
  0xc6   : > { %v8975_v61 = vpop.permute.xlu2 %425 }
  0xcb   : > { %678 = vrot.lane.b32.xlu0 %v606_v62, %s8780_s19  ;;  %668 = vrot.lane.b32.xlu1 %v601_v63, %s8780_s19 }
  0xcc   : > { %670 = vrot.lane.b32.xlu2 %v602_v0, %s8780_s19  ;;  %v628_v0 = vmul.f32 %v8967_v56, %v8893_v15 }
  0xce   : > { %v8983_v6 = vpop.permute.xlu2 %429 }
  0xd3   : > { %684 = vrot.lane.b32.xlu0 %v609_v7, %s8780_s19  ;;  %674 = vrot.lane.b32.xlu1 %v604_v11, %s8780_s19  ;;  %v629_v7 = vmul.f32 %v8967_v56, %v8905_v21 }
  0xd4   : > { %676 = vrot.lane.b32.xlu2 %v605_v12, %s8780_s19 }
  0xd6   : > { %v8993_v19 = vpop.permute.xlu2 %435 }
  0xd7   : > { %14805 = vst [vmem:[#allocation15_spill] sm:$0xff] %v8993_v19 }
  0xdb   : > { %690 = vrot.lane.b32.xlu0 %v612_v14, %s8780_s19  ;;  %680 = vrot.lane.b32.xlu1 %v607_v18, %s8780_s19 }
  0xdc   : > { %682 = vrot.lane.b32.xlu2 %v608_v20, %s8780_s19 }
  0xdd   : > { %v8999_v22 = vpop.permute.xlu0 %431  ;;  %v9001_v24 = vpop.permute.xlu1 %427 }
  0xde   : > { %v9008_v28 = vpop.permute.xlu2 %441 }
  0xe3   : > { %696 = vrot.lane.b32.xlu0 %v615_v25, %s8780_s19  ;;  %686 = vrot.lane.b32.xlu1 %v610_v26, %s8780_s19 }
  0xe4   : > { %688 = vrot.lane.b32.xlu2 %v611_v27, %s8780_s19 }
  0xe5   : > { %v9011_v29 = vpop.permute.xlu0 %437  ;;  %v9013_v30 = vpop.permute.xlu1 %433 }
  0xe6   : > { %14806 = vst [vmem:[#allocation16_spill] sm:$0xff] %v9011_v29  ;;  %v9025_v39 = vpop.permute.xlu2 %447 }
  0xe7   : > { %14807 = vst [vmem:[#allocation17_spill] sm:$0xff] %v9013_v30 }
  0xe8   : > { %14809 = vst [vmem:[#allocation19_spill] sm:$0xff] %v9025_v39 }
  0xeb   : > { %702 = vrot.lane.b32.xlu0 %v618_v33, %s8780_s19  ;;  %692 = vrot.lane.b32.xlu1 %v613_v34, %s8780_s19 }
  0xec   : > { %694 = vrot.lane.b32.xlu2 %v614_v35, %s8780_s19 }
  0xed   : > { %v9021_v36 = vpop.permute.xlu1 %439  ;;  %v9023_v37 = vpop.permute.xlu0 %443 }
  0xee   : > { %14808 = vst [vmem:[#allocation18_spill] sm:$0xff] %v9021_v36  ;;  %v9037_v45 = vpop.permute.xlu2 %453 }
  0xef   : > { %14811 = vst [vmem:[#allocation21_spill] sm:$0xff] %v9037_v45 }
  0xf3   : > { %708 = vrot.lane.b32.xlu0 %v621_v40, %s8780_s19  ;;  %698 = vrot.lane.b32.xlu1 %v616_v41, %s8780_s19 }
  0xf4   : > { %700 = vrot.lane.b32.xlu2 %v617_v42, %s8780_s19 }
  0xf5   : > { %v9033_v43 = vpop.permute.xlu1 %445  ;;  %v9035_v44 = vpop.permute.xlu0 %449 }
  0xf6   : > { %14810 = vst [vmem:[#allocation20_spill] sm:$0xff] %v9035_v44  ;;  %v9054_v53 = vpop.permute.xlu2 %459  ;;  %v340_v44 = vmul.f32 %v8934_v38, %v8881_v8 }
  0xfb   : > { %704 = vrot.lane.b32.xlu1 %v619_v46, %s8780_s19  ;;  %714 = vrot.lane.b32.xlu0 %v624_v47, %s8780_s19 }
  0xfc   : > { %706 = vrot.lane.b32.xlu2 %v620_v48, %s8780_s19 }
  0xfd   : > { %v9046_v49 = vpop.permute.xlu1 %451  ;;  %v9048_v50 = vpop.permute.xlu0 %455 }
  0xfe   : > { %14812 = vst [vmem:[#allocation22_spill] sm:$0xff] %v9046_v49  ;;  %v9071_v60 = vpop.permute.xlu2 %465 }
  0xff   : > { %14813 = vst [vmem:[#allocation23_spill] sm:$0xff] %v9048_v50 }
 0x100   : > { %14814 = vst [vmem:[#allocation24_spill] sm:$0xff] %v9071_v60 }
 0x103   : > { %720 = vrot.lane.b32.xlu0 %v627_v51, %s8780_s19  ;;  %710 = vrot.lane.b32.xlu1 %v622_v52, %s8780_s19 }
 0x104   : > { %712 = vrot.lane.b32.xlu2 %v623_v54, %s8780_s19 }
 0x105   : > { %v9061_v55 = vpop.permute.xlu1 %457  ;;  %v9063_v57 = vpop.permute.xlu0 %461 }
 0x106   : > { %v9088_v13 = vpop.permute.xlu2 %471 }
 0x107   : > { %14817 = vst [vmem:[#allocation27_spill] sm:$0xff] %v9088_v13 }
 0x10b   : > { %820 = vperm.xlu0 %8426, %v8846_v2   ;;  %716 = vrot.lane.b32.xlu1 %v625_v58, %s8780_s19 }
 0x10c   : > { %718 = vrot.lane.b32.xlu2 %v626_v59, %s8780_s19 }
 0x10d   : > { %v9074_v62 = vpop.permute.xlu1 %463  ;;  %v9076_v63 = vpop.permute.xlu0 %467 }
 0x10e   : > { %14815 = vst [vmem:[#allocation25_spill] sm:$0xff] %v9076_v63  ;;  %v9096_v20 = vpop.permute.xlu2 %477 }
 0x113   : > { %722 = vrot.lane.b32.xlu1 %v628_v0, %s8780_s19 }
 0x114   : > { %724 = vrot.lane.b32.xlu2 %v629_v7, %s8780_s19 }
 0x115   : > { %v9084_v11 = vpop.permute.xlu1 %469  ;;  %v9086_v12 = vpop.permute.xlu0 %473 }
 0x116   : > { %14816 = vst [vmem:[#allocation26_spill] sm:$0xff] %v9084_v11  ;;  %v9103_v26 = vpop.permute.xlu2 %483 }
 0x117   : > { %14820 = vst [vmem:[#allocation30_spill] sm:$0xff] %v9103_v26 }
 0x11b   : > { %824 = vperm.xlu1 %8427, %v8859_v4  }
 0x11c   : > { %828 = vperm.xlu2 %8428, %v8851_v3  }
 0x11d   : > { %v9092_v14 = vpop.permute.xlu1 %475  ;;  %v9094_v18 = vpop.permute.xlu0 %479 }
 0x11e   : > { %v9109_v33 = vpop.permute.xlu2 %664 }
 0x11f   : > { %14823 = vst [vmem:[#allocation33_spill] sm:$0xff] %v9109_v33 }
 0x123   : > { %832 = vperm.xlu1 %8427, %v8864_v5  }
 0x125   : > { %v9099_v56 = vpop.permute.xlu1 %481  ;;  %v9101_v25 = vpop.permute.xlu0 %485 }
 0x126   : > { %14818 = vst [vmem:[#allocation28_spill] sm:$0xff] %v9099_v56  ;;  %v9119_v42 = vpop.permute.xlu2 %670 }
 0x127   : > { %14819 = vst [vmem:[#allocation29_spill] sm:$0xff] %v9101_v25 }
 0x128   : > { %14828 = vst [vmem:[#allocation38_spill] sm:$0xff] %v9119_v42 }
 0x12d   : > { %v9105_v27 = vpop.permute.xlu1 %487  ;;  %v9107_v31 = vpop.permute.xlu0 %666 }
 0x12e   : > { %14821 = vst [vmem:[#allocation31_spill] sm:$0xff] %v9105_v27  ;;  %v9125_v48 = vpop.permute.xlu2 %676 }
 0x12f   : > { %14822 = vst [vmem:[#allocation32_spill] sm:$0xff] %v9107_v31 }
 0x130   : > { %14831 = vst [vmem:[#allocation41_spill] sm:$0xff] %v9125_v48 }
 0x135   : > { %v9111_v34 = vpop.permute.xlu0 %672  ;;  %v9113_v35 = vpop.permute.xlu1 %662 }
 0x136   : > { %14824 = vst [vmem:[#allocation34_spill] sm:$0xff] %v9111_v34  ;;  %v9131_v54 = vpop.permute.xlu2 %682 }
 0x137   : > { %14825 = vst [vmem:[#allocation35_spill] sm:$0xff] %v9113_v35 }
 0x138   : > { %14834 = vst [vmem:[#allocation44_spill] sm:$0xff] %v9131_v54 }
 0x13d   : > { %v9115_v40 = vpop.permute.xlu0 %678  ;;  %v9117_v41 = vpop.permute.xlu1 %668 }
 0x13e   : > { %14826 = vst [vmem:[#allocation36_spill] sm:$0xff] %v9115_v40  ;;  %v9137_v0 = vpop.permute.xlu2 %688 }
 0x13f   : > { %14827 = vst [vmem:[#allocation37_spill] sm:$0xff] %v9117_v41 }
 0x140   : > { %14837 = vst [vmem:[#allocation47_spill] sm:$0xff] %v9137_v0 }
 0x145   : > { %v9121_v46 = vpop.permute.xlu0 %684  ;;  %v9123_v47 = vpop.permute.xlu1 %674 }
 0x146   : > { %14829 = vst [vmem:[#allocation39_spill] sm:$0xff] %v9121_v46  ;;  %v9147_v48 = vpop.permute.xlu2 %694 }
 0x147   : > { %14830 = vst [vmem:[#allocation40_spill] sm:$0xff] %v9123_v47 }
 0x148   : > { %14842 = vst [vmem:[#allocation52_spill] sm:$0xff] %v9147_v48 }
 0x14d   : > { %v9127_v51 = vpop.permute.xlu0 %690  ;;  %v9129_v52 = vpop.permute.xlu1 %680 }
 0x14e   : > { %14832 = vst [vmem:[#allocation42_spill] sm:$0xff] %v9127_v51  ;;  %v9153_v47 = vpop.permute.xlu2 %700 }
 0x14f   : > { %14833 = vst [vmem:[#allocation43_spill] sm:$0xff] %v9129_v52 }
 0x150   : > { %14844 = vst [vmem:[#allocation54_spill] sm:$0xff] %v9153_v47 }
 0x155   : > { %v9133_v58 = vpop.permute.xlu0 %696  ;;  %v9135_v59 = vpop.permute.xlu1 %686 }
 0x156   : > { %14835 = vst [vmem:[#allocation45_spill] sm:$0xff] %v9133_v58  ;;  %v9159_v51 = vpop.permute.xlu2 %706 }
 0x157   : > { %14836 = vst [vmem:[#allocation46_spill] sm:$0xff] %v9135_v59 }
 0x158   : > { %14846 = vst [vmem:[#allocation56_spill] sm:$0xff] %v9159_v51 }
 0x15d   : > { %v9139_v7 = vpop.permute.xlu0 %702  ;;  %v9141_v1 = vpop.permute.xlu1 %692 }
 0x15e   : > { %14838 = vst [vmem:[#allocation48_spill] sm:$0xff] %v9139_v7  ;;  %v9169_v49 = vpop.permute.xlu2 %712 }
 0x15f   : > { %14839 = vst [vmem:[#allocation49_spill] sm:$0xff] %v9141_v1 }
 0x165   : > { %v9143_v50 = vpop.permute.xlu0 %708  ;;  %v9145_v36 = vpop.permute.xlu1 %698 }
 0x166   : > { %14840 = vst [vmem:[#allocation50_spill] sm:$0xff] %v9143_v50 }
 0x167   : > { %14841 = vst [vmem:[#allocation51_spill] sm:$0xff] %v9145_v36 }
 0x16d   : > { %v9149_v13 = vpop.permute.xlu1 %704  ;;  %v9151_v27 = vpop.permute.xlu0 %714 }
 0x16e   : > { %14843 = vst [vmem:[#allocation53_spill] sm:$0xff] %v9149_v13  ;;  %v749_v39 = vsel %vm726_vm1, %v9169_v49, %v9151_v27 }
 0x175   : > { %v9155_v34 = vpop.permute.xlu0 %720  ;;  %v9157_v29 = vpop.permute.xlu1 %710 }
 0x176   : > { %14845 = vst [vmem:[#allocation55_spill] sm:$0xff] %v9155_v34 }
 0x17d   : > { %v821_v0 = vpop.permute.xlu0 %820  ;;  %v9161_v1 = vpop.permute.xlu1 %716 }
 0x17e   : > { %v836_v50 = vmul.f32 %v821_v0, %v8883_v9  ;;  %v835_v19 = vmul.f32 %v821_v0, %v8885_v10  ;;  %v837_v45 = vmul.f32 %v821_v0, %v8897_v17  ;;  %v839_v51 = vmul.f32 %v821_v0, %v8895_v16 }
 0x17f   : > { %v838_v13 = vmul.f32 %v821_v0, %v8881_v8  ;;  %v840_v25 = vmul.f32 %v821_v0, %v8907_v23 }
 0x180   : > { %901 = vrot.lane.b32.xlu0 %v836_v50, %s8782_s20  ;;  %899 = vrot.lane.b32.xlu2 %v835_v19, %s8782_s20  ;;  %v842_v19 = vmul.f32 %v821_v0, %v8905_v21 }
 0x181   : > { %903 = vrot.lane.b32.xlu1 %v837_v45, %s8782_s20  ;;  %v841_v45 = vmul.f32 %v821_v0, %v8893_v15 }
 0x185   : > { %v9171_v11 = vpop.permute.xlu1 %722 }
 0x186   : > { %14847 = vst [vmem:[#allocation57_spill] sm:$0xff] %v9171_v11  ;;  %v9182_v11 = vpop.permute.xlu2 %718 }
 0x187   : > { %14848 = vst [vmem:[#allocation58_spill] sm:$0xff] %v9182_v11 }
 0x188   : > { %907 = vrot.lane.b32.xlu0 %v839_v51, %s8782_s20  ;;  %905 = vrot.lane.b32.xlu2 %v838_v13, %s8782_s20 }
 0x189   : > { %909 = vrot.lane.b32.xlu1 %v840_v25, %s8782_s20 }
 0x18d   : > { %v825_v50 = vpop.permute.xlu1 %824 }
 0x18e   : > { %v843_v34 = vmul.f32 %v825_v50, %v8885_v10  ;;  %v845_v51 = vmul.f32 %v825_v50, %v8897_v17  ;;  %v844_v13 = vmul.f32 %v825_v50, %v8883_v9  ;;  %v846_v25 = vmul.f32 %v825_v50, %v8881_v8  ;;  %v9192_v0 = vpop.permute.xlu2 %724 }
 0x18f   : > { %14849 = vst [vmem:[#allocation59_spill] sm:$0xff] %v9192_v0  ;;  %v850_v0 = vmul.f32 %v825_v50, %v8905_v21 }
 0x190   : > { %913 = vrot.lane.b32.xlu0 %v842_v19, %s8782_s20  ;;  %911 = vrot.lane.b32.xlu2 %v841_v45, %s8782_s20  ;;  %v848_v19 = vmul.f32 %v825_v50, %v8907_v23  ;;  %v847_v45 = vmul.f32 %v825_v50, %v8895_v16 }
 0x191   : > { %915 = vrot.lane.b32.xlu1 %v843_v34, %s8782_s20  ;;  %v849_v34 = vmul.f32 %v825_v50, %v8893_v15 }
 0x196   : > { %v829_v63 = vpop.permute.xlu2 %828 }
 0x197   : > { %v856_v50 = vmul.f32 %v829_v63, %v8907_v23 }
 0x198   : > { %919 = vrot.lane.b32.xlu0 %v845_v51, %s8782_s20  ;;  %917 = vrot.lane.b32.xlu2 %v844_v13, %s8782_s20  ;;  %v851_v51 = vmul.f32 %v829_v63, %v8885_v10  ;;  %v852_v13 = vmul.f32 %v829_v63, %v8883_v9 }
 0x199   : > { %921 = vrot.lane.b32.xlu1 %v846_v25, %s8782_s20  ;;  %v8783_v25 = vmov 4  }
 0x19a   : > { %8429 = vset.pattern.permute.xlu1 %v8783_v25  ;;  %8431 = vset.pattern.permute.xlu0 %v8783_v25 }
 0x19b   : > { %8430 = vset.pattern.permute.xlu2 %v8783_v25 }
 0x1a0   : > { %925 = vrot.lane.b32.xlu0 %v848_v19, %s8782_s20  ;;  %923 = vrot.lane.b32.xlu2 %v847_v45, %s8782_s20  ;;  %v853_v19 = vmul.f32 %v829_v63, %v8897_v17  ;;  %v854_v45 = vmul.f32 %v829_v63, %v8881_v8 }
 0x1a1   : > { %927 = vrot.lane.b32.xlu1 %v849_v34, %s8782_s20  ;;  %v855_v34 = vmul.f32 %v829_v63, %v8895_v16 }
 0x1a8   : > { %929 = vrot.lane.b32.xlu2 %v850_v0, %s8782_s20  ;;  %931 = vrot.lane.b32.xlu0 %v851_v51, %s8782_s20  ;;  %v857_v0 = vmul.f32 %v829_v63, %v8893_v15  ;;  %v858_v51 = vmul.f32 %v829_v63, %v8905_v21 }
 0x1a9   : > { %933 = vrot.lane.b32.xlu1 %v852_v13, %s8782_s20  ;;  %v833_v13 = vpop.permute.xlu1 %832 }
 0x1aa   : > { %v859_v25 = vmul.f32 %v833_v13, %v8885_v10  ;;  %v862_v63 = vmul.f32 %v833_v13, %v8881_v8 }
 0x1b0   : > { %935 = vrot.lane.b32.xlu2 %v853_v19, %s8782_s20  ;;  %937 = vrot.lane.b32.xlu0 %v854_v45, %s8782_s20  ;;  %v860_v19 = vmul.f32 %v833_v13, %v8883_v9  ;;  %v861_v45 = vmul.f32 %v833_v13, %v8897_v17 }
 0x1b1   : > { %939 = vrot.lane.b32.xlu1 %v855_v34, %s8782_s20  ;;  %v863_v34 = vmul.f32 %v833_v13, %v8895_v16 }
 0x1b8   : > { %941 = vrot.lane.b32.xlu2 %v856_v50, %s8782_s20  ;;  %943 = vrot.lane.b32.xlu0 %v857_v0, %s8782_s20  ;;  %v864_v50 = vmul.f32 %v833_v13, %v8907_v23  ;;  %v865_v0 = vmul.f32 %v833_v13, %v8893_v15 }
 0x1b9   : > { %945 = vrot.lane.b32.xlu1 %v858_v51, %s8782_s20  ;;  %v866_v51 = vmul.f32 %v833_v13, %v8905_v21 }
 0x1c0   : > { %947 = vrot.lane.b32.xlu2 %v859_v25, %s8782_s20  ;;  %949 = vrot.lane.b32.xlu0 %v860_v19, %s8782_s20 }
 0x1c1   : > { %951 = vrot.lane.b32.xlu1 %v861_v45, %s8782_s20 }
 0x1c8   : > { %953 = vrot.lane.b32.xlu2 %v862_v63, %s8782_s20  ;;  %955 = vrot.lane.b32.xlu0 %v863_v34, %s8782_s20 }
 0x1c9   : > { %957 = vrot.lane.b32.xlu1 %v864_v50, %s8782_s20 }
 0x1d0   : > { %959 = vrot.lane.b32.xlu2 %v865_v0, %s8782_s20  ;;  %961 = vrot.lane.b32.xlu0 %v866_v51, %s8782_s20 }
 0x1d1   : > { %1057 = vperm.xlu1 %8429, %v8846_v2  }
 0x1d8   : > { %1061 = vperm.xlu2 %8430, %v8859_v4   ;;  %1065 = vperm.xlu0 %8431, %v8851_v3  }
 0x1d9   : > { %1069 = vperm.xlu1 %8429, %v8864_v5  }
 0x1da   : > { %v9239_v25 = vpop.permute.xlu2 %899 }
 0x1db   : > { %14850 = vst [vmem:[#allocation60_spill] sm:$0xff] %v9239_v25 }
 0x1e2   : > { %v9241_v19 = vpop.permute.xlu2 %905 }
 0x1e3   : > { %14851 = vst [vmem:[#allocation61_spill] sm:$0xff] %v9241_v19 }
 0x1ea   : > { %v9245_v63 = vpop.permute.xlu2 %911 }
 0x1eb   : > { %14853 = vst [vmem:[#allocation63_spill] sm:$0xff] %v9245_v63 }
 0x1f2   : > { %v9247_v13 = vpop.permute.xlu0 %901  ;;  %v9251_v50 = vpop.permute.xlu2 %917 }
 0x1f3   : > { %v9243_v45 = vpop.permute.xlu1 %903  ;;  %14854 = vst [vmem:[#allocation64_spill] sm:$0xff] %v9247_v13 }
 0x1f4   : > { %14852 = vst [vmem:[#allocation62_spill] sm:$0xff] %v9243_v45 }
 0x1f5   : > { %14856 = vst [vmem:[#allocation66_spill] sm:$0xff] %v9251_v50 }
 0x1fa   : > { %v9255_v51 = vpop.permute.xlu0 %907  ;;  %v9259_v59 = vpop.permute.xlu2 %923 }
 0x1fb   : > { %v9249_v34 = vpop.permute.xlu1 %909  ;;  %14858 = vst [vmem:[#allocation68_spill] sm:$0xff] %v9255_v51 }
 0x1fc   : > { %14855 = vst [vmem:[#allocation65_spill] sm:$0xff] %v9249_v34 }
 0x1fd   : > { %14860 = vst [vmem:[#allocation70_spill] sm:$0xff] %v9259_v59 }
 0x202   : > { %v9261_v25 = vpop.permute.xlu0 %913  ;;  %v9265_v45 = vpop.permute.xlu2 %929 }
 0x203   : > { %v9253_v0 = vpop.permute.xlu1 %915  ;;  %14861 = vst [vmem:[#allocation71_spill] sm:$0xff] %v9261_v25 }
 0x204   : > { %14857 = vst [vmem:[#allocation67_spill] sm:$0xff] %v9253_v0 }
 0x205   : > { %14863 = vst [vmem:[#allocation73_spill] sm:$0xff] %v9265_v45 }
 0x20a   : > { %v9267_v63 = vpop.permute.xlu0 %919  ;;  %v9271_v34 = vpop.permute.xlu2 %935 }
 0x20b   : > { %v9257_v26 = vpop.permute.xlu1 %921  ;;  %14864 = vst [vmem:[#allocation74_spill] sm:$0xff] %v9267_v63 }
 0x20c   : > { %14859 = vst [vmem:[#allocation69_spill] sm:$0xff] %v9257_v26 }
 0x20d   : > { %14866 = vst [vmem:[#allocation76_spill] sm:$0xff] %v9271_v34 }
 0x212   : > { %v9273_v50 = vpop.permute.xlu0 %925  ;;  %v9277_v51 = vpop.permute.xlu2 %941 }
 0x213   : > { %v9263_v19 = vpop.permute.xlu1 %927  ;;  %14867 = vst [vmem:[#allocation77_spill] sm:$0xff] %v9273_v50 }
 0x214   : > { %14862 = vst [vmem:[#allocation72_spill] sm:$0xff] %v9263_v19 }
 0x215   : > { %14869 = vst [vmem:[#allocation79_spill] sm:$0xff] %v9277_v51 }
 0x21a   : > { %v9281_v59 = vpop.permute.xlu0 %931  ;;  %v9285_v19 = vpop.permute.xlu2 %947 }
 0x21b   : > { %v9269_v13 = vpop.permute.xlu1 %933  ;;  %14871 = vst [vmem:[#allocation81_spill] sm:$0xff] %v9281_v59 }
 0x21c   : > { %14865 = vst [vmem:[#allocation75_spill] sm:$0xff] %v9269_v13 }
 0x222   : > { %v9287_v45 = vpop.permute.xlu0 %937  ;;  %v9291_v13 = vpop.permute.xlu2 %953 }
 0x223   : > { %v9275_v0 = vpop.permute.xlu1 %939  ;;  %14872 = vst [vmem:[#allocation82_spill] sm:$0xff] %v9287_v45 }
 0x224   : > { %14868 = vst [vmem:[#allocation78_spill] sm:$0xff] %v9275_v0 }
 0x22a   : > { %v9293_v34 = vpop.permute.xlu0 %943  ;;  %v9301_v45 = vpop.permute.xlu2 %959 }
 0x22b   : > { %v9279_v26 = vpop.permute.xlu1 %945  ;;  %14874 = vst [vmem:[#allocation84_spill] sm:$0xff] %v9293_v34 }
 0x22c   : > { %14870 = vst [vmem:[#allocation80_spill] sm:$0xff] %v9279_v26 }
 0x22d   : > { %14875 = vst [vmem:[#allocation85_spill] sm:$0xff] %v9301_v45 }
 0x233   : > { %v9283_v25 = vpop.permute.xlu1 %951 }
 0x23b   : > { %v9289_v63 = vpop.permute.xlu1 %957 }
 0x23c   : > { %14873 = vst [vmem:[#allocation83_spill] sm:$0xff] %v9289_v63  ;;  %v9303_v63 = vpop.permute.xlu0 %949 }
 0x243   : > { %v1058_v50 = vpop.permute.xlu1 %1057 }
 0x244   : > { %v1073_v0 = vmul.f32 %v1058_v50, %v8883_v9  ;;  %v1072_v51 = vmul.f32 %v1058_v50, %v8885_v10  ;;  %v1075_v26 = vmul.f32 %v1058_v50, %v8881_v8  ;;  %v1076_v34 = vmul.f32 %v1058_v50, %v8895_v16  ;;  %v9314_v52 = vpop.permute.xlu0 %955 }
 0x245   : > { %v1074_v59 = vmul.f32 %v1058_v50, %v8897_v17  ;;  %v1078_v40 = vmul.f32 %v1058_v50, %v8893_v15  ;;  %v1077_v45 = vmul.f32 %v1058_v50, %v8907_v23  ;;  %14876 = vst [vmem:[#allocation86_spill] sm:$0xff] %v9314_v52 }
 0x246   : > { %1138 = vrot.lane.b32.xlu1 %v1073_v0, %s8784_s22  ;;  %1136 = vrot.lane.b32.xlu2 %v1072_v51, %s8784_s22  ;;  %v1062_v0 = vpop.permute.xlu2 %1061 }
 0x247   : > { %1142 = vrot.lane.b32.xlu0 %v1075_v26, %s8784_s22  ;;  %v1081_v51 = vmul.f32 %v1062_v0, %v8883_v9  ;;  %v1079_v26 = vmul.f32 %v1058_v50, %v8905_v21  ;;  %v1085_v50 = vmul.f32 %v1062_v0, %v8907_v23 }
 0x24c   : > { %v9324_v54 = vpop.permute.xlu0 %961 }
 0x24d   : > { %14877 = vst [vmem:[#allocation87_spill] sm:$0xff] %v9324_v54  ;;  %v1086_v54 = vmul.f32 %v1062_v0, %v8893_v15 }
 0x24e   : > { %1144 = vrot.lane.b32.xlu1 %v1076_v34, %s8784_s22  ;;  %1140 = vrot.lane.b32.xlu2 %v1074_v59, %s8784_s22  ;;  %v1082_v34 = vmul.f32 %v1062_v0, %v8897_v17  ;;  %v1080_v59 = vmul.f32 %v1062_v0, %v8885_v10 }
 0x24f   : > { %1148 = vrot.lane.b32.xlu0 %v1078_v40, %s8784_s22  ;;  %v1084_v40 = vmul.f32 %v1062_v0, %v8895_v16 }
 0x256   : > { %1150 = vrot.lane.b32.xlu1 %v1079_v26, %s8784_s22  ;;  %1146 = vrot.lane.b32.xlu2 %v1077_v45, %s8784_s22  ;;  %v1083_v45 = vmul.f32 %v1062_v0, %v8881_v8  ;;  %v1066_v26 = vpop.permute.xlu0 %1065 }
 0x257   : > { %1154 = vrot.lane.b32.xlu0 %v1081_v51, %s8784_s22  ;;  %v1087_v51 = vmul.f32 %v1062_v0, %v8905_v21  ;;  %v1070_v0 = vpop.permute.xlu1 %1069 }
 0x25e   : > { %1156 = vrot.lane.b32.xlu1 %v1082_v34, %s8784_s22  ;;  %1152 = vrot.lane.b32.xlu2 %v1080_v59, %s8784_s22  ;;  %v1088_v34 = vmul.f32 %v1066_v26, %v8885_v10  ;;  %v1090_v59 = vmul.f32 %v1066_v26, %v8897_v17 }
 0x25f   : > { %1160 = vrot.lane.b32.xlu0 %v1084_v40, %s8784_s22  ;;  %v8785_v40 = vmov 5  }
 0x260   : > { %8433 = vset.pattern.permute.xlu0 %v8785_v40  ;;  %8432 = vset.pattern.permute.xlu2 %v8785_v40 }
 0x261   : > { %8434 = vset.pattern.permute.xlu1 %v8785_v40  ;;  %v1097_v40 = vmul.f32 %v1070_v0, %v8883_v9 }
 0x266   : > { %1162 = vrot.lane.b32.xlu1 %v1085_v50, %s8784_s22  ;;  %1158 = vrot.lane.b32.xlu2 %v1083_v45, %s8784_s22  ;;  %v1091_v50 = vmul.f32 %v1066_v26, %v8881_v8  ;;  %v1089_v45 = vmul.f32 %v1066_v26, %v8883_v9 }
 0x267   : > { %1166 = vrot.lane.b32.xlu0 %v1087_v51, %s8784_s22  ;;  %v1093_v51 = vmul.f32 %v1066_v26, %v8907_v23 }
 0x26e   : > { %1168 = vrot.lane.b32.xlu1 %v1088_v34, %s8784_s22  ;;  %1164 = vrot.lane.b32.xlu2 %v1086_v54, %s8784_s22  ;;  %v1094_v54 = vmul.f32 %v1066_v26, %v8893_v15  ;;  %v1092_v34 = vmul.f32 %v1066_v26, %v8895_v16 }
 0x26f   : > { %1172 = vrot.lane.b32.xlu0 %v1090_v59, %s8784_s22  ;;  %v1096_v59 = vmul.f32 %v1070_v0, %v8885_v10 }
 0x276   : > { %1174 = vrot.lane.b32.xlu1 %v1091_v50, %s8784_s22  ;;  %1170 = vrot.lane.b32.xlu2 %v1089_v45, %s8784_s22  ;;  %v1095_v50 = vmul.f32 %v1066_v26, %v8905_v21  ;;  %v1099_v45 = vmul.f32 %v1070_v0, %v8881_v8  ;;  %v1103_v26 = vmul.f32 %v1070_v0, %v8905_v21 }
 0x277   : > { %1178 = vrot.lane.b32.xlu0 %v1093_v51, %s8784_s22  ;;  %v1100_v51 = vmul.f32 %v1070_v0, %v8895_v16 }
 0x27e   : > { %1180 = vrot.lane.b32.xlu1 %v1094_v54, %s8784_s22  ;;  %1176 = vrot.lane.b32.xlu2 %v1092_v34, %s8784_s22  ;;  %v1098_v54 = vmul.f32 %v1070_v0, %v8897_v17  ;;  %v1102_v34 = vmul.f32 %v1070_v0, %v8893_v15 }
 0x27f   : > { %1184 = vrot.lane.b32.xlu0 %v1096_v59, %s8784_s22  ;;  %v1101_v59 = vmul.f32 %v1070_v0, %v8907_v23 }
 0x286   : > { %1186 = vrot.lane.b32.xlu1 %v1097_v40, %s8784_s22  ;;  %1182 = vrot.lane.b32.xlu2 %v1095_v50, %s8784_s22 }
 0x287   : > { %1190 = vrot.lane.b32.xlu0 %v1099_v45, %s8784_s22 }
 0x28e   : > { %1192 = vrot.lane.b32.xlu1 %v1100_v51, %s8784_s22  ;;  %1188 = vrot.lane.b32.xlu2 %v1098_v54, %s8784_s22 }
 0x28f   : > { %1196 = vrot.lane.b32.xlu0 %v1102_v34, %s8784_s22 }
 0x296   : > { %1198 = vrot.lane.b32.xlu1 %v1103_v26, %s8784_s22  ;;  %1194 = vrot.lane.b32.xlu2 %v1101_v59, %s8784_s22 }
 0x297   : > { %1298 = vperm.xlu0 %8433, %v8859_v4  }
 0x29e   : > { %1294 = vperm.xlu2 %8432, %v8846_v2   ;;  %1302 = vperm.xlu1 %8434, %v8851_v3  }
 0x2a0   : > { %v9370_v40 = vpop.permute.xlu2 %1136 }
 0x2a1   : > { %14878 = vst [vmem:[#allocation88_spill] sm:$0xff] %v9370_v40 }
 0x2a6   : > { %1306 = vperm.xlu2 %8432, %v8864_v5  }
 0x2a8   : > { %v9373_v50 = vpop.permute.xlu2 %1140 }
 0x2a9   : > { %14879 = vst [vmem:[#allocation89_spill] sm:$0xff] %v9373_v50 }
 0x2b0   : > { %v9375_v45 = vpop.permute.xlu2 %1146 }
 0x2b1   : > { %14880 = vst [vmem:[#allocation90_spill] sm:$0xff] %v9375_v45 }
 0x2b8   : > { %v9377_v51 = vpop.permute.xlu1 %1138  ;;  %v9379_v0 = vpop.permute.xlu2 %1152 }
 0x2b9   : > { %14881 = vst [vmem:[#allocation91_spill] sm:$0xff] %v9377_v51  ;;  %v9381_v54 = vpop.permute.xlu0 %1142 }
 0x2ba   : > { %14882 = vst [vmem:[#allocation92_spill] sm:$0xff] %v9379_v0 }
 0x2bb   : > { %14883 = vst [vmem:[#allocation93_spill] sm:$0xff] %v9381_v54 }
 0x2c0   : > { %v9383_v34 = vpop.permute.xlu1 %1144  ;;  %v9385_v4 = vpop.permute.xlu2 %1158 }
 0x2c1   : > { %14884 = vst [vmem:[#allocation94_spill] sm:$0xff] %v9383_v34  ;;  %v9387_v2 = vpop.permute.xlu0 %1148 }
 0x2c2   : > { %14885 = vst [vmem:[#allocation95_spill] sm:$0xff] %v9385_v4 }
 0x2c3   : > { %14886 = vst [vmem:[#allocation96_spill] sm:$0xff] %v9387_v2 }
 0x2c8   : > { %v9389_v3 = vpop.permute.xlu1 %1150  ;;  %v9391_v26 = vpop.permute.xlu2 %1164 }
 0x2c9   : > { %14887 = vst [vmem:[#allocation97_spill] sm:$0xff] %v9389_v3  ;;  %v9393_v5 = vpop.permute.xlu0 %1154 }
 0x2ca   : > { %14888 = vst [vmem:[#allocation98_spill] sm:$0xff] %v9391_v26 }
 0x2cb   : > { %14889 = vst [vmem:[#allocation99_spill] sm:$0xff] %v9393_v5 }
 0x2d0   : > { %v9395_v59 = vpop.permute.xlu1 %1156  ;;  %v9397_v45 = vpop.permute.xlu2 %1170 }
 0x2d1   : > { %14890 = vst [vmem:[#allocation100_spill] sm:$0xff] %v9395_v59  ;;  %v9399_v50 = vpop.permute.xlu0 %1160 }
 0x2d2   : > { %14891 = vst [vmem:[#allocation101_spill] sm:$0xff] %v9397_v45 }
 0x2d3   : > { %14892 = vst [vmem:[#allocation102_spill] sm:$0xff] %v9399_v50 }
 0x2d8   : > { %v9401_v0 = vpop.permute.xlu1 %1162  ;;  %v9403_v54 = vpop.permute.xlu2 %1176 }
 0x2d9   : > { %14893 = vst [vmem:[#allocation103_spill] sm:$0xff] %v9401_v0  ;;  %v9405_v34 = vpop.permute.xlu0 %1166 }
 0x2da   : > { %14894 = vst [vmem:[#allocation104_spill] sm:$0xff] %v9403_v54 }
 0x2db   : > { %14895 = vst [vmem:[#allocation105_spill] sm:$0xff] %v9405_v34 }
 0x2e0   : > { %v9407_v4 = vpop.permute.xlu2 %1182  ;;  %v9411_v3 = vpop.permute.xlu1 %1168 }
 0x2e1   : > { %14896 = vst [vmem:[#allocation106_spill] sm:$0xff] %v9407_v4  ;;  %v9409_v2 = vpop.permute.xlu0 %1172 }
 0x2e2   : > { %14897 = vst [vmem:[#allocation107_spill] sm:$0xff] %v9409_v2 }
 0x2e3   : > { %14898 = vst [vmem:[#allocation108_spill] sm:$0xff] %v9411_v3 }
 0x2e8   : > { %v9413_v26 = vpop.permute.xlu2 %1188  ;;  %v9417_v59 = vpop.permute.xlu1 %1174 }
 0x2e9   : > { %v9415_v5 = vpop.permute.xlu0 %1178  ;;  %14900 = vst [vmem:[#allocation110_spill] sm:$0xff] %v9417_v59 }
 0x2ea   : > { %14899 = vst [vmem:[#allocation109_spill] sm:$0xff] %v9415_v5 }
 0x2f0   : > { %v9419_v40 = vpop.permute.xlu2 %1194  ;;  %v9423_v0 = vpop.permute.xlu1 %1180 }
 0x2f1   : > { %14901 = vst [vmem:[#allocation111_spill] sm:$0xff] %v9419_v40  ;;  %v9421_v50 = vpop.permute.xlu0 %1184 }
 0x2f2   : > { %14902 = vst [vmem:[#allocation112_spill] sm:$0xff] %v9423_v0 }
 0x2f8   : > { %v1295_v51 = vpop.permute.xlu2 %1294  ;;  %v9433_v5 = vpop.permute.xlu1 %1186 }
 0x2f9   : > { %v9425_v34 = vpop.permute.xlu0 %1190  ;;  %v1311_v4 = vmul.f32 %v1295_v51, %v8897_v17  ;;  %v1310_v54 = vmul.f32 %v1295_v51, %v8883_v9  ;;  %v1309_v3 = vmul.f32 %v1295_v51, %v8885_v10  ;;  %v1314_v0 = vmul.f32 %v1295_v51, %v8907_v23 }
 0x2fa   : > { %v1313_v59 = vmul.f32 %v1295_v51, %v8895_v16  ;;  %v1312_v45 = vmul.f32 %v1295_v51, %v8881_v8 }
 0x2fb   : > { %1377 = vrot.lane.b32.xlu0 %v1311_v4, %s8786_s23  ;;  %1375 = vrot.lane.b32.xlu2 %v1310_v54, %s8786_s23  ;;  %v1316_v54 = vmul.f32 %v1295_v51, %v8905_v21 }
 0x2fc   : > { %1373 = vrot.lane.b32.xlu1 %v1309_v3, %s8786_s23 }
 0x300   : > { %v9444_v3 = vpop.permute.xlu1 %1192 }
 0x301   : > { %v9435_v40 = vpop.permute.xlu0 %1196  ;;  %14904 = vst [vmem:[#allocation114_spill] sm:$0xff] %v9444_v3 }
 0x302   : > { %14903 = vst [vmem:[#allocation113_spill] sm:$0xff] %v9435_v40  ;;  %v1315_v40 = vmul.f32 %v1295_v51, %v8893_v15 }
 0x303   : > { %1383 = vrot.lane.b32.xlu0 %v1314_v0, %s8786_s23  ;;  %1381 = vrot.lane.b32.xlu2 %v1313_v59, %s8786_s23 }
 0x304   : > { %1379 = vrot.lane.b32.xlu1 %v1312_v45, %s8786_s23 }
 0x308   : > { %v9455_v46 = vpop.permute.xlu1 %1198 }
 0x309   : > { %v1299_v4 = vpop.permute.xlu0 %1298  ;;  %14905 = vst [vmem:[#allocation115_spill] sm:$0xff] %v9455_v46 }
 0x30a   : > { %v1317_v2 = vmul.f32 %v1299_v4, %v8885_v10  ;;  %v1319_v0 = vmul.f32 %v1299_v4, %v8897_v17  ;;  %v1320_v59 = vmul.f32 %v1299_v4, %v8881_v8  ;;  %v1318_v45 = vmul.f32 %v1299_v4, %v8883_v9 }
 0x30b   : > { %1387 = vrot.lane.b32.xlu2 %v1316_v54, %s8786_s23  ;;  %v1322_v51 = vmul.f32 %v1299_v4, %v8907_v23 }
 0x30c   : > { %1389 = vrot.lane.b32.xlu0 %v1317_v2, %s8786_s23  ;;  %1385 = vrot.lane.b32.xlu1 %v1315_v40, %s8786_s23  ;;  %v1323_v2 = vmul.f32 %v1299_v4, %v8893_v15  ;;  %v1321_v40 = vmul.f32 %v1299_v4, %v8895_v16 }
 0x310   : > { %v1303_v54 = vpop.permute.xlu1 %1302 }
 0x311   : > { %v1326_v46 = vmul.f32 %v1303_v54, %v8883_v9 }
 0x313   : > { %1393 = vrot.lane.b32.xlu2 %v1319_v0, %s8786_s23  ;;  %v1325_v0 = vmul.f32 %v1303_v54, %v8885_v10 }
 0x314   : > { %1395 = vrot.lane.b32.xlu0 %v1320_v59, %s8786_s23  ;;  %1391 = vrot.lane.b32.xlu1 %v1318_v45, %s8786_s23  ;;  %v1324_v59 = vmul.f32 %v1299_v4, %v8905_v21  ;;  %v8787_v45 = vmov 6   ;;  %v1332_v4 = vmul.f32 %v1303_v54, %v8905_v21 }
 0x315   : > { %8435 = vset.pattern.permute.xlu0 %v8787_v45  ;;  %8436 = vset.pattern.permute.xlu1 %v8787_v45 }
 0x316   : > { %8437 = vset.pattern.permute.xlu2 %v8787_v45 }
 0x31b   : > { %1399 = vrot.lane.b32.xlu2 %v1322_v51, %s8786_s23  ;;  %v1328_v51 = vmul.f32 %v1303_v54, %v8881_v8 }
 0x31c   : > { %1401 = vrot.lane.b32.xlu0 %v1323_v2, %s8786_s23  ;;  %1397 = vrot.lane.b32.xlu1 %v1321_v40, %s8786_s23  ;;  %v1329_v2 = vmul.f32 %v1303_v54, %v8895_v16  ;;  %v1327_v40 = vmul.f32 %v1303_v54, %v8897_v17 }
 0x323   : > { %1405 = vrot.lane.b32.xlu2 %v1325_v0, %s8786_s23  ;;  %v1330_v0 = vmul.f32 %v1303_v54, %v8907_v23 }
 0x324   : > { %1407 = vrot.lane.b32.xlu0 %v1326_v46, %s8786_s23  ;;  %1403 = vrot.lane.b32.xlu1 %v1324_v59, %s8786_s23  ;;  %v1331_v46 = vmul.f32 %v1303_v54, %v8893_v15  ;;  %v1307_v59 = vpop.permute.xlu2 %1306 }
 0x325   : > { %v1334_v45 = vmul.f32 %v1307_v59, %v8883_v9  ;;  %v1337_v54 = vmul.f32 %v1307_v59, %v8895_v16 }
 0x32b   : > { %1411 = vrot.lane.b32.xlu2 %v1328_v51, %s8786_s23  ;;  %v1335_v51 = vmul.f32 %v1307_v59, %v8897_v17 }
 0x32c   : > { %1413 = vrot.lane.b32.xlu0 %v1329_v2, %s8786_s23  ;;  %1409 = vrot.lane.b32.xlu1 %v1327_v40, %s8786_s23  ;;  %v1333_v2 = vmul.f32 %v1307_v59, %v8885_v10  ;;  %v1338_v40 = vmul.f32 %v1307_v59, %v8907_v23 }
 0x333   : > { %1417 = vrot.lane.b32.xlu2 %v1331_v46, %s8786_s23  ;;  %v1336_v46 = vmul.f32 %v1307_v59, %v8881_v8 }
 0x334   : > { %1419 = vrot.lane.b32.xlu0 %v1332_v4, %s8786_s23  ;;  %1415 = vrot.lane.b32.xlu1 %v1330_v0, %s8786_s23  ;;  %v1340_v4 = vmul.f32 %v1307_v59, %v8905_v21  ;;  %v1339_v0 = vmul.f32 %v1307_v59, %v8893_v15  ;;  %v9514_v59 = vld [vmem:[%s14352_s1 + $0x8] sm:$0xff] }
 0x33b   : > { %1423 = vrot.lane.b32.xlu2 %v1334_v45, %s8786_s23  ;;  %v9501_v45 = vld [vmem:[%s14352_s1] sm:$0xff] }
 0x33c   : > { %1425 = vrot.lane.b32.xlu0 %v1335_v51, %s8786_s23  ;;  %1421 = vrot.lane.b32.xlu1 %v1333_v2, %s8786_s23  ;;  %v9508_v51 = vld [vmem:[%s14352_s1 + $0x10] sm:$0xff]  ;;  %v9520_v2 = vld [vmem:[%s14352_s1 + $0x18] sm:$0xff] }
 0x343   : > { %1429 = vrot.lane.b32.xlu2 %v1337_v54, %s8786_s23 }
 0x344   : > { %1431 = vrot.lane.b32.xlu0 %v1338_v40, %s8786_s23  ;;  %1427 = vrot.lane.b32.xlu1 %v1336_v46, %s8786_s23 }
 0x34b   : > { %1435 = vrot.lane.b32.xlu2 %v1340_v4, %s8786_s23 }
 0x34c   : > { %1531 = vperm.xlu0 %8435, %v9501_v45   ;;  %1433 = vrot.lane.b32.xlu1 %v1339_v0, %s8786_s23 }
 0x353   : > { %1539 = vperm.xlu2 %8437, %v9508_v51  }
 0x354   : > { %1535 = vperm.xlu1 %8436, %v9514_v59  }
 0x355   : > { %v9527_v46 = vpop.permute.xlu2 %1375 }
 0x356   : > { %14908 = vst [vmem:[#allocation118_spill] sm:$0xff] %v9527_v46 }
 0x35c   : > { %1543 = vperm.xlu1 %8436, %v9520_v2  }
 0x35d   : > { %v9537_v48 = vpop.permute.xlu2 %1381 }
 0x35e   : > { %14913 = vst [vmem:[#allocation123_spill] sm:$0xff] %v9537_v48 }
 0x365   : > { %v9543_v42 = vpop.permute.xlu2 %1387 }
 0x366   : > { %14916 = vst [vmem:[#allocation126_spill] sm:$0xff] %v9543_v42 }
 0x36d   : > { %v9523_v54 = vpop.permute.xlu0 %1377  ;;  %v9549_v46 = vpop.permute.xlu2 %1393 }
 0x36e   : > { %14906 = vst [vmem:[#allocation116_spill] sm:$0xff] %v9523_v54  ;;  %v9525_v40 = vpop.permute.xlu1 %1373 }
 0x36f   : > { %14907 = vst [vmem:[#allocation117_spill] sm:$0xff] %v9525_v40 }
 0x370   : > { %14919 = vst [vmem:[#allocation129_spill] sm:$0xff] %v9549_v46 }
 0x375   : > { %v9529_v4 = vpop.permute.xlu0 %1383 }
 0x376   : > { %14909 = vst [vmem:[#allocation119_spill] sm:$0xff] %v9529_v4  ;;  %v9531_v0 = vpop.permute.xlu1 %1379 }
 0x377   : > { %14910 = vst [vmem:[#allocation120_spill] sm:$0xff] %v9531_v0 }
 0x37e   : > { %v9533_v47 = vpop.permute.xlu0 %1389  ;;  %v9535_v7 = vpop.permute.xlu1 %1385 }
 0x37f   : > { %14911 = vst [vmem:[#allocation121_spill] sm:$0xff] %v9533_v47  ;;  %v9555_v47 = vpop.permute.xlu2 %1399 }
 0x380   : > { %14912 = vst [vmem:[#allocation122_spill] sm:$0xff] %v9535_v7 }
 0x381   : > { %14922 = vst [vmem:[#allocation132_spill] sm:$0xff] %v9555_v47 }
 0x386   : > { %v9539_v58 = vpop.permute.xlu0 %1395  ;;  %v9541_v36 = vpop.permute.xlu1 %1391 }
 0x387   : > { %14914 = vst [vmem:[#allocation124_spill] sm:$0xff] %v9539_v58  ;;  %v9565_v42 = vpop.permute.xlu2 %1405 }
 0x388   : > { %14915 = vst [vmem:[#allocation125_spill] sm:$0xff] %v9541_v36 }
 0x389   : > { %14927 = vst [vmem:[#allocation137_spill] sm:$0xff] %v9565_v42 }
 0x38e   : > { %v9545_v54 = vpop.permute.xlu0 %1401  ;;  %v9547_v40 = vpop.permute.xlu1 %1397 }
 0x38f   : > { %14917 = vst [vmem:[#allocation127_spill] sm:$0xff] %v9545_v54  ;;  %v9571_v46 = vpop.permute.xlu2 %1411 }
 0x390   : > { %14918 = vst [vmem:[#allocation128_spill] sm:$0xff] %v9547_v40 }
 0x391   : > { %14928 = vst [vmem:[#allocation138_spill] sm:$0xff] %v9571_v46 }
 0x396   : > { %v9551_v4 = vpop.permute.xlu0 %1407  ;;  %v9553_v0 = vpop.permute.xlu1 %1403 }
 0x397   : > { %14920 = vst [vmem:[#allocation130_spill] sm:$0xff] %v9551_v4  ;;  %v9577_v47 = vpop.permute.xlu2 %1417 }
 0x398   : > { %14921 = vst [vmem:[#allocation131_spill] sm:$0xff] %v9553_v0 }
 0x399   : > { %14930 = vst [vmem:[#allocation140_spill] sm:$0xff] %v9577_v47 }
 0x39e   : > { %v9557_v7 = vpop.permute.xlu0 %1413  ;;  %v9559_v48 = vpop.permute.xlu1 %1409 }
 0x39f   : > { %14923 = vst [vmem:[#allocation133_spill] sm:$0xff] %v9557_v7 }
 0x3a0   : > { %14924 = vst [vmem:[#allocation134_spill] sm:$0xff] %v9559_v48 }
 0x3a6   : > { %v9561_v58 = vpop.permute.xlu0 %1419  ;;  %v9563_v36 = vpop.permute.xlu1 %1415 }
 0x3a7   : > { %14925 = vst [vmem:[#allocation135_spill] sm:$0xff] %v9561_v58 }
 0x3a8   : > { %14926 = vst [vmem:[#allocation136_spill] sm:$0xff] %v9563_v36 }
 0x3ae   : > { %v9567_v54 = vpop.permute.xlu0 %1425  ;;  %v9569_v40 = vpop.permute.xlu1 %1421 }
 0x3b6   : > { %v9573_v4 = vpop.permute.xlu0 %1431  ;;  %v9575_v0 = vpop.permute.xlu1 %1427 }
 0x3b7   : > { %14929 = vst [vmem:[#allocation139_spill] sm:$0xff] %v9573_v4  ;;  %v9587_v4 = vpop.permute.xlu2 %1423 }
 0x3be   : > { %v1532_v7 = vpop.permute.xlu0 %1531  ;;  %v9585_v46 = vpop.permute.xlu1 %1433 }
 0x3bf   : > { %v1547_v48 = vmul.f32 %v1532_v7, %v8883_v9  ;;  %v1546_v58 = vmul.f32 %v1532_v7, %v8885_v10  ;;  %v1548_v36 = vmul.f32 %v1532_v7, %v8897_v17  ;;  %14931 = vst [vmem:[#allocation141_spill] sm:$0xff] %v9585_v46  ;;  %v1550_v47 = vmul.f32 %v1532_v7, %v8895_v16  ;;  %v9598_v35 = vpop.permute.xlu2 %1429 }
 0x3c0   : > { %v1549_v42 = vmul.f32 %v1532_v7, %v8881_v8  ;;  %v1551_v41 = vmul.f32 %v1532_v7, %v8907_v23  ;;  %v1552_v46 = vmul.f32 %v1532_v7, %v8893_v15  ;;  %14932 = vst [vmem:[#allocation142_spill] sm:$0xff] %v9598_v35 }
 0x3c1   : > { %1612 = vrot.lane.b32.xlu0 %v1547_v48, %s8788_s9  ;;  %1610 = vrot.lane.b32.xlu2 %v1546_v58, %s8788_s9 }
 0x3c2   : > { %1614 = vrot.lane.b32.xlu1 %v1548_v36, %s8788_s9  ;;  %v1553_v36 = vmul.f32 %v1532_v7, %v8905_v21 }
 0x3c6   : > { %v1536_v48 = vpop.permute.xlu1 %1535 }
 0x3c7   : > { %v1554_v58 = vmul.f32 %v1536_v48, %v8885_v10  ;;  %v9608_v33 = vpop.permute.xlu2 %1435  ;;  %v1559_v7 = vmul.f32 %v1536_v48, %v8907_v23 }
 0x3c8   : > { %14933 = vst [vmem:[#allocation143_spill] sm:$0xff] %v9608_v33  ;;  %v1561_v33 = vmul.f32 %v1536_v48, %v8905_v21 }
 0x3c9   : > { %1618 = vrot.lane.b32.xlu0 %v1550_v47, %s8788_s9  ;;  %1616 = vrot.lane.b32.xlu2 %v1549_v42, %s8788_s9  ;;  %v1556_v47 = vmul.f32 %v1536_v48, %v8897_v17  ;;  %v1555_v42 = vmul.f32 %v1536_v48, %v8883_v9 }
 0x3ca   : > { %1620 = vrot.lane.b32.xlu1 %v1551_v41, %s8788_s9  ;;  %v1557_v41 = vmul.f32 %v1536_v48, %v8881_v8 }
 0x3d1   : > { %1624 = vrot.lane.b32.xlu0 %v1553_v36, %s8788_s9  ;;  %1622 = vrot.lane.b32.xlu2 %v1552_v46, %s8788_s9  ;;  %v1558_v46 = vmul.f32 %v1536_v48, %v8895_v16  ;;  %v1540_v36 = vpop.permute.xlu2 %1539 }
 0x3d2   : > { %1626 = vrot.lane.b32.xlu1 %v1554_v58, %s8788_s9  ;;  %v1560_v58 = vmul.f32 %v1536_v48, %v8893_v15  ;;  %v1567_v48 = vmul.f32 %v1540_v36, %v8907_v23 }
 0x3d9   : > { %1630 = vrot.lane.b32.xlu0 %v1556_v47, %s8788_s9  ;;  %1628 = vrot.lane.b32.xlu2 %v1555_v42, %s8788_s9  ;;  %v8789_v47 = vmov 7   ;;  %v1562_v42 = vmul.f32 %v1540_v36, %v8885_v10 }
 0x3da   : > { %1632 = vrot.lane.b32.xlu1 %v1557_v41, %s8788_s9  ;;  %8438 = vset.pattern.permute.xlu0 %v8789_v47  ;;  %v1563_v41 = vmul.f32 %v1540_v36, %v8883_v9 }
 0x3db   : > { %8439 = vset.pattern.permute.xlu1 %v8789_v47 }
 0x3e1   : > { %1636 = vrot.lane.b32.xlu0 %v1559_v7, %s8788_s9  ;;  %1634 = vrot.lane.b32.xlu2 %v1558_v46, %s8788_s9  ;;  %v1564_v7 = vmul.f32 %v1540_v36, %v8897_v17  ;;  %v1565_v46 = vmul.f32 %v1540_v36, %v8881_v8 }
 0x3e2   : > { %1638 = vrot.lane.b32.xlu1 %v1560_v58, %s8788_s9  ;;  %v1566_v58 = vmul.f32 %v1540_v36, %v8895_v16 }
 0x3e9   : > { %1640 = vrot.lane.b32.xlu2 %v1561_v33, %s8788_s9  ;;  %1642 = vrot.lane.b32.xlu0 %v1562_v42, %s8788_s9  ;;  %v1568_v33 = vmul.f32 %v1540_v36, %v8893_v15  ;;  %v1569_v42 = vmul.f32 %v1540_v36, %v8905_v21  ;;  %v8790_v36 = vmov 8  }
 0x3ea   : > { %1644 = vrot.lane.b32.xlu1 %v1563_v41, %s8788_s9  ;;  %v9635_v41 = vpop.permute.xlu1 %1543  ;;  %8440 = vset.pattern.permute.xlu2 %v8790_v36 }
 0x3eb   : > { %14934 = vst [vmem:[#allocation144_spill] sm:$0xff] %v9635_v41 }
 0x3f1   : > { %1646 = vrot.lane.b32.xlu2 %v1564_v7, %s8788_s9  ;;  %1648 = vrot.lane.b32.xlu0 %v1565_v46, %s8788_s9  ;;  %v1570_v7 = vmul.f32 %v9635_v41, %v8885_v10  ;;  %v1571_v46 = vmul.f32 %v9635_v41, %v8883_v9 }
 0x3f2   : > { %1650 = vrot.lane.b32.xlu1 %v1566_v58, %s8788_s9  ;;  %v1572_v58 = vmul.f32 %v9635_v41, %v8897_v17 }
 0x3f9   : > { %1652 = vrot.lane.b32.xlu2 %v1567_v48, %s8788_s9  ;;  %1654 = vrot.lane.b32.xlu0 %v1568_v33, %s8788_s9  ;;  %v1573_v48 = vmul.f32 %v9635_v41, %v8881_v8  ;;  %v14935_v33 = vmov 0  }
 0x3fa   : > { %1656 = vrot.lane.b32.xlu1 %v1569_v42, %s8788_s9 }
 0x401   : > { %1658 = vrot.lane.b32.xlu2 %v1570_v7, %s8788_s9  ;;  %1660 = vrot.lane.b32.xlu0 %v1571_v46, %s8788_s9 }
 0x402   : > { %1662 = vrot.lane.b32.xlu1 %v1572_v58, %s8788_s9 }
 0x409   : > { %1664 = vrot.lane.b32.xlu2 %v1573_v48, %s8788_s9  ;;  %1776 = vperm.xlu0 %8438, %v9508_v51  }
 0x40a   : > { %1780 = vperm.xlu1 %8439, %v9520_v2  }
 0x411   : > { %1772 = vperm.xlu0 %8438, %v9514_v59   ;;  %2013 = vperm.xlu2 %8440, %v9508_v51   ;;  %v1574_v51 = vmul.f32 %v9635_v41, %v8895_v16 }
 0x412   : > { %8441 = vset.pattern.permute.xlu1 %v8790_v36 }
 0x413   : > { %2017 = vperm.xlu1 %8441, %v9520_v2  }
 0x419   : > { %8443 = vset.pattern.permute.xlu0 %v14935_v33  ;;  %8442 = vset.pattern.permute.xlu2 %v8789_v47 }
 0x41a   : > { %295 = vperm.xlu0 %8443, %v9501_v45   ;;  %1768 = vperm.xlu2 %8442, %v9501_v45  }
 0x41b   : > { %2005 = vperm.xlu1 %8441, %v9501_v45   ;;  %v9665_v2 = vpop.permute.xlu2 %1610 }
 0x41c   : > { %14936 = vst [vmem:[#allocation145_spill] sm:$0xff] %v9665_v2 }
 0x422   : > { %300 = vperm.xlu0 %8443, %v9514_v59   ;;  %8444 = vset.pattern.permute.xlu2 %v8790_v36 }
 0x423   : > { %2009 = vperm.xlu2 %8444, %v9514_v59   ;;  %8445 = vset.pattern.permute.xlu1 %v14935_v33  ;;  %v9671_v45 = vpop.permute.xlu2 %1616 }
 0x424   : > { %14939 = vst [vmem:[#allocation148_spill] sm:$0xff] %v9671_v45 }
 0x42a   : > { %1666 = vrot.lane.b32.xlu0 %v1574_v51, %s8788_s9 }
 0x42b   : > { %8446 = vset.pattern.permute.xlu2 %v14935_v33  ;;  %v9677_v46 = vpop.permute.xlu2 %1622 }
 0x42c   : > { %14942 = vst [vmem:[#allocation151_spill] sm:$0xff] %v9677_v46 }
 0x433   : > { %v9667_v47 = vpop.permute.xlu0 %1612  ;;  %v9683_v48 = vpop.permute.xlu2 %1628 }
 0x434   : > { %14937 = vst [vmem:[#allocation146_spill] sm:$0xff] %v9667_v47  ;;  %v9669_v42 = vpop.permute.xlu1 %1614 }
 0x435   : > { %14938 = vst [vmem:[#allocation147_spill] sm:$0xff] %v9669_v42 }
 0x436   : > { %14945 = vst [vmem:[#allocation154_spill] sm:$0xff] %v9683_v48 }
 0x43b   : > { %v9673_v7 = vpop.permute.xlu0 %1618  ;;  %v9693_v41 = vpop.permute.xlu2 %1634 }
 0x43c   : > { %14940 = vst [vmem:[#allocation149_spill] sm:$0xff] %v9673_v7  ;;  %v9675_v59 = vpop.permute.xlu1 %1620 }
 0x43d   : > { %14941 = vst [vmem:[#allocation150_spill] sm:$0xff] %v9675_v59 }
 0x43e   : > { %14950 = vst [vmem:[#allocation159_spill] sm:$0xff] %v9693_v41 }
 0x443   : > { %v9679_v58 = vpop.permute.xlu0 %1624  ;;  %v9699_v46 = vpop.permute.xlu2 %1640 }
 0x444   : > { %14943 = vst [vmem:[#allocation152_spill] sm:$0xff] %v9679_v58  ;;  %v9681_v36 = vpop.permute.xlu1 %1626 }
 0x445   : > { %14944 = vst [vmem:[#allocation153_spill] sm:$0xff] %v9681_v36 }
 0x446   : > { %14953 = vst [vmem:[#allocation162_spill] sm:$0xff] %v9699_v46 }
 0x44b   : > { %v9685_v33 = vpop.permute.xlu0 %1630  ;;  %v9705_v48 = vpop.permute.xlu2 %1646 }
 0x44c   : > { %14946 = vst [vmem:[#allocation155_spill] sm:$0xff] %v9685_v33  ;;  %v9687_v51 = vpop.permute.xlu1 %1632 }
 0x44d   : > { %14947 = vst [vmem:[#allocation156_spill] sm:$0xff] %v9687_v51 }
 0x44e   : > { %14956 = vst [vmem:[#allocation165_spill] sm:$0xff] %v9705_v48 }
 0x453   : > { %v9689_v21 = vpop.permute.xlu0 %1636 }
 0x454   : > { %14948 = vst [vmem:[#allocation157_spill] sm:$0xff] %v9689_v21  ;;  %v9691_v23 = vpop.permute.xlu1 %1638  ;;  %v9711_v21 = vpop.permute.xlu2 %1652 }
 0x455   : > { %14949 = vst [vmem:[#allocation158_spill] sm:$0xff] %v9691_v23 }
 0x456   : > { %14959 = vst [vmem:[#allocation168_spill] sm:$0xff] %v9711_v21 }
 0x45b   : > { %v9695_v15 = vpop.permute.xlu0 %1642 }
 0x45c   : > { %14951 = vst [vmem:[#allocation160_spill] sm:$0xff] %v9695_v15  ;;  %v9697_v59 = vpop.permute.xlu1 %1644 }
 0x45d   : > { %14952 = vst [vmem:[#allocation161_spill] sm:$0xff] %v9697_v59 }
 0x463   : > { %v9701_v58 = vpop.permute.xlu0 %1648 }
 0x464   : > { %14954 = vst [vmem:[#allocation163_spill] sm:$0xff] %v9701_v58  ;;  %v9703_v36 = vpop.permute.xlu1 %1650 }
 0x465   : > { %14955 = vst [vmem:[#allocation164_spill] sm:$0xff] %v9703_v36 }
 0x46b   : > { %v9707_v33 = vpop.permute.xlu0 %1654 }
 0x46c   : > { %14957 = vst [vmem:[#allocation166_spill] sm:$0xff] %v9707_v33  ;;  %v9709_v51 = vpop.permute.xlu1 %1656  ;;  %v9725_v33 = vpop.permute.xlu2 %1658 }
 0x46d   : > { %14958 = vst [vmem:[#allocation167_spill] sm:$0xff] %v9709_v51 }
 0x473   : > { %v9713_v23 = vpop.permute.xlu0 %1660 }
 0x474   : > { %v9715_v41 = vpop.permute.xlu1 %1662 }
 0x47b   : > { %v9717_v7 = vpop.permute.xlu0 %1776 }
 0x47c   : > { %14960 = vst [vmem:[#allocation169_spill] sm:$0xff] %v9717_v7  ;;  %v1801_v46 = vmul.f32 %v9717_v7, %v8897_v17  ;;  %v1800_v45 = vmul.f32 %v9717_v7, %v8883_v9  ;;  %v1799_v42 = vmul.f32 %v9717_v7, %v8885_v10  ;;  %v9730_v51 = vpop.permute.xlu1 %1780  ;;  %v1803_v2 = vmul.f32 %v9717_v7, %v8895_v16 }
 0x47d   : > { %14961 = vst [vmem:[#allocation170_spill] sm:$0xff] %v9730_v51  ;;  %v1807_v21 = vmul.f32 %v9730_v51, %v8885_v10  ;;  %v1802_v47 = vmul.f32 %v9717_v7, %v8881_v8  ;;  %v1808_v36 = vmul.f32 %v9730_v51, %v8883_v9  ;;  %v1811_v7 = vmul.f32 %v9730_v51, %v8895_v16 }
 0x47e   : > { %1883 = vrot.lane.b32.xlu0 %v1801_v46, %s8791_s10  ;;  %1881 = vrot.lane.b32.xlu2 %v1800_v45, %s8791_s10  ;;  %v9740_v46 = vpop.permute.xlu2 %1664  ;;  %v1809_v45 = vmul.f32 %v9730_v51, %v8897_v17 }
 0x47f   : > { %1879 = vrot.lane.b32.xlu1 %v1799_v42, %s8791_s10  ;;  %v1810_v42 = vmul.f32 %v9730_v51, %v8881_v8 }
 0x486   : > { %1895 = vrot.lane.b32.xlu0 %v1807_v21, %s8791_s10  ;;  %1887 = vrot.lane.b32.xlu2 %v1803_v2, %s8791_s10  ;;  %v9752_v21 = vpop.permute.xlu2 %2013 }
 0x487   : > { %1885 = vrot.lane.b32.xlu1 %v1802_v47, %s8791_s10  ;;  %14962 = vst [vmem:[#allocation171_spill] sm:$0xff] %v9752_v21  ;;  %v2037_v2 = vmul.f32 %v9752_v21, %v8883_v9  ;;  %v2036_v47 = vmul.f32 %v9752_v21, %v8885_v10 }
 0x48e   : > { %1901 = vrot.lane.b32.xlu0 %v1810_v42, %s8791_s10  ;;  %1899 = vrot.lane.b32.xlu2 %v1809_v45, %s8791_s10  ;;  %v2039_v42 = vmul.f32 %v9752_v21, %v8881_v8  ;;  %v2038_v45 = vmul.f32 %v9752_v21, %v8897_v17 }
 0x48f   : > { %1897 = vrot.lane.b32.xlu1 %v1808_v36, %s8791_s10  ;;  %v2040_v36 = vmul.f32 %v9752_v21, %v8895_v16 }
 0x496   : > { %2118 = vrot.lane.b32.xlu0 %v2037_v2, %s8792_s11  ;;  %2116 = vrot.lane.b32.xlu2 %v2036_v47, %s8792_s11  ;;  %v9772_v2 = vpop.permute.xlu1 %2017 }
 0x497   : > { %1903 = vrot.lane.b32.xlu1 %v1811_v7, %s8791_s10  ;;  %14963 = vst [vmem:[#allocation172_spill] sm:$0xff] %v9772_v2  ;;  %v2046_v7 = vmul.f32 %v9772_v2, %v8897_v17  ;;  %v2045_v47 = vmul.f32 %v9772_v2, %v8883_v9  ;;  %v2044_v51 = vmul.f32 %v9772_v2, %v8885_v10 }
 0x498   : > { %v2047_v21 = vmul.f32 %v9772_v2, %v8881_v8 }
 0x49e   : > { %2124 = vrot.lane.b32.xlu0 %v2040_v36, %s8792_s11  ;;  %2122 = vrot.lane.b32.xlu2 %v2039_v42, %s8792_s11  ;;  %v9783_v36 = vpop.permute.xlu2 %1768 }
 0x49f   : > { %2120 = vrot.lane.b32.xlu1 %v2038_v45, %s8792_s11  ;;  %14964 = vst [vmem:[#allocation173_spill] sm:$0xff] %v9783_v36  ;;  %v1783_v42 = vmul.f32 %v9783_v36, %v8885_v10  ;;  %v2048_v45 = vmul.f32 %v9772_v2, %v8895_v16  ;;  %v1787_v2 = vmul.f32 %v9783_v36, %v8895_v16 }
 0x4a6   : > { %2136 = vrot.lane.b32.xlu0 %v2046_v7, %s8792_s11  ;;  %2134 = vrot.lane.b32.xlu2 %v2045_v47, %s8792_s11  ;;  %v1786_v7 = vmul.f32 %v9783_v36, %v8881_v8  ;;  %v1784_v47 = vmul.f32 %v9783_v36, %v8883_v9 }
 0x4a7   : > { %2132 = vrot.lane.b32.xlu1 %v2044_v51, %s8792_s11  ;;  %v1785_v51 = vmul.f32 %v9783_v36, %v8897_v17 }
 0x4ae   : > { %2140 = vrot.lane.b32.xlu2 %v2048_v45, %s8792_s11  ;;  %1847 = vrot.lane.b32.xlu0 %v1783_v42, %s8791_s10  ;;  %v9803_v45 = vpop.permute.xlu0 %1772 }
 0x4af   : > { %2138 = vrot.lane.b32.xlu1 %v2047_v21, %s8792_s11  ;;  %14965 = vst [vmem:[#allocation174_spill] sm:$0xff] %v9803_v45  ;;  %v1791_v21 = vmul.f32 %v9803_v45, %v8885_v10  ;;  %v1792_v42 = vmul.f32 %v9803_v45, %v8883_v9 }
 0x4b6   : > { %1851 = vrot.lane.b32.xlu2 %v1785_v51, %s8791_s10  ;;  %1853 = vrot.lane.b32.xlu0 %v1786_v7, %s8791_s10  ;;  %v1794_v51 = vmul.f32 %v9803_v45, %v8881_v8  ;;  %v1795_v7 = vmul.f32 %v9803_v45, %v8895_v16 }
 0x4b7   : > { %1849 = vrot.lane.b32.xlu1 %v1784_v47, %s8791_s10  ;;  %v1793_v47 = vmul.f32 %v9803_v45, %v8897_v17 }
 0x4be   : > { %1863 = vrot.lane.b32.xlu2 %v1791_v21, %s8791_s10  ;;  %1865 = vrot.lane.b32.xlu0 %v1792_v42, %s8791_s10  ;;  %v9823_v21 = vpop.permute.xlu1 %2005  ;;  %v273_v42 = vld [vmem:[%s14353_s2 + $0x10] sm:$0xff] }
 0x4bf   : > { %1855 = vrot.lane.b32.xlu1 %v1787_v2, %s8791_s10  ;;  %14966 = vst [vmem:[#allocation175_spill] sm:$0xff] %v9823_v21  ;;  %v274_v2 = vld [vmem:[%s14353_s2 + $0x18] sm:$0xff]  ;;  %v2020_v36 = vmul.f32 %v9823_v21, %v8885_v10  ;;  %v2023_v45 = vmul.f32 %v9823_v21, %v8881_v8  ;;  %v2021_v58 = vmul.f32 %v9823_v21, %v8883_v9 }
 0x4c6   : > { %1869 = vrot.lane.b32.xlu2 %v1794_v51, %s8791_s10  ;;  %1871 = vrot.lane.b32.xlu0 %v1795_v7, %s8791_s10  ;;  %v9834_v51 = vpop.permute.xlu2 %2009  ;;  %v9836_v7 = vpop.permute.xlu0 %295 }
 0x4c7   : > { %1867 = vrot.lane.b32.xlu1 %v1793_v47, %s8791_s10  ;;  %14967 = vst [vmem:[#allocation176_spill] sm:$0xff] %v9834_v51  ;;  %v2022_v47 = vmul.f32 %v9823_v21, %v8897_v17 }
 0x4c8   : > { %14968 = vst [vmem:[#allocation177_spill] sm:$0xff] %v9836_v7  ;;  %v2024_v7 = vmul.f32 %v9823_v21, %v8895_v16 }
 0x4ce   : > { %2258 = vperm.xlu2 %8446, %v274_v2   ;;  %2084 = vrot.lane.b32.xlu0 %v2020_v36, %s8792_s11  ;;  %v2029_v2 = vmul.f32 %v9834_v51, %v8883_v9  ;;  %v9855_v15 = vpop.permute.xlu0 %300 }
 0x4cf   : > { %2253 = vperm.xlu1 %8445, %v273_v42   ;;  %v2028_v42 = vmul.f32 %v9834_v51, %v8885_v10  ;;  %14970 = vst [vmem:[#allocation179_spill] sm:$0xff] %v9855_v15 }
 0x4d6   : > { %2088 = vrot.lane.b32.xlu2 %v2022_v47, %s8792_s11  ;;  %2090 = vrot.lane.b32.xlu0 %v2023_v45, %s8792_s11  ;;  %v2032_v45 = vmul.f32 %v9834_v51, %v8895_v16  ;;  %v2031_v47 = vmul.f32 %v9834_v51, %v8881_v8  ;;  %v271_v16 = vld [vmem:[%s14353_s2] sm:$0xff] }
 0x4d7   : > { %2086 = vrot.lane.b32.xlu1 %v2021_v58, %s8792_s11 }
 0x4d8   : > { %v9847_v36 = vpop.permute.xlu2 %1881 }
 0x4d9   : > { %14969 = vst [vmem:[#allocation178_spill] sm:$0xff] %v9847_v36  ;;  %v2030_v36 = vmul.f32 %v9834_v51, %v8897_v17 }
 0x4de   : > { %2102 = vrot.lane.b32.xlu0 %v2029_v2, %s8792_s11  ;;  %2100 = vrot.lane.b32.xlu2 %v2028_v42, %s8792_s11  ;;  %v9871_v2 = vpop.permute.xlu0 %1666  ;;  %v272_v42 = vld [vmem:[%s14353_s2 + $0x8] sm:$0xff] }
 0x4df   : > { %2092 = vrot.lane.b32.xlu1 %v2024_v7, %s8792_s11  ;;  %14972 = vst [vmem:[#allocation181_spill] sm:$0xff] %v9871_v2 }
 0x4e0   : > { %v9860_v58 = vpop.permute.xlu2 %1887 }
 0x4e1   : > { %14971 = vst [vmem:[#allocation180_spill] sm:$0xff] %v9860_v58 }
 0x4e6   : > { %2108 = vrot.lane.b32.xlu0 %v2032_v45, %s8792_s11  ;;  %2106 = vrot.lane.b32.xlu2 %v2031_v47, %s8792_s11 }
 0x4e7   : > { %2104 = vrot.lane.b32.xlu1 %v2030_v36, %s8792_s11 }
 0x4e8   : > { %v9873_v7 = vpop.permute.xlu2 %1899 }
 0x4ee   : > { %2248 = vperm.xlu2 %8446, %v272_v42  }
 0x4ef   : > { %2243 = vperm.xlu1 %8445, %v271_v16  }
 0x4f0   : > { %v9881_v51 = vpop.permute.xlu0 %1883  ;;  %v9883_v45 = vpop.permute.xlu2 %2116 }
 0x4f1   : > { %14973 = vst [vmem:[#allocation182_spill] sm:$0xff] %v9881_v51  ;;  %v9885_v47 = vpop.permute.xlu1 %1879 }
 0x4f2   : > { %14974 = vst [vmem:[#allocation183_spill] sm:$0xff] %v9883_v45 }
 0x4f3   : > { %14975 = vst [vmem:[#allocation184_spill] sm:$0xff] %v9885_v47 }
 0x4f8   : > { %v9887_v36 = vpop.permute.xlu0 %1895  ;;  %v9889_v21 = vpop.permute.xlu2 %2122 }
 0x4f9   : > { %14976 = vst [vmem:[#allocation185_spill] sm:$0xff] %v9889_v21  ;;  %v9891_v58 = vpop.permute.xlu1 %1885  ;;  %v9913_v21 = vmul.f32 %v8923_v32, %v8885_v10 }
 0x4fa   : > { %14977 = vst [vmem:[#allocation186_spill] sm:$0xff] %v9891_v58  ;;  %v511_v58 = vsel %vm489_vm0, %v9086_v12, %v9092_v14  ;;  %v339_v12 = vmul.f32 %v8934_v38, %v8897_v17 }
 0x4fb   : > { %14984 = vst [vmem:[#allocation193_spill] sm:$0xff] %v9913_v21  ;;  %v338_v21 = vmul.f32 %v8934_v38, %v8883_v9 }
 0x500   : > { %v9893_v15 = vpop.permute.xlu0 %1901  ;;  %v9895_v59 = vpop.permute.xlu2 %2134 }
 0x501   : > { %v9897_v48 = vpop.permute.xlu1 %1897 }
 0x508   : > { %v9899_v42 = vpop.permute.xlu0 %2118  ;;  %v9901_v16 = vpop.permute.xlu2 %2140 }
 0x509   : > { %14978 = vst [vmem:[#allocation187_spill] sm:$0xff] %v9899_v42  ;;  %v9903_v51 = vpop.permute.xlu1 %1903  ;;  %v9920_v42 = vmul.f32 %v8923_v32, %v8883_v9 }
 0x50a   : > { %14979 = vst [vmem:[#allocation188_spill] sm:$0xff] %v9901_v16 }
 0x50b   : > { %14980 = vst [vmem:[#allocation189_spill] sm:$0xff] %v9903_v51 }
 0x50c   : > { %14985 = vst [vmem:[#allocation194_spill] sm:$0xff] %v9920_v42  ;;  %v514_v42 = vsel %vm489_vm0, %v9094_v18, %v9099_v56 }
 0x510   : > { %v9905_v45 = vpop.permute.xlu0 %2124  ;;  %v9907_v47 = vpop.permute.xlu2 %1851 }
 0x511   : > { %14981 = vst [vmem:[#allocation190_spill] sm:$0xff] %v9905_v45  ;;  %v9909_v31 = vpop.permute.xlu1 %2120  ;;  %v337_v45 = vmul.f32 %v8934_v38, %v8885_v10 }
 0x512   : > { %14982 = vst [vmem:[#allocation191_spill] sm:$0xff] %v9907_v47  ;;  %v512_v47 = vsel %vm489_vm0, %v9092_v14, %v9096_v20  ;;  %v748_v14 = vsel %vm726_vm1, %v9157_v29, %v9169_v49  ;;  %v987_v29 = vsel %vm963_vm2, %v9283_v25, %v9291_v13 }
 0x513   : > { %14983 = vst [vmem:[#allocation192_spill] sm:$0xff] %v9909_v31  ;;  %v513_v31 = vsel %vm489_vm0, %v9096_v20, %v9094_v18  ;;  %v574_v10 = vadd.f32 %v511_v58, %v337_v45  ;;  %v750_v20 = vsel %vm726_vm1, %v9151_v27, %v9161_v1  ;;  %v575_v9 = vadd.f32 %v512_v47, %v338_v21 }
 0x514   : > { %v576_v60 = vadd.f32 %v513_v31, %v339_v12  ;;  %v577_v18 = vadd.f32 %v514_v42, %v340_v44  ;;  %v751_v58 = vsel %vm726_vm1, %v9161_v1, %v9182_v11  ;;  %v985_v45 = vsel %vm963_vm2, %v9285_v19, %v9303_v63 }
 0x515   : > { %v811_v47 = vadd.f32 %v748_v14, %v574_v10  ;;  %v986_v44 = vsel %vm963_vm2, %v9303_v63, %v9283_v25  ;;  %v9964_v1 = vmul.f32 %v8923_v32, %v8897_v17  ;;  %v812_v27 = vadd.f32 %v749_v39, %v575_v9 }
 0x516   : > { %v813_v12 = vadd.f32 %v750_v20, %v576_v60  ;;  %v988_v19 = vsel %vm963_vm2, %v9291_v13, %v9314_v52  ;;  %v1222_v10 = vsel %vm1200_vm3, %v9421_v50, %v9433_v5  ;;  %v814_v60 = vadd.f32 %v751_v58, %v577_v18 }
 0x517   : > { %v1048_v14 = vadd.f32 %v985_v45, %v811_v47  ;;  %v1223_v25 = vsel %vm1200_vm3, %v9433_v5, %v9413_v26  ;;  %v1049_v63 = vadd.f32 %v986_v44, %v812_v27  ;;  %v1224_v9 = vsel %vm1200_vm3, %v9413_v26, %v9425_v34 }
 0x518   : > { %v2137_v21 = vpop.permute.xlu0 %2136  ;;  %v9957_v31 = vpop.permute.xlu2 %1863  ;;  %v1050_v42 = vadd.f32 %v987_v29, %v813_v12  ;;  %v1225_v39 = vsel %vm1200_vm3, %v9425_v34, %v9444_v3  ;;  %v1051_v13 = vadd.f32 %v988_v19, %v814_v60  ;;  %v1460_v50 = vsel %vm1437_vm4, %v9587_v4, %v9567_v54 }
 0x519   : > { %v2133_v49 = vpop.permute.xlu1 %2132  ;;  %v1285_v20 = vadd.f32 %v1222_v10, %v1048_v14  ;;  %v1459_v5 = vsel %vm1437_vm4, %v9569_v40, %v9587_v4  ;;  %v1286_v18 = vadd.f32 %v1223_v25, %v1049_v63  ;;  %v1461_v26 = vsel %vm1437_vm4, %v9567_v54, %v9575_v0 }
 0x51a   : > { %v1462_v34 = vsel %vm1437_vm4, %v9575_v0, %v9598_v35  ;;  %v332_v58 = vmul.f32 %v8923_v32, %v8881_v8  ;;  %v1287_v29 = vadd.f32 %v1224_v9, %v1050_v42  ;;  %v1288_v45 = vadd.f32 %v1225_v39, %v1051_v13  ;;  %v15046_v3 = vld [vmem:[#allocation192_spill] sm:$0xff] }
 0x51b   : > { %v1696_v47 = vsel %vm1674_vm5, %v9725_v33, %v9713_v23  ;;  %v1523_v40 = vadd.f32 %v1460_v50, %v1286_v18  ;;  %v1522_v4 = vadd.f32 %v1459_v5, %v1285_v20  ;;  %v1698_v54 = vsel %vm1674_vm5, %v9715_v41, %v9740_v46 }
 0x51c   : > { %v1697_v0 = vsel %vm1674_vm5, %v9713_v23, %v9715_v41  ;;  %v1524_v27 = vadd.f32 %v1461_v26, %v1287_v29  ;;  %v1525_v19 = vadd.f32 %v1462_v34, %v1288_v45  ;;  %v1699_v33 = vsel %vm1674_vm5, %v9740_v46, %v9871_v2 }
 0x51d   : > { %v1759_v60 = vadd.f32 %v1696_v47, %v1522_v4  ;;  %v1933_v42 = vsel %vm1911_vm6, %v9887_v36, %v9897_v48  ;;  %v1934_v23 = vsel %vm1911_vm6, %v9897_v48, %v9873_v7  ;;  %v1935_v41 = vsel %vm1911_vm6, %v9873_v7, %v9893_v15  ;;  %v14988_v4 = vld [vmem:[#allocation19_spill] sm:$0xff] }
 0x51e   : > { %v1761_v14 = vadd.f32 %v1698_v54, %v1524_v27  ;;  %v1760_v25 = vadd.f32 %v1697_v0, %v1523_v40  ;;  %v1936_v46 = vsel %vm1911_vm6, %v9893_v15, %v9903_v51  ;;  %v1762_v63 = vadd.f32 %v1699_v33, %v1525_v19  ;;  %v14989_v0 = vld [vmem:[#allocation24_spill] sm:$0xff] }
 0x51f   : > { %v2170_v9 = vsel %vm2148_vm7, %v2133_v49, %v9895_v59  ;;  %v2171_v36 = vsel %vm2148_vm7, %v9895_v59, %v2137_v21  ;;  %v1996_v39 = vadd.f32 %v1933_v42, %v1759_v60  ;;  %v10033_v15 = vsel %vm489_vm0, %v8983_v6, %v8999_v22  ;;  %v14990_v19 = vld [vmem:[#allocation20_spill] sm:$0xff] }
 0x520   : > { %v10004_v12 = vpop.permute.xlu0 %1847  ;;  %v10006_v44 = vpop.permute.xlu2 %1869  ;;  %v1997_v13 = vadd.f32 %v1934_v23, %v1760_v25  ;;  %v1998_v20 = vadd.f32 %v1935_v41, %v1761_v14  ;;  %v10038_v49 = vsel %vm489_vm0, %v8975_v61, %v9001_v24  ;;  %v10043_v59 = vsel %vm489_vm0, %v9001_v24, %v8983_v6  ;;  %v14992_v23 = vld [vmem:[#allocation194_spill] sm:$0xff]  ;;  %v15028_v51 = vld [vmem:[#allocation164_spill] sm:$0xff] }
 0x521   : > { %14986 = vst [vmem:[#allocation195_spill] sm:$0xff] %v10004_v12  ;;  %v2139_v10 = vpop.permute.xlu1 %2138  ;;  %v10048_v50 = vsel %vm489_vm0, %v8999_v22, %v9013_v30  ;;  %v2233_v5 = vadd.f32 %v2170_v9, %v1996_v39  ;;  %v10053_v34 = vsel %vm489_vm0, %v9008_v28, %v9023_v37  ;;  %v504_v61 = vsel %vm489_vm0, %v9061_v55, %v9054_v53  ;;  %v15015_v30 = vld [vmem:[#allocation101_spill] sm:$0xff] }
 0x522   : > { %v2172_v48 = vsel %vm2148_vm7, %v2137_v21, %v2139_v10  ;;  %v2173_v7 = vsel %vm2148_vm7, %v2139_v10, %v9901_v16  ;;  %v1999_v21 = vadd.f32 %v1936_v46, %v1762_v63  ;;  %v2234_v18 = vadd.f32 %v2171_v36, %v1997_v13  ;;  %v14991_v10 = vld [vmem:[#allocation193_spill] sm:$0xff]  ;;  %v14993_v63 = vld [vmem:[#allocation32_spill] sm:$0xff]  ;;  %v14995_v36 = vld [vmem:[#allocation35_spill] sm:$0xff] }
 0x523   : > { %v2235_v26 = vadd.f32 %v2172_v48, %v1998_v20  ;;  %v505_v6 = vsel %vm489_vm0, %v9054_v53, %v9063_v57  ;;  %v506_v45 = vsel %vm489_vm0, %v9063_v57, %v9074_v62  ;;  %v10076_v53 = vsel %vm489_vm0, %v9023_v37, %v9033_v43  ;;  %v14997_v13 = vld [vmem:[#allocation37_spill] sm:$0xff]  ;;  %v15023_v16 = vld [vmem:[#allocation138_spill] sm:$0xff] }
 0x524   : > { %v2236_v24 = vadd.f32 %v2173_v7, %v1999_v21  ;;  %v10081_v54 = vsel %vm489_vm0, %v9033_v43, %v14988_v4  ;;  %v507_v57 = vsel %vm489_vm0, %v9074_v62, %v14989_v0  ;;  %v10090_v33 = vsel %vm489_vm0, %v14988_v4, %v14990_v19  ;;  %v14994_v62 = vld [vmem:[#allocation33_spill] sm:$0xff]  ;;  %v14999_v7 = vld [vmem:[#allocation51_spill] sm:$0xff]  ;;  %v15017_v19 = vld [vmem:[#allocation110_spill] sm:$0xff] }
 0x525   : > { %v566_v60 = vadd.f32 %v504_v61, %v14991_v10  ;;  %v567_v41 = vadd.f32 %v505_v6, %v14992_v23  ;;  %v568_v43 = vadd.f32 %v506_v45, %v9964_v1  ;;  %v569_v46 = vadd.f32 %v507_v57, %v332_v58  ;;  %v14998_v1 = vld [vmem:[#allocation38_spill] sm:$0xff]  ;;  %v15000_v21 = vld [vmem:[#allocation45_spill] sm:$0xff]  ;;  %v15002_v6 = vld [vmem:[#allocation48_spill] sm:$0xff] }
 0x526   : > { %v10098_v9 = vsel %vm726_vm1, %v14994_v62, %v14993_v63  ;;  %v10103_v48 = vsel %vm726_vm1, %v14995_v36, %v14994_v62  ;;  %v10110_v20 = vsel %vm726_vm1, %v14993_v63, %v14997_v13  ;;  %v10115_v58 = vsel %vm726_vm1, %v14997_v13, %v14998_v1  ;;  %v15006_v57 = vld [vmem:[#allocation43_spill] sm:$0xff]  ;;  %v15010_v62 = vld [vmem:[#allocation81_spill] sm:$0xff]  ;;  %v15011_v13 = vld [vmem:[#allocation82_spill] sm:$0xff] }
 0x527   : > { %v15009_v23 = vld [vmem:[#allocation75_spill] sm:$0xff] }
 0x528   : > { %v10061_v29 = vpop.permute.xlu0 %1853  ;;  %v10063_v22 = vpop.permute.xlu2 %2258  ;;  %v978_v36 = vsel %vm963_vm2, %v15010_v62, %v15009_v23  ;;  %v15014_v1 = vld [vmem:[#allocation107_spill] sm:$0xff] }
 0x529   : > { %14987 = vst [vmem:[#allocation196_spill] sm:$0xff] %v10063_v22  ;;  %v10068_v47 = vpop.permute.xlu1 %1849  ;;  %v2285_v28 = vadd.f32 %v10063_v22, %v2233_v5  ;;  %v2286_v40 = vadd.f32 %v10063_v22, %v2234_v18  ;;  %v2287_v55 = vadd.f32 %v10063_v22, %v2235_v26  ;;  %v2288_v27 = vadd.f32 %v10063_v22, %v2236_v24  ;;  %v15001_v26 = vld [vmem:[#allocation52_spill] sm:$0xff]  ;;  %v15003_v24 = vld [vmem:[#allocation54_spill] sm:$0xff] }
 0x52a   : > { %v742_v5 = vsel %vm726_vm1, %v15000_v21, %v14999_v7  ;;  %v741_v61 = vsel %vm726_vm1, %v15001_v26, %v15000_v21  ;;  %v744_v45 = vsel %vm726_vm1, %v15003_v24, %v15002_v6  ;;  %v15012_v21 = vld [vmem:[#allocation78_spill] sm:$0xff]  ;;  %v15018_v22 = vld [vmem:[#allocation104_spill] sm:$0xff] }
 0x52b   : > { %v2317_v37 = vmax.f32 %v2285_v28, 0.0  ;;  %v2318_v42 = vmax.f32 %v2286_v40, 0.0  ;;  %v2319_v14 = vmax.f32 %v2287_v55, 0.0  ;;  %v2320_v25 = vmax.f32 %v2288_v27, 0.0  ;;  %v15004_v40 = vld [vmem:[#allocation39_spill] sm:$0xff]  ;;  %v15005_v55 = vld [vmem:[#allocation44_spill] sm:$0xff] }
 0x52c   : > { %v743_v28 = vsel %vm726_vm1, %v14999_v7, %v15003_v24  ;;  %v10137_v4 = vsel %vm726_vm1, %v15005_v55, %v15004_v40  ;;  %v15007_v27 = vld [vmem:[#allocation36_spill] sm:$0xff]  ;;  %v804_v63 = vadd.f32 %v742_v5, %v567_v41  ;;  %v981_v26 = vsel %vm963_vm2, %v15011_v13, %v15012_v21  ;;  %v15039_v21 = vld [vmem:[#allocation186_spill] sm:$0xff] }
 0x52d   : > { %v10105_v39 = vpack.c.bf16 %v2318_v42, %v2317_v37  ;;  %v10120_v18 = vpack.c.bf16 %v2320_v25, %v2319_v14  ;;  %v10142_v10 = vsel %vm726_vm1, %v15007_v27, %v15006_v57  ;;  %v10147_v37 = vsel %vm726_vm1, %v15006_v57, %v15005_v55  ;;  %v15008_v42 = vld [vmem:[#allocation76_spill] sm:$0xff]  ;;  %v15048_v6 = vld [vmem:[#allocation190_spill] sm:$0xff] }
 0x52e   : > { %v979_v14 = vsel %vm963_vm2, %v15009_v23, %v15008_v42  ;;  %v980_v7 = vsel %vm963_vm2, %v15008_v42, %v15011_v13  ;;  %v803_v55 = vadd.f32 %v741_v61, %v566_v60  ;;  %v806_v57 = vadd.f32 %v744_v45, %v569_v46  ;;  %v15016_v23 = vld [vmem:[#allocation108_spill] sm:$0xff]  ;;  %v15019_v61 = vld [vmem:[#allocation134_spill] sm:$0xff] }
 0x52f   : > { %14996 = vst [vmem:[#allocation19_spill] sm:$0xff] %v10105_v39  ;;  %3161 = vrot.lane.b32.xlu2 %v10105_v39, %s8792_s11  ;;  %v805_v27 = vadd.f32 %v743_v28, %v568_v43  ;;  %v1216_v41 = vsel %vm1200_vm3, %v15015_v30, %v15014_v1  ;;  %v1041_v5 = vadd.f32 %v979_v14, %v804_v63  ;;  %v15020_v45 = vld [vmem:[#allocation130_spill] sm:$0xff]  ;;  %v15021_v63 = vld [vmem:[#allocation137_spill] sm:$0xff] }
 0x530   : > { %2353 = vst [vmem:[#allocation2 + $0x54] sm:$0xff] %v10105_v39  ;;  %v10153_v25 = vpop.permute.xlu0 %1865  ;;  %v1215_v62 = vsel %vm1200_vm3, %v15016_v23, %v15015_v30  ;;  %v1217_v42 = vsel %vm1200_vm3, %v15014_v1, %v15017_v19  ;;  %v1218_v13 = vsel %vm1200_vm3, %v15017_v19, %v15018_v22  ;;  %v1040_v60 = vadd.f32 %v978_v36, %v803_v55  ;;  %v15022_v23 = vld [vmem:[#allocation133_spill] sm:$0xff] }
 0x531   : > { %2354 = vst [vmem:[#allocation2 + $0x5c] sm:$0xff] %v10120_v18  ;;  %v10164_v24 = vpop.permute.xlu1 %1855  ;;  %v1042_v46 = vadd.f32 %v980_v7, %v805_v27  ;;  %v1043_v43 = vadd.f32 %v981_v26, %v806_v57  ;;  %v1453_v28 = vsel %vm1437_vm4, %v15020_v45, %v15019_v61  ;;  %v1278_v14 = vadd.f32 %v1216_v41, %v1041_v5  ;;  %v15024_v55 = vld [vmem:[#allocation165_spill] sm:$0xff]  ;;  %v15026_v5 = vld [vmem:[#allocation160_spill] sm:$0xff] }
 0x532   : > { %15013 = vst [vmem:[#allocation193_spill] sm:$0xff] %v10164_v24  ;;  %v1452_v30 = vsel %vm1437_vm4, %v15021_v63, %v15020_v45  ;;  %v1455_v1 = vsel %vm1437_vm4, %v15023_v16, %v15022_v23  ;;  %v1454_v19 = vsel %vm1437_vm4, %v15019_v61, %v15023_v16  ;;  %v1277_v36 = vadd.f32 %v1215_v62, %v1040_v60  ;;  %v15025_v57 = vld [vmem:[#allocation161_spill] sm:$0xff]  ;;  %v15027_v63 = vld [vmem:[#allocation163_spill] sm:$0xff]  ;;  %v15029_v62 = vld [vmem:[#allocation46_spill] sm:$0xff] }
 0x533   : > { %v1279_v7 = vadd.f32 %v1217_v42, %v1042_v46  ;;  %v1280_v26 = vadd.f32 %v1218_v13, %v1043_v43  ;;  %v1690_v27 = vsel %vm1674_vm5, %v15025_v57, %v15024_v55  ;;  %v1515_v41 = vadd.f32 %v1453_v28, %v1278_v14  ;;  %v15030_v61 = vld [vmem:[#allocation64_spill] sm:$0xff] }
 0x534   : > { %v1689_v45 = vsel %vm1674_vm5, %v15026_v5, %v15025_v57  ;;  %v1691_v23 = vsel %vm1674_vm5, %v15024_v55, %v15027_v63  ;;  %v1692_v16 = vsel %vm1674_vm5, %v15027_v63, %v15028_v51  ;;  %v737_v42 = vsel %vm726_vm1, %v15004_v40, %v15029_v62  ;;  %v15031_v28 = vld [vmem:[#allocation60_spill] sm:$0xff]  ;;  %v15032_v57 = vld [vmem:[#allocation62_spill] sm:$0xff]  ;;  %v15033_v5 = vld [vmem:[#allocation61_spill] sm:$0xff] }
 0x535   : > { %v1514_v13 = vadd.f32 %v1452_v30, %v1277_v36  ;;  %v1517_v60 = vadd.f32 %v1455_v1, %v1280_v26  ;;  %v1516_v46 = vadd.f32 %v1454_v19, %v1279_v7  ;;  %v10210_v14 = vsel %vm963_vm2, %v15031_v28, %v15030_v61  ;;  %v15034_v7 = vld [vmem:[#allocation8_spill] sm:$0xff]  ;;  %v15035_v26 = vld [vmem:[#allocation179_spill] sm:$0xff]  ;;  %v15036_v62 = vld [vmem:[#allocation178_spill] sm:$0xff] }
 0x536   : > { %v10215_v55 = vsel %vm963_vm2, %v15030_v61, %v15032_v57  ;;  %v10220_v63 = vsel %vm963_vm2, %v15032_v57, %v15033_v5  ;;  %v1752_v40 = vadd.f32 %v1690_v27, %v1515_v41  ;;  %v321_v28 = vmul.f32 %v15035_v26, %v15034_v7  ;;  %v15037_v51 = vld [vmem:[#allocation184_spill] sm:$0xff]  ;;  %v15038_v61 = vld [vmem:[#allocation182_spill] sm:$0xff]  ;;  %v15044_v57 = vld [vmem:[#allocation187_spill] sm:$0xff] }
 0x537   : > { %v1751_v1 = vadd.f32 %v1689_v45, %v1514_v13  ;;  %v1753_v19 = vadd.f32 %v1691_v23, %v1516_v46  ;;  %v1754_v36 = vadd.f32 %v1692_v16, %v1517_v60  ;;  %v1926_v22 = vsel %vm1911_vm6, %v15037_v51, %v15036_v62  ;;  %v15040_v41 = vld [vmem:[#allocation180_spill] sm:$0xff]  ;;  %v15041_v45 = vld [vmem:[#allocation177_spill] sm:$0xff]  ;;  %v15042_v13 = vld [vmem:[#allocation7_spill] sm:$0xff]  ;;  %v10244_v46 = vpop.permute.xlu2 %2088 }
 0x538   : > { %v10205_v43 = vpop.permute.xlu0 %1871  ;;  %v1927_v2 = vsel %vm1911_vm6, %v15036_v62, %v15038_v61  ;;  %v1928_v27 = vsel %vm1911_vm6, %v15038_v61, %v15039_v21  ;;  %v1929_v23 = vsel %vm1911_vm6, %v15039_v21, %v15040_v41  ;;  %v313_v16 = vmul.f32 %v15041_v45, %v15034_v7  ;;  %15043 = vst [vmem:[#allocation194_spill] sm:$0xff] %v10244_v46  ;;  %v15045_v61 = vld [vmem:[#allocation183_spill] sm:$0xff]  ;;  %v15047_v7 = vld [vmem:[#allocation185_spill] sm:$0xff] }
 0x539   : > { %v10222_v30 = vpop.permute.xlu1 %1867  ;;  %v314_v60 = vmul.f32 %v15041_v45, %v15042_v13  ;;  %v315_v51 = vmul.f32 %v15041_v45, %v8897_v17  ;;  %v324_v62 = vmul.f32 %v15035_v26, %v8881_v8  ;;  %v2163_v35 = vsel %vm2148_vm7, %v15045_v61, %v15044_v57 }
 0x53a   : > { %v2164_v21 = vsel %vm2148_vm7, %v15044_v57, %v15046_v3  ;;  %v2165_v41 = vsel %vm2148_vm7, %v15046_v3, %v15047_v7  ;;  %v2166_v52 = vsel %vm2148_vm7, %v15047_v7, %v15048_v6  ;;  %v1988_v11 = vadd.f32 %v1926_v22, %v1751_v1 }
 0x53b   : > { %v1989_v32 = vadd.f32 %v1927_v2, %v1752_v40  ;;  %v1990_v38 = vadd.f32 %v1928_v27, %v1753_v19  ;;  %v1991_v0 = vadd.f32 %v1929_v23, %v1754_v36  ;;  %v316_v56 = vmul.f32 %v15041_v45, %v8881_v8  ;;  %v15050_v19 = vld [vmem:[#allocation68_spill] sm:$0xff]  ;;  %v15053_v27 = vld [vmem:[#allocation74_spill] sm:$0xff] }
 0x53c   : > { %v558_v61 = vadd.f32 %v10053_v34, %v321_v28  ;;  %v322_v57 = vmul.f32 %v15035_v26, %v15042_v13  ;;  %v323_v39 = vmul.f32 %v15035_v26, %v8897_v17  ;;  %v2225_v3 = vadd.f32 %v2163_v35, %v1988_v11  ;;  %v15051_v28 = vld [vmem:[#allocation66_spill] sm:$0xff] }
 0x53d   : > { %v2226_v46 = vadd.f32 %v2164_v21, %v1989_v32  ;;  %v2227_v24 = vadd.f32 %v2165_v41, %v1990_v38  ;;  %v2228_v12 = vadd.f32 %v2166_v52, %v1991_v0  ;;  %v550_v2 = vadd.f32 %v10038_v49, %v313_v16  ;;  %v15058_v21 = vld [vmem:[#allocation89_spill] sm:$0xff] }
 0x53e   : > { %v551_v22 = vadd.f32 %v10043_v59, %v314_v60  ;;  %v552_v8 = vadd.f32 %v10033_v15, %v315_v51  ;;  %v561_v34 = vadd.f32 %v10090_v33, %v324_v62  ;;  %v553_v11 = vadd.f32 %v10048_v50, %v316_v56  ;;  %v15054_v50 = vld [vmem:[#allocation69_spill] sm:$0xff]  ;;  %v15055_v51 = vld [vmem:[#allocation70_spill] sm:$0xff] }
 0x53f   : > { %v795_v35 = vadd.f32 %v10142_v10, %v558_v61  ;;  %v559_v52 = vadd.f32 %v10076_v53, %v322_v57  ;;  %v560_v15 = vadd.f32 %v10081_v54, %v323_v39  ;;  %v967_v36 = vsel %vm963_vm2, %v15033_v5, %v15050_v19  ;;  %v10296_v10 = vpop.permute.xlu2 %2100  ;;  %v15059_v61 = vld [vmem:[#allocation93_spill] sm:$0xff]  ;;  %v15060_v57 = vld [vmem:[#allocation94_spill] sm:$0xff] }
 0x540   : > { %v10267_v7 = vpop.permute.xlu0 %2084  ;;  %v972_v56 = vsel %vm963_vm2, %v15051_v28, %v15053_v27  ;;  %v973_v53 = vsel %vm963_vm2, %v15053_v27, %v15054_v50  ;;  %v787_v54 = vadd.f32 %v10103_v48, %v550_v2  ;;  %v798_v39 = vadd.f32 %v737_v42, %v561_v34  ;;  %v15067_v27 = vld [vmem:[#allocation118_spill] sm:$0xff] }
 0x541   : > { %v10273_v40 = vpop.permute.xlu1 %2253  ;;  %v788_v23 = vadd.f32 %v10098_v9, %v551_v22  ;;  %v796_v13 = vadd.f32 %v10147_v37, %v559_v52  ;;  %v797_v60 = vadd.f32 %v10137_v4, %v560_v15  ;;  %v789_v48 = vadd.f32 %v10110_v20, %v552_v8  ;;  %v15056_v37 = vld [vmem:[#allocation91_spill] sm:$0xff]  ;;  %v15057_v4 = vld [vmem:[#allocation88_spill] sm:$0xff] }
 0x542   : > { %15049 = vst [vmem:[#allocation32_spill] sm:$0xff] %v10273_v40  ;;  %v2277_v1 = vadd.f32 %v10273_v40, %v2225_v3  ;;  %v2278_v17 = vadd.f32 %v10273_v40, %v2226_v46  ;;  %v2279_v32 = vadd.f32 %v10273_v40, %v2227_v24  ;;  %v2280_v38 = vadd.f32 %v10273_v40, %v2228_v12  ;;  %v15052_v24 = vld [vmem:[#allocation67_spill] sm:$0xff]  ;;  %v15062_v8 = vld [vmem:[#allocation92_spill] sm:$0xff] }
 0x543   : > { %v971_v12 = vsel %vm963_vm2, %v15052_v24, %v15051_v28  ;;  %v974_v46 = vsel %vm963_vm2, %v15054_v50, %v15055_v51  ;;  %v790_v42 = vadd.f32 %v10115_v58, %v553_v11  ;;  %v1201_v62 = vsel %vm1200_vm3, %v15057_v4, %v15056_v37  ;;  %v15061_v22 = vld [vmem:[#allocation99_spill] sm:$0xff]  ;;  %v15069_v50 = vld [vmem:[#allocation120_spill] sm:$0xff] }
 0x544   : > { %v2309_v49 = vmax.f32 %v2277_v1, 0.0  ;;  %v2310_v59 = vmax.f32 %v2278_v17, 0.0  ;;  %v2311_v0 = vmax.f32 %v2279_v32, 0.0  ;;  %v2312_v33 = vmax.f32 %v2280_v38, 0.0  ;;  %v15063_v1 = vld [vmem:[#allocation100_spill] sm:$0xff] }
 0x545   : > { %v1032_v16 = vadd.f32 %v971_v12, %v795_v35  ;;  %v1202_v20 = vsel %vm1200_vm3, %v15056_v37, %v15058_v21  ;;  %v1203_v58 = vsel %vm1200_vm3, %v15058_v21, %v15059_v61  ;;  %v1204_v3 = vsel %vm1200_vm3, %v15059_v61, %v15060_v57  ;;  %v15066_v12 = vld [vmem:[#allocation116_spill] sm:$0xff] }
 0x546   : > { %v10298_v41 = vpack.c.bf16 %v2310_v59, %v2309_v49  ;;  %v10300_v5 = vpack.c.bf16 %v2312_v33, %v2311_v0  ;;  %v1208_v34 = vsel %vm1200_vm3, %v15062_v8, %v15061_v22  ;;  %v1209_v17 = vsel %vm1200_vm3, %v15061_v22, %v15063_v1  ;;  %v15064_v49 = vld [vmem:[#allocation95_spill] sm:$0xff]  ;;  %v15065_v0 = vld [vmem:[#allocation102_spill] sm:$0xff]  ;;  %v15075_v22 = vld [vmem:[#allocation128_spill] sm:$0xff] }
 0x547   : > { %v1024_v32 = vadd.f32 %v10210_v14, %v787_v54  ;;  %v1035_v38 = vadd.f32 %v974_v46, %v798_v39  ;;  %v1025_v11 = vadd.f32 %v10215_v55, %v788_v23  ;;  %v1269_v35 = vadd.f32 %v1208_v34, %v1032_v16  ;;  %v15068_v55 = vld [vmem:[#allocation117_spill] sm:$0xff]  ;;  %v15070_v54 = vld [vmem:[#allocation123_spill] sm:$0xff]  ;;  %v15071_v23 = vld [vmem:[#allocation124_spill] sm:$0xff] }
 0x548   : > { %2349 = vst [vmem:[#allocation2 + $0x38] sm:$0xff] %v10298_v41  ;;  %3153 = vrot.lane.b32.xlu0 %v10298_v41, %s8792_s11  ;;  %3155 = vrot.lane.b32.xlu1 %v10300_v5, %s8792_s11  ;;  %v10315_v9 = vpop.permute.xlu0 %2090  ;;  %v1033_v52 = vadd.f32 %v972_v56, %v796_v13  ;;  %v1034_v15 = vadd.f32 %v973_v53, %v797_v60  ;;  %v15072_v16 = vld [vmem:[#allocation129_spill] sm:$0xff] }
 0x549   : > { %2350 = vst [vmem:[#allocation2 + $0x40] sm:$0xff] %v10300_v5  ;;  %v10330_v2 = vpop.permute.xlu1 %2086  ;;  %v1210_v59 = vsel %vm1200_vm3, %v15063_v1, %v15064_v49  ;;  %v1211_v33 = vsel %vm1200_vm3, %v15064_v49, %v15065_v0  ;;  %v1026_v28 = vadd.f32 %v10220_v63, %v789_v48  ;;  %v1027_v24 = vadd.f32 %v967_v36, %v790_v42  ;;  %v15073_v36 = vld [vmem:[#allocation125_spill] sm:$0xff]  ;;  %v2107_v49 = vpop.permute.xlu2 %2106 }
 0x54a   : > { %v1439_v14 = vsel %vm1437_vm4, %v15067_v27, %v15066_v12  ;;  %v1438_v56 = vsel %vm1437_vm4, %v15068_v55, %v15067_v27  ;;  %v1440_v53 = vsel %vm1437_vm4, %v15066_v12, %v15069_v50  ;;  %v1441_v39 = vsel %vm1437_vm4, %v15069_v50, %v15070_v54  ;;  %v15074_v13 = vld [vmem:[#allocation121_spill] sm:$0xff] }
 0x54b   : > { %v1447_v63 = vsel %vm1437_vm4, %v15072_v16, %v15071_v23  ;;  %v1445_v60 = vsel %vm1437_vm4, %v15074_v13, %v15073_v36  ;;  %v1261_v46 = vadd.f32 %v1201_v62, %v1024_v32  ;;  %v1272_v48 = vadd.f32 %v1211_v33, %v1035_v38  ;;  %v15076_v32 = vld [vmem:[#allocation146_spill] sm:$0xff]  ;;  %v15078_v38 = vld [vmem:[#allocation147_spill] sm:$0xff]  ;;  %v15082_v33 = vld [vmem:[#allocation153_spill] sm:$0xff] }
 0x54c   : > { %v1262_v42 = vadd.f32 %v1202_v20, %v1025_v11  ;;  %v1506_v37 = vadd.f32 %v1445_v60, %v1269_v35  ;;  %v1270_v4 = vadd.f32 %v1209_v17, %v1033_v52  ;;  %v1271_v21 = vadd.f32 %v1210_v59, %v1034_v15  ;;  %v15077_v20 = vld [vmem:[#allocation145_spill] sm:$0xff]  ;;  %v15079_v35 = vld [vmem:[#allocation148_spill] sm:$0xff]  ;;  %v15081_v59 = vld [vmem:[#allocation154_spill] sm:$0xff] }
 0x54d   : > { %v1446_v61 = vsel %vm1437_vm4, %v15073_v36, %v15072_v16  ;;  %v1448_v8 = vsel %vm1437_vm4, %v15071_v23, %v15075_v22  ;;  %v1263_v34 = vadd.f32 %v1203_v58, %v1026_v28  ;;  %v1264_v1 = vadd.f32 %v1204_v3, %v1027_v24  ;;  %v15080_v15 = vld [vmem:[#allocation149_spill] sm:$0xff]  ;;  %v15083_v36 = vld [vmem:[#allocation155_spill] sm:$0xff] }
 0x54e   : > { %v1675_v17 = vsel %vm1674_vm5, %v15077_v20, %v15076_v32  ;;  %v1676_v11 = vsel %vm1674_vm5, %v15076_v32, %v15078_v38  ;;  %v1677_v52 = vsel %vm1674_vm5, %v15078_v38, %v15079_v35  ;;  %v1678_v58 = vsel %vm1674_vm5, %v15079_v35, %v15080_v15  ;;  %v15084_v38 = vld [vmem:[#allocation156_spill] sm:$0xff] }
 0x54f   : > { %v1682_v28 = vsel %vm1674_vm5, %v15082_v33, %v15081_v59  ;;  %v1498_v24 = vadd.f32 %v1438_v56, %v1261_v46  ;;  %v1919_v12 = vsel %vm1911_vm6, %v9957_v31, %v10153_v25  ;;  %v1509_v27 = vadd.f32 %v1448_v8, %v1272_v48  ;;  %v15085_v46 = vld [vmem:[#allocation159_spill] sm:$0xff] }
 0x550   : > { %3163 = vrot.lane.b32.xlu0 %v10120_v18, %s8792_s11  ;;  %v2103_v62 = vpop.permute.xlu0 %2102  ;;  %v1499_v55 = vadd.f32 %v1439_v14, %v1262_v42  ;;  %v1743_v50 = vadd.f32 %v1682_v28, %v1506_v37  ;;  %v1507_v23 = vadd.f32 %v1446_v61, %v1270_v4  ;;  %v1508_v16 = vadd.f32 %v1447_v63, %v1271_v21  ;;  %v15086_v8 = vld [vmem:[#allocation191_spill] sm:$0xff] }
 0x551   : > { %v10385_v3 = vpop.permute.xlu1 %2092  ;;  %v1683_v13 = vsel %vm1674_vm5, %v15081_v59, %v15083_v36  ;;  %v1500_v60 = vadd.f32 %v1440_v53, %v1263_v34  ;;  %v1501_v32 = vadd.f32 %v1441_v39, %v1264_v1  ;;  %v2156_v20 = vsel %vm2148_vm7, %v10296_v10, %v2103_v62  ;;  %v10426_v28 = vpop.permute.xlu2 %2248 }
 0x552   : > { %v1684_v56 = vsel %vm1674_vm5, %v15083_v36, %v15084_v38  ;;  %v1685_v31 = vsel %vm1674_vm5, %v15084_v38, %v15085_v46  ;;  %v1980_v14 = vadd.f32 %v1919_v12, %v1743_v50  ;;  %v1922_v63 = vsel %vm1911_vm6, %v10006_v44, %v10205_v43 }
 0x553   : > { %v1735_v48 = vadd.f32 %v1675_v17, %v1498_v24  ;;  %v1920_v53 = vsel %vm1911_vm6, %v10153_v25, %v10222_v30  ;;  %v1921_v10 = vsel %vm1911_vm6, %v10222_v30, %v10006_v44  ;;  %v1746_v39 = vadd.f32 %v1685_v31, %v1509_v27  ;;  %v15087_v25 = vld [vmem:[#allocation195_spill] sm:$0xff]  ;;  %v15088_v27 = vld [vmem:[#allocation193_spill] sm:$0xff] }
 0x554   : > { %v1736_v42 = vadd.f32 %v1676_v11, %v1499_v55  ;;  %v1744_v37 = vadd.f32 %v1683_v13, %v1507_v23  ;;  %v1745_v4 = vadd.f32 %v1684_v56, %v1508_v16  ;;  %v2217_v21 = vadd.f32 %v2156_v20, %v1980_v14  ;;  %v15089_v13 = vld [vmem:[#allocation194_spill] sm:$0xff] }
 0x555   : > { %v1737_v61 = vadd.f32 %v1677_v52, %v1500_v60  ;;  %v1914_v34 = vsel %vm1911_vm6, %v15086_v8, %v10061_v29  ;;  %v1738_v1 = vadd.f32 %v1678_v58, %v1501_v32  ;;  %v1983_v17 = vadd.f32 %v1922_v63, %v1746_v39 }
 0x556   : > { %v1912_v59 = vsel %vm1911_vm6, %v15087_v25, %v10068_v47  ;;  %v1981_v33 = vadd.f32 %v1920_v53, %v1744_v37  ;;  %v1982_v44 = vadd.f32 %v1921_v10, %v1745_v4  ;;  %v1913_v52 = vsel %vm1911_vm6, %v10068_v47, %v15086_v8 }
 0x557   : > { %v1915_v55 = vsel %vm1911_vm6, %v10061_v29, %v15088_v27  ;;  %v2269_v50 = vadd.f32 %v10426_v28, %v2217_v21  ;;  %v1974_v36 = vadd.f32 %v1914_v34, %v1737_v61  ;;  %v2149_v47 = vsel %vm2148_vm7, %v10267_v7, %v10330_v2 }
 0x558   : > { %v10416_v35 = vpop.permute.xlu0 %2108  ;;  %v2150_v60 = vsel %vm2148_vm7, %v10330_v2, %v15089_v13  ;;  %v2152_v29 = vsel %vm2148_vm7, %v10315_v9, %v10385_v3  ;;  %v1972_v38 = vadd.f32 %v1912_v59, %v1735_v48  ;;  %v1973_v7 = vadd.f32 %v1913_v52, %v1736_v42 }
 0x559   : > { %v2105_v30 = vpop.permute.xlu1 %2104  ;;  %v2159_v11 = vsel %vm2148_vm7, %v2107_v49, %v10416_v35  ;;  %v1975_v56 = vadd.f32 %v1915_v55, %v1738_v1  ;;  %v2301_v14 = vmax.f32 %v2269_v50, 0.0 }
 0x55a   : > { %v2157_v58 = vsel %vm2148_vm7, %v2103_v62, %v2105_v30  ;;  %v2158_v24 = vsel %vm2148_vm7, %v2105_v30, %v2107_v49  ;;  %v2220_v12 = vadd.f32 %v2159_v11, %v1983_v17  ;;  %v2151_v62 = vsel %vm2148_vm7, %v15089_v13, %v10315_v9 }
 0x55b   : > { %v2218_v23 = vadd.f32 %v2157_v58, %v1981_v33  ;;  %v2219_v16 = vadd.f32 %v2158_v24, %v1982_v44  ;;  %v2209_v10 = vadd.f32 %v2149_v47, %v1972_v38  ;;  %v2210_v39 = vadd.f32 %v2150_v60, %v1973_v7  ;;  %v15090_v44 = vld [vmem:[#allocation19_spill] sm:$0xff] }
 0x55c   : > { %v2272_v49 = vadd.f32 %v10426_v28, %v2220_v12  ;;  %v2211_v37 = vadd.f32 %v2151_v62, %v1974_v36  ;;  %v2212_v4 = vadd.f32 %v2152_v29, %v1975_v56  ;;  %v15094_v62 = vld [vmem:[#allocation9_spill] sm:$0xff] }
 0x55d   : > { %v2270_v32 = vadd.f32 %v10426_v28, %v2218_v23  ;;  %v2271_v20 = vadd.f32 %v10426_v28, %v2219_v16 }
 0x55e   : > { %v2304_v31 = vmax.f32 %v2272_v49, 0.0  ;;  %v15095_v49 = vld [vmem:[#allocation144_spill] sm:$0xff] }
 0x55f   : > { %v2302_v63 = vmax.f32 %v2270_v32, 0.0  ;;  %v2303_v53 = vmax.f32 %v2271_v20, 0.0  ;;  %v1576_v60 = vmul.f32 %v15095_v49, %v15094_v62  ;;  %v15096_v32 = vld [vmem:[#allocation12_spill] sm:$0xff] }
 0x560   : > { %v1575_v20 = vmul.f32 %v15095_v49, %v15096_v32 }
 0x561   : > { %v10449_v2 = vpack.c.bf16 %v2302_v63, %v2301_v14  ;;  %v10451_v21 = vpack.c.bf16 %v2304_v31, %v2303_v53  ;;  %v10453_v9 = vpop.permute.xlu1 %2243  ;;  %v15097_v31 = vld [vmem:[#allocation170_spill] sm:$0xff] }
 0x562   : > { %v2261_v61 = vadd.f32 %v10453_v9, %v2209_v10  ;;  %v2262_v48 = vadd.f32 %v10453_v9, %v2210_v39  ;;  %v2263_v42 = vadd.f32 %v10453_v9, %v2211_v37  ;;  %v2264_v8 = vadd.f32 %v10453_v9, %v2212_v4  ;;  %v15099_v10 = vld [vmem:[#allocation169_spill] sm:$0xff] }
 0x563   : > { %2345 = vst [vmem:[#allocation2 + $0x1c] sm:$0xff] %v10449_v2  ;;  %3145 = vrot.lane.b32.xlu0 %v10449_v2, %s8792_s11  ;;  %v1812_v14 = vmul.f32 %v15097_v31, %v15096_v32  ;;  %v1804_v39 = vmul.f32 %v15099_v10, %v15096_v32  ;;  %v1805_v37 = vmul.f32 %v15099_v10, %v15094_v62 }
 0x564   : > { %2346 = vst [vmem:[#allocation2 + $0x24] sm:$0xff] %v10451_v21  ;;  %v2293_v34 = vmax.f32 %v2261_v61, 0.0  ;;  %v2294_v1 = vmax.f32 %v2262_v48, 0.0  ;;  %v2295_v17 = vmax.f32 %v2263_v42, 0.0  ;;  %v2296_v25 = vmax.f32 %v2264_v8, 0.0 }
 0x566   : > { %v10463_v59 = vpack.c.bf16 %v2294_v1, %v2293_v34  ;;  %v10465_v33 = vpack.c.bf16 %v2296_v25, %v2295_v17 }
 0x568   : > { %2341 = vst [vmem:[#allocation2] sm:$0xff] %v10463_v59  ;;  %3139 = vrot.lane.b32.xlu2 %v10465_v33, %s8792_s11  ;;  %3137 = vrot.lane.b32.xlu1 %v10463_v59, %s8792_s11 }
 0x569   : > { %2342 = vst [vmem:[#allocation2 + $0x8] sm:$0xff] %v10465_v33 }
 0x56b   : > { %2610 = vrot.lane.b32.xlu0 %v10300_v5, %s8782_s20 }
 0x570   : > { %2608 = vrot.lane.b32.xlu2 %v10298_v41, %s8782_s20  ;;  %3147 = vrot.lane.b32.xlu1 %v10451_v21, %s8792_s11 }
 0x573   : > { %2592 = vrot.lane.b32.xlu0 %v10463_v59, %s8782_s20 }
 0x578   : > { %2618 = vrot.lane.b32.xlu2 %v10120_v18, %s8782_s20  ;;  %2616 = vrot.lane.b32.xlu1 %v15090_v44, %s8782_s20 }
 0x57b   : > { %2602 = vrot.lane.b32.xlu0 %v10451_v21, %s8782_s20 }
 0x580   : > { %2594 = vrot.lane.b32.xlu1 %v10465_v33, %s8782_s20  ;;  %2600 = vrot.lane.b32.xlu2 %v10449_v2, %s8782_s20 }
 0x583   : > { %2507 = vrot.lane.b32.xlu0 %v15090_v44, %s8780_s19 }
 0x588   : > { %2499 = vrot.lane.b32.xlu1 %v10298_v41, %s8780_s19  ;;  %2501 = vrot.lane.b32.xlu2 %v10300_v5, %s8780_s19 }
 0x589   : > { %v3162_v30 = vpop.permute.xlu2 %3161 }
 0x58a   : > { %v3181_v16 = vrot.slane %v3162_v30, 4 }
 0x58b   : > { %2485 = vrot.lane.b32.xlu0 %v10465_v33, %s8780_s19 }
 0x590   : > { %2509 = vrot.lane.b32.xlu1 %v10120_v18, %s8780_s19  ;;  %2483 = vrot.lane.b32.xlu2 %v10463_v59, %s8780_s19 }
 0x593   : > { %2389 = vrot.lane.b32.xlu0 %v10298_v41, %s8779_s18 }
 0x598   : > { %2491 = vrot.lane.b32.xlu1 %v10449_v2, %s8780_s19  ;;  %2493 = vrot.lane.b32.xlu2 %v10451_v21, %s8780_s19 }
 0x59b   : > { %2399 = vrot.lane.b32.xlu0 %v10120_v18, %s8779_s18 }
 0x5a0   : > { %2391 = vrot.lane.b32.xlu1 %v10300_v5, %s8779_s18  ;;  %2397 = vrot.lane.b32.xlu2 %v15090_v44, %s8779_s18 }
 0x5a3   : > { %2381 = vrot.lane.b32.xlu0 %v10449_v2, %s8779_s18 }
 0x5a8   : > { %2373 = vrot.lane.b32.xlu1 %v10463_v59, %s8779_s18  ;;  %2375 = vrot.lane.b32.xlu2 %v10465_v33, %s8779_s18 }
 0x5ab   : > { %3046 = vrot.lane.b32.xlu0 %v10300_v5, %s8791_s10 }
 0x5b0   : > { %2383 = vrot.lane.b32.xlu1 %v10451_v21, %s8779_s18  ;;  %3044 = vrot.lane.b32.xlu2 %v10298_v41, %s8791_s10 }
 0x5b3   : > { %3028 = vrot.lane.b32.xlu0 %v10463_v59, %s8791_s10 }
 0x5b8   : > { %3052 = vrot.lane.b32.xlu1 %v15090_v44, %s8791_s10  ;;  %3054 = vrot.lane.b32.xlu2 %v10120_v18, %s8791_s10 }
 0x5ba   : > { %v3154_v11 = vpop.permute.xlu0 %3153  ;;  %v10533_v52 = vpop.permute.xlu1 %3155 }
 0x5bb   : > { %15091 = vst [vmem:[#allocation33_spill] sm:$0xff] %v10533_v52  ;;  %v3177_v58 = vrot.slane %v3154_v11, 4  ;;  %v14554_v24 = vrot.slane %v10533_v52, 4  ;;  %3038 = vrot.lane.b32.xlu0 %v10451_v21, %s8791_s10 }
 0x5bd   : > { %v3200_v12 = vsel %vm2421_vm8, %v3177_v58, %v14554_v24 }
 0x5be   : > { %v3201_v55 = vsel %vm2148_vm7, %v3154_v11, %v3200_v12  ;;  %v15101_v12 = vld [vmem:[#allocation171_spill] sm:$0xff] }
 0x5bf   : > { %3238 = vst [vmem:[#allocation2 + $0x3b8] sm:$0xff] %v3201_v55  ;;  %v2041_v55 = vmul.f32 %v15101_v12, %v15096_v32 }
 0x5c0   : > { %3030 = vrot.lane.b32.xlu1 %v10465_v33, %s8791_s10  ;;  %3036 = vrot.lane.b32.xlu2 %v10449_v2, %s8791_s10 }
 0x5c2   : > { %v10546_v50 = vpop.permute.xlu0 %3163  ;;  %v10548_v23 = vpop.permute.xlu2 %3139 }
 0x5c3   : > { %15092 = vst [vmem:[#allocation35_spill] sm:$0xff] %v10546_v50  ;;  %v14553_v36 = vrot.slane %v10546_v50, 4  ;;  %2943 = vrot.lane.b32.xlu0 %v15090_v44, %s8788_s9  ;;  %v14552_v48 = vrot.slane %v10548_v23, 4 }
 0x5c4   : > { %15093 = vst [vmem:[#allocation37_spill] sm:$0xff] %v10548_v23 }
 0x5c5   : > { %v3207_v47 = vsel %vm2421_vm8, %v3181_v16, %v14553_v36 }
 0x5c6   : > { %v3208_v13 = vsel %vm2148_vm7, %v3162_v30, %v3207_v47  ;;  %v7538_v38 = vld [vmem:[#allocation2 + $0x3b8] sm:$0xf]  ;;  %v1813_v30 = vmul.f32 %v15097_v31, %v15094_v62 }
 0x5c7   : > { %3242 = vst [vmem:[#allocation2 + $0x3d4] sm:$0xff] %v3208_v13 }
 0x5c8   : > { %2935 = vrot.lane.b32.xlu1 %v10298_v41, %s8788_s9  ;;  %2937 = vrot.lane.b32.xlu2 %v10300_v5, %s8788_s9 }
 0x5ca   : > { %v2609_v29 = vpop.permute.xlu2 %2608 }
 0x5cb   : > { %1670 = vrot.lane.b32.xlu0 %v1576_v60, %s8788_s9  ;;  %v2632_v1 = vrot.slane %v2609_v29, 4 }
 0x5ce   : > { %v8241_v7 = vld [vmem:[#allocation2 + $0x3d0] sm:$0xf0] }
 0x5cf   : > { %v7539_v56 = vor.u32 %v8241_v7, %v7538_v38  ;;  %v15104_v7 = vld [vmem:[#allocation172_spill] sm:$0xff] }
 0x5d0   : > { %2945 = vrot.lane.b32.xlu1 %v10120_v18, %s8788_s9  ;;  %1668 = vrot.lane.b32.xlu2 %v1575_v20, %s8788_s9 }
 0x5d1   : > { %4239 = vmatpush.bf16.msra.mxu2 %v7539_v56  ;;  %v2050_v56 = vmul.f32 %v15104_v7, %v15094_v62 }
 0x5d2   : > { %v10571_v63 = vpop.permute.xlu2 %2618 }
 0x5d3   : > { %15098 = vst [vmem:[#allocation51_spill] sm:$0xff] %v10571_v63  ;;  %1905 = vrot.lane.b32.xlu0 %v1812_v14, %s8791_s10 }
 0x5d5   : > { %v3146_v53 = vpop.permute.xlu0 %3145 }
 0x5d6   : > { %v3173_v13 = vrot.slane %v3146_v53, 4 }
 0x5d8   : > { %1889 = vrot.lane.b32.xlu1 %v1804_v39, %s8791_s10  ;;  %1891 = vrot.lane.b32.xlu2 %v1805_v37, %s8791_s10  ;;  %v14558_v37 = vrot.slane %v10571_v63, 4 }
 0x5da   : > { %v3138_v4 = vpop.permute.xlu1 %3137  ;;  %v2601_v61 = vpop.permute.xlu2 %2600 }
 0x5db   : > { %v3169_v42 = vrot.slane %v3138_v4, 4  ;;  %2921 = vrot.lane.b32.xlu0 %v10465_v33, %s8788_s9 }
 0x5dd   : > { %v3185_v8 = vsel %vm2421_vm8, %v3169_v42, %v14552_v48  ;;  %v10586_v34 = vpop.permute.xlu0 %2610 }
 0x5de   : > { %15100 = vst [vmem:[#allocation45_spill] sm:$0xff] %v10586_v34  ;;  %v3187_v17 = vsel %vm2148_vm7, %v3138_v4, %v3185_v8  ;;  %v14562_v25 = vrot.slane %v10586_v34, 4  ;;  %v2042_v8 = vmul.f32 %v15101_v12, %v15094_v62 }
 0x5df   : > { %3230 = vst [vmem:[#allocation2 + $0x380] sm:$0xff] %v3187_v17 }
 0x5e0   : > { %v2655_v11 = vsel %vm2421_vm8, %v2632_v1, %v14562_v25  ;;  %1907 = vrot.lane.b32.xlu1 %v1813_v30, %s8791_s10  ;;  %2919 = vrot.lane.b32.xlu2 %v10463_v59, %s8788_s9  ;;  %v2628_v1 = vrot.slane %v2601_v61, 4 }
 0x5e1   : > { %v2656_v58 = vsel %vm963_vm2, %v2609_v29, %v2655_v11  ;;  %v2049_v11 = vmul.f32 %v15104_v7, %v15096_v32  ;;  %v15140_v7 = vld [vmem:[#allocation48_spill] sm:$0xff] }
 0x5e2   : > { %2693 = vst [vmem:[#allocation2 + $0x188] sm:$0xff] %v2656_v58  ;;  %v10601_v16 = vpop.permute.xlu1 %3147  ;;  %v10603_v47 = vpop.permute.xlu2 %2501 }
 0x5e3   : > { %15102 = vst [vmem:[#allocation52_spill] sm:$0xff] %v10601_v16  ;;  %v14555_v60 = vrot.slane %v10601_v16, 4  ;;  %2126 = vrot.lane.b32.xlu0 %v2041_v55, %s8792_s11 }
 0x5e4   : > { %15103 = vst [vmem:[#allocation54_spill] sm:$0xff] %v10603_v47 }
 0x5e5   : > { %v3193_v20 = vsel %vm2421_vm8, %v3173_v13, %v14555_v60  ;;  %v2593_v38 = vpop.permute.xlu0 %2592 }
 0x5e6   : > { %v3194_v29 = vsel %vm2148_vm7, %v3146_v53, %v3193_v20  ;;  %v7510_v58 = vld [vmem:[#allocation2 + $0x380] sm:$0xf] }
 0x5e7   : > { %3234 = vst [vmem:[#allocation2 + $0x39c] sm:$0xff] %v3194_v29 }
 0x5e8   : > { %2927 = vrot.lane.b32.xlu1 %v10449_v2, %s8788_s9  ;;  %2929 = vrot.lane.b32.xlu2 %v10451_v21, %s8788_s9 }
 0x5e9   : > { %v8168_v48 = vld [vmem:[#allocation2 + $0x18c] sm:$0xf] }
 0x5ea   : > { %v2617_v14 = vpop.permute.xlu1 %2616  ;;  %v10617_v39 = vpop.permute.xlu2 %2483 }
 0x5eb   : > { %v2636_v4 = vrot.slane %v2617_v14, 4  ;;  %2144 = vrot.lane.b32.xlu0 %v2050_v56, %s8792_s11  ;;  %v15106_v56 = vld [vmem:[#allocation174_spill] sm:$0xff] }
 0x5ed   : > { %v2662_v53 = vsel %vm2421_vm8, %v2636_v4, %v14558_v37  ;;  %v10624_v42 = vpop.permute.xlu0 %2602 }
 0x5ee   : > { %15105 = vst [vmem:[#allocation39_spill] sm:$0xff] %v10624_v42  ;;  %v2663_v17 = vsel %vm963_vm2, %v2617_v14, %v2662_v53  ;;  %v14557_v30 = vrot.slane %v10624_v42, 4  ;;  %v8234_v55 = vld [vmem:[#allocation2 + $0x398] sm:$0xf0]  ;;  %v1796_v14 = vmul.f32 %v15106_v56, %v15096_v32  ;;  %v15136_v42 = vld [vmem:[#allocation83_spill] sm:$0xff] }
 0x5ef   : > { %2697 = vst [vmem:[#allocation2 + $0x1a4] sm:$0xff] %v2663_v17  ;;  %v7511_v13 = vor.u32 %v8234_v55, %v7510_v58  ;;  %v2624_v17 = vrot.slane %v2593_v38, 4  ;;  %v15109_v55 = vld [vmem:[#allocation173_spill] sm:$0xff] }
 0x5f0   : > { %v2648_v20 = vsel %vm2421_vm8, %v2628_v1, %v14557_v30  ;;  %2128 = vrot.lane.b32.xlu1 %v2042_v8, %s8792_s11  ;;  %2142 = vrot.lane.b32.xlu2 %v2049_v11, %s8792_s11 }
 0x5f1   : > { %v2649_v29 = vsel %vm963_vm2, %v2601_v61, %v2648_v20  ;;  %4240 = vmatpush.bf16.msra.mxu2 %v7511_v13  ;;  %v7258_v61 = vld [vmem:[#allocation2 + $0x188] sm:$0xf]  ;;  %v1788_v13 = vmul.f32 %v15109_v55, %v15096_v32  ;;  %v1789_v20 = vmul.f32 %v15109_v55, %v15094_v62 }
 0x5f2   : > { %2689 = vst [vmem:[#allocation2 + $0x16c] sm:$0xff] %v2649_v29  ;;  %v10640_v4 = vpop.permute.xlu1 %2594  ;;  %v10642_v53 = vpop.permute.xlu2 %2493 }
 0x5f3   : > { %15107 = vst [vmem:[#allocation44_spill] sm:$0xff] %v10640_v4  ;;  %v14556_v58 = vrot.slane %v10640_v4, 4  ;;  %1873 = vrot.lane.b32.xlu0 %v1796_v14, %s8791_s10 }
 0x5f4   : > { %15108 = vst [vmem:[#allocation43_spill] sm:$0xff] %v10642_v53 }
 0x5f5   : > { %v2640_v8 = vsel %vm2421_vm8, %v2624_v17, %v14556_v58  ;;  %v2508_v1 = vpop.permute.xlu0 %2507 }
 0x5f6   : > { %v2642_v11 = vsel %vm963_vm2, %v2593_v38, %v2640_v8  ;;  %v8171_v29 = vld [vmem:[#allocation2 + $0x1a0] sm:$0xf0]  ;;  %v7260_v36 = vld [vmem:[#allocation2 + $0x1a4] sm:$0xf0]  ;;  %v14559_v8 = vrot.slane %v10603_v47, 4 }
 0x5f7   : > { %2685 = vst [vmem:[#allocation2 + $0x150] sm:$0xff] %v2642_v11  ;;  %v7259_v24 = vor.u32 %v8171_v29, %v7258_v61  ;;  %v7263_v14 = vor.u32 %v8168_v48, %v7260_v36  ;;  %v1797_v29 = vmul.f32 %v15106_v56, %v15094_v62  ;;  %v15142_v56 = vld [vmem:[#allocation114_spill] sm:$0xff] }
 0x5f8   : > { %1857 = vrot.lane.b32.xlu1 %v1788_v13, %s8791_s10  ;;  %1859 = vrot.lane.b32.xlu2 %v1789_v20, %s8791_s10  ;;  %v2515_v13 = vrot.slane %v10617_v39, 4 }
 0x5f9   : > { %4175 = vmatpush.bf16.msra.mxu0 %v7259_v24  ;;  %4262 = vmatpush.bf16.msra.mxu3 %v7263_v14  ;;  %v8164_v36 = vld [vmem:[#allocation2 + $0x168] sm:$0xf0]  ;;  %v7232_v48 = vld [vmem:[#allocation2 + $0x16c] sm:$0xf0] }
 0x5fa   : > { %v2500_v17 = vpop.permute.xlu1 %2499  ;;  %v2398_v38 = vpop.permute.xlu2 %2397 }
 0x5fb   : > { %v2523_v60 = vrot.slane %v2500_v17, 4  ;;  %2828 = vrot.lane.b32.xlu0 %v10300_v5, %s8786_s23 }
 0x5fd   : > { %v2546_v11 = vsel %vm2421_vm8, %v2523_v60, %v14559_v8  ;;  %v10662_v61 = vpop.permute.xlu0 %2485 }
 0x5fe   : > { %15110 = vst [vmem:[#allocation36_spill] sm:$0xff] %v10662_v61  ;;  %v2547_v24 = vsel %vm726_vm1, %v2500_v17, %v2546_v11  ;;  %v14560_v20 = vrot.slane %v10662_v61, 4  ;;  %v7230_v14 = vld [vmem:[#allocation2 + $0x150] sm:$0xf]  ;;  %v8161_v58 = vld [vmem:[#allocation2 + $0x154] sm:$0xf] }
 0x5ff   : > { %2584 = vst [vmem:[#allocation2 + $0x118] sm:$0xff] %v2547_v24  ;;  %v7231_v30 = vor.u32 %v8164_v36, %v7230_v14  ;;  %v7235_v37 = vor.u32 %v8161_v58, %v7232_v48  ;;  %v15111_v11 = vld [vmem:[#allocation175_spill] sm:$0xff]  ;;  %v2527_v48 = vrot.slane %v2508_v1, 4  ;;  %v8238_v61 = vld [vmem:[#allocation2 + $0x3bc] sm:$0xf] }
 0x600   : > { %v2531_v60 = vsel %vm2421_vm8, %v2515_v13, %v14560_v20  ;;  %1875 = vrot.lane.b32.xlu1 %v1797_v29, %s8791_s10  ;;  %2826 = vrot.lane.b32.xlu2 %v10298_v41, %s8786_s23  ;;  %v2025_v8 = vmul.f32 %v15111_v11, %v15096_v32 }
 0x601   : > { %v2533_v17 = vsel %vm726_vm1, %v10617_v39, %v2531_v60  ;;  %4176 = vmatpush.bf16.msra.mxu0 %v7231_v30  ;;  %4263 = vmatpush.bf16.msra.mxu3 %v7235_v37  ;;  %v15114_v30 = vld [vmem:[#allocation176_spill] sm:$0xff] }
 0x602   : > { %2576 = vst [vmem:[#allocation2 + $0xe0] sm:$0xff] %v2533_v17  ;;  %v10679_v36 = vpop.permute.xlu1 %2509  ;;  %v10681_v58 = vpop.permute.xlu2 %2375  ;;  %v2034_v29 = vmul.f32 %v15114_v30, %v15094_v62  ;;  %v2033_v50 = vmul.f32 %v15114_v30, %v15096_v32 }
 0x603   : > { %15112 = vst [vmem:[#allocation76_spill] sm:$0xff] %v10679_v36  ;;  %v14561_v13 = vrot.slane %v10679_v36, 4  ;;  %2094 = vrot.lane.b32.xlu0 %v2025_v8, %s8792_s11  ;;  %v14571_v8 = vrot.slane %v10642_v53, 4 }
 0x604   : > { %15113 = vst [vmem:[#allocation75_spill] sm:$0xff] %v10681_v58 }
 0x605   : > { %v2553_v24 = vsel %vm2421_vm8, %v2527_v48, %v14561_v13  ;;  %v2390_v39 = vpop.permute.xlu0 %2389  ;;  %v2417_v13 = vrot.slane %v2398_v38, 4 }
 0x606   : > { %v2554_v37 = vsel %vm726_vm1, %v2508_v1, %v2553_v24  ;;  %v2026_v24 = vmul.f32 %v15111_v11, %v15094_v62  ;;  %v8154_v20 = vld [vmem:[#allocation2 + $0x11c] sm:$0xf]  ;;  %v15134_v62 = vld [vmem:[#allocation29_spill] sm:$0xff] }
 0x607   : > { %2588 = vst [vmem:[#allocation2 + $0x134] sm:$0xff] %v2554_v37  ;;  %v7202_v37 = vld [vmem:[#allocation2 + $0x118] sm:$0xf] }
 0x608   : > { %2834 = vrot.lane.b32.xlu1 %v15090_v44, %s8786_s23  ;;  %2836 = vrot.lane.b32.xlu2 %v10120_v18, %s8786_s23 }
 0x60a   : > { %v2492_v14 = vpop.permute.xlu1 %2491  ;;  %v10695_v60 = vpop.permute.xlu2 %3044 }
 0x60b   : > { %v2519_v17 = vrot.slane %v2492_v14, 4  ;;  %2112 = vrot.lane.b32.xlu0 %v2034_v29, %s8792_s11 }
 0x60d   : > { %v2539_v1 = vsel %vm2421_vm8, %v2519_v17, %v14571_v8  ;;  %v10702_v48 = vpop.permute.xlu0 %2399 }
 0x60e   : > { %15115 = vst [vmem:[#allocation81_spill] sm:$0xff] %v10702_v48  ;;  %v2540_v25 = vsel %vm726_vm1, %v2492_v14, %v2539_v1  ;;  %v14574_v23 = vrot.slane %v10702_v48, 4  ;;  %v8157_v29 = vld [vmem:[#allocation2 + $0x130] sm:$0xf0]  ;;  %v7204_v52 = vld [vmem:[#allocation2 + $0x134] sm:$0xf0] }
 0x60f   : > { %2580 = vst [vmem:[#allocation2 + $0xfc] sm:$0xff] %v2540_v25  ;;  %v7203_v16 = vor.u32 %v8157_v29, %v7202_v37  ;;  %v7207_v17 = vor.u32 %v8154_v20, %v7204_v52  ;;  %v2413_v25 = vrot.slane %v2390_v39, 4 }
 0x610   : > { %v2444_v8 = vsel %vm2421_vm8, %v2417_v13, %v14574_v23  ;;  %2096 = vrot.lane.b32.xlu1 %v2026_v24, %s8792_s11  ;;  %2110 = vrot.lane.b32.xlu2 %v2033_v50, %s8792_s11  ;;  %v7174_v13 = vld [vmem:[#allocation2 + $0xe0] sm:$0xf] }
 0x611   : > { %v2445_v14 = vsel %vm489_vm0, %v2398_v38, %v2444_v8  ;;  %4177 = vmatpush.bf16.msra.mxu0 %v7203_v16  ;;  %4264 = vmatpush.bf16.msra.mxu3 %v7207_v17  ;;  %v8147_v8 = vld [vmem:[#allocation2 + $0xe4] sm:$0xf] }
 0x612   : > { %2479 = vst [vmem:[#allocation2 + $0xc4] sm:$0xff] %v2445_v14  ;;  %v10716_v1 = vpop.permute.xlu1 %2391  ;;  %v10718_v53 = vpop.permute.xlu2 %3054 }
 0x613   : > { %15116 = vst [vmem:[#allocation82_spill] sm:$0xff] %v10716_v1  ;;  %v14575_v52 = vrot.slane %v10716_v1, 4  ;;  %2818 = vrot.lane.b32.xlu0 %v10449_v2, %s8786_s23 }
 0x614   : > { %15117 = vst [vmem:[#allocation107_spill] sm:$0xff] %v10718_v53 }
 0x615   : > { %v2437_v20 = vsel %vm2421_vm8, %v2413_v25, %v14575_v52  ;;  %v2382_v50 = vpop.permute.xlu0 %2381  ;;  %v14579_v25 = vrot.slane %v10681_v58, 4 }
 0x616   : > { %v2438_v16 = vsel %vm489_vm0, %v2390_v39, %v2437_v20  ;;  %v8150_v38 = vld [vmem:[#allocation2 + $0xf8] sm:$0xf0]  ;;  %v7176_v24 = vld [vmem:[#allocation2 + $0xfc] sm:$0xf0] }
 0x617   : > { %2475 = vst [vmem:[#allocation2 + $0xa8] sm:$0xff] %v2438_v16  ;;  %v7175_v37 = vor.u32 %v8150_v38, %v7174_v13  ;;  %v7179_v29 = vor.u32 %v8147_v8, %v7176_v24  ;;  %v3068_v38 = vrot.slane %v10695_v60, 4 }
 0x618   : > { %2810 = vrot.lane.b32.xlu1 %v10463_v59, %s8786_s23  ;;  %2812 = vrot.lane.b32.xlu2 %v10465_v33, %s8786_s23 }
 0x619   : > { %4178 = vmatpush.bf16.msra.mxu0 %v7175_v37  ;;  %4265 = vmatpush.bf16.msra.mxu3 %v7179_v29  ;;  %v8143_v13 = vld [vmem:[#allocation2 + $0xc0] sm:$0xf0]  ;;  %v7148_v16 = vld [vmem:[#allocation2 + $0xc4] sm:$0xf0] }
 0x61a   : > { %v2374_v17 = vpop.permute.xlu1 %2373  ;;  %v3037_v14 = vpop.permute.xlu2 %3036 }
 0x61b   : > { %v2405_v23 = vrot.slane %v2374_v17, 4  ;;  %2719 = vrot.lane.b32.xlu0 %v10300_v5, %s8784_s22 }
 0x61d   : > { %v2422_v39 = vsel %vm2421_vm8, %v2405_v23, %v14579_v25  ;;  %v10737_v20 = vpop.permute.xlu0 %3046  ;;  %v8126_v25 = vld [vmem:[#allocation2 + $0x3c] sm:$0xf] }
 0x61e   : > { %15118 = vst [vmem:[#allocation101_spill] sm:$0xff] %v10737_v20  ;;  %v2424_v8 = vsel %vm489_vm0, %v2374_v17, %v2422_v39  ;;  %v14581_v24 = vrot.slane %v10737_v20, 4  ;;  %v7146_v37 = vld [vmem:[#allocation2 + $0xa8] sm:$0xf]  ;;  %v8140_v29 = vld [vmem:[#allocation2 + $0xac] sm:$0xf] }
 0x61f   : > { %2467 = vst [vmem:[#allocation2 + $0x70] sm:$0xff] %v2424_v8  ;;  %v7147_v52 = vor.u32 %v8143_v13, %v7146_v37  ;;  %v7151_v48 = vor.u32 %v8140_v29, %v7148_v16  ;;  %v2409_v13 = vrot.slane %v2382_v50, 4  ;;  %v14582_v8 = vrot.slane %v10718_v53, 4  ;;  %v15139_v53 = vld [vmem:[#allocation53_spill] sm:$0xff] }
 0x620   : > { %v3091_v5 = vsel %vm2421_vm8, %v3068_v38, %v14581_v24  ;;  %2820 = vrot.lane.b32.xlu1 %v10451_v21, %s8786_s23  ;;  %2717 = vrot.lane.b32.xlu2 %v10298_v41, %s8784_s22 }
 0x621   : > { %v3092_v23 = vsel %vm1911_vm6, %v10695_v60, %v3091_v5  ;;  %4179 = vmatpush.bf16.msra.mxu0 %v7147_v52  ;;  %4266 = vmatpush.bf16.msra.mxu3 %v7151_v48  ;;  %v3064_v5 = vrot.slane %v3037_v14, 4 }
 0x622   : > { %3129 = vst [vmem:[#allocation2 + $0x348] sm:$0xff] %v3092_v23  ;;  %v10751_v17 = vpop.permute.xlu1 %2383  ;;  %v10753_v39 = vpop.permute.xlu2 %2937 }
 0x623   : > { %15119 = vst [vmem:[#allocation108_spill] sm:$0xff] %v10751_v17  ;;  %v14578_v16 = vrot.slane %v10751_v17, 4  ;;  %2701 = vrot.lane.b32.xlu0 %v10463_v59, %s8784_s22 }
 0x624   : > { %15120 = vst [vmem:[#allocation110_spill] sm:$0xff] %v10753_v39 }
 0x625   : > { %v2430_v41 = vsel %vm2421_vm8, %v2409_v13, %v14578_v16  ;;  %v3029_v38 = vpop.permute.xlu0 %3028 }
 0x626   : > { %v2431_v60 = vsel %vm489_vm0, %v2382_v50, %v2430_v41  ;;  %v7118_v29 = vld [vmem:[#allocation2 + $0x70] sm:$0xf] }
 0x627   : > { %2471 = vst [vmem:[#allocation2 + $0x8c] sm:$0xff] %v2431_v60 }
 0x628   : > { %2725 = vrot.lane.b32.xlu1 %v15090_v44, %s8784_s22  ;;  %2727 = vrot.lane.b32.xlu2 %v10120_v18, %s8784_s22  ;;  %v8133_v44 = vld [vmem:[#allocation2 + $0x74] sm:$0xf] }
 0x629   : > { %v8224_v17 = vld [vmem:[#allocation2 + $0x34c] sm:$0xf] }
 0x62a   : > { %v3053_v48 = vpop.permute.xlu1 %3052  ;;  %v10766_v52 = vpop.permute.xlu2 %1668 }
 0x62b   : > { %v3072_v59 = vrot.slane %v3053_v48, 4  ;;  %2711 = vrot.lane.b32.xlu0 %v10451_v21, %s8784_s22 }
 0x62d   : > { %v3098_v50 = vsel %vm2421_vm8, %v3072_v59, %v14582_v8  ;;  %v10774_v37 = vpop.permute.xlu0 %3038  ;;  %v7090_v59 = vld [vmem:[#allocation2 + $0x38] sm:$0xf] }
 0x62e   : > { %15121 = vst [vmem:[#allocation134_spill] sm:$0xff] %v10774_v37  ;;  %v3099_v18 = vsel %vm1911_vm6, %v3053_v48, %v3098_v50  ;;  %v14580_v23 = vrot.slane %v10774_v37, 4  ;;  %v8136_v13 = vld [vmem:[#allocation2 + $0x88] sm:$0xf0]  ;;  %v7120_v41 = vld [vmem:[#allocation2 + $0x8c] sm:$0xf0] }
 0x62f   : > { %3133 = vst [vmem:[#allocation2 + $0x364] sm:$0xff] %v3099_v18  ;;  %v7119_v60 = vor.u32 %v8136_v13, %v7118_v29  ;;  %v7123_v16 = vor.u32 %v8133_v44, %v7120_v41  ;;  %v8129_v44 = vld [vmem:[#allocation2 + $0x50] sm:$0xf0]  ;;  %v7092_v18 = vld [vmem:[#allocation2 + $0x54] sm:$0xf0] }
 0x630   : > { %v3084_v21 = vsel %vm2421_vm8, %v3064_v5, %v14580_v23  ;;  %2703 = vrot.lane.b32.xlu1 %v10465_v33, %s8784_s22  ;;  %2709 = vrot.lane.b32.xlu2 %v10449_v2, %s8784_s22  ;;  %v3060_v5 = vrot.slane %v3029_v38, 4  ;;  %v7091_v33 = vor.u32 %v8129_v44, %v7090_v59  ;;  %v7095_v41 = vor.u32 %v8126_v25, %v7092_v18  ;;  %v7062_v23 = vld [vmem:[#allocation2] sm:$0xf]  ;;  %v8122_v2 = vld [vmem:[#allocation2 + $0x18] sm:$0xf0] }
 0x631   : > { %v3085_v48 = vsel %vm1911_vm6, %v3037_v14, %v3084_v21  ;;  %4180 = vmatpush.bf16.msra.mxu0 %v7119_v60  ;;  %4267 = vmatpush.bf16.msra.mxu3 %v7123_v16  ;;  %v7482_v16 = vld [vmem:[#allocation2 + $0x348] sm:$0xf]  ;;  %v8119_v21 = vld [vmem:[#allocation2 + $0x4] sm:$0xf]  ;;  %v7063_v59 = vor.u32 %v8122_v2, %v7062_v23  ;;  %v7064_v44 = vld [vmem:[#allocation2 + $0x1c] sm:$0xf0] }
 0x632   : > { %3125 = vst [vmem:[#allocation2 + $0x32c] sm:$0xff] %v3085_v48  ;;  %v10786_v50 = vpop.permute.xlu1 %3030  ;;  %v10788_v29 = vpop.permute.xlu2 %1891  ;;  %v7540_v48 = vld [vmem:[#allocation2 + $0x3d4] sm:$0xf0]  ;;  %v7067_v1 = vor.u32 %v8119_v21, %v7064_v44 }
 0x633   : > { %15122 = vst [vmem:[#allocation130_spill] sm:$0xff] %v10786_v50  ;;  %v14591_v13 = vrot.slane %v10786_v50, 4  ;;  %v15137_v50 = vld [vmem:[#allocation86_spill] sm:$0xff] }
 0x634   : > { %v989_v63 = vsel %vm963_vm2, %v15137_v50, %v15136_v42 }
 0x635   : > { %v3076_v14 = vsel %vm2421_vm8, %v3060_v5, %v14591_v13  ;;  %v2944_v60 = vpop.permute.xlu0 %2943  ;;  %4181 = vmatpush.bf16.msra.mxu0 %v7091_v33  ;;  %4268 = vmatpush.bf16.msra.mxu3 %v7095_v41  ;;  %v10795_v5 = vor.u32 %v8238_v61, %v7540_v48  ;;  %v7512_v13 = vld [vmem:[#allocation2 + $0x39c] sm:$0xf0] }
 0x636   : > { %v3078_v24 = vsel %vm1911_vm6, %v3029_v38, %v3076_v14  ;;  %v8227_v8 = vld [vmem:[#allocation2 + $0x360] sm:$0xf0]  ;;  %v7484_v58 = vld [vmem:[#allocation2 + $0x364] sm:$0xf0]  ;;  %v14592_v38 = vrot.slane %v10753_v39, 4 }
 0x637   : > { %3121 = vst [vmem:[#allocation2 + $0x310] sm:$0xff] %v3078_v24  ;;  %v7483_v25 = vor.u32 %v8227_v8, %v7482_v16  ;;  %v7487_v18 = vor.u32 %v8224_v17, %v7484_v58  ;;  %v8231_v24 = vld [vmem:[#allocation2 + $0x384] sm:$0xf] }
 0x638   : > { %v10804_v61 = vor.u32 %v8231_v24, %v7512_v13  ;;  %v2963_v13 = vrot.slane %v2944_v60, 4  ;;  %v15125_v24 = vld [vmem:[#allocation30_spill] sm:$0xff] }
 0x639   : > { %4182 = vmatpush.bf16.msra.mxu0 %v7063_v59  ;;  %8371 = vmatpush.bf16.msra.mxu1 %v7483_v25  ;;  %v7456_v16 = vld [vmem:[#allocation2 + $0x32c] sm:$0xf0] }
 0x63a   : > { %4269 = vmatpush.bf16.msra.mxu3 %v7067_v1  ;;  %4291 = vmatpush.bf16.msrb.mxu2 %v7487_v18  ;;  %v2936_v33 = vpop.permute.xlu1 %2935  ;;  %v2920_v41 = vpop.permute.xlu2 %2919  ;;  %15123 = vst [vmem:[#allocation137_spill] sm:$0xff] %v10804_v61  ;;  %v8220_v1 = vld [vmem:[#allocation2 + $0x328] sm:$0xf0] }
 0x63b   : > { %v2959_v14 = vrot.slane %v2936_v33, 4  ;;  %v2951_v20 = vrot.slane %v2920_v41, 4 }
 0x63d   : > { %4204 = vmatpush.bf16.msrb.mxu0 %v7483_v25  ;;  %v2982_v58 = vsel %vm2421_vm8, %v2959_v14, %v14592_v38  ;;  %v10802_v17 = vpop.permute.xlu0 %1670 }
 0x63e   : > { %8379 = vmatpush.bf16.msrb.mxu3 %v10795_v5  ;;  %v2983_v8 = vsel %vm1674_vm5, %v2936_v33, %v2982_v58  ;;  %v7454_v23 = vld [vmem:[#allocation2 + $0x310] sm:$0xf]  ;;  %v8217_v2 = vld [vmem:[#allocation2 + $0x314] sm:$0xf]  ;;  %v15126_v58 = vld [vmem:[#allocation28_spill] sm:$0xff] }
 0x63f   : > { %3020 = vst [vmem:[#allocation2 + $0x2d8] sm:$0xff] %v2983_v8  ;;  %v7455_v21 = vor.u32 %v8220_v1, %v7454_v23  ;;  %v7459_v48 = vor.u32 %v8217_v2, %v7456_v16  ;;  %v515_v1 = vsel %vm489_vm0, %v15126_v58, %v15125_v24  ;;  %v15127_v23 = vld [vmem:[#allocation25_spill] sm:$0xff]  ;;  %v15128_v2 = vld [vmem:[#allocation24_spill] sm:$0xff] }
 0x640   : > { %v508_v16 = vsel %vm489_vm0, %v15128_v2, %v15127_v23  ;;  %v516_v2 = vsel %vm489_vm0, %v15125_v24, %v15134_v62 }
 0x641   : > { %4205 = vmatpush.bf16.msrb.mxu0 %v7455_v21  ;;  %8372 = vmatpush.bf16.msra.mxu1 %v7455_v21  ;;  %v15129_v21 = vld [vmem:[#allocation10_spill] sm:$0xff] }
 0x642   : > { %8380 = vmatpush.bf16.msrb.mxu3 %v10804_v61  ;;  %4292 = vmatpush.bf16.msrb.mxu2 %v7459_v48  ;;  %v10808_v59 = vpop.permute.xlu1 %2945  ;;  %v10810_v25 = vpop.permute.xlu2 %2929  ;;  %v15130_v48 = vld [vmem:[#allocation14_spill] sm:$0xff] }
 0x643   : > { %15124 = vst [vmem:[#allocation138_spill] sm:$0xff] %v10808_v59  ;;  %v14595_v44 = vrot.slane %v10808_v59, 4  ;;  %v341_v38 = vmul.f32 %v15130_v48, %v15129_v21  ;;  %v342_v58 = vmul.f32 %v15130_v48, %v15096_v32  ;;  %v15138_v48 = vld [vmem:[#allocation57_spill] sm:$0xff] }
 0x645   : > { %v2989_v18 = vsel %vm2421_vm8, %v2963_v13, %v14595_v44  ;;  %v10816_v33 = vpop.permute.xlu0 %1905  ;;  %v15131_v13 = vld [vmem:[#allocation13_spill] sm:$0xff]  ;;  %v578_v59 = vadd.f32 %v515_v1, %v341_v38  ;;  %v579_v11 = vadd.f32 %v516_v2, %v342_v58  ;;  %v15145_v2 = vld [vmem:[#allocation139_spill] sm:$0xff] }
 0x646   : > { %v2990_v14 = vsel %vm1674_vm5, %v2944_v60, %v2989_v18  ;;  %v333_v44 = vmul.f32 %v15131_v13, %v15129_v21  ;;  %v15132_v60 = vld [vmem:[#allocation55_spill] sm:$0xff]  ;;  %v15133_v18 = vld [vmem:[#allocation58_spill] sm:$0xff]  ;;  %v7426_v4 = vld [vmem:[#allocation2 + $0x2d8] sm:$0xf] }
 0x647   : > { %3024 = vst [vmem:[#allocation2 + $0x2f4] sm:$0xff] %v2990_v14  ;;  %v752_v14 = vsel %vm726_vm1, %v15133_v18, %v15132_v60  ;;  %v8210_v37 = vld [vmem:[#allocation2 + $0x2dc] sm:$0xf]  ;;  %v753_v30 = vsel %vm726_vm1, %v15132_v60, %v15138_v48 }
 0x648   : > { %v570_v47 = vadd.f32 %v508_v16, %v333_v44  ;;  %v815_v34 = vadd.f32 %v752_v14, %v578_v59  ;;  %v745_v44 = vsel %vm726_vm1, %v15140_v7, %v15139_v53  ;;  %v15141_v16 = vld [vmem:[#allocation111_spill] sm:$0xff]  ;;  %v15143_v59 = vld [vmem:[#allocation85_spill] sm:$0xff]  ;;  %v816_v58 = vadd.f32 %v753_v30, %v579_v11  ;;  %v15150_v30 = vld [vmem:[#allocation56_spill] sm:$0xff] }
 0x649   : > { %v1226_v50 = vsel %vm1200_vm3, %v15142_v56, %v15141_v16  ;;  %v990_v14 = vsel %vm963_vm2, %v15136_v42, %v15143_v59  ;;  %v15146_v56 = vld [vmem:[#allocation142_spill] sm:$0xff] }
 0x64a   : > { %v10822_v8 = vpop.permute.xlu1 %1889  ;;  %v10829_v36 = vpop.permute.xlu2 %2142  ;;  %v1052_v60 = vadd.f32 %v989_v63, %v815_v34  ;;  %v334_v63 = vmul.f32 %v15131_v13, %v15096_v32  ;;  %v15147_v34 = vld [vmem:[#allocation79_spill] sm:$0xff]  ;;  %v15148_v42 = vld [vmem:[#allocation78_spill] sm:$0xff]  ;;  %v15152_v13 = vld [vmem:[#allocation109_spill] sm:$0xff] }
 0x64d   : > { %v10841_v39 = vpop.permute.xlu0 %2921 }
 0x64e   : > { %15135 = vst [vmem:[#allocation165_spill] sm:$0xff] %v10841_v39  ;;  %v14625_v18 = vrot.slane %v10841_v39, 4  ;;  %v8213_v38 = vld [vmem:[#allocation2 + $0x2f0] sm:$0xf0]  ;;  %v7428_v1 = vld [vmem:[#allocation2 + $0x2f4] sm:$0xf0] }
 0x64f   : > { %v7427_v24 = vor.u32 %v8213_v38, %v7426_v4  ;;  %v7431_v62 = vor.u32 %v8210_v37, %v7428_v1  ;;  %v15144_v37 = vld [vmem:[#allocation26_spill] sm:$0xff]  ;;  %v1463_v38 = vsel %vm1437_vm4, %v15146_v56, %v15145_v2  ;;  %v15149_v1 = vld [vmem:[#allocation113_spill] sm:$0xff] }
 0x650   : > { %v2967_v61 = vsel %vm2421_vm8, %v2951_v20, %v14625_v18  ;;  %v509_v7 = vsel %vm489_vm0, %v15127_v23, %v15144_v37  ;;  %v1227_v11 = vsel %vm1200_vm3, %v15141_v16, %v15149_v1  ;;  %v746_v23 = vsel %vm726_vm1, %v15139_v53, %v15150_v30  ;;  %v15153_v37 = vld [vmem:[#allocation104_spill] sm:$0xff] }
 0x651   : > { %v2969_v4 = vsel %vm1674_vm5, %v2920_v41, %v2967_v61  ;;  %4206 = vmatpush.bf16.msrb.mxu0 %v7427_v24  ;;  %8373 = vmatpush.bf16.msra.mxu1 %v7427_v24  ;;  %v982_v41 = vsel %vm963_vm2, %v15148_v42, %v15147_v34  ;;  %v1289_v61 = vadd.f32 %v1226_v50, %v1052_v60  ;;  %v15154_v60 = vld [vmem:[#allocation141_spill] sm:$0xff]  ;;  %v15159_v30 = vld [vmem:[#allocation188_spill] sm:$0xff] }
 0x652   : > { %3012 = vst [vmem:[#allocation2 + $0x2a0] sm:$0xff] %v2969_v4  ;;  %4293 = vmatpush.bf16.msrb.mxu2 %v7431_v62  ;;  %v10869_v20 = vpop.permute.xlu1 %1907  ;;  %v807_v24 = vadd.f32 %v745_v44, %v570_v47  ;;  %v1053_v62 = vadd.f32 %v990_v14, %v816_v58  ;;  %v15151_v4 = vld [vmem:[#allocation181_spill] sm:$0xff]  ;;  %v571_v18 = vadd.f32 %v509_v7, %v334_v63  ;;  %v10891_v39 = vpop.permute.xlu2 %1859  ;;  %v15155_v47 = vld [vmem:[#allocation84_spill] sm:$0xff] }
 0x653   : > { %v1700_v56 = vsel %vm1674_vm5, %v15151_v4, %v10766_v52  ;;  %v1219_v42 = vsel %vm1200_vm3, %v15153_v37, %v15152_v13  ;;  %v1526_v50 = vadd.f32 %v1463_v38, %v1289_v61  ;;  %v1464_v16 = vsel %vm1437_vm4, %v15145_v2, %v15154_v60  ;;  %v15156_v7 = vld [vmem:[#allocation189_spill] sm:$0xff]  ;;  %v15157_v37 = vld [vmem:[#allocation136_spill] sm:$0xff] }
 0x654   : > { %v1044_v53 = vadd.f32 %v982_v41, %v807_v24  ;;  %v983_v44 = vsel %vm963_vm2, %v15147_v34, %v15155_v47  ;;  %v1290_v14 = vadd.f32 %v1227_v11, %v1053_v62  ;;  %v1937_v58 = vsel %vm1911_vm6, %v15156_v7, %v10816_v33  ;;  %v15158_v38 = vld [vmem:[#allocation133_spill] sm:$0xff]  ;;  %v15160_v62 = vld [vmem:[#allocation112_spill] sm:$0xff] }
 0x655   : > { %v2127_v1 = vpop.permute.xlu0 %2126  ;;  %v808_v63 = vadd.f32 %v746_v23, %v571_v18  ;;  %v1456_v61 = vsel %vm1437_vm4, %v15158_v38, %v15157_v37  ;;  %v1763_v4 = vadd.f32 %v1700_v56, %v1526_v50  ;;  %v1701_v2 = vsel %vm1674_vm5, %v10766_v52, %v10802_v17  ;;  %v15161_v23 = vld [vmem:[#allocation168_spill] sm:$0xff] }
 0x656   : > { %v1281_v41 = vadd.f32 %v1219_v42, %v1044_v53  ;;  %v1527_v24 = vadd.f32 %v1464_v16, %v1290_v14  ;;  %v2174_v34 = vsel %vm2148_vm7, %v15159_v30, %v10829_v36  ;;  %v1220_v18 = vsel %vm1200_vm3, %v15152_v13, %v15160_v62  ;;  %v15162_v7 = vld [vmem:[#allocation164_spill] sm:$0xff]  ;;  %v15165_v62 = vld [vmem:[#allocation166_spill] sm:$0xff] }
 0x657   : > { %v1045_v11 = vadd.f32 %v983_v44, %v808_v63  ;;  %v1693_v38 = vsel %vm1674_vm5, %v15162_v7, %v15161_v23  ;;  %v2000_v56 = vadd.f32 %v1937_v58, %v1763_v4  ;;  %v15163_v50 = vld [vmem:[#allocation140_spill] sm:$0xff]  ;;  %v1938_v30 = vsel %vm1911_vm6, %v10816_v33, %v10869_v20 }
 0x658   : > { %v1457_v52 = vsel %vm1437_vm4, %v15157_v37, %v15163_v50  ;;  %v1518_v42 = vadd.f32 %v1456_v61, %v1281_v41  ;;  %v1764_v16 = vadd.f32 %v1701_v2, %v1527_v24  ;;  %v14629_v44 = vrot.slane %v10810_v25, 4  ;;  %v15164_v13 = vld [vmem:[#allocation180_spill] sm:$0xff] }
 0x659   : > { %v1930_v14 = vsel %vm1911_vm6, %v15164_v13, %v10822_v8  ;;  %v2237_v63 = vadd.f32 %v2174_v34, %v2000_v56  ;;  %v1282_v58 = vadd.f32 %v1220_v18, %v1045_v11  ;;  %v1694_v37 = vsel %vm1674_vm5, %v15161_v23, %v15165_v62  ;;  %v15166_v23 = vld [vmem:[#allocation196_spill] sm:$0xff] }
 0x65a   : > { %v2928_v53 = vpop.permute.xlu1 %2927  ;;  %v1755_v4 = vadd.f32 %v1693_v38, %v1518_v42  ;;  %v2001_v61 = vadd.f32 %v1938_v30, %v1764_v16  ;;  %v2167_v2 = vsel %vm2148_vm7, %v15048_v6, %v2127_v1  ;;  %v1931_v18 = vsel %vm1911_vm6, %v10822_v8, %v10788_v29  ;;  %v10942_v38 = vpop.permute.xlu2 %2826 }
 0x65b   : > { %v2955_v7 = vrot.slane %v2928_v53, 4  ;;  %v1519_v24 = vadd.f32 %v1457_v52, %v1282_v58  ;;  %v2289_v6 = vadd.f32 %v15166_v23, %v2237_v63  ;;  %v325_v52 = vmul.f32 %v15035_v26, %v15129_v21 }
 0x65c   : > { %v1992_v13 = vadd.f32 %v1930_v14, %v1755_v4  ;;  %v15168_v14 = vld [vmem:[#allocation20_spill] sm:$0xff]  ;;  %v326_v8 = vmul.f32 %v15035_v26, %v15096_v32 }
 0x65d   : > { %v2975_v33 = vsel %vm2421_vm8, %v2955_v7, %v14629_v44  ;;  %v10932_v41 = vpop.permute.xlu0 %2144  ;;  %v1756_v42 = vadd.f32 %v1694_v37, %v1519_v24  ;;  %v2321_v63 = vmax.f32 %v2289_v6, 0.0  ;;  %v317_v24 = vmul.f32 %v15041_v45, %v15129_v21  ;;  %v7398_v6 = vld [vmem:[#allocation2 + $0x2a0] sm:$0xf] }
 0x65e   : > { %v2976_v34 = vsel %vm1674_vm5, %v2928_v53, %v2975_v33  ;;  %v2175_v11 = vsel %vm2148_vm7, %v10829_v36, %v10932_v41  ;;  %v2229_v16 = vadd.f32 %v2167_v2, %v1992_v13  ;;  %v15167_v53 = vld [vmem:[#allocation22_spill] sm:$0xff]  ;;  %v15170_v13 = vld [vmem:[#allocation21_spill] sm:$0xff] }
 0x65f   : > { %3016 = vst [vmem:[#allocation2 + $0x2bc] sm:$0xff] %v2976_v34  ;;  %v2238_v56 = vadd.f32 %v2175_v11, %v2001_v61  ;;  %v501_v36 = vsel %vm489_vm0, %v15168_v14, %v15167_v53  ;;  %v1993_v7 = vadd.f32 %v1931_v18, %v1756_v42  ;;  %v502_v34 = vsel %vm489_vm0, %v15167_v53, %v15170_v13  ;;  %v15172_v42 = vld [vmem:[#allocation17_spill] sm:$0xff]  ;;  %v15175_v13 = vld [vmem:[#allocation42_spill] sm:$0xff] }
 0x660   : > { %v562_v33 = vadd.f32 %v501_v36, %v325_v52  ;;  %v2281_v37 = vadd.f32 %v10273_v40, %v2229_v16  ;;  %v15173_v52 = vld [vmem:[#allocation47_spill] sm:$0xff]  ;;  %v8203_v36 = vld [vmem:[#allocation2 + $0x2a4] sm:$0xf] }
 0x661   : > { %v2290_v30 = vadd.f32 %v15166_v23, %v2238_v56  ;;  %v15171_v56 = vld [vmem:[#allocation15_spill] sm:$0xff] }
 0x662   : > { %v10950_v58 = vpop.permute.xlu1 %2128  ;;  %v2313_v44 = vmax.f32 %v2281_v37, 0.0 }
 0x663   : > { %15169 = vst [vmem:[#allocation161_spill] sm:$0xff] %v10950_v58  ;;  %v2322_v4 = vmax.f32 %v2290_v30, 0.0  ;;  %v2168_v61 = vsel %vm2148_vm7, %v2127_v1, %v10950_v58  ;;  %v494_v1 = vsel %vm489_vm0, %v15172_v42, %v15171_v56  ;;  %v15174_v30 = vld [vmem:[#allocation46_spill] sm:$0xff]  ;;  %v318_v58 = vmul.f32 %v15041_v45, %v15096_v32  ;;  %v15177_v32 = vld [vmem:[#allocation16_spill] sm:$0xff] }
 0x664   : > { %v2230_v2 = vadd.f32 %v2168_v61, %v1993_v7  ;;  %v738_v16 = vsel %vm726_vm1, %v15174_v30, %v15173_v52  ;;  %v563_v61 = vadd.f32 %v502_v34, %v326_v8  ;;  %v554_v30 = vadd.f32 %v494_v1, %v317_v24  ;;  %v15176_v8 = vld [vmem:[#allocation77_spill] sm:$0xff]  ;;  %v15178_v1 = vld [vmem:[#allocation34_spill] sm:$0xff] }
 0x665   : > { %v10962_v11 = vpack.c.bf16 %v2322_v4, %v2321_v63  ;;  %v10964_v18 = vpop.permute.xlu0 %1873  ;;  %v799_v53 = vadd.f32 %v738_v16, %v562_v33  ;;  %v975_v33 = vsel %vm963_vm2, %v15055_v51, %v15176_v8  ;;  %v495_v24 = vsel %vm489_vm0, %v15171_v56, %v15177_v32  ;;  %v15180_v51 = vld [vmem:[#allocation72_spill] sm:$0xff] }
 0x666   : > { %v2282_v14 = vadd.f32 %v10273_v40, %v2230_v2  ;;  %v8206_v21 = vld [vmem:[#allocation2 + $0x2b8] sm:$0xf0]  ;;  %v7400_v7 = vld [vmem:[#allocation2 + $0x2bc] sm:$0xf0]  ;;  %v739_v2 = vsel %vm726_vm1, %v15173_v52, %v15175_v13  ;;  %v10981_v40 = vpop.permute.xlu2 %2836  ;;  %v15179_v52 = vld [vmem:[#allocation38_spill] sm:$0xff] }
 0x667   : > { %2355 = vst [vmem:[#allocation2 + $0x64] sm:$0xff] %v10962_v11  ;;  %3056 = vrot.lane.b32.xlu2 %v10962_v11, %s8791_s10  ;;  %v7399_v63 = vor.u32 %v8206_v21, %v7398_v6  ;;  %v7403_v4 = vor.u32 %v8203_v36, %v7400_v7  ;;  %v800_v6 = vadd.f32 %v739_v2, %v563_v61  ;;  %v15181_v7 = vld [vmem:[#allocation103_spill] sm:$0xff] }
 0x668   : > { %v2314_v42 = vmax.f32 %v2282_v14, 0.0  ;;  %v731_v16 = vsel %vm726_vm1, %v15179_v52, %v15178_v1  ;;  %v1036_v14 = vadd.f32 %v975_v33, %v799_v53  ;;  %v555_v21 = vadd.f32 %v495_v24, %v318_v58  ;;  %v15184_v52 = vld [vmem:[#allocation98_spill] sm:$0xff] }
 0x669   : > { %4207 = vmatpush.bf16.msrb.mxu0 %v7399_v63  ;;  %8374 = vmatpush.bf16.msra.mxu1 %v7399_v63  ;;  %v791_v36 = vadd.f32 %v731_v16, %v554_v30  ;;  %v1212_v61 = vsel %vm1200_vm3, %v15065_v0, %v15181_v7  ;;  %v2850_v53 = vrot.slane %v10942_v38, 4  ;;  %v15183_v30 = vld [vmem:[#allocation65_spill] sm:$0xff]  ;;  %v1213_v16 = vsel %vm1200_vm3, %v15181_v7, %v15184_v52 }
 0x66a   : > { %v10986_v34 = vpack.c.bf16 %v2314_v42, %v2313_v44  ;;  %4294 = vmatpush.bf16.msrb.mxu2 %v7403_v4  ;;  %v10988_v37 = vpop.permute.xlu1 %1857  ;;  %v976_v44 = vsel %vm963_vm2, %v15176_v8, %v15180_v51  ;;  %v15182_v4 = vld [vmem:[#allocation40_spill] sm:$0xff]  ;;  %v968_v2 = vsel %vm963_vm2, %v15050_v19, %v15183_v30  ;;  %v1273_v8 = vadd.f32 %v1212_v61, %v1036_v14  ;;  %v15187_v61 = vld [vmem:[#allocation90_spill] sm:$0xff] }
 0x66b   : > { %v1037_v63 = vadd.f32 %v976_v44, %v800_v6  ;;  %v732_v42 = vsel %vm726_vm1, %v15178_v1, %v15182_v4  ;;  %v1028_v24 = vadd.f32 %v968_v2, %v791_v36  ;;  %v15185_v44 = vld [vmem:[#allocation132_spill] sm:$0xff] }
 0x66c   : > { %2351 = vst [vmem:[#allocation2 + $0x48] sm:$0xff] %v10986_v34  ;;  %2612 = vrot.lane.b32.xlu0 %v10986_v34, %s8782_s20  ;;  %3048 = vrot.lane.b32.xlu1 %v10986_v34, %s8791_s10  ;;  %v792_v33 = vadd.f32 %v732_v42, %v555_v21  ;;  %v1449_v1 = vsel %vm1437_vm4, %v15075_v22, %v15185_v44  ;;  %v15186_v21 = vld [vmem:[#allocation63_spill] sm:$0xff] }
 0x66d   : > { %v11004_v56 = vpop.permute.xlu0 %2828  ;;  %v1274_v19 = vadd.f32 %v1213_v16, %v1037_v63  ;;  %v969_v36 = vsel %vm963_vm2, %v15183_v30, %v15186_v21  ;;  %v1510_v7 = vadd.f32 %v1449_v1, %v1273_v8  ;;  %v15188_v22 = vld [vmem:[#allocation127_spill] sm:$0xff]  ;;  %v15189_v16 = vld [vmem:[#allocation157_spill] sm:$0xff] }
 0x66e   : > { %v14633_v58 = vrot.slane %v11004_v56, 4  ;;  %v2111_v42 = vpop.permute.xlu2 %2110  ;;  %v1029_v2 = vadd.f32 %v969_v36, %v792_v33  ;;  %v1450_v63 = vsel %vm1437_vm4, %v15185_v44, %v15188_v22  ;;  %v1686_v30 = vsel %vm1674_vm5, %v15085_v46, %v15189_v16  ;;  %v15192_v46 = vld [vmem:[#allocation158_spill] sm:$0xff] }
 0x66f   : > { %v1511_v8 = vadd.f32 %v1450_v63, %v1274_v19  ;;  %v1747_v36 = vadd.f32 %v1686_v30, %v1510_v7  ;;  %v1687_v22 = vsel %vm1674_vm5, %v15189_v16, %v15192_v46  ;;  %v15193_v19 = vld [vmem:[#allocation122_spill] sm:$0xff] }
 0x670   : > { %v2873_v0 = vsel %vm2421_vm8, %v2850_v53, %v14633_v58  ;;  %v1205_v53 = vsel %vm1200_vm3, %v15060_v57, %v15187_v61  ;;  %v1923_v57 = vsel %vm1911_vm6, %v10205_v43, %v10964_v18  ;;  %v2160_v58 = vsel %vm2148_vm7, %v10416_v35, %v2111_v42 }
 0x671   : > { %v2874_v6 = vsel %vm1437_vm4, %v10942_v38, %v2873_v0  ;;  %v1265_v38 = vadd.f32 %v1205_v53, %v1028_v24  ;;  %v15191_v24 = vld [vmem:[#allocation119_spill] sm:$0xff]  ;;  %v1984_v43 = vadd.f32 %v1923_v57, %v1747_v36  ;;  %v14637_v35 = vrot.slane %v10981_v40, 4 }
 0x672   : > { %2911 = vst [vmem:[#allocation2 + $0x268] sm:$0xff] %v2874_v6  ;;  %v11028_v14 = vpop.permute.xlu1 %1875  ;;  %v15190_v6 = vld [vmem:[#allocation96_spill] sm:$0xff]  ;;  %v1442_v1 = vsel %vm1437_vm4, %v15070_v54, %v15191_v24  ;;  %v1443_v63 = vsel %vm1437_vm4, %v15191_v24, %v15193_v19  ;;  %v1748_v54 = vadd.f32 %v1687_v22, %v1511_v8 }
 0x673   : > { %v1206_v33 = vsel %vm1200_vm3, %v15187_v61, %v15190_v6  ;;  %v1502_v53 = vadd.f32 %v1442_v1, %v1265_v38  ;;  %v15194_v61 = vld [vmem:[#allocation150_spill] sm:$0xff]  ;;  %v1924_v7 = vsel %vm1911_vm6, %v10964_v18, %v11028_v14  ;;  %v1916_v38 = vsel %vm1911_vm6, %v15088_v27, %v10988_v37 }
 0x674   : > { %2620 = vrot.lane.b32.xlu1 %v10962_v11, %s8782_s20  ;;  %v1266_v44 = vadd.f32 %v1206_v33, %v1029_v2  ;;  %v1679_v52 = vsel %vm1674_vm5, %v15080_v15, %v15194_v61  ;;  %v2221_v16 = vadd.f32 %v2160_v58, %v1984_v43  ;;  %v1985_v24 = vadd.f32 %v1924_v7, %v1748_v54  ;;  %v15195_v58 = vld [vmem:[#allocation151_spill] sm:$0xff] }
 0x675   : > { %v2095_v0 = vpop.permute.xlu0 %2094  ;;  %v1739_v33 = vadd.f32 %v1679_v52, %v1502_v53  ;;  %v1680_v52 = vsel %vm1674_vm5, %v15194_v61, %v15195_v58 }
 0x676   : > { %v1503_v57 = vadd.f32 %v1443_v63, %v1266_v44  ;;  %v11071_v1 = vpop.permute.xlu2 %2812  ;;  %v2153_v15 = vsel %vm2148_vm7, %v10385_v3, %v2095_v0  ;;  %v1917_v3 = vsel %vm1911_vm6, %v10988_v37, %v10891_v39  ;;  %v2273_v44 = vadd.f32 %v10426_v28, %v2221_v16 }
 0x677   : > { %v1976_v8 = vadd.f32 %v1916_v38, %v1739_v33 }
 0x678   : > { %v1740_v43 = vadd.f32 %v1680_v52, %v1503_v57 }
 0x679   : > { %v2213_v63 = vadd.f32 %v2153_v15, %v1976_v8  ;;  %v8196_v15 = vld [vmem:[#allocation2 + $0x26c] sm:$0xf] }
 0x67a   : > { %v2835_v2 = vpop.permute.xlu1 %2834  ;;  %v1977_v7 = vadd.f32 %v1917_v3, %v1740_v43  ;;  %v14635_v43 = vrot.slane %v11071_v1, 4 }
 0x67b   : > { %v2854_v30 = vrot.slane %v2835_v2, 4 }
 0x67d   : > { %v2880_v18 = vsel %vm2421_vm8, %v2854_v30, %v14637_v35  ;;  %v11078_v22 = vpop.permute.xlu0 %2112  ;;  %v2265_v30 = vadd.f32 %v10453_v9, %v2213_v63 }
 0x67e   : > { %v2881_v36 = vsel %vm1437_vm4, %v2835_v2, %v2880_v18  ;;  %v2161_v27 = vsel %vm2148_vm7, %v2111_v42, %v11078_v22  ;;  %v2305_v42 = vmax.f32 %v2273_v44, 0.0  ;;  %v7370_v18 = vld [vmem:[#allocation2 + $0x268] sm:$0xf] }
 0x67f   : > { %2915 = vst [vmem:[#allocation2 + $0x284] sm:$0xff] %v2881_v36  ;;  %v2222_v53 = vadd.f32 %v2161_v27, %v1985_v24  ;;  %v2718_v36 = vpop.permute.xlu2 %2717  ;;  %v2297_v52 = vmax.f32 %v2265_v30, 0.0 }
 0x681   : > { %v2274_v54 = vadd.f32 %v10426_v28, %v2222_v53 }
 0x682   : > { %v11091_v2 = vpop.permute.xlu1 %2096 }
 0x683   : > { %v2306_v38 = vmax.f32 %v2274_v54, 0.0  ;;  %v2154_v61 = vsel %vm2148_vm7, %v2095_v0, %v11091_v2 }
 0x684   : > { %v2214_v33 = vadd.f32 %v2154_v61, %v1977_v7 }
 0x685   : > { %v11096_v37 = vpack.c.bf16 %v2306_v38, %v2305_v42  ;;  %v2819_v16 = vpop.permute.xlu0 %2818  ;;  %v2741_v42 = vrot.slane %v2718_v36, 4 }
 0x686   : > { %v2266_v57 = vadd.f32 %v10453_v9, %v2214_v33  ;;  %v8199_v24 = vld [vmem:[#allocation2 + $0x280] sm:$0xf0]  ;;  %v7372_v8 = vld [vmem:[#allocation2 + $0x284] sm:$0xf0] }
 0x687   : > { %2347 = vst [vmem:[#allocation2 + $0x2c] sm:$0xff] %v11096_v37  ;;  %3040 = vrot.lane.b32.xlu0 %v11096_v37, %s8791_s10  ;;  %v7371_v27 = vor.u32 %v8199_v24, %v7370_v18  ;;  %v7375_v0 = vor.u32 %v8196_v15, %v7372_v8  ;;  %v11122_v33 = vpop.permute.xlu2 %2727  ;;  %v7014_v24 = vld [vmem:[#allocation4] sm:$0xf]  ;;  %v8108_v15 = vld [vmem:[#allocation4 + $0x8] sm:$0xf0]  ;;  %v2846_v8 = vrot.slane %v2819_v16, 4 }
 0x688   : > { %v2298_v3 = vmax.f32 %v2266_v57, 0.0 }
 0x689   : > { %4208 = vmatpush.bf16.msrb.mxu0 %v7371_v27  ;;  %8375 = vmatpush.bf16.msra.mxu1 %v7371_v27 }
 0x68a   : > { %v11102_v44 = vpack.c.bf16 %v2298_v3, %v2297_v52  ;;  %4295 = vmatpush.bf16.msrb.mxu2 %v7375_v0  ;;  %v2811_v53 = vpop.permute.xlu1 %2810  ;;  %v11128_v0 = vor.u32 %v8108_v15, %v7014_v24 }
 0x68b   : > { %v2842_v63 = vrot.slane %v2811_v53, 4 }
 0x68c   : > { %2343 = vst [vmem:[#allocation2 + $0x10] sm:$0xff] %v11102_v44  ;;  %2596 = vrot.lane.b32.xlu1 %v11102_v44, %s8782_s20  ;;  %3032 = vrot.lane.b32.xlu2 %v11102_v44, %s8791_s10 }
 0x68d   : > { %v2858_v54 = vsel %vm2421_vm8, %v2842_v63, %v14635_v43  ;;  %v11113_v7 = vpop.permute.xlu0 %2719  ;;  %4183 = vmatmul.bf16.vlgmr.msra.gmra.mxu0 %v11128_v0  ;;  %4270 = vmatmul.bf16.vlgmr.msra.gmra.mxu3 %v11128_v0  ;;  %v14643_v63 = vrot.slane %v11122_v33, 4 }
 0x68e   : > { %v2860_v38 = vsel %vm1437_vm4, %v2811_v53, %v2858_v54  ;;  %v14634_v61 = vrot.slane %v11113_v7, 4 }
 0x68f   : > { %2903 = vst [vmem:[#allocation2 + $0x230] sm:$0xff] %v2860_v38  ;;  %2939 = vrot.lane.b32.xlu0 %v10986_v34, %s8788_s9  ;;  %v2710_v54 = vpop.permute.xlu2 %2709 }
 0x690   : > { %v2764_v30 = vsel %vm2421_vm8, %v2741_v42, %v14634_v61 }
 0x691   : > { %v2765_v18 = vsel %vm1200_vm3, %v2718_v36, %v2764_v30  ;;  %v15196_v30 = vld [vmem:[#allocation11_spill] sm:$0xff] }
 0x692   : > { %2802 = vst [vmem:[#allocation2 + $0x1f8] sm:$0xff] %v2765_v18  ;;  %v11125_v57 = vpop.permute.xlu1 %2820  ;;  %v1577_v18 = vmul.f32 %v15095_v49, %v15196_v30 }
 0x693   : > { %v14636_v27 = vrot.slane %v11125_v57, 4 }
 0x694   : > { %2947 = vrot.lane.b32.xlu1 %v10962_v11, %s8788_s9  ;;  %2604 = vrot.lane.b32.xlu2 %v11096_v37, %s8782_s20 }
 0x695   : > { %v2866_v36 = vsel %vm2421_vm8, %v2846_v8, %v14636_v27  ;;  %v2702_v52 = vpop.permute.xlu0 %2701  ;;  %v2737_v8 = vrot.slane %v2710_v54, 4 }
 0x696   : > { %v2867_v3 = vsel %vm1437_vm4, %v2819_v16, %v2866_v36  ;;  %v7342_v24 = vld [vmem:[#allocation2 + $0x230] sm:$0xf]  ;;  %v8189_v15 = vld [vmem:[#allocation2 + $0x234] sm:$0xf] }
 0x697   : > { %2907 = vst [vmem:[#allocation2 + $0x24c] sm:$0xff] %v2867_v3  ;;  %2511 = vrot.lane.b32.xlu0 %v10962_v11, %s8780_s19 }
 0x69a   : > { %v2726_v53 = vpop.permute.xlu1 %2725 }
 0x69b   : > { %v2745_v42 = vrot.slane %v2726_v53, 4 }
 0x69c   : > { %2923 = vrot.lane.b32.xlu1 %v11102_v44, %s8788_s9  ;;  %2503 = vrot.lane.b32.xlu2 %v10986_v34, %s8780_s19 }
 0x69d   : > { %v2771_v38 = vsel %vm2421_vm8, %v2745_v42, %v14643_v63  ;;  %v11150_v16 = vpop.permute.xlu0 %2711  ;;  %v7046_v63 = vld [vmem:[#allocation4 + $0x38] sm:$0xf] }
 0x69e   : > { %v2772_v36 = vsel %vm1200_vm3, %v2726_v53, %v2771_v38  ;;  %v14641_v3 = vrot.slane %v11150_v16, 4  ;;  %v8192_v61 = vld [vmem:[#allocation2 + $0x248] sm:$0xf0]  ;;  %v7344_v43 = vld [vmem:[#allocation2 + $0x24c] sm:$0xf0]  ;;  %v1806_v38 = vmul.f32 %v15099_v10, %v15196_v30 }
 0x69f   : > { %2806 = vst [vmem:[#allocation2 + $0x214] sm:$0xff] %v2772_v36  ;;  %1672 = vrot.lane.b32.xlu0 %v1577_v18, %s8788_s9  ;;  %v7343_v27 = vor.u32 %v8192_v61, %v7342_v24  ;;  %v7347_v35 = vor.u32 %v8189_v15, %v7344_v43  ;;  %v2733_v36 = vrot.slane %v2702_v52, 4  ;;  %v7314_v61 = vld [vmem:[#allocation2 + $0x1f8] sm:$0xf]  ;;  %v7026_v15 = vld [vmem:[#allocation4 + $0x18] sm:$0xf] }
 0x6a0   : > { %v2757_v42 = vsel %vm2421_vm8, %v2737_v8, %v14641_v3 }
 0x6a1   : > { %v2758_v49 = vsel %vm1200_vm3, %v2710_v54, %v2757_v42  ;;  %4209 = vmatpush.bf16.msrb.mxu0 %v7343_v27  ;;  %8376 = vmatpush.bf16.msra.mxu1 %v7343_v27  ;;  %v8182_v27 = vld [vmem:[#allocation2 + $0x1fc] sm:$0xf]  ;;  %v8111_v42 = vld [vmem:[#allocation4 + $0x20] sm:$0xf0] }
 0x6a2   : > { %2798 = vst [vmem:[#allocation2 + $0x1dc] sm:$0xff] %v2758_v49  ;;  %4296 = vmatpush.bf16.msrb.mxu2 %v7347_v35  ;;  %v11161_v53 = vpop.permute.xlu1 %2703  ;;  %v11175_v49 = vor.u32 %v8111_v42, %v7026_v15  ;;  %v1790_v15 = vmul.f32 %v15109_v55, %v15196_v30 }
 0x6a3   : > { %v14642_v18 = vrot.slane %v11161_v53, 4 }
 0x6a4   : > { %1893 = vrot.lane.b32.xlu1 %v1806_v38, %s8791_s10  ;;  %2931 = vrot.lane.b32.xlu2 %v11096_v37, %s8788_s9  ;;  %15197 = vst [vmem:[#allocation160_spill] sm:$0xff] %v11175_v49  ;;  %v1814_v38 = vmul.f32 %v15097_v31, %v15196_v30  ;;  %v2043_v31 = vmul.f32 %v15101_v12, %v15196_v30  ;;  %v15201_v12 = vld [vmem:[#allocation172_spill] sm:$0xff] }
 0x6a5   : > { %v2749_v43 = vsel %vm2421_vm8, %v2733_v36, %v14642_v18  ;;  %4188 = vmatmul.bf16.gmra.mxu0 %v11175_v49  ;;  %4275 = vmatmul.bf16.gmra.mxu3 %v11175_v49 }
 0x6a6   : > { %v2751_v35 = vsel %vm1200_vm3, %v2702_v52, %v2749_v43  ;;  %v8185_v54 = vld [vmem:[#allocation2 + $0x210] sm:$0xf0]  ;;  %v7316_v24 = vld [vmem:[#allocation2 + $0x214] sm:$0xf0] }
 0x6a7   : > { %2794 = vst [vmem:[#allocation2 + $0x1c0] sm:$0xff] %v2751_v35  ;;  %2487 = vrot.lane.b32.xlu0 %v11102_v44, %s8780_s19  ;;  %v7315_v10 = vor.u32 %v8185_v54, %v7314_v61  ;;  %v7319_v8 = vor.u32 %v8182_v27, %v7316_v24  ;;  %v7038_v54 = vld [vmem:[#allocation4 + $0x30] sm:$0xf]  ;;  %v8114_v24 = vld [vmem:[#allocation4 + $0x38] sm:$0xf0] }
 0x6a9   : > { %4210 = vmatpush.bf16.msrb.mxu0 %v7315_v10  ;;  %8377 = vmatpush.bf16.msra.mxu1 %v7315_v10  ;;  %v8178_v52 = vld [vmem:[#allocation2 + $0x1d8] sm:$0xf0]  ;;  %v7288_v61 = vld [vmem:[#allocation2 + $0x1dc] sm:$0xf0] }
 0x6aa   : > { %4297 = vmatpush.bf16.msrb.mxu2 %v7319_v8  ;;  %v15198_v10 = vld [vmem:[#allocation137_spill] sm:$0xff]  ;;  %v11195_v8 = vor.u32 %v8114_v24, %v7038_v54  ;;  %v15205_v54 = vld [vmem:[#allocation175_spill] sm:$0xff] }
 0x6ab   : > { %v2027_v24 = vmul.f32 %v15205_v54, %v15196_v30 }
 0x6ac   : > { %2495 = vrot.lane.b32.xlu1 %v11096_v37, %s8780_s19  ;;  %1909 = vrot.lane.b32.xlu2 %v1814_v38, %s8791_s10  ;;  %15199 = vst [vmem:[#allocation163_spill] sm:$0xff] %v11195_v8  ;;  %v2051_v38 = vmul.f32 %v15201_v12, %v15196_v30  ;;  %v8109_v12 = vld [vmem:[#allocation4 + $0x10] sm:$0xf0] }
 0x6ae   : > { %v7286_v36 = vld [vmem:[#allocation2 + $0x1c0] sm:$0xf]  ;;  %v8175_v43 = vld [vmem:[#allocation2 + $0x1c4] sm:$0xf] }
 0x6af   : > { %2838 = vrot.lane.b32.xlu0 %v10962_v11, %s8786_s23  ;;  %v7287_v27 = vor.u32 %v8178_v52, %v7286_v36  ;;  %v7291_v35 = vor.u32 %v8175_v43, %v7288_v61  ;;  %v15203_v36 = vld [vmem:[#allocation107_spill] sm:$0xff] }
 0x6b0   : > { %v15204_v43 = vrot.slane %v15203_v36, 4 }
 0x6b1   : > { %4211 = vmatpush.bf16.msrb.mxu0 %v7287_v27  ;;  %8378 = vmatpush.bf16.msra.mxu1 %v7287_v27  ;;  %v7050_v27 = vld [vmem:[#allocation4 + $0x48] sm:$0xf] }
 0x6b2   : > { %4298 = vmatpush.bf16.msrb.mxu2 %v7291_v35  ;;  %v8117_v35 = vld [vmem:[#allocation4 + $0x50] sm:$0xf0] }
 0x6b4   : > { %2130 = vrot.lane.b32.xlu1 %v2043_v31, %s8792_s11  ;;  %2830 = vrot.lane.b32.xlu2 %v10986_v34, %s8786_s23 }
 0x6b5   : > { %4326 = vmatpush.bf16.msra.mxu0 %v10795_v5  ;;  %v15200_v5 = vld [vmem:[#allocation174_spill] sm:$0xff]  ;;  %4280 = vmatmul.bf16.gmra.mxu3 %v11195_v8 }
 0x6b6   : > { %v1798_v42 = vmul.f32 %v15200_v5, %v15196_v30  ;;  %4193 = vmatmul.bf16.gmra.mxu0 %v11195_v8  ;;  %v15249_v8 = vld [vmem:[#allocation115_spill] sm:$0xff] }
 0x6b7   : > { %1861 = vrot.lane.b32.xlu0 %v1790_v15, %s8791_s10  ;;  %v11224_v15 = vor.u32 %v8117_v35, %v7050_v27  ;;  %v7034_v27 = vld [vmem:[#allocation4 + $0x20] sm:$0xf]  ;;  %v8112_v35 = vld [vmem:[#allocation4 + $0x28] sm:$0xf0] }
 0x6b9   : > { %4327 = vmatpush.bf16.msra.mxu0 %v15198_v10  ;;  %15206 = vst [vmem:[#allocation60_spill] sm:$0xff] %v11224_v15  ;;  %v15207_v10 = vld [vmem:[#allocation176_spill] sm:$0xff] }
 0x6ba   : > { %v2035_v5 = vmul.f32 %v15207_v10, %v15196_v30 }
 0x6bc   : > { %1877 = vrot.lane.b32.xlu1 %v1798_v42, %s8791_s10  ;;  %2146 = vrot.lane.b32.xlu2 %v2051_v38, %s8792_s11  ;;  %v7022_v42 = vld [vmem:[#allocation4 + $0x8] sm:$0xf] }
 0x6bd   : > { %v11234_v38 = vor.u32 %v8109_v12, %v7022_v42  ;;  %v15213_v12 = vld [vmem:[#allocation101_spill] sm:$0xff] }
 0x6bf   : > { %2401 = vrot.lane.b32.xlu0 %v10962_v11, %s8779_s18  ;;  %7564 = vmatmul.msk.bf16.vlgmr.msra.gmra.mxu2 %vm4162_vm9, %v11234_v38 }
 0x6c1   : > { %v11208_v55 = vpop.permute.xlu2 %3056 }
 0x6c2   : > { %15202 = vst [vmem:[#allocation64_spill] sm:$0xff] %v11208_v55  ;;  %v14638_v52 = vrot.slane %v11208_v55, 4 }
 0x6c4   : > { %v3100_v61 = vsel %vm2421_vm8, %v15204_v43, %v14638_v52  ;;  %2814 = vrot.lane.b32.xlu1 %v11102_v44, %s8786_s23  ;;  %2393 = vrot.lane.b32.xlu2 %v10986_v34, %s8779_s18  ;;  %v7016_v43 = vld [vmem:[#allocation4 + $0xc] sm:$0xf0] }
 0x6c5   : > { %v3101_v31 = vsel %vm1911_vm6, %v15203_v36, %v3100_v61  ;;  %4285 = vmatmul.bf16.gmra.mxu3 %v11224_v15  ;;  %v8107_v36 = vld [vmem:[#allocation4 + $0x4] sm:$0xf] }
 0x6c6   : > { %3134 = vst [vmem:[#allocation2 + $0x36c] sm:$0xff] %v3101_v31  ;;  %4198 = vmatmul.bf16.gmra.mxu0 %v11224_v15  ;;  %v11244_v61 = vor.u32 %v8107_v36, %v7016_v43  ;;  %v11253_v31 = vor.u32 %v8112_v35, %v7034_v27  ;;  %v15214_v36 = vrot.slane %v15213_v12, 4 }
 0x6c7   : > { %2098 = vrot.lane.b32.xlu0 %v2027_v24, %s8792_s11 }
 0x6c8   : > { %15208 = vst [vmem:[#allocation62_spill] sm:$0xff] %v11253_v31 }
 0x6cc   : > { %2114 = vrot.lane.b32.xlu1 %v2035_v5, %s8792_s11  ;;  %2822 = vrot.lane.b32.xlu2 %v11096_v37, %s8786_s23  ;;  %v15211_v5 = vld [vmem:[#allocation45_spill] sm:$0xff] }
 0x6cd   : > { %v8228_v3 = vld [vmem:[#allocation2 + $0x368] sm:$0xf0] }
 0x6cf   : > { %2385 = vrot.lane.b32.xlu0 %v11096_v37, %s8779_s18  ;;  %7565 = vmatmul.msk.bf16.gmra.mxu2 %vm4162_vm9, %v11253_v31 }
 0x6d4   : > { %2721 = vrot.lane.b32.xlu1 %v10986_v34, %s8784_s22  ;;  %2377 = vrot.lane.b32.xlu2 %v11102_v44, %s8779_s18 }
 0x6d6   : > { %4212 = vmatmul.bf16.vlgmr.msrb.gmra.mxu0 %v11244_v61 }
 0x6d7   : > { %3157 = vrot.lane.b32.xlu0 %v10986_v34, %s8792_s11 }
 0x6dc   : > { %3165 = vrot.lane.b32.xlu1 %v10962_v11, %s8792_s11  ;;  %2729 = vrot.lane.b32.xlu2 %v10962_v11, %s8784_s22  ;;  %v15212_v11 = vrot.slane %v15211_v5, 4 }
 0x6de   : > { %v11255_v54 = vpop.permute.xlu0 %2612  ;;  %v11257_v24 = vpop.permute.xlu1 %3048 }
 0x6df   : > { %15209 = vst [vmem:[#allocation61_spill] sm:$0xff] %v11255_v54  ;;  %v14640_v10 = vrot.slane %v11255_v54, 4  ;;  %v14639_v34 = vrot.slane %v11257_v24, 4  ;;  %2713 = vrot.lane.b32.xlu0 %v11096_v37, %s8784_s22  ;;  %v15244_v54 = vld [vmem:[#allocation9_spill] sm:$0xff] }
 0x6e0   : > { %15210 = vst [vmem:[#allocation8_spill] sm:$0xff] %v11257_v24 }
 0x6e1   : > { %v2657_v42 = vsel %vm2421_vm8, %v15212_v11, %v14640_v10  ;;  %v3093_v43 = vsel %vm2421_vm8, %v15214_v36, %v14639_v34 }
 0x6e2   : > { %v2658_v27 = vsel %vm963_vm2, %v15211_v5, %v2657_v42  ;;  %v3094_v35 = vsel %vm1911_vm6, %v15213_v12, %v3093_v43  ;;  %v15217_v5 = vld [vmem:[#allocation51_spill] sm:$0xff]  ;;  %v15219_v43 = vld [vmem:[#allocation130_spill] sm:$0xff] }
 0x6e3   : > { %2694 = vst [vmem:[#allocation2 + $0x190] sm:$0xff] %v2658_v27  ;;  %v15218_v42 = vrot.slane %v15217_v5, 4  ;;  %v15220_v27 = vrot.slane %v15219_v43, 4 }
 0x6e4   : > { %3130 = vst [vmem:[#allocation2 + $0x350] sm:$0xff] %v3094_v35  ;;  %3141 = vrot.lane.b32.xlu1 %v11102_v44, %s8792_s11  ;;  %2705 = vrot.lane.b32.xlu2 %v11102_v44, %s8784_s22 }
 0x6e6   : > { %v11283_v11 = vpop.permute.xlu1 %2620  ;;  %v11285_v52 = vpop.permute.xlu2 %3032  ;;  %7568 = vmatmul.msk.bf16.vlgmr.msra.gmra.mxu0 %vm4162_vm9, %v11234_v38 }
 0x6e7   : > { %15215 = vst [vmem:[#allocation179_spill] sm:$0xff] %v11283_v11  ;;  %v14644_v36 = vrot.slane %v11283_v11, 4  ;;  %v14645_v34 = vrot.slane %v11285_v52, 4 }
 0x6e8   : > { %15216 = vst [vmem:[#allocation178_spill] sm:$0xff] %v11285_v52  ;;  %v15226_v52 = vld [vmem:[#allocation54_spill] sm:$0xff] }
 0x6e9   : > { %v2664_v12 = vsel %vm2421_vm8, %v15218_v42, %v14644_v36  ;;  %v3079_v44 = vsel %vm2421_vm8, %v15220_v27, %v14645_v34  ;;  %v8115_v36 = vld [vmem:[#allocation4 + $0x40] sm:$0xf0] }
 0x6ea   : > { %v2665_v35 = vsel %vm963_vm2, %v15217_v5, %v2664_v12  ;;  %v3080_v10 = vsel %vm1911_vm6, %v15219_v43, %v3079_v44  ;;  %v11307_v27 = vor.u32 %v8115_v36, %v7046_v63  ;;  %v8169_v36 = vld [vmem:[#allocation2 + $0x194] sm:$0xf] }
 0x6eb   : > { %2698 = vst [vmem:[#allocation2 + $0x1ac] sm:$0xff] %v2665_v35  ;;  %v7490_v18 = vld [vmem:[#allocation2 + $0x350] sm:$0xf] }
 0x6ec   : > { %3122 = vst [vmem:[#allocation2 + $0x318] sm:$0xff] %v3080_v10  ;;  %3149 = vrot.lane.b32.xlu2 %v11096_v37, %s8792_s11  ;;  %v7491_v42 = vor.u32 %v8228_v3, %v7490_v18  ;;  %7566 = vmatmul.msk.bf16.gmra.mxu2 %vm4162_vm9, %v11307_v27  ;;  %v15223_v10 = vld [vmem:[#allocation39_spill] sm:$0xff] }
 0x6ed   : > { %15221 = vst [vmem:[#allocation184_spill] sm:$0xff] %v11307_v27  ;;  %7570 = vmatmul.msk.bf16.vlgmr.msrb.gmra.mxu3 %vm4162_vm9, %v11307_v27  ;;  %v15224_v43 = vrot.slane %v15223_v10, 4  ;;  %v7266_v3 = vld [vmem:[#allocation2 + $0x190] sm:$0xf] }
 0x6ee   : > { %4378 = vmatpush.bf16.msra.mxu3 %v7491_v42  ;;  %v11309_v5 = vpop.permute.xlu2 %2604  ;;  %v15248_v27 = vld [vmem:[#allocation87_spill] sm:$0xff] }
 0x6ef   : > { %15222 = vst [vmem:[#allocation182_spill] sm:$0xff] %v11309_v5  ;;  %v14650_v12 = vrot.slane %v11309_v5, 4 }
 0x6f1   : > { %v2650_v37 = vsel %vm2421_vm8, %v15224_v43, %v14650_v12  ;;  %v15227_v43 = vrot.slane %v15226_v52, 4 }
 0x6f2   : > { %v2651_v63 = vsel %vm963_vm2, %v15223_v10, %v2650_v37  ;;  %v8172_v18 = vld [vmem:[#allocation2 + $0x1a8] sm:$0xf0]  ;;  %v7268_v44 = vld [vmem:[#allocation2 + $0x1ac] sm:$0xf0] }
 0x6f3   : > { %2690 = vst [vmem:[#allocation2 + $0x174] sm:$0xff] %v2651_v63  ;;  %v7267_v35 = vor.u32 %v8172_v18, %v7266_v3  ;;  %v7271_v42 = vor.u32 %v8169_v36, %v7268_v44  ;;  %v15229_v3 = vld [vmem:[#allocation134_spill] sm:$0xff] }
 0x6f4   : > { %v15230_v63 = vrot.slane %v15229_v3, 4 }
 0x6f5   : > { %4349 = vmatpush.bf16.msrb.mxu1 %v7267_v35  ;;  %4436 = vmatpush.bf16.msrb.mxu0 %v7271_v42  ;;  %v7058_v42 = vld [vmem:[#allocation4 + $0x50] sm:$0xf] }
 0x6f6   : > { %v11323_v34 = vpop.permute.xlu2 %2503  ;;  %7569 = vmatmul.msk.bf16.gmra.mxu0 %vm4162_vm9, %v11253_v31  ;;  %v15250_v31 = vld [vmem:[#allocation113_spill] sm:$0xff] }
 0x6f7   : > { %15225 = vst [vmem:[#allocation186_spill] sm:$0xff] %v11323_v34  ;;  %v14653_v24 = vrot.slane %v11323_v34, 4 }
 0x6f9   : > { %v2548_v12 = vsel %vm2421_vm8, %v15227_v43, %v14653_v24  ;;  %v11331_v5 = vpop.permute.xlu0 %3040  ;;  %v8118_v43 = vld [vmem:[#allocation4 + $0x58] sm:$0xf0] }
 0x6fa   : > { %15228 = vst [vmem:[#allocation177_spill] sm:$0xff] %v11331_v5  ;;  %v2549_v10 = vsel %vm726_vm1, %v15226_v52, %v2548_v12  ;;  %v14654_v37 = vrot.slane %v11331_v5, 4 }
 0x6fb   : > { %2585 = vst [vmem:[#allocation2 + $0x120] sm:$0xff] %v2549_v10  ;;  %v15233_v10 = vld [vmem:[#allocation44_spill] sm:$0xff] }
 0x6fc   : > { %v3086_v18 = vsel %vm2421_vm8, %v15230_v63, %v14654_v37  ;;  %v15234_v24 = vrot.slane %v15233_v10, 4  ;;  %v11363_v37 = vor.u32 %v8118_v43, %v7058_v42 }
 0x6fd   : > { %v3087_v36 = vsel %vm1911_vm6, %v15229_v3, %v3086_v18  ;;  %v15235_v3 = vrot.slane %v10810_v25, 4 }
 0x6fe   : > { %3126 = vst [vmem:[#allocation2 + $0x334] sm:$0xff] %v3087_v36  ;;  %v11345_v44 = vpop.permute.xlu1 %2596  ;;  %v11347_v35 = vpop.permute.xlu2 %2931  ;;  %7567 = vmatmul.msk.bf16.gmra.mxu2 %vm4162_vm9, %v11363_v37  ;;  %7571 = vmatmul.msk.bf16.gmra.mxu3 %vm4162_vm9, %v11363_v37 }
 0x6ff   : > { %15231 = vst [vmem:[#allocation7_spill] sm:$0xff] %v11345_v44  ;;  %v14662_v52 = vrot.slane %v11345_v44, 4  ;;  %v14661_v12 = vrot.slane %v11347_v35, 4 }
 0x700   : > { %15232 = vst [vmem:[#allocation187_spill] sm:$0xff] %v11347_v35 }
 0x701   : > { %v2643_v63 = vsel %vm2421_vm8, %v15234_v24, %v14662_v52  ;;  %v2977_v18 = vsel %vm2421_vm8, %v15235_v3, %v14661_v12  ;;  %v11361_v36 = vpop.permute.xlu0 %2939  ;;  %15237 = vst [vmem:[#allocation192_spill] sm:$0xff] %v11363_v37  ;;  %v15238_v24 = vld [vmem:[#allocation110_spill] sm:$0xff]  ;;  %v15242_v12 = vld [vmem:[#allocation29_spill] sm:$0xff] }
 0x702   : > { %15236 = vst [vmem:[#allocation183_spill] sm:$0xff] %v11361_v36  ;;  %v2644_v5 = vsel %vm963_vm2, %v15233_v10, %v2643_v63  ;;  %v2978_v55 = vsel %vm1674_vm5, %v10810_v25, %v2977_v18  ;;  %v14669_v34 = vrot.slane %v11361_v36, 4  ;;  %v15239_v42 = vrot.slane %v15238_v24, 4  ;;  %v7462_v25 = vld [vmem:[#allocation2 + $0x318] sm:$0xf]  ;;  %v15241_v18 = vld [vmem:[#allocation31_spill] sm:$0xff] }
 0x703   : > { %2686 = vst [vmem:[#allocation2 + $0x158] sm:$0xff] %v2644_v5  ;;  %v15240_v5 = vld [vmem:[#allocation14_spill] sm:$0xff]  ;;  %v517_v52 = vsel %vm489_vm0, %v15242_v12, %v15241_v18 }
 0x704   : > { %3017 = vst [vmem:[#allocation2 + $0x2c4] sm:$0xff] %v2978_v55  ;;  %v2984_v43 = vsel %vm2421_vm8, %v15239_v42, %v14669_v34  ;;  %v344_v3 = vmul.f32 %v15240_v5, %v15196_v30  ;;  %v343_v42 = vmul.f32 %v15240_v5, %v15244_v54  ;;  %v15246_v12 = vld [vmem:[#allocation138_spill] sm:$0xff]  ;;  %v7240_v5 = vld [vmem:[#allocation2 + $0x174] sm:$0xf0] }
 0x705   : > { %v2985_v10 = vsel %vm1674_vm5, %v15238_v24, %v2984_v43  ;;  %v8221_v63 = vld [vmem:[#allocation2 + $0x330] sm:$0xf0] }
 0x706   : > { %3021 = vst [vmem:[#allocation2 + $0x2e0] sm:$0xff] %v2985_v10  ;;  %v11386_v55 = vpop.permute.xlu1 %2947  ;;  %v1910_v35 = vpop.permute.xlu2 %1909  ;;  %v7463_v36 = vor.u32 %v8221_v63, %v7462_v25  ;;  %v581_v24 = vadd.f32 %v15241_v18, %v344_v3  ;;  %v15245_v43 = vld [vmem:[#allocation59_spill] sm:$0xff]  ;;  %v580_v37 = vadd.f32 %v517_v52, %v343_v42  ;;  %v15247_v10 = vrot.slane %v15246_v12, 4 }
 0x707   : > { %15243 = vst [vmem:[#allocation185_spill] sm:$0xff] %v11386_v55  ;;  %v14680_v34 = vrot.slane %v11386_v55, 4  ;;  %v754_v44 = vsel %vm726_vm1, %v15138_v48, %v15245_v43  ;;  %v8165_v63 = vld [vmem:[#allocation2 + $0x170] sm:$0xf0]  ;;  %v991_v3 = vsel %vm963_vm2, %v15143_v59, %v15248_v27  ;;  %v15251_v59 = vld [vmem:[#allocation76_spill] sm:$0xff] }
 0x708   : > { %4379 = vmatpush.bf16.msra.mxu3 %v7463_v36  ;;  %v818_v15 = vadd.f32 %v15245_v43, %v581_v24  ;;  %v817_v42 = vadd.f32 %v754_v44, %v580_v37  ;;  %v1228_v24 = vsel %vm1200_vm3, %v15250_v31, %v15249_v8  ;;  %v15252_v43 = vrot.slane %v15251_v59, 4  ;;  %v15253_v44 = vld [vmem:[#allocation143_spill] sm:$0xff] }
 0x709   : > { %v2991_v11 = vsel %vm2421_vm8, %v15247_v10, %v14680_v34  ;;  %v11400_v25 = vpop.permute.xlu0 %2511 }
 0x70a   : > { %v2992_v48 = vsel %vm1674_vm5, %v15246_v12, %v2991_v11  ;;  %v14708_v52 = vrot.slane %v11400_v25, 4  ;;  %v7238_v36 = vld [vmem:[#allocation2 + $0x158] sm:$0xf]  ;;  %v8162_v18 = vld [vmem:[#allocation2 + $0x15c] sm:$0xf]  ;;  %v1055_v55 = vadd.f32 %v15248_v27, %v818_v15  ;;  %v1054_v12 = vadd.f32 %v991_v3, %v817_v42 }
 0x70b   : > { %3025 = vst [vmem:[#allocation2 + $0x2fc] sm:$0xff] %v2992_v48  ;;  %v7239_v10 = vor.u32 %v8165_v63, %v7238_v36  ;;  %v7243_v34 = vor.u32 %v8162_v18, %v7240_v5  ;;  %v1465_v15 = vsel %vm1437_vm4, %v15154_v60, %v15253_v44  ;;  %v8110_v36 = vld [vmem:[#allocation4 + $0x1c] sm:$0xf] }
 0x70c   : > { %v2555_v11 = vsel %vm2421_vm8, %v15252_v43, %v14708_v52  ;;  %v1292_v37 = vadd.f32 %v15249_v8, %v1055_v55  ;;  %v1291_v63 = vadd.f32 %v1228_v24, %v1054_v12  ;;  %v15254_v8 = vld [vmem:[#allocation165_spill] sm:$0xff] }
 0x70d   : > { %v2556_v49 = vsel %vm726_vm1, %v15251_v59, %v2555_v11  ;;  %4350 = vmatpush.bf16.msrb.mxu1 %v7239_v10  ;;  %4437 = vmatpush.bf16.msrb.mxu0 %v7243_v34  ;;  %v7028_v34 = vld [vmem:[#allocation4 + $0x24] sm:$0xf0]  ;;  %v15255_v55 = vrot.slane %v15254_v8, 4 }
 0x70e   : > { %2589 = vst [vmem:[#allocation2 + $0x13c] sm:$0xff] %v2556_v49  ;;  %v11424_v31 = vpop.permute.xlu1 %2923  ;;  %v11426_v27 = vpop.permute.xlu2 %2830  ;;  %v1529_v48 = vadd.f32 %v15253_v44, %v1292_v37  ;;  %v1528_v18 = vadd.f32 %v1465_v15, %v1291_v63  ;;  %v15256_v49 = vrot.slane %v11004_v56, 4  ;;  %v11441_v24 = vor.u32 %v8110_v36, %v7028_v34  ;;  %v7434_v37 = vld [vmem:[#allocation2 + $0x2e0] sm:$0xf]  ;;  %4299 = vmatmul.bf16.vlgmr.msrb.gmra.mxu2 %v11244_v61 }
 0x70f   : > { %v14689_v5 = vrot.slane %v11424_v31, 4  ;;  %v14690_v3 = vrot.slane %v11426_v27, 4  ;;  %v1939_v36 = vsel %vm1911_vm6, %v10869_v20, %v1910_v35 }
 0x710   : > { %4217 = vmatmul.bf16.vlgmr.msra.gmra.mxu1 %v11441_v24 }
 0x711   : > { %v2970_v60 = vsel %vm2421_vm8, %v15255_v55, %v14689_v5  ;;  %v2875_v42 = vsel %vm2421_vm8, %v15256_v49, %v14690_v3  ;;  %v1673_v10 = vpop.permute.xlu0 %1672  ;;  %v15258_v55 = vld [vmem:[#allocation26_spill] sm:$0xff]  ;;  %v8155_v49 = vld [vmem:[#allocation2 + $0x124] sm:$0xf] }
 0x712   : > { %v2971_v59 = vsel %vm1674_vm5, %v15254_v8, %v2970_v60  ;;  %v2876_v43 = vsel %vm1437_vm4, %v11004_v56, %v2875_v42  ;;  %v1702_v11 = vsel %vm1674_vm5, %v10802_v17, %v1673_v10  ;;  %v1766_v12 = vadd.f32 %v1673_v10, %v1529_v48  ;;  %v8214_v44 = vld [vmem:[#allocation2 + $0x2f8] sm:$0xf0]  ;;  %v7210_v8 = vld [vmem:[#allocation2 + $0x120] sm:$0xf]  ;;  %v15257_v56 = vld [vmem:[#allocation27_spill] sm:$0xff] }
 0x713   : > { %3013 = vst [vmem:[#allocation2 + $0x2a8] sm:$0xff] %v2971_v59  ;;  %v1765_v15 = vadd.f32 %v1702_v11, %v1528_v18  ;;  %v7435_v63 = vor.u32 %v8214_v44, %v7434_v37  ;;  %v510_v17 = vsel %vm489_vm0, %v15258_v55, %v15257_v56  ;;  %v15259_v42 = vld [vmem:[#allocation13_spill] sm:$0xff]  ;;  %v15261_v37 = vld [vmem:[#allocation56_spill] sm:$0xff] }
 0x714   : > { %2912 = vst [vmem:[#allocation2 + $0x270] sm:$0xff] %v2876_v43  ;;  %v2003_v34 = vadd.f32 %v1910_v35, %v1766_v12  ;;  %v336_v10 = vmul.f32 %v15259_v42, %v15196_v30  ;;  %v335_v59 = vmul.f32 %v15259_v42, %v15244_v54  ;;  %v15260_v12 = vld [vmem:[#allocation50_spill] sm:$0xff]  ;;  %v15262_v42 = vld [vmem:[#allocation80_spill] sm:$0xff] }
 0x715   : > { %4380 = vmatpush.bf16.msra.mxu3 %v7435_v63  ;;  %v2002_v48 = vadd.f32 %v1939_v36, %v1765_v15  ;;  %v8158_v60 = vld [vmem:[#allocation2 + $0x138] sm:$0xf0]  ;;  %v7212_v18 = vld [vmem:[#allocation2 + $0x13c] sm:$0xf0]  ;;  %v747_v44 = vsel %vm726_vm1, %v15261_v37, %v15260_v12  ;;  %v984_v3 = vsel %vm963_vm2, %v15155_v47, %v15262_v42 }
 0x716   : > { %v11460_v11 = vpop.permute.xlu1 %1893  ;;  %v2147_v20 = vpop.permute.xlu2 %2146  ;;  %v7211_v35 = vor.u32 %v8158_v60, %v7210_v8  ;;  %v7215_v43 = vor.u32 %v8155_v49, %v7212_v18  ;;  %v573_v36 = vadd.f32 %v15257_v56, %v336_v10  ;;  %v572_v55 = vadd.f32 %v510_v17, %v335_v59  ;;  %v8207_v17 = vld [vmem:[#allocation2 + $0x2c0] sm:$0xf0]  ;;  %v15264_v10 = vld [vmem:[#allocation112_spill] sm:$0xff] }
 0x717   : > { %v2176_v15 = vsel %vm2148_vm7, %v10932_v41, %v2147_v20  ;;  %v2240_v63 = vadd.f32 %v2147_v20, %v2003_v34 }
 0x718   : > { %v2239_v5 = vadd.f32 %v2176_v15, %v2002_v48  ;;  %4351 = vmatpush.bf16.msrb.mxu1 %v7211_v35  ;;  %4438 = vmatpush.bf16.msrb.mxu0 %v7215_v43  ;;  %v809_v49 = vadd.f32 %v747_v44, %v572_v55  ;;  %v810_v18 = vadd.f32 %v15260_v12, %v573_v36  ;;  %v15263_v48 = vld [vmem:[#allocation106_spill] sm:$0xff]  ;;  %v15265_v44 = vld [vmem:[#allocation36_spill] sm:$0xff] }
 0x719   : > { %v2292_v8 = vadd.f32 %v15166_v23, %v2240_v63  ;;  %v11472_v60 = vpop.permute.xlu0 %2487  ;;  %v1221_v59 = vsel %vm1200_vm3, %v15264_v10, %v15263_v48  ;;  %v15266_v12 = vrot.slane %v15265_v44, 4  ;;  %v319_v36 = vmul.f32 %v15041_v45, %v15244_v54 }
 0x71a   : > { %v2291_v41 = vadd.f32 %v15166_v23, %v2239_v5  ;;  %v14705_v34 = vrot.slane %v11472_v60, 4  ;;  %v7406_v56 = vld [vmem:[#allocation2 + $0x2a8] sm:$0xf]  ;;  %v1047_v47 = vadd.f32 %v15262_v42, %v810_v18  ;;  %v1046_v43 = vadd.f32 %v984_v3, %v809_v49  ;;  %v15267_v5 = vld [vmem:[#allocation135_spill] sm:$0xff] }
 0x71b   : > { %v2324_v20 = vmax.f32 %v2292_v8, 0.0  ;;  %v7407_v35 = vor.u32 %v8207_v17, %v7406_v56  ;;  %v1458_v15 = vsel %vm1437_vm4, %v15163_v50, %v15267_v5  ;;  %v320_v50 = vmul.f32 %v15041_v45, %v15196_v30  ;;  %v15268_v56 = vld [vmem:[#allocation18_spill] sm:$0xff] }
 0x71c   : > { %v2323_v37 = vmax.f32 %v2291_v41, 0.0  ;;  %v2534_v23 = vsel %vm2421_vm8, %v15266_v12, %v14705_v34  ;;  %v1284_v3 = vadd.f32 %v15263_v48, %v1047_v47  ;;  %v1283_v55 = vadd.f32 %v1221_v59, %v1046_v43  ;;  %v15269_v59 = vld [vmem:[#allocation167_spill] sm:$0xff] }
 0x71d   : > { %v2535_v63 = vsel %vm726_vm1, %v15265_v44, %v2534_v23  ;;  %4381 = vmatpush.bf16.msra.mxu3 %v7407_v35  ;;  %v496_v17 = vsel %vm489_vm0, %v15177_v32, %v15268_v56  ;;  %v1695_v45 = vsel %vm1674_vm5, %v15165_v62, %v15269_v59  ;;  %v15272_v32 = vld [vmem:[#allocation82_spill] sm:$0xff] }
 0x71e   : > { %v11494_v42 = vpack.c.bf16 %v2324_v20, %v2323_v37  ;;  %2577 = vst [vmem:[#allocation2 + $0xe8] sm:$0xff] %v2535_v63  ;;  %v11496_v8 = vpop.permute.xlu1 %2495  ;;  %v11498_v49 = vpop.permute.xlu2 %2393  ;;  %v1520_v48 = vadd.f32 %v1458_v15, %v1283_v55  ;;  %v1521_v10 = vadd.f32 %v15267_v5, %v1284_v3  ;;  %v15270_v20 = vld [vmem:[#allocation43_spill] sm:$0xff]  ;;  %v15273_v43 = vrot.slane %v15272_v32, 4  ;;  %4304 = vmatmul.bf16.gmra.mxu2 %v11441_v24  ;;  %v8113_v55 = vld [vmem:[#allocation4 + $0x34] sm:$0xf] }
 0x71f   : > { %v14706_v18 = vrot.slane %v11496_v8, 4  ;;  %v14707_v41 = vrot.slane %v11498_v49, 4  ;;  %v15271_v35 = vrot.slane %v15270_v20, 4  ;;  %v556_v12 = vadd.f32 %v496_v17, %v319_v36  ;;  %v7040_v17 = vld [vmem:[#allocation4 + $0x3c] sm:$0xf0] }
 0x720   : > { %2356 = vst [vmem:[#allocation2 + $0x6c] sm:$0xf] %v11494_v42  ;;  %2622 = vrot.lane.b32.xlu1 %v11494_v42, %s8782_s20  ;;  %v557_v15 = vadd.f32 %v15268_v56, %v320_v50  ;;  %v1758_v63 = vadd.f32 %v15269_v59, %v1521_v10  ;;  %v1932_v3 = vsel %vm1911_vm6, %v10788_v29, %v11460_v11  ;;  %v15274_v50 = vrot.slane %v10981_v40, 4  ;;  %v15275_v59 = vld [vmem:[#allocation23_spill] sm:$0xff] }
 0x721   : > { %v2541_v47 = vsel %vm2421_vm8, %v15271_v35, %v14706_v18  ;;  %v2439_v37 = vsel %vm2421_vm8, %v15273_v43, %v14707_v41  ;;  %v11524_v44 = vpop.permute.xlu0 %2838  ;;  %v328_v36 = vmul.f32 %v15035_v26, %v15196_v30  ;;  %v327_v10 = vmul.f32 %v15035_v26, %v15244_v54  ;;  %v15276_v35 = vld [vmem:[#allocation21_spill] sm:$0xff] }
 0x722   : > { %v2542_v23 = vsel %vm726_vm1, %v15270_v20, %v2541_v47  ;;  %v2440_v62 = vsel %vm489_vm0, %v15272_v32, %v2439_v37  ;;  %v14691_v5 = vrot.slane %v11524_v44, 4  ;;  %v1757_v20 = vadd.f32 %v1695_v45, %v1520_v48  ;;  %v15277_v47 = vld [vmem:[#allocation41_spill] sm:$0xff] }
 0x723   : > { %2581 = vst [vmem:[#allocation2 + $0x104] sm:$0xff] %v2542_v23  ;;  %v11546_v29 = vor.u32 %v8113_v55, %v7040_v17  ;;  %v503_v30 = vsel %vm489_vm0, %v15276_v35, %v15275_v59  ;;  %v733_v48 = vsel %vm726_vm1, %v15182_v4, %v15277_v47  ;;  %v1995_v45 = vadd.f32 %v11460_v11, %v1758_v63 }
 0x724   : > { %2476 = vst [vmem:[#allocation2 + $0xb0] sm:$0xff] %v2440_v62  ;;  %v2882_v56 = vsel %vm2421_vm8, %v15274_v50, %v14691_v5  ;;  %v1994_v43 = vadd.f32 %v1932_v3, %v1757_v20  ;;  %v793_v26 = vadd.f32 %v733_v48, %v556_v12  ;;  %v794_v54 = vadd.f32 %v15277_v47, %v557_v15  ;;  %v15278_v62 = vld [vmem:[#allocation161_spill] sm:$0xff]  ;;  %v15280_v50 = vld [vmem:[#allocation71_spill] sm:$0xff]  ;;  %v15281_v15 = vld [vmem:[#allocation32_spill] sm:$0xff] }
 0x725   : > { %v2883_v32 = vsel %vm1437_vm4, %v10981_v40, %v2882_v56  ;;  %4222 = vmatmul.bf16.gmra.mxu1 %v11546_v29  ;;  %v565_v11 = vadd.f32 %v15275_v59, %v328_v36  ;;  %v564_v40 = vadd.f32 %v503_v30, %v327_v10  ;;  %v15279_v3 = vld [vmem:[#allocation49_spill] sm:$0xff]  ;;  %v970_v12 = vsel %vm963_vm2, %v15186_v21, %v15280_v50  ;;  %v7182_v36 = vld [vmem:[#allocation2 + $0xe8] sm:$0xf] }
 0x726   : > { %2916 = vst [vmem:[#allocation2 + $0x28c] sm:$0xff] %v2883_v32  ;;  %v2131_v37 = vpop.permute.xlu1 %2130  ;;  %v11557_v23 = vpop.permute.xlu2 %2822  ;;  %v740_v20 = vsel %vm726_vm1, %v15175_v13, %v15279_v3  ;;  %v15282_v35 = vrot.slane %v11125_v57, 4  ;;  %v1030_v59 = vadd.f32 %v970_v12, %v793_v26  ;;  %v1031_v30 = vadd.f32 %v15280_v50, %v794_v54  ;;  %v15283_v5 = vld [vmem:[#allocation97_spill] sm:$0xff] }
 0x727   : > { %v2169_v55 = vsel %vm2148_vm7, %v15278_v62, %v2131_v37  ;;  %v2232_v17 = vadd.f32 %v2131_v37, %v1995_v45  ;;  %v14701_v4 = vrot.slane %v11557_v23, 4  ;;  %v8148_v45 = vld [vmem:[#allocation2 + $0xec] sm:$0xf] }
 0x728   : > { %v2231_v63 = vadd.f32 %v2169_v55, %v1994_v43  ;;  %v802_v55 = vadd.f32 %v15279_v3, %v565_v11  ;;  %v1268_v54 = vadd.f32 %v15283_v5, %v1031_v30 }
 0x729   : > { %v2284_v56 = vadd.f32 %v15281_v15, %v2232_v17  ;;  %v2868_v47 = vsel %vm2421_vm8, %v15282_v35, %v14701_v4  ;;  %v11577_v48 = vpop.permute.xlu0 %1861  ;;  %v801_v35 = vadd.f32 %v740_v20, %v564_v40 }
 0x72a   : > { %v2283_v10 = vadd.f32 %v15281_v15, %v2231_v63  ;;  %v2869_v13 = vsel %vm1437_vm4, %v11125_v57, %v2868_v47  ;;  %v8151_v21 = vld [vmem:[#allocation2 + $0x100] sm:$0xf0]  ;;  %v7184_v32 = vld [vmem:[#allocation2 + $0x104] sm:$0xf0]  ;;  %v7378_v63 = vld [vmem:[#allocation2 + $0x270] sm:$0xf]  ;;  %v1207_v57 = vsel %vm1200_vm3, %v15190_v6, %v15283_v5 }
 0x72b   : > { %v2316_v43 = vmax.f32 %v2284_v56, 0.0  ;;  %2908 = vst [vmem:[#allocation2 + $0x254] sm:$0xff] %v2869_v13  ;;  %v7183_v37 = vor.u32 %v8151_v21, %v7182_v36  ;;  %v7187_v62 = vor.u32 %v8148_v45, %v7184_v32  ;;  %v15284_v47 = vld [vmem:[#allocation73_spill] sm:$0xff]  ;;  %v1267_v40 = vadd.f32 %v1207_v57, %v1030_v59  ;;  %v8116_v36 = vld [vmem:[#allocation4 + $0x4c] sm:$0xf]  ;;  %v15285_v5 = vld [vmem:[#allocation126_spill] sm:$0xff] }
 0x72c   : > { %v2315_v17 = vmax.f32 %v2283_v10, 0.0  ;;  %v977_v11 = vsel %vm963_vm2, %v15180_v51, %v15284_v47  ;;  %v1039_v3 = vadd.f32 %v15284_v47, %v802_v55  ;;  %v7052_v10 = vld [vmem:[#allocation4 + $0x54] sm:$0xf0]  ;;  %v1444_v13 = vsel %vm1437_vm4, %v15193_v19, %v15285_v5  ;;  %v15286_v51 = vld [vmem:[#allocation75_spill] sm:$0xff]  ;;  %v15288_v19 = vld [vmem:[#allocation105_spill] sm:$0xff] }
 0x72d   : > { %4352 = vmatpush.bf16.msrb.mxu1 %v7183_v37  ;;  %4439 = vmatpush.bf16.msrb.mxu0 %v7187_v62  ;;  %v8200_v15 = vld [vmem:[#allocation2 + $0x288] sm:$0xf0]  ;;  %v1038_v6 = vadd.f32 %v977_v11, %v801_v35  ;;  %v15287_v59 = vrot.slane %v15286_v51, 4  ;;  %v1505_v45 = vadd.f32 %v15285_v5, %v1268_v54  ;;  %v11616_v37 = vor.u32 %v8116_v36, %v7052_v10  ;;  %v15293_v47 = vld [vmem:[#allocation127_spill] sm:$0xff] }
 0x72e   : > { %v11587_v26 = vpack.c.bf16 %v2316_v43, %v2315_v17  ;;  %v1878_v50 = vpop.permute.xlu1 %1877  ;;  %v11590_v12 = vpop.permute.xlu2 %2377  ;;  %v7379_v56 = vor.u32 %v8200_v15, %v7378_v63  ;;  %v15289_v62 = vld [vmem:[#allocation98_spill] sm:$0xff]  ;;  %v1504_v17 = vadd.f32 %v1444_v13, %v1267_v40  ;;  %v1276_v35 = vadd.f32 %v15288_v19, %v1039_v3  ;;  %4309 = vmatmul.bf16.gmra.mxu2 %v11546_v29  ;;  %v15290_v15 = vld [vmem:[#allocation81_spill] sm:$0xff]  ;;  %v15294_v40 = vld [vmem:[#allocation152_spill] sm:$0xff] }
 0x72f   : > { %v14702_v20 = vrot.slane %v11590_v12, 4  ;;  %v1214_v55 = vsel %vm1200_vm3, %v15289_v62, %v15288_v19  ;;  %v15291_v57 = vrot.slane %v15290_v15, 4  ;;  %v1681_v3 = vsel %vm1674_vm5, %v15195_v58, %v15294_v40 }
 0x730   : > { %2352 = vst [vmem:[#allocation2 + $0x50] sm:$0xf] %v11587_v26  ;;  %2614 = vrot.lane.b32.xlu0 %v11587_v26, %s8782_s20  ;;  %4382 = vmatpush.bf16.msra.mxu3 %v7379_v56  ;;  %v1275_v63 = vadd.f32 %v1214_v55, %v1038_v6  ;;  %v15292_v56 = vld [vmem:[#allocation131_spill] sm:$0xff]  ;;  %v1742_v10 = vadd.f32 %v15294_v40, %v1505_v45  ;;  %v15296_v55 = vrot.slane %v11122_v33, 4 }
 0x731   : > { %v2425_v30 = vsel %vm2421_vm8, %v15287_v59, %v14702_v20  ;;  %2505 = vrot.lane.b32.xlu1 %v11587_v26, %s8780_s19  ;;  %v11610_v21 = vpop.permute.xlu0 %2401  ;;  %v1451_v11 = vsel %vm1437_vm4, %v15293_v47, %v15292_v56  ;;  %v1918_v6 = vsel %vm1911_vm6, %v10891_v39, %v11577_v48  ;;  %v1513_v59 = vadd.f32 %v15292_v56, %v1276_v35 }
 0x732   : > { %v2426_v32 = vsel %vm489_vm0, %v15286_v51, %v2425_v30  ;;  %v14704_v43 = vrot.slane %v11610_v21, 4  ;;  %v1741_v51 = vadd.f32 %v1681_v3, %v1504_v17  ;;  %v1979_v45 = vadd.f32 %v11577_v48, %v1742_v10 }
 0x733   : > { %2468 = vst [vmem:[#allocation2 + $0x78] sm:$0xff] %v2426_v32  ;;  %v1512_v32 = vadd.f32 %v1451_v11, %v1275_v63  ;;  %v15295_v39 = vrot.slane %v11071_v1, 4  ;;  %v1925_v11 = vsel %vm1911_vm6, %v11028_v14, %v1878_v50 }
 0x734   : > { %v2446_v54 = vsel %vm2421_vm8, %v15291_v57, %v14704_v43  ;;  %v1978_v19 = vadd.f32 %v1918_v6, %v1741_v51  ;;  %v8141_v6 = vld [vmem:[#allocation2 + $0xb4] sm:$0xf]  ;;  %v3411_v43 = vld [vmem:[%s14355_s4 + $0x28] sm:$0xff] }
 0x735   : > { %v2447_v36 = vsel %vm489_vm0, %v15290_v15, %v2446_v54  ;;  %4227 = vmatmul.bf16.gmra.mxu1 %v11616_v37  ;;  %v15297_v54 = vld [vmem:[#allocation162_spill] sm:$0xff] }
 0x736   : > { %2480 = vst [vmem:[#allocation2 + $0xcc] sm:$0xff] %v2447_v36  ;;  %v11640_v5 = vpop.permute.xlu1 %2814  ;;  %v11642_v13 = vpop.permute.xlu2 %2729  ;;  %v1688_v56 = vsel %vm1674_vm5, %v15192_v46, %v15297_v54  ;;  %v1750_v47 = vadd.f32 %v15297_v54, %v1513_v59 }
 0x737   : > { %v14699_v30 = vrot.slane %v11640_v5, 4  ;;  %v14697_v58 = vrot.slane %v11642_v13, 4  ;;  %v1749_v40 = vadd.f32 %v1688_v56, %v1512_v32 }
 0x738   : > { %v1987_v3 = vadd.f32 %v1878_v50, %v1750_v47  ;;  %v8193_v47 = vld [vmem:[#allocation2 + $0x250] sm:$0xf0] }
 0x739   : > { %v2861_v62 = vsel %vm2421_vm8, %v15295_v39, %v14699_v30  ;;  %v2773_v17 = vsel %vm2421_vm8, %v15296_v55, %v14697_v58  ;;  %v2099_v35 = vpop.permute.xlu0 %2098  ;;  %v3410_v30 = vld [vmem:[%s14355_s4 + $0x20] sm:$0xff] }
 0x73a   : > { %v2862_v15 = vsel %vm1437_vm4, %v11071_v1, %v2861_v62  ;;  %v2774_v48 = vsel %vm1200_vm3, %v11122_v33, %v2773_v17  ;;  %v2155_v63 = vsel %vm2148_vm7, %v11091_v2, %v2099_v35  ;;  %v2216_v57 = vadd.f32 %v2099_v35, %v1979_v45  ;;  %v7154_v33 = vld [vmem:[#allocation2 + $0xb0] sm:$0xf] }
 0x73b   : > { %2904 = vst [vmem:[#allocation2 + $0x238] sm:$0xff] %v2862_v15  ;;  %v2215_v36 = vadd.f32 %v2155_v63, %v1978_v19  ;;  %v1986_v45 = vadd.f32 %v1925_v11, %v1749_v40  ;;  %v15298_v15 = vrot.slane %v11161_v53, 4 }
 0x73c   : > { %2807 = vst [vmem:[#allocation2 + $0x21c] sm:$0xff] %v2774_v48  ;;  %v2268_v1 = vadd.f32 %v10453_v9, %v2216_v57 }
 0x73d   : > { %v2267_v2 = vadd.f32 %v10453_v9, %v2215_v36  ;;  %v8144_v10 = vld [vmem:[#allocation2 + $0xc8] sm:$0xf0]  ;;  %v7156_v51 = vld [vmem:[#allocation2 + $0xcc] sm:$0xf0] }
 0x73e   : > { %v2300_v46 = vmax.f32 %v2268_v1, 0.0  ;;  %v2115_v39 = vpop.permute.xlu1 %2114  ;;  %v11673_v59 = vpop.permute.xlu2 %2705  ;;  %v7155_v62 = vor.u32 %v8144_v10, %v7154_v33  ;;  %v7159_v14 = vor.u32 %v8141_v6, %v7156_v51  ;;  %4314 = vmatmul.bf16.gmra.mxu2 %v11616_v37 }
 0x73f   : > { %v2299_v55 = vmax.f32 %v2267_v2, 0.0  ;;  %v2162_v32 = vsel %vm2148_vm7, %v11078_v22, %v2115_v39  ;;  %v2224_v19 = vadd.f32 %v2115_v39, %v1987_v3  ;;  %v14700_v17 = vrot.slane %v11673_v59, 4  ;;  %v15302_v39 = vld [vmem:[#allocation52_spill] sm:$0xff] }
 0x740   : > { %v2223_v50 = vadd.f32 %v2162_v32, %v1986_v45  ;;  %4353 = vmatpush.bf16.msrb.mxu1 %v7155_v62  ;;  %4440 = vmatpush.bf16.msrb.mxu0 %v7159_v14  ;;  %v15301_v45 = vrot.slane %v11113_v7, 4  ;;  %v15303_v62 = vrot.slane %v15302_v39, 4 }
 0x741   : > { %v11678_v9 = vpack.c.bf16 %v2300_v46, %v2299_v55  ;;  %v2276_v35 = vadd.f32 %v10426_v28, %v2224_v19  ;;  %v2752_v48 = vsel %vm2421_vm8, %v15298_v15, %v14700_v17  ;;  %v11686_v63 = vpop.permute.xlu0 %2385 }
 0x742   : > { %v2275_v22 = vadd.f32 %v10426_v28, %v2223_v50  ;;  %v2753_v57 = vsel %vm1200_vm3, %v11161_v53, %v2752_v48  ;;  %v14703_v54 = vrot.slane %v11686_v63, 4  ;;  %v7350_v56 = vld [vmem:[#allocation2 + $0x238] sm:$0xf] }
 0x743   : > { %2344 = vst [vmem:[#allocation2 + $0x18] sm:$0xf] %v11678_v9  ;;  %v2308_v11 = vmax.f32 %v2276_v35, 0.0  ;;  %2598 = vrot.lane.b32.xlu2 %v11678_v9, %s8782_s20  ;;  %v7351_v36 = vor.u32 %v8193_v47, %v7350_v56  ;;  %v15299_v28 = vld [vmem:[#allocation108_spill] sm:$0xff]  ;;  %v15304_v35 = vld [vmem:[#allocation33_spill] sm:$0xff] }
 0x744   : > { %v2307_v40 = vmax.f32 %v2275_v22, 0.0  ;;  %2795 = vst [vmem:[#allocation2 + $0x1c8] sm:$0xff] %v2753_v57  ;;  %v15300_v1 = vrot.slane %v15299_v28, 4  ;;  %v15305_v15 = vrot.slane %v15304_v35, 4  ;;  %v7126_v22 = vld [vmem:[#allocation2 + $0x78] sm:$0xf] }
 0x745   : > { %4383 = vmatpush.bf16.msra.mxu3 %v7351_v36  ;;  %v8134_v56 = vld [vmem:[#allocation2 + $0x7c] sm:$0xf] }
 0x746   : > { %v2432_v53 = vsel %vm2421_vm8, %v15300_v1, %v14703_v54  ;;  %v11703_v3 = vpack.c.bf16 %v2308_v11, %v2307_v40  ;;  %v11705_v2 = vpop.permute.xlu1 %2721  ;;  %v11707_v10 = vpop.permute.xlu2 %3149  ;;  %v7098_v1 = vld [vmem:[#allocation2 + $0x40] sm:$0xf] }
 0x747   : > { %v2433_v33 = vsel %vm489_vm0, %v15299_v28, %v2432_v53  ;;  %v14696_v6 = vrot.slane %v11705_v2, 4  ;;  %v14693_v51 = vrot.slane %v11707_v10, 4  ;;  %v8127_v53 = vld [vmem:[#allocation2 + $0x44] sm:$0xf] }
 0x748   : > { %2472 = vst [vmem:[#allocation2 + $0x94] sm:$0xff] %v2433_v33  ;;  %2606 = vrot.lane.b32.xlu0 %v11703_v3, %s8782_s20  ;;  %2497 = vrot.lane.b32.xlu1 %v11703_v3, %s8780_s19  ;;  %v15306_v33 = vld [vmem:[#allocation35_spill] sm:$0xff] }
 0x749   : > { %2348 = vst [vmem:[#allocation2 + $0x34] sm:$0xf] %v11703_v3  ;;  %v2766_v46 = vsel %vm2421_vm8, %v15301_v45, %v14696_v6  ;;  %v3195_v14 = vsel %vm2421_vm8, %v15303_v62, %v14693_v51  ;;  %v11726_v55 = vpop.permute.xlu0 %3157  ;;  %v15307_v45 = vrot.slane %v15306_v33, 4  ;;  %v8130_v62 = vld [vmem:[#allocation2 + $0x58] sm:$0xf0]  ;;  %v15322_v6 = vld [vmem:[#allocation179_spill] sm:$0xff] }
 0x74a   : > { %v2767_v32 = vsel %vm1200_vm3, %v11113_v7, %v2766_v46  ;;  %v3196_v19 = vsel %vm2148_vm7, %v15302_v39, %v3195_v14  ;;  %v14695_v50 = vrot.slane %v11726_v55, 4  ;;  %v7100_v14 = vld [vmem:[#allocation2 + $0x5c] sm:$0xf0]  ;;  %v15323_v58 = vrot.slane %v15322_v6, 4 }
 0x74b   : > { %2803 = vst [vmem:[#allocation2 + $0x200] sm:$0xff] %v2767_v32  ;;  %2513 = vrot.lane.b32.xlu2 %v11494_v42, %s8780_s19 }
 0x74c   : > { %3235 = vst [vmem:[#allocation2 + $0x3a4] sm:$0xff] %v3196_v19  ;;  %v3202_v48 = vsel %vm2421_vm8, %v15305_v15, %v14695_v50  ;;  %v8186_v15 = vld [vmem:[#allocation2 + $0x218] sm:$0xf0] }
 0x74d   : > { %v3203_v7 = vsel %vm2148_vm7, %v15304_v35, %v3202_v48  ;;  %v11759_v48 = vpop.f32.mrf.mxu2 }
 0x74e   : > { %3239 = vst [vmem:[#allocation2 + $0x3c0] sm:$0xff] %v3203_v7  ;;  %v11742_v11 = vpop.permute.xlu1 %3165  ;;  %v7103_v7 = vor.u32 %v8127_v53, %v7100_v14  ;;  %v7072_v53 = vld [vmem:[#allocation2 + $0x24] sm:$0xf0] }
 0x74f   : > { %v8137_v57 = vld [vmem:[#allocation2 + $0x90] sm:$0xf0]  ;;  %v7128_v47 = vld [vmem:[#allocation2 + $0x94] sm:$0xf0]  ;;  %v14698_v28 = vrot.slane %v11742_v11, 4 }
 0x750   : > { %v7127_v36 = vor.u32 %v8137_v57, %v7126_v22  ;;  %v7131_v40 = vor.u32 %v8134_v56, %v7128_v47  ;;  %2489 = vrot.lane.b32.xlu0 %v11678_v9, %s8780_s19  ;;  %3050 = vrot.lane.b32.xlu1 %v11587_v26, %s8791_s10  ;;  %v7099_v22 = vor.u32 %v8130_v62, %v7098_v1  ;;  %v15308_v56 = vrot.slane %v11150_v16, 4  ;;  %v8123_v1 = vld [vmem:[#allocation2 + $0x20] sm:$0xf0] }
 0x751   : > { %v3209_v46 = vsel %vm2421_vm8, %v15307_v45, %v14698_v28  ;;  %v11754_v39 = vpop.permute.xlu0 %2713  ;;  %v8225_v45 = vld [vmem:[#allocation2 + $0x354] sm:$0xf] }
 0x752   : > { %4354 = vmatpush.bf16.msrb.mxu1 %v7127_v36  ;;  %4441 = vmatpush.bf16.msrb.mxu0 %v7131_v40  ;;  %v3210_v32 = vsel %vm2148_vm7, %v15306_v33, %v3209_v46  ;;  %v14694_v19 = vrot.slane %v11754_v39, 4  ;;  %v7322_v35 = vld [vmem:[#allocation2 + $0x200] sm:$0xf]  ;;  %v7070_v36 = vld [vmem:[#allocation2 + $0x8] sm:$0xf] }
 0x753   : > { %3243 = vst [vmem:[#allocation2 + $0x3dc] sm:$0xff] %v3210_v32  ;;  %2395 = vrot.lane.b32.xlu2 %v11587_v26, %s8779_s18  ;;  %v7323_v57 = vor.u32 %v8186_v15, %v7322_v35  ;;  %v8120_v40 = vld [vmem:[#allocation2 + $0xc] sm:$0xf]  ;;  %v7071_v14 = vor.u32 %v8123_v1, %v7070_v36  ;;  %v7492_v35 = vld [vmem:[#allocation2 + $0x36c] sm:$0xf0]  ;;  %v15309_v15 = vld [vmem:[#allocation37_spill] sm:$0xff] }
 0x754   : > { %v2759_v47 = vsel %vm2421_vm8, %v15308_v56, %v14694_v19  ;;  %v7075_v32 = vor.u32 %v8120_v40, %v7072_v53  ;;  %v7436_v53 = vld [vmem:[#allocation2 + $0x2fc] sm:$0xf0] }
 0x755   : > { %v2760_v33 = vsel %vm1200_vm3, %v11150_v16, %v2759_v47  ;;  %4384 = vmatpush.bf16.msra.mxu3 %v7323_v57  ;;  %v7495_v16 = vor.u32 %v8225_v45, %v7492_v35  ;;  %v7464_v57 = vld [vmem:[#allocation2 + $0x334] sm:$0xf0]  ;;  %v7546_v47 = vld [vmem:[#allocation2 + $0x3c0] sm:$0xf]  ;;  %v11784_v40 = vpop.f32.mrf.mxu2  ;;  %v8218_v45 = vld [vmem:[#allocation2 + $0x31c] sm:$0xf] }
 0x756   : > { %4355 = vmatpush.bf16.msrb.mxu1 %v7099_v22  ;;  %4442 = vmatpush.bf16.msrb.mxu0 %v7103_v7  ;;  %2799 = vst [vmem:[#allocation2 + $0x1e4] sm:$0xff] %v2760_v33  ;;  %v11770_v46 = vpop.permute.xlu1 %3141  ;;  %v15310_v22 = vrot.slane %v15309_v15, 4  ;;  %v7467_v1 = vor.u32 %v8218_v45, %v7464_v57  ;;  %v8204_v57 = vld [vmem:[#allocation2 + $0x2ac] sm:$0xf]  ;;  %v7520_v45 = vld [vmem:[#allocation2 + $0x3a4] sm:$0xf0] }
 0x757   : > { %v14692_v62 = vrot.slane %v11770_v46, 4 }
 0x758   : > { %2403 = vrot.lane.b32.xlu0 %v11494_v42, %s8779_s18  ;;  %2387 = vrot.lane.b32.xlu1 %v11703_v3, %s8779_s18 }
 0x759   : > { %v3188_v7 = vsel %vm2421_vm8, %v15310_v22, %v14692_v62  ;;  %v8239_v22 = vld [vmem:[#allocation2 + $0x3c4] sm:$0xf] }
 0x75a   : > { %4356 = vmatpush.bf16.msrb.mxu1 %v7071_v14  ;;  %4443 = vmatpush.bf16.msrb.mxu0 %v7075_v32  ;;  %v3189_v56 = vsel %vm2148_vm7, %v15309_v15, %v3188_v7  ;;  %v8242_v36 = vld [vmem:[#allocation2 + $0x3d8] sm:$0xf0]  ;;  %v7294_v14 = vld [vmem:[#allocation2 + $0x1c8] sm:$0xf]  ;;  %v7548_v35 = vld [vmem:[#allocation2 + $0x3dc] sm:$0xf0] }
 0x75b   : > { %3231 = vst [vmem:[#allocation2 + $0x388] sm:$0xff] %v3189_v56  ;;  %3058 = vrot.lane.b32.xlu2 %v11494_v42, %s8791_s10  ;;  %v7547_v33 = vor.u32 %v8242_v36, %v7546_v47  ;;  %v8211_v15 = vld [vmem:[#allocation2 + $0x2e4] sm:$0xf]  ;;  %v7551_v56 = vor.u32 %v8239_v22, %v7548_v35  ;;  %v7380_v35 = vld [vmem:[#allocation2 + $0x28c] sm:$0xf0] }
 0x75c   : > { %v7439_v7 = vor.u32 %v8211_v15, %v7436_v53  ;;  %v8235_v47 = vld [vmem:[#allocation2 + $0x3a0] sm:$0xf0]  ;;  %v8190_v22 = vld [vmem:[#allocation2 + $0x23c] sm:$0xf] }
 0x75d   : > { %4357 = vmatmul.bf16.vlgmr.msrb.gmra.mxu1 %v11128_v0  ;;  %4444 = vmatmul.bf16.vlgmr.msrb.gmra.mxu0 %v11128_v0  ;;  %v8179_v32 = vld [vmem:[#allocation2 + $0x1e0] sm:$0xf0] }
 0x75e   : > { %4465 = vmatpush.bf16.msra.mxu1 %v7495_v16  ;;  %4413 = vmatpush.bf16.msra.mxu2 %v7547_v33  ;;  %v7295_v16 = vor.u32 %v8179_v32, %v7294_v14  ;;  %v7408_v32 = vld [vmem:[#allocation2 + $0x2c4] sm:$0xf0] }
 0x75f   : > { %v7411_v53 = vor.u32 %v8204_v57, %v7408_v32  ;;  %v8183_v57 = vld [vmem:[#allocation2 + $0x204] sm:$0xf]  ;;  %v8176_v32 = vld [vmem:[#allocation2 + $0x1cc] sm:$0xf] }
 0x760   : > { %2379 = vrot.lane.b32.xlu0 %v11678_v9, %s8779_s18  ;;  %2941 = vrot.lane.b32.xlu1 %v11587_v26, %s8788_s9 }
 0x761   : > { %4385 = vmatpush.bf16.msra.mxu3 %v7295_v16  ;;  %v8197_v16 = vld [vmem:[#allocation2 + $0x274] sm:$0xf] }
 0x762   : > { %4466 = vmatpush.bf16.msra.mxu1 %v7467_v1  ;;  %v7518_v36 = vld [vmem:[#allocation2 + $0x388] sm:$0xf]  ;;  %v8232_v33 = vld [vmem:[#allocation2 + $0x38c] sm:$0xf]  ;;  %v11794_v1 = vpop.f32.mrf.mxu2  ;;  %v7383_v15 = vor.u32 %v8197_v16, %v7380_v35 }
 0x763   : > { %3034 = vrot.lane.b32.xlu2 %v11678_v9, %s8791_s10  ;;  %v7519_v14 = vor.u32 %v8235_v47, %v7518_v36  ;;  %v7523_v62 = vor.u32 %v8232_v33, %v7520_v45  ;;  %v7324_v36 = vld [vmem:[#allocation2 + $0x21c] sm:$0xf0]  ;;  %v11811_v33 = vpop.f32.mrf.mxu3  ;;  %v15314_v16 = vld [vmem:[#allocation62_spill] sm:$0xff] }
 0x764   : > { %4386 = vmatmul.bf16.vlgmr.msra.gmra.mxu3 %v11244_v61  ;;  %v7327_v45 = vor.u32 %v8183_v57, %v7324_v36 }
 0x765   : > { %4500 = vmatpush.bf16.msrb.mxu3 %v7551_v56  ;;  %4414 = vmatpush.bf16.msra.mxu2 %v7519_v14  ;;  %v7352_v56 = vld [vmem:[#allocation2 + $0x254] sm:$0xf0]  ;;  %v7296_v14 = vld [vmem:[#allocation2 + $0x1e4] sm:$0xf0] }
 0x766   : > { %4467 = vmatpush.bf16.msra.mxu1 %v7439_v7  ;;  %v7355_v47 = vor.u32 %v8190_v22, %v7352_v56  ;;  %v7299_v35 = vor.u32 %v8176_v32, %v7296_v14  ;;  %v15315_v22 = vld [vmem:[#allocation163_spill] sm:$0xff]  ;;  %v15319_v14 = vld [vmem:[#allocation60_spill] sm:$0xff] }
 0x767   : > { %v3408_v32 = vld [vmem:[%s14355_s4 + $0x10] sm:$0xff] }
 0x768   : > { %3042 = vrot.lane.b32.xlu0 %v11703_v3, %s8791_s10  ;;  %2933 = vrot.lane.b32.xlu1 %v11703_v3, %s8788_s9 }
 0x769   : > { %4501 = vmatpush.bf16.msrb.mxu3 %v7523_v62  ;;  %7572 = vmatmul.msk.bf16.vlgmr.msra.gmra.mxu2 %vm4162_vm9, %v11234_v38  ;;  %v15312_v62 = vld [vmem:[#allocation160_spill] sm:$0xff] }
 0x76a   : > { %4468 = vmatpush.bf16.msra.mxu1 %v7411_v53  ;;  %v11805_v7 = vpop.f32.mrf.mxu2 }
 0x76b   : > { %15311 = vst [vmem:[#allocation190_spill] sm:$0xff] %v11805_v7  ;;  %2949 = vrot.lane.b32.xlu2 %v11494_v42, %s8788_s9 }
 0x76d   : > { %4362 = vmatmul.bf16.gmra.mxu1 %v15312_v62  ;;  %4449 = vmatmul.bf16.gmra.mxu0 %v15312_v62 }
 0x76e   : > { %4469 = vmatpush.bf16.msra.mxu1 %v7383_v15  ;;  %v11828_v15 = vpop.f32.mrf.mxu3 }
 0x770   : > { %2925 = vrot.lane.b32.xlu0 %v11678_v9, %s8788_s9  ;;  %2816 = vrot.lane.b32.xlu1 %v11678_v9, %s8786_s23 }
 0x772   : > { %4470 = vmatpush.bf16.msra.mxu1 %v7355_v47  ;;  %v11819_v53 = vpop.f32.mrf.mxu2  ;;  %v11840_v47 = vpop.f32.mrf.mxu0 }
 0x773   : > { %2832 = vrot.lane.b32.xlu2 %v11587_v26, %s8786_s23  ;;  %15313 = vst [vmem:[#allocation68_spill] sm:$0xff] %v11819_v53 }
 0x774   : > { %4391 = vmatmul.bf16.gmra.mxu3 %v11441_v24 }
 0x776   : > { %4471 = vmatpush.bf16.msra.mxu1 %v7327_v45  ;;  %v11844_v57 = vpop.f32.mrf.mxu3  ;;  %v15318_v45 = vld [vmem:[#allocation184_spill] sm:$0xff] }
 0x778   : > { %2840 = vrot.lane.b32.xlu0 %v11494_v42, %s8786_s23  ;;  %2731 = vrot.lane.b32.xlu1 %v11494_v42, %s8784_s22 }
 0x779   : > { %7573 = vmatmul.msk.bf16.gmra.mxu2 %vm4162_vm9, %v15314_v16 }
 0x77a   : > { %4472 = vmatpush.bf16.msra.mxu1 %v7299_v35  ;;  %v11834_v56 = vpop.f32.mrf.mxu2 }
 0x77b   : > { %2824 = vrot.lane.b32.xlu2 %v11703_v3, %s8786_s23  ;;  %15316 = vst [vmem:[#allocation66_spill] sm:$0xff] %v11834_v56 }
 0x77d   : > { %4367 = vmatmul.bf16.gmra.mxu1 %v15315_v22  ;;  %4454 = vmatmul.bf16.gmra.mxu0 %v15315_v22 }
 0x77e   : > { %v11864_v35 = vpop.f32.mrf.mxu3 }
 0x77f   : > { %15320 = vst [vmem:[#allocation74_spill] sm:$0xff] %v11864_v35 }
 0x780   : > { %2723 = vrot.lane.b32.xlu0 %v11587_v26, %s8784_s22  ;;  %3159 = vrot.lane.b32.xlu1 %v11587_v26, %s8792_s11  ;;  %v11855_v26 = vpop.f32.mrf.mxu0 }
 0x782   : > { %v11847_v36 = vpop.f32.mrf.mxu2 }
 0x783   : > { %2707 = vrot.lane.b32.xlu2 %v11678_v9, %s8784_s22  ;;  %15317 = vst [vmem:[#allocation67_spill] sm:$0xff] %v11847_v36 }
 0x784   : > { %4396 = vmatmul.bf16.gmra.mxu3 %v11546_v29 }
 0x786   : > { %v11888_v17 = vpop.f32.mrf.mxu3 }
 0x787   : > { %15324 = vst [vmem:[#allocation70_spill] sm:$0xff] %v11888_v17 }
 0x788   : > { %2715 = vrot.lane.b32.xlu0 %v11703_v3, %s8784_s22  ;;  %3151 = vrot.lane.b32.xlu1 %v11703_v3, %s8792_s11  ;;  %v3406_v3 = vld [vmem:[%s14355_s4] sm:$0xff]  ;;  %v11874_v50 = vpop.f32.mrf.mxu0  ;;  %s8106_s22 = sshll.u32 %s15639_s25, 6 }
 0x789   : > { %7574 = vmatmul.msk.bf16.gmra.mxu2 %vm4162_vm9, %v15318_v45  ;;  %s14292_s29 = scalar_lea.vmem %s14357_s6, %s8106_s22 }
 0x78a   : > { %v11871_v51 = vpop.f32.mrf.mxu2 }
 0x78b   : > { %3167 = vrot.lane.b32.xlu2 %v11494_v42, %s8792_s11  ;;  %15321 = vst [vmem:[#allocation69_spill] sm:$0xff] %v11871_v51 }
 0x78d   : > { %4372 = vmatmul.bf16.gmra.mxu1 %v15319_v14  ;;  %4459 = vmatmul.bf16.gmra.mxu0 %v15319_v14 }
 0x78e   : > { %v11917_v18 = vpop.f32.mrf.mxu3 }
 0x78f   : > { %15329 = vst [vmem:[#allocation88_spill] sm:$0xff] %v11917_v18 }
 0x790   : > { %3143 = vrot.lane.b32.xlu0 %v11678_v9, %s8792_s11  ;;  %3426 = vperm.xlu1 %8445, %v3408_v32   ;;  %v3407_v32 = vld [vmem:[%s14355_s4 + $0x8] sm:$0xff] }
 0x792   : > { %v2623_v42 = vpop.permute.xlu1 %2622 }
 0x793   : > { %v2639_v19 = vrot.slane %v2623_v42, 4  ;;  %3416 = vperm.xlu2 %8446, %v3406_v3  }
 0x794   : > { %4401 = vmatmul.bf16.gmra.mxu3 %v11616_v37 }
 0x795   : > { %v2666_v28 = vsel %vm2421_vm8, %v15323_v58, %v2639_v19  ;;  %v2668_v9 = vsel %vm963_vm2, %v2623_v42, %v2639_v19  ;;  %v3409_v58 = vld [vmem:[%s14355_s4 + $0x18] sm:$0xff]  ;;  %v11895_v42 = vpop.f32.mrf.mxu2 }
 0x796   : > { %v2667_v3 = vsel %vm963_vm2, %v15322_v6, %v2666_v28  ;;  %2700 = vst [vmem:[#allocation2 + $0x1bc] sm:$0xf] %v2668_v9  ;;  %v15325_v19 = vld [vmem:[#allocation192_spill] sm:$0xff]  ;;  %v3412_v6 = vld [vmem:[%s14355_s4 + $0x30] sm:$0xff]  ;;  %v11904_v28 = vpop.f32.mrf.mxu1 }
 0x797   : > { %2699 = vst [vmem:[#allocation2 + $0x1b4] sm:$0xff] %v2667_v3  ;;  %v15327_v3 = vld [vmem:[#allocation7_spill] sm:$0xff] }
 0x798   : > { %3421 = vperm.xlu0 %8443, %v3407_v32   ;;  %3436 = vperm.xlu1 %8445, %v3410_v30   ;;  %v3413_v30 = vld [vmem:[%s14355_s4 + $0x38] sm:$0xff]  ;;  %v11906_v32 = vpop.f32.mrf.mxu0 }
 0x799   : > { %7575 = vmatmul.msk.bf16.gmra.mxu2 %vm4162_vm9, %v15325_v19  ;;  %15326 = vst [vmem:[#allocation91_spill] sm:$0xff] %v11906_v32  ;;  %v15382_v32 = vrot.slane %v11742_v11, 4 }
 0x79b   : > { %3431 = vperm.xlu2 %8446, %v3409_v58   ;;  %v15328_v58 = vrot.slane %v15327_v3, 4 }
 0x79d   : > { %4473 = vmatmul.bf16.vlgmr.msra.gmra.mxu1 %v11244_v61  ;;  %v2599_v4 = vpop.permute.xlu2 %2598 }
 0x79e   : > { %v2627_v9 = vrot.slane %v2599_v4, 4  ;;  %v11935_v18 = vpop.f32.mrf.mxu1 }
 0x79f   : > { %15334 = vst [vmem:[#allocation89_spill] sm:$0xff] %v11935_v18 }
 0x7a0   : > { %v2645_v20 = vsel %vm2421_vm8, %v15328_v58, %v2627_v9  ;;  %v2647_v54 = vsel %vm963_vm2, %v2599_v4, %v2627_v9  ;;  %3446 = vperm.xlu0 %8443, %v3412_v6   ;;  %3451 = vperm.xlu1 %8445, %v3413_v30   ;;  %v15330_v4 = vld [vmem:[#allocation61_spill] sm:$0xff] }
 0x7a1   : > { %v2646_v34 = vsel %vm963_vm2, %v15327_v3, %v2645_v20  ;;  %2688 = vst [vmem:[#allocation2 + $0x168] sm:$0xf] %v2647_v54  ;;  %v15331_v6 = vrot.slane %v15330_v4, 4  ;;  %v11925_v20 = vpop.f32.mrf.mxu2  ;;  %v15332_v54 = vld [vmem:[#allocation186_spill] sm:$0xff] }
 0x7a2   : > { %2687 = vst [vmem:[#allocation2 + $0x160] sm:$0xff] %v2646_v34  ;;  %v2615_v41 = vpop.permute.xlu0 %2614  ;;  %v15333_v3 = vrot.slane %v15332_v54, 4 }
 0x7a3   : > { %v2635_v52 = vrot.slane %v2615_v41, 4  ;;  %v2506_v51 = vpop.permute.xlu1 %2505  ;;  %3441 = vperm.xlu2 %8446, %v3411_v43  }
 0x7a4   : > { %v2526_v58 = vrot.slane %v2506_v51, 4  ;;  %7576 = vmatmul.msk.bf16.vlgmr.msrb.gmra.mxu3 %vm4162_vm9, %v11234_v38 }
 0x7a5   : > { %v2659_v30 = vsel %vm2421_vm8, %v15331_v6, %v2635_v52  ;;  %v2661_v9 = vsel %vm963_vm2, %v2615_v41, %v2635_v52  ;;  %v2514_v36 = vpop.permute.xlu2 %2513  ;;  %v15335_v52 = vrot.slane %v11400_v25, 4 }
 0x7a6   : > { %v2660_v34 = vsel %vm963_vm2, %v15330_v4, %v2659_v30  ;;  %2696 = vst [vmem:[#allocation2 + $0x1a0] sm:$0xf] %v2661_v9  ;;  %v2550_v43 = vsel %vm2421_vm8, %v15333_v3, %v2526_v58  ;;  %v2552_v56 = vsel %vm726_vm1, %v2506_v51, %v2526_v58  ;;  %v2530_v53 = vrot.slane %v2514_v36, 4  ;;  %v11941_v30 = vpop.f32.mrf.mxu0  ;;  %v11945_v58 = vpop.f32.mrf.mxu3 }
 0x7a7   : > { %2695 = vst [vmem:[#allocation2 + $0x198] sm:$0xff] %v2660_v34  ;;  %v2551_v6 = vsel %vm726_vm1, %v15332_v54, %v2550_v43  ;;  %v8173_v34 = vld [vmem:[#allocation2 + $0x1b0] sm:$0xf0]  ;;  %v7276_v54 = vld [vmem:[#allocation2 + $0x1b4] sm:$0xf0] }
 0x7a8   : > { %2586 = vst [vmem:[#allocation2 + $0x128] sm:$0xff] %v2551_v6  ;;  %v2557_v41 = vsel %vm2421_vm8, %v15335_v52, %v2530_v53  ;;  %v2559_v4 = vsel %vm726_vm1, %v2514_v36, %v2530_v53 }
 0x7a9   : > { %15336 = vst [vmem:[#allocation93_spill] sm:$0xff] %v11941_v30  ;;  %v2558_v51 = vsel %vm726_vm1, %v11400_v25, %v2557_v41  ;;  %v11948_v36 = vpop.f32.mrf.mxu2 }
 0x7aa   : > { %2587 = vst [vmem:[#allocation2 + $0x130] sm:$0xf] %v2552_v56  ;;  %v15338_v56 = vrot.slane %v11498_v49, 4 }
 0x7ab   : > { %2590 = vst [vmem:[#allocation2 + $0x144] sm:$0xff] %v2558_v51  ;;  %v11956_v51 = vpop.f32.mrf.mxu1 }
 0x7ac   : > { %2591 = vst [vmem:[#allocation2 + $0x14c] sm:$0xf] %v2559_v4 }
 0x7ad   : > { %15337 = vst [vmem:[#allocation94_spill] sm:$0xff] %v11945_v58  ;;  %4478 = vmatmul.bf16.gmra.mxu1 %v11441_v24  ;;  %v2396_v9 = vpop.permute.xlu2 %2395 }
 0x7ae   : > { %v2416_v3 = vrot.slane %v2396_v9, 4  ;;  %v7274_v43 = vld [vmem:[#allocation2 + $0x198] sm:$0xf]  ;;  %v8170_v6 = vld [vmem:[#allocation2 + $0x19c] sm:$0xf]  ;;  %15339 = vst [vmem:[#allocation99_spill] sm:$0xff] %v11956_v51  ;;  %v11958_v58 = vpop.f32.mrf.mxu0 }
 0x7af   : > { %v7275_v52 = vor.u32 %v8173_v34, %v7274_v43  ;;  %v7279_v53 = vor.u32 %v8170_v6, %v7276_v54  ;;  %15340 = vst [vmem:[#allocation92_spill] sm:$0xff] %v11958_v58  ;;  %v11962_v54 = vpop.f32.mrf.mxu3  ;;  %v15342_v6 = vld [vmem:[#allocation64_spill] sm:$0xff] }
 0x7b0   : > { %v2441_v25 = vsel %vm2421_vm8, %v15338_v56, %v2416_v3  ;;  %v2443_v41 = vsel %vm489_vm0, %v2396_v9, %v2416_v3  ;;  %15341 = vst [vmem:[#allocation100_spill] sm:$0xff] %v11962_v54  ;;  %v15343_v9 = vrot.slane %v15342_v6, 4 }
 0x7b1   : > { %v2442_v4 = vsel %vm489_vm0, %v11498_v49, %v2441_v25  ;;  %2478 = vst [vmem:[#allocation2 + $0xc0] sm:$0xf] %v2443_v41  ;;  %4523 = vmatpush.bf16.msrb.mxu2 %v7275_v52  ;;  %4610 = vmatpush.bf16.msra.mxu3 %v7279_v53  ;;  %v11970_v53 = vpop.f32.mrf.mxu2 }
 0x7b2   : > { %2477 = vst [vmem:[#allocation2 + $0xb8] sm:$0xff] %v2442_v4 }
 0x7b3   : > { %15344 = vst [vmem:[#allocation95_spill] sm:$0xff] %v11970_v53  ;;  %v11972_v51 = vpop.f32.mrf.mxu1 }
 0x7b4   : > { %7577 = vmatmul.msk.bf16.gmra.mxu3 %vm4162_vm9, %v15314_v16  ;;  %15345 = vst [vmem:[#allocation102_spill] sm:$0xff] %v11972_v51 }
 0x7b5   : > { %v3059_v34 = vpop.permute.xlu2 %3058 }
 0x7b6   : > { %v3075_v43 = vrot.slane %v3059_v34, 4  ;;  %v11975_v54 = vpop.f32.mrf.mxu0 }
 0x7b7   : > { %15346 = vst [vmem:[#allocation116_spill] sm:$0xff] %v11975_v54  ;;  %v11989_v17 = vpop.f32.mrf.mxu3 }
 0x7b8   : > { %v3102_v3 = vsel %vm2421_vm8, %v15343_v9, %v3075_v43  ;;  %v3104_v49 = vsel %vm1911_vm6, %v3059_v34, %v3075_v43  ;;  %v15347_v9 = vld [vmem:[#allocation182_spill] sm:$0xff]  ;;  %15350 = vst [vmem:[#allocation118_spill] sm:$0xff] %v11989_v17 }
 0x7b9   : > { %v3103_v52 = vsel %vm1911_vm6, %v15342_v6, %v3102_v3  ;;  %3136 = vst [vmem:[#allocation2 + $0x37c] sm:$0xf] %v3104_v49  ;;  %v15348_v7 = vrot.slane %v15347_v9, 4  ;;  %v15349_v6 = vrot.slane %v11496_v8, 4 }
 0x7ba   : > { %3135 = vst [vmem:[#allocation2 + $0x374] sm:$0xff] %v3103_v52  ;;  %v2607_v56 = vpop.permute.xlu0 %2606  ;;  %v2498_v25 = vpop.permute.xlu1 %2497 }
 0x7bb   : > { %v2631_v41 = vrot.slane %v2607_v56, 4  ;;  %v2522_v4 = vrot.slane %v2498_v25, 4 }
 0x7bd   : > { %4483 = vmatmul.bf16.gmra.mxu1 %v11546_v29  ;;  %v2652_v34 = vsel %vm2421_vm8, %v15348_v7, %v2631_v41  ;;  %v2654_v43 = vsel %vm963_vm2, %v2607_v56, %v2631_v41  ;;  %v2543_v3 = vsel %vm2421_vm8, %v15349_v6, %v2522_v4  ;;  %v3035_v49 = vpop.permute.xlu2 %3034  ;;  %v2545_v54 = vsel %vm726_vm1, %v2498_v25, %v2522_v4  ;;  %v15351_v7 = vld [vmem:[#allocation178_spill] sm:$0xff] }
 0x7be   : > { %v2653_v52 = vsel %vm963_vm2, %v15347_v9, %v2652_v34  ;;  %2692 = vst [vmem:[#allocation2 + $0x184] sm:$0xf] %v2654_v43  ;;  %v2544_v51 = vsel %vm726_vm1, %v11496_v8, %v2543_v3  ;;  %v3063_v58 = vrot.slane %v3035_v49, 4  ;;  %v15352_v56 = vrot.slane %v15351_v7, 4  ;;  %v11997_v43 = vpop.f32.mrf.mxu2 }
 0x7bf   : > { %2691 = vst [vmem:[#allocation2 + $0x17c] sm:$0xff] %v2653_v52 }
 0x7c0   : > { %2582 = vst [vmem:[#allocation2 + $0x10c] sm:$0xff] %v2544_v51  ;;  %v3081_v41 = vsel %vm2421_vm8, %v15352_v56, %v3063_v58  ;;  %v3083_v6 = vsel %vm1911_vm6, %v3035_v49, %v3063_v58  ;;  %v15354_v51 = vrot.slane %v11472_v60, 4  ;;  %v12008_v56 = vpop.f32.mrf.mxu1 }
 0x7c1   : > { %2583 = vst [vmem:[#allocation2 + $0x114] sm:$0xf] %v2545_v54  ;;  %v3082_v9 = vsel %vm1911_vm6, %v15351_v7, %v3081_v41  ;;  %v15355_v54 = vld [vmem:[#allocation8_spill] sm:$0xff]  ;;  %v7246_v41 = vld [vmem:[#allocation2 + $0x160] sm:$0xf] }
 0x7c2   : > { %3123 = vst [vmem:[#allocation2 + $0x320] sm:$0xff] %v3082_v9  ;;  %v2490_v34 = vpop.permute.xlu0 %2489  ;;  %v3051_v8 = vpop.permute.xlu1 %3050  ;;  %v15356_v49 = vrot.slane %v15355_v54, 4  ;;  %v7500_v35 = vld [vmem:[#allocation2 + $0x374] sm:$0xf0] }
 0x7c3   : > { %3124 = vst [vmem:[#allocation2 + $0x328] sm:$0xf] %v3083_v6  ;;  %v2518_v25 = vrot.slane %v2490_v34, 4  ;;  %v3071_v4 = vrot.slane %v3051_v8, 4 }
 0x7c4   : > { %15353 = vst [vmem:[#allocation117_spill] sm:$0xff] %v11997_v43  ;;  %7578 = vmatmul.msk.bf16.gmra.mxu3 %vm4162_vm9, %v15318_v45 }
 0x7c5   : > { %v2536_v3 = vsel %vm2421_vm8, %v15354_v51, %v2518_v25  ;;  %v2538_v58 = vsel %vm726_vm1, %v2490_v34, %v2518_v25  ;;  %v3095_v52 = vsel %vm2421_vm8, %v15356_v49, %v3071_v4  ;;  %v2950_v7 = vpop.permute.xlu2 %2949  ;;  %15357 = vst [vmem:[#allocation120_spill] sm:$0xff] %v12008_v56  ;;  %v3097_v17 = vsel %vm1911_vm6, %v3051_v8, %v3071_v4  ;;  %v12015_v34 = vpop.f32.mrf.mxu0  ;;  %v8163_v49 = vld [vmem:[#allocation2 + $0x164] sm:$0xf]  ;;  %v7220_v4 = vld [vmem:[#allocation2 + $0x144] sm:$0xf0] }
 0x7c6   : > { %v2537_v6 = vsel %vm726_vm1, %v11472_v60, %v2536_v3  ;;  %2579 = vst [vmem:[#allocation2 + $0xf8] sm:$0xf] %v2538_v58  ;;  %v3096_v9 = vsel %vm1911_vm6, %v15355_v54, %v3095_v52  ;;  %v2966_v51 = vrot.slane %v2950_v7, 4  ;;  %v8166_v43 = vld [vmem:[#allocation2 + $0x178] sm:$0xf0]  ;;  %v15359_v56 = vld [vmem:[#allocation185_spill] sm:$0xff]  ;;  %v12023_v54 = vpop.f32.mrf.mxu3 }
 0x7c7   : > { %15358 = vst [vmem:[#allocation123_spill] sm:$0xff] %v12015_v34  ;;  %v7247_v25 = vor.u32 %v8166_v43, %v7246_v41  ;;  %v7248_v30 = vld [vmem:[#allocation2 + $0x17c] sm:$0xf0]  ;;  %v15360_v53 = vrot.slane %v15359_v56, 4  ;;  %v8159_v58 = vld [vmem:[#allocation2 + $0x140] sm:$0xf0] }
 0x7c8   : > { %2578 = vst [vmem:[#allocation2 + $0xf0] sm:$0xff] %v2537_v6  ;;  %v2995_v60 = vsel %vm1674_vm5, %v2950_v7, %v2966_v51  ;;  %v7251_v3 = vor.u32 %v8163_v49, %v7248_v30  ;;  %v7218_v41 = vld [vmem:[#allocation2 + $0x128] sm:$0xf]  ;;  %v8156_v7 = vld [vmem:[#allocation2 + $0x12c] sm:$0xf]  ;;  %v15362_v30 = vrot.slane %v11610_v21, 4 }
 0x7c9   : > { %3131 = vst [vmem:[#allocation2 + $0x358] sm:$0xff] %v3096_v9  ;;  %v2993_v18 = vsel %vm2421_vm8, %v15360_v53, %v2966_v51  ;;  %4524 = vmatpush.bf16.msrb.mxu2 %v7247_v25  ;;  %v7219_v9 = vor.u32 %v8159_v58, %v7218_v41  ;;  %v15363_v51 = vrot.slane %v11686_v63, 4  ;;  %v12033_v58 = vpop.f32.mrf.mxu2 }
 0x7ca   : > { %3132 = vst [vmem:[#allocation2 + $0x360] sm:$0xf] %v3097_v17  ;;  %v2994_v8 = vsel %vm1674_vm5, %v15359_v56, %v2993_v18  ;;  %4611 = vmatpush.bf16.msra.mxu3 %v7251_v3  ;;  %v2404_v43 = vpop.permute.xlu0 %2403  ;;  %v2388_v52 = vpop.permute.xlu1 %2387  ;;  %v7223_v17 = vor.u32 %v8156_v7, %v7220_v4  ;;  %v8229_v3 = vld [vmem:[#allocation2 + $0x370] sm:$0xf0] }
 0x7cb   : > { %15361 = vst [vmem:[#allocation124_spill] sm:$0xff] %v12023_v54  ;;  %v2420_v6 = vrot.slane %v2404_v43, 4  ;;  %v2412_v53 = vrot.slane %v2388_v52, 4  ;;  %v15366_v54 = vrot.slane %v11426_v27, 4 }
 0x7cc   : > { %3026 = vst [vmem:[#allocation2 + $0x304] sm:$0xff] %v2994_v8  ;;  %v7192_v8 = vld [vmem:[#allocation2 + $0x10c] sm:$0xf0] }
 0x7cd   : > { %3027 = vst [vmem:[#allocation2 + $0x30c] sm:$0xf] %v2995_v60  ;;  %4488 = vmatmul.bf16.gmra.mxu1 %v11616_v37  ;;  %v2448_v18 = vsel %vm2421_vm8, %v15362_v30, %v2420_v6  ;;  %v2450_v56 = vsel %vm489_vm0, %v2404_v43, %v2420_v6  ;;  %v2434_v25 = vsel %vm2421_vm8, %v15363_v51, %v2412_v53  ;;  %v2833_v49 = vpop.permute.xlu2 %2832  ;;  %v8152_v60 = vld [vmem:[#allocation2 + $0x108] sm:$0xf0] }
 0x7ce   : > { %4525 = vmatpush.bf16.msrb.mxu2 %v7219_v9  ;;  %15364 = vst [vmem:[#allocation129_spill] sm:$0xff] %v12033_v58  ;;  %v2449_v4 = vsel %vm489_vm0, %v11610_v21, %v2448_v18  ;;  %v2435_v41 = vsel %vm489_vm0, %v11686_v63, %v2434_v25  ;;  %v2436_v43 = vsel %vm489_vm0, %v2388_v52, %v2412_v53  ;;  %v2853_v6 = vrot.slane %v2833_v49, 4  ;;  %v12040_v9 = vpop.f32.mrf.mxu1  ;;  %v12046_v25 = vpop.f32.mrf.mxu0  ;;  %v7080_v58 = vld [vmem:[#allocation2 + $0x2c] sm:$0xf0] }
 0x7cf   : > { %2482 = vst [vmem:[#allocation2 + $0xdc] sm:$0xf] %v2450_v56  ;;  %4612 = vmatpush.bf16.msra.mxu3 %v7223_v17  ;;  %v7190_v7 = vld [vmem:[#allocation2 + $0xf0] sm:$0xf]  ;;  %v8149_v34 = vld [vmem:[#allocation2 + $0xf4] sm:$0xf] }
 0x7d0   : > { %2481 = vst [vmem:[#allocation2 + $0xd4] sm:$0xff] %v2449_v4  ;;  %v7191_v30 = vor.u32 %v8152_v60, %v7190_v7  ;;  %v7498_v51 = vld [vmem:[#allocation2 + $0x358] sm:$0xf]  ;;  %v2877_v21 = vsel %vm2421_vm8, %v15366_v54, %v2853_v6  ;;  %v2879_v18 = vsel %vm1437_vm4, %v2833_v49, %v2853_v6  ;;  %v7195_v63 = vor.u32 %v8149_v34, %v7192_v8  ;;  %v12050_v54 = vpop.f32.mrf.mxu3 }
 0x7d1   : > { %15365 = vst [vmem:[#allocation125_spill] sm:$0xff] %v12040_v9  ;;  %v7499_v56 = vor.u32 %v8229_v3, %v7498_v51  ;;  %v2878_v52 = vsel %vm1437_vm4, %v11426_v27, %v2877_v21  ;;  %v15368_v34 = vrot.slane %v11590_v12, 4  ;;  %v15369_v3 = vld [vmem:[#allocation183_spill] sm:$0xff]  ;;  %v7162_v6 = vld [vmem:[#allocation2 + $0xb8] sm:$0xf] }
 0x7d2   : > { %2473 = vst [vmem:[#allocation2 + $0x9c] sm:$0xff] %v2435_v41  ;;  %4526 = vmatpush.bf16.msrb.mxu2 %v7191_v30  ;;  %v2380_v53 = vpop.permute.xlu0 %2379  ;;  %v2942_v17 = vpop.permute.xlu1 %2941  ;;  %v15370_v8 = vrot.slane %v15369_v3, 4 }
 0x7d3   : > { %2474 = vst [vmem:[#allocation2 + $0xa4] sm:$0xf] %v2436_v43  ;;  %4552 = vmatpush.bf16.msra.mxu0 %v7499_v56  ;;  %4613 = vmatpush.bf16.msra.mxu3 %v7195_v63  ;;  %v2408_v60 = vrot.slane %v2380_v53, 4  ;;  %v2962_v4 = vrot.slane %v2942_v17, 4  ;;  %v8142_v63 = vld [vmem:[#allocation2 + $0xbc] sm:$0xf] }
 0x7d4   : > { %2913 = vst [vmem:[#allocation2 + $0x278] sm:$0xff] %v2878_v52  ;;  %7579 = vmatmul.msk.bf16.gmra.mxu3 %vm4162_vm9, %v15325_v19 }
 0x7d5   : > { %2914 = vst [vmem:[#allocation2 + $0x280] sm:$0xf] %v2879_v18  ;;  %v2427_v49 = vsel %vm2421_vm8, %v15368_v34, %v2408_v60  ;;  %v2429_v27 = vsel %vm489_vm0, %v2380_v53, %v2408_v60  ;;  %v2986_v41 = vsel %vm2421_vm8, %v15370_v8, %v2962_v4  ;;  %v2825_v43 = vpop.permute.xlu2 %2824  ;;  %v2988_v51 = vsel %vm1674_vm5, %v2942_v17, %v2962_v4  ;;  %v12066_v53 = vpop.f32.mrf.mxu2 }
 0x7d6   : > { %15367 = vst [vmem:[#allocation121_spill] sm:$0xff] %v12050_v54  ;;  %v2428_v7 = vsel %vm489_vm0, %v11590_v12, %v2427_v49  ;;  %v2987_v30 = vsel %vm1674_vm5, %v15369_v3, %v2986_v41  ;;  %v2849_v21 = vrot.slane %v2825_v43, 4  ;;  %v15372_v60 = vrot.slane %v11557_v23, 4  ;;  %v12076_v8 = vpop.f32.mrf.mxu0 }
 0x7d7   : > { %2470 = vst [vmem:[#allocation2 + $0x88] sm:$0xf] %v2429_v27  ;;  %v8145_v18 = vld [vmem:[#allocation2 + $0xd0] sm:$0xf0]  ;;  %v7164_v52 = vld [vmem:[#allocation2 + $0xd4] sm:$0xf0] }
 0x7d8   : > { %2469 = vst [vmem:[#allocation2 + $0x80] sm:$0xff] %v2428_v7  ;;  %v7163_v56 = vor.u32 %v8145_v18, %v7162_v6  ;;  %v2870_v34 = vsel %vm2421_vm8, %v15372_v60, %v2849_v21  ;;  %v2872_v12 = vsel %vm1437_vm4, %v2825_v43, %v2849_v21  ;;  %v7167_v49 = vor.u32 %v8142_v63, %v7164_v52  ;;  %v15373_v7 = vld [vmem:[#allocation177_spill] sm:$0xff]  ;;  %v15375_v21 = vld [vmem:[#allocation187_spill] sm:$0xff]  ;;  %v12085_v63 = vpop.f32.mrf.mxu3 }
 0x7d9   : > { %15371 = vst [vmem:[#allocation128_spill] sm:$0xff] %v12066_v53  ;;  %v2871_v17 = vsel %vm1437_vm4, %v11557_v23, %v2870_v34  ;;  %v15376_v23 = vrot.slane %v15375_v21, 4  ;;  %v8138_v52 = vld [vmem:[#allocation2 + $0x98] sm:$0xf0] }
 0x7da   : > { %3022 = vst [vmem:[#allocation2 + $0x2e8] sm:$0xff] %v2987_v30  ;;  %v12074_v4 = vpop.f32.mrf.mxu1  ;;  %4527 = vmatpush.bf16.msrb.mxu2 %v7163_v56  ;;  %4614 = vmatpush.bf16.msra.mxu3 %v7167_v49  ;;  %v3043_v27 = vpop.permute.xlu0 %3042  ;;  %v15374_v30 = vrot.slane %v15373_v7, 4 }
 0x7db   : > { %3023 = vst [vmem:[#allocation2 + $0x2f0] sm:$0xf] %v2988_v51  ;;  %v2934_v3 = vpop.permute.xlu1 %2933  ;;  %v3067_v41 = vrot.slane %v3043_v27, 4 }
 0x7dc   : > { %2909 = vst [vmem:[#allocation2 + $0x25c] sm:$0xff] %v2871_v17  ;;  %v2958_v6 = vrot.slane %v2934_v3, 4 }
 0x7dd   : > { %2910 = vst [vmem:[#allocation2 + $0x264] sm:$0xf] %v2872_v12  ;;  %v3088_v43 = vsel %vm2421_vm8, %v15374_v30, %v3067_v41  ;;  %v3090_v51 = vsel %vm1911_vm6, %v3043_v27, %v3067_v41  ;;  %v2708_v56 = vpop.permute.xlu2 %2707  ;;  %v7136_v30 = vld [vmem:[#allocation2 + $0x9c] sm:$0xf0] }
 0x7de   : > { %v2979_v18 = vsel %vm2421_vm8, %v15376_v23, %v2958_v6  ;;  %15377 = vst [vmem:[#allocation146_spill] sm:$0xff] %v12085_v63  ;;  %v3089_v60 = vsel %vm1911_vm6, %v15373_v7, %v3088_v43  ;;  %v2981_v12 = vsel %vm1674_vm5, %v2934_v3, %v2958_v6  ;;  %v2736_v49 = vrot.slane %v2708_v56, 4  ;;  %v7106_v43 = vld [vmem:[#allocation2 + $0x48] sm:$0xf]  ;;  %v12100_v6 = vpop.f32.mrf.mxu2 }
 0x7df   : > { %3128 = vst [vmem:[#allocation2 + $0x344] sm:$0xf] %v3090_v51  ;;  %v2980_v34 = vsel %vm1674_vm5, %v15375_v21, %v2979_v18  ;;  %v7134_v17 = vld [vmem:[#allocation2 + $0x80] sm:$0xf]  ;;  %v8135_v41 = vld [vmem:[#allocation2 + $0x84] sm:$0xf] }
 0x7e0   : > { %3127 = vst [vmem:[#allocation2 + $0x33c] sm:$0xff] %v3089_v60  ;;  %v7135_v27 = vor.u32 %v8138_v52, %v7134_v17  ;;  %v15378_v23 = vrot.slane %v11673_v59, 4  ;;  %v2756_v9 = vsel %vm1200_vm3, %v2708_v56, %v2736_v49  ;;  %v7139_v7 = vor.u32 %v8135_v41, %v7136_v30  ;;  %v8128_v21 = vld [vmem:[#allocation2 + $0x4c] sm:$0xf]  ;;  %v8131_v60 = vld [vmem:[#allocation2 + $0x60] sm:$0xf0] }
 0x7e1   : > { %3018 = vst [vmem:[#allocation2 + $0x2cc] sm:$0xff] %v2980_v34  ;;  %v7108_v17 = vld [vmem:[#allocation2 + $0x64] sm:$0xf0]  ;;  %v7078_v41 = vld [vmem:[#allocation2 + $0x10] sm:$0xf] }
 0x7e2   : > { %v2754_v63 = vsel %vm2421_vm8, %v15378_v23, %v2736_v49  ;;  %3019 = vst [vmem:[#allocation2 + $0x2d4] sm:$0xf] %v2981_v12  ;;  %v12098_v3 = vpop.f32.mrf.mxu1  ;;  %4528 = vmatpush.bf16.msrb.mxu2 %v7135_v27  ;;  %4615 = vmatpush.bf16.msra.mxu3 %v7139_v7  ;;  %v2926_v18 = vpop.permute.xlu0 %2925  ;;  %v7107_v49 = vor.u32 %v8131_v60, %v7106_v43  ;;  %v8124_v30 = vld [vmem:[#allocation2 + $0x28] sm:$0xf0]  ;;  %v15380_v27 = vrot.slane %v11424_v31, 4 }
 0x7e3   : > { %v2755_v51 = vsel %vm1200_vm3, %v11673_v59, %v2754_v63  ;;  %15379 = vst [vmem:[#allocation145_spill] sm:$0xff] %v12100_v6  ;;  %v2817_v52 = vpop.permute.xlu1 %2816  ;;  %v2954_v34 = vrot.slane %v2926_v18, 4  ;;  %v7111_v12 = vor.u32 %v8128_v21, %v7108_v17  ;;  %v8121_v59 = vld [vmem:[#allocation2 + $0x14] sm:$0xf]  ;;  %v12102_v63 = vpop.f32.mrf.mxu0  ;;  %v7470_v43 = vld [vmem:[#allocation2 + $0x320] sm:$0xf] }
 0x7e4   : > { %2796 = vst [vmem:[#allocation2 + $0x1d0] sm:$0xff] %v2755_v51  ;;  %v2845_v56 = vrot.slane %v2817_v52, 4  ;;  %v15381_v51 = vrot.slane %v11640_v5, 4  ;;  %v8226_v60 = vld [vmem:[#allocation2 + $0x35c] sm:$0xf] }
 0x7e5   : > { %2797 = vst [vmem:[#allocation2 + $0x1d8] sm:$0xf] %v2756_v9  ;;  %v2972_v23 = vsel %vm2421_vm8, %v15380_v27, %v2954_v34  ;;  %v2974_v7 = vsel %vm1674_vm5, %v2926_v18, %v2954_v34  ;;  %v3168_v6 = vpop.permute.xlu2 %3167  ;;  %v7506_v21 = vld [vmem:[#allocation2 + $0x360] sm:$0xf] }
 0x7e6   : > { %v2863_v9 = vsel %vm2421_vm8, %v15381_v51, %v2845_v56  ;;  %4529 = vmatpush.bf16.msrb.mxu2 %v7107_v49  ;;  %v2973_v17 = vsel %vm1674_vm5, %v11424_v31, %v2972_v23  ;;  %3015 = vst [vmem:[#allocation2 + $0x2b8] sm:$0xf] %v2974_v7  ;;  %v2865_v27 = vsel %vm1437_vm4, %v2817_v52, %v2845_v56  ;;  %v3184_v18 = vrot.slane %v3168_v6, 4  ;;  %v8230_v52 = vld [vmem:[#allocation2 + $0x378] sm:$0xf0] }
 0x7e7   : > { %v2864_v54 = vsel %vm1437_vm4, %v11640_v5, %v2863_v9  ;;  %4616 = vmatpush.bf16.msra.mxu3 %v7111_v12  ;;  %v8222_v34 = vld [vmem:[#allocation2 + $0x338] sm:$0xf0]  ;;  %3014 = vst [vmem:[#allocation2 + $0x2b0] sm:$0xff] %v2973_v17  ;;  %v12116_v53 = vpop.f32.mrf.mxu3  ;;  %v7079_v49 = vor.u32 %v8124_v30, %v7078_v41  ;;  %v7083_v5 = vor.u32 %v8121_v59, %v7080_v58  ;;  %v7442_v56 = vld [vmem:[#allocation2 + $0x2e8] sm:$0xf] }
 0x7e8   : > { %v7471_v51 = vor.u32 %v8222_v34, %v7470_v43  ;;  %2905 = vst [vmem:[#allocation2 + $0x240] sm:$0xff] %v2864_v54  ;;  %v3211_v31 = vsel %vm2421_vm8, %v15382_v32, %v3184_v18  ;;  %v3213_v23 = vsel %vm2148_vm7, %v3168_v6, %v3184_v18  ;;  %v7503_v7 = vor.u32 %v8226_v60, %v7500_v35  ;;  %v7472_v54 = vld [vmem:[#allocation2 + $0x33c] sm:$0xf0]  ;;  %v8223_v30 = vld [vmem:[#allocation2 + $0x340] sm:$0xf0] }
 0x7e9   : > { %2906 = vst [vmem:[#allocation2 + $0x248] sm:$0xf] %v2865_v27  ;;  %v3212_v12 = vsel %vm2148_vm7, %v11742_v11, %v3211_v31  ;;  %v7507_v41 = vor.u32 %v8230_v52, %v7506_v21  ;;  %v8219_v58 = vld [vmem:[#allocation2 + $0x324] sm:$0xf]  ;;  %v7478_v35 = vld [vmem:[#allocation2 + $0x328] sm:$0xf] }
 0x7ea   : > { %v12124_v9 = vpop.f32.mrf.mxu1  ;;  %4530 = vmatpush.bf16.msrb.mxu2 %v7079_v49  ;;  %4553 = vmatpush.bf16.msra.mxu0 %v7471_v51  ;;  %3244 = vst [vmem:[#allocation2 + $0x3e4] sm:$0xff] %v3212_v12  ;;  %v2841_v32 = vpop.permute.xlu0 %2840  ;;  %v8215_v60 = vld [vmem:[#allocation2 + $0x300] sm:$0xf0]  ;;  %v7475_v21 = vor.u32 %v8219_v58, %v7472_v54  ;;  %v7479_v27 = vor.u32 %v8223_v30, %v7478_v35  ;;  %v15383_v18 = vrot.slane %v11524_v44, 4  ;;  %v15384_v51 = vrot.slane %v11642_v13, 4 }
 0x7eb   : > { %4617 = vmatpush.bf16.msra.mxu3 %v7083_v5  ;;  %v2732_v43 = vpop.permute.xlu1 %2731  ;;  %3245 = vst [vmem:[#allocation2 + $0x3ec] sm:$0xf] %v3213_v23  ;;  %v2857_v6 = vrot.slane %v2841_v32, 4  ;;  %v7443_v17 = vor.u32 %v8215_v60, %v7442_v56  ;;  %v7450_v52 = vld [vmem:[#allocation2 + $0x2f0] sm:$0xf] }
 0x7ec   : > { %v2748_v59 = vrot.slane %v2732_v43, 4  ;;  %v12126_v11 = vpop.f32.mrf.mxu2  ;;  %v8208_v30 = vld [vmem:[#allocation2 + $0x2c8] sm:$0xf0]  ;;  %v7444_v35 = vld [vmem:[#allocation2 + $0x304] sm:$0xf0] }
 0x7ed   : > { %4531 = vmatmul.bf16.vlgmr.msrb.gmra.mxu2 %v11128_v0  ;;  %v2884_v34 = vsel %vm2421_vm8, %v15383_v18, %v2857_v6  ;;  %v2886_v49 = vsel %vm1437_vm4, %v2841_v32, %v2857_v6  ;;  %v12138_v5 = vpop.permute.xlu2 %3416  ;;  %v12146_v32 = vpop.f32.mrf.mxu0  ;;  %v8216_v6 = vld [vmem:[#allocation2 + $0x308] sm:$0xf0] }
 0x7ee   : > { %4639 = vmatpush.bf16.msra.mxu2 %v7503_v7  ;;  %v2775_v31 = vsel %vm2421_vm8, %v15384_v51, %v2748_v59  ;;  %v2777_v23 = vsel %vm1200_vm3, %v2732_v43, %v2748_v59  ;;  %4618 = vmatmul.bf16.vlgmr.msra.gmra.mxu3 %v11128_v0  ;;  %v8212_v7 = vld [vmem:[#allocation2 + $0x2ec] sm:$0xf]  ;;  %v2885_v56 = vsel %vm1437_vm4, %v11524_v44, %v2884_v34  ;;  %v7414_v54 = vld [vmem:[#allocation2 + $0x2b0] sm:$0xf] }
 0x7ef   : > { %4726 = vmatpush.bf16.msrb.mxu3 %v7507_v41  ;;  %2918 = vst [vmem:[#allocation2 + $0x29c] sm:$0xf] %v2886_v49  ;;  %v2776_v12 = vsel %vm1200_vm3, %v11642_v13, %v2775_v31  ;;  %4554 = vmatpush.bf16.msra.mxu0 %v7443_v17  ;;  %v4185_v41 = vadd.f32 %v11840_v47, %v12138_v5  ;;  %v12150_v58 = vpop.f32.mrf.mxu3  ;;  %v8205_v17 = vld [vmem:[#allocation2 + $0x2b4] sm:$0xf]  ;;  %v7416_v31 = vld [vmem:[#allocation2 + $0x2cc] sm:$0xf0] }
 0x7f0   : > { %2917 = vst [vmem:[#allocation2 + $0x294] sm:$0xff] %v2885_v56  ;;  %v4272_v43 = vadd.f32 %v11811_v33, %v12138_v5  ;;  %v7415_v44 = vor.u32 %v8208_v30, %v7414_v54  ;;  %v7447_v13 = vor.u32 %v8212_v7, %v7444_v35  ;;  %v7451_v60 = vor.u32 %v8216_v6, %v7450_v52  ;;  %v7386_v56 = vld [vmem:[#allocation2 + $0x278] sm:$0xf] }
 0x7f1   : > { %2808 = vst [vmem:[#allocation2 + $0x224] sm:$0xff] %v2776_v12  ;;  %v4214_v59 = vadd.f32 %v12046_v25, %v4185_v41  ;;  %v8209_v25 = vld [vmem:[#allocation2 + $0x2d0] sm:$0xf0]  ;;  %v7419_v7 = vor.u32 %v8205_v17, %v7416_v31  ;;  %v15388_v54 = vrot.slane %v11726_v55, 4 }
 0x7f2   : > { %4640 = vmatpush.bf16.msra.mxu2 %v7475_v21  ;;  %2809 = vst [vmem:[#allocation2 + $0x22c] sm:$0xf] %v2777_v23  ;;  %v12153_v47 = vpop.f32.mrf.mxu1  ;;  %v7422_v21 = vld [vmem:[#allocation2 + $0x2b8] sm:$0xf]  ;;  %v4301_v18 = vadd.f32 %v11895_v42, %v4272_v43  ;;  %v2724_v33 = vpop.permute.xlu0 %2723  ;;  %v15387_v42 = vrot.slane %v11705_v2, 4 }
 0x7f3   : > { %4727 = vmatpush.bf16.msrb.mxu3 %v7479_v27  ;;  %4555 = vmatpush.bf16.msra.mxu0 %v7415_v44  ;;  %v3160_v34 = vpop.permute.xlu1 %3159  ;;  %v12157_v27 = vadd.f32 %v11759_v48, %v4214_v59  ;;  %v2744_v49 = vrot.slane %v2724_v33, 4  ;;  %v7423_v52 = vor.u32 %v8209_v25, %v7422_v21  ;;  %v8198_v43 = vld [vmem:[#allocation2 + $0x27c] sm:$0xf]  ;;  %v7366_v25 = vld [vmem:[#allocation2 + $0x248] sm:$0xf] }
 0x7f4   : > { %v3180_v51 = vrot.slane %v3160_v34, 4  ;;  %v12159_v23 = vpop.f32.mrf.mxu2  ;;  %v12162_v12 = vadd.f32 %v12102_v63, %v4301_v18 }
 0x7f5   : > { %15385 = vst [vmem:[#allocation147_spill] sm:$0xff] %v12157_v27  ;;  %v2768_v41 = vsel %vm2421_vm8, %v15387_v42, %v2744_v49  ;;  %v2770_v48 = vsel %vm1200_vm3, %v2724_v33, %v2744_v49  ;;  %v14709_v35 = vmax.f32 %v12157_v27, 0.0  ;;  %v7394_v33 = vld [vmem:[#allocation2 + $0x280] sm:$0xf]  ;;  %v12180_v31 = vpop.f32.mrf.mxu0 }
 0x7f6   : > { %4641 = vmatpush.bf16.msra.mxu2 %v7447_v13  ;;  %15386 = vst [vmem:[#allocation148_spill] sm:$0xff] %v12162_v12  ;;  %v3204_v30 = vsel %vm2421_vm8, %v15388_v54, %v3180_v51  ;;  %v8202_v44 = vld [vmem:[#allocation2 + $0x298] sm:$0xf0]  ;;  %v2769_v13 = vsel %vm1200_vm3, %v11705_v2, %v2768_v41  ;;  %v3206_v6 = vsel %vm2148_vm7, %v3160_v34, %v3180_v51  ;;  %v14710_v49 = vmax.f32 %v12162_v12, 0.0  ;;  %v7358_v2 = vld [vmem:[#allocation2 + $0x240] sm:$0xf] }
 0x7f7   : > { %4728 = vmatpush.bf16.msrb.mxu3 %v7451_v60  ;;  %2805 = vst [vmem:[#allocation2 + $0x210] sm:$0xf] %v2770_v48  ;;  %v3205_v63 = vsel %vm2148_vm7, %v11726_v55, %v3204_v30  ;;  %v8201_v59 = vld [vmem:[#allocation2 + $0x290] sm:$0xf0]  ;;  %v7388_v60 = vld [vmem:[#allocation2 + $0x294] sm:$0xf0]  ;;  %v12177_v17 = vpop.f32.mrf.mxu3  ;;  %v7395_v34 = vor.u32 %v8202_v44, %v7394_v33 }
 0x7f8   : > { %2804 = vst [vmem:[#allocation2 + $0x208] sm:$0xff] %v2769_v13  ;;  %v7387_v21 = vor.u32 %v8201_v59, %v7386_v56  ;;  %v7391_v18 = vor.u32 %v8198_v43, %v7388_v60  ;;  %v8191_v51 = vld [vmem:[#allocation2 + $0x244] sm:$0xf]  ;;  %v7360_v54 = vld [vmem:[#allocation2 + $0x25c] sm:$0xf0]  ;;  %v15389_v44 = vrot.slane %v11754_v39, 4 }
 0x7f9   : > { %3240 = vst [vmem:[#allocation2 + $0x3c8] sm:$0xff] %v3205_v63  ;;  %v8195_v30 = vld [vmem:[#allocation2 + $0x260] sm:$0xf0]  ;;  %v7363_v13 = vor.u32 %v8191_v51, %v7360_v54  ;;  %v15390_v60 = vrot.slane %v11707_v10, 4 }
 0x7fa   : > { %4642 = vmatpush.bf16.msra.mxu2 %v7419_v7  ;;  %3241 = vst [vmem:[#allocation2 + $0x3d0] sm:$0xf] %v3206_v6  ;;  %v12182_v55 = vpop.f32.mrf.mxu1  ;;  %4556 = vmatpush.bf16.msra.mxu0 %v7387_v21  ;;  %v2716_v42 = vpop.permute.xlu0 %2715  ;;  %v8194_v7 = vld [vmem:[#allocation2 + $0x258] sm:$0xf0]  ;;  %v7367_v63 = vor.u32 %v8195_v30, %v7366_v25  ;;  %v8187_v33 = vld [vmem:[#allocation2 + $0x220] sm:$0xf0] }
 0x7fb   : > { %4729 = vmatpush.bf16.msrb.mxu3 %v7423_v52  ;;  %v3152_v41 = vpop.permute.xlu1 %3151  ;;  %v2740_v52 = vrot.slane %v2716_v42, 4  ;;  %v7359_v48 = vor.u32 %v8194_v7, %v7358_v2  ;;  %v8243_v2 = vld [vmem:[#allocation2 + $0x3e0] sm:$0xf0] }
 0x7fc   : > { %v3176_v56 = vrot.slane %v3152_v41, 4  ;;  %v12184_v43 = vpop.f32.mrf.mxu2 }
 0x7fd   : > { %4536 = vmatmul.bf16.gmra.mxu2 %v15312_v62  ;;  %v2761_v6 = vsel %vm2421_vm8, %v15389_v44, %v2740_v52  ;;  %v2763_v59 = vsel %vm1200_vm3, %v2716_v42, %v2740_v52  ;;  %v8447_v42 = vpack.i.bf16 %v14710_v49, %v14709_v35  ;;  %v8188_v44 = vld [vmem:[#allocation2 + $0x228] sm:$0xf0]  ;;  %v7556_v35 = vld [vmem:[#allocation2 + $0x3e4] sm:$0xf0] }
 0x7fe   : > { %4643 = vmatpush.bf16.msra.mxu2 %v7391_v18  ;;  %v3197_v21 = vsel %vm2421_vm8, %v15390_v60, %v3176_v56  ;;  %v3199_v18 = vsel %vm2148_vm7, %v3152_v41, %v3176_v56  ;;  %4623 = vmatmul.bf16.gmra.mxu3 %v15312_v62  ;;  %v2762_v51 = vsel %vm1200_vm3, %v11754_v39, %v2761_v6  ;;  %v7332_v39 = vld [vmem:[#allocation2 + $0x224] sm:$0xf0]  ;;  %v8244_v49 = vld [vmem:[#allocation2 + $0x3e8] sm:$0xf0] }
 0x7ff   : > { %4730 = vmatpush.bf16.msrb.mxu3 %v7395_v34  ;;  %v7338_v34 = vld [vmem:[#allocation2 + $0x210] sm:$0xf]  ;;  %2801 = vst [vmem:[#allocation2 + $0x1f4] sm:$0xf] %v2763_v59  ;;  %v3198_v25 = vsel %vm2148_vm7, %v11707_v10, %v3197_v21  ;;  %4557 = vmatpush.bf16.msra.mxu0 %v7359_v48  ;;  %v7330_v7 = vld [vmem:[#allocation2 + $0x208] sm:$0xf]  ;;  %v12204_v52 = vpop.f32.mrf.mxu3 }
 0x800   : > { %v8184_v41 = vld [vmem:[#allocation2 + $0x20c] sm:$0xf]  ;;  %2800 = vst [vmem:[#allocation2 + $0x1ec] sm:$0xff] %v2762_v51  ;;  %v7331_v56 = vor.u32 %v8187_v33, %v7330_v7  ;;  %v7554_v54 = vld [vmem:[#allocation2 + $0x3c8] sm:$0xf]  ;;  %8448 = vrot.lane.b32.xlu2 %v8447_v42, %s8779_s18  ;;  %v7339_v48 = vor.u32 %v8188_v44, %v7338_v34 }
 0x801   : > { %3236 = vst [vmem:[#allocation2 + $0x3ac] sm:$0xff] %v3198_v25  ;;  %v7555_v10 = vor.u32 %v8243_v2, %v7554_v54  ;;  %v7335_v30 = vor.u32 %v8184_v41, %v7332_v39  ;;  %v7310_v33 = vld [vmem:[#allocation2 + $0x1d8] sm:$0xf]  ;;  %v7302_v2 = vld [vmem:[#allocation2 + $0x1d0] sm:$0xf] }
 0x802   : > { %4644 = vmatpush.bf16.msra.mxu2 %v7363_v13  ;;  %3237 = vst [vmem:[#allocation2 + $0x3b4] sm:$0xf] %v3199_v18  ;;  %v12207_v6 = vpop.f32.mrf.mxu1  ;;  %v3144_v59 = vpop.permute.xlu0 %3143  ;;  %v8177_v51 = vld [vmem:[#allocation2 + $0x1d4] sm:$0xf]  ;;  %v15391_v18 = vrot.slane %v11770_v46, 4 }
 0x803   : > { %4731 = vmatpush.bf16.msrb.mxu3 %v7367_v63  ;;  %4558 = vmatpush.bf16.msra.mxu0 %v7331_v56  ;;  %v12209_v60 = vpop.permute.xlu1 %3426  ;;  %v12211_v13 = vpop.f32.mrf.mxu0  ;;  %v3172_v63 = vrot.slane %v3144_v59, 4  ;;  %v8240_v7 = vld [vmem:[#allocation2 + $0x3cc] sm:$0xf]  ;;  %v7562_v41 = vld [vmem:[#allocation2 + $0x3d0] sm:$0xf] }
 0x804   : > { %4587 = vmatpush.bf16.msrb.mxu1 %v7555_v10  ;;  %v12213_v21 = vpop.f32.mrf.mxu2  ;;  %v7563_v27 = vor.u32 %v8244_v49, %v7562_v41 }
 0x805   : > { %v3190_v25 = vsel %vm2421_vm8, %v15391_v18, %v3172_v63  ;;  %v3192_v34 = vsel %vm2148_vm7, %v3144_v59, %v3172_v63  ;;  %v7559_v18 = vor.u32 %v8240_v7, %v7556_v35 }
 0x806   : > { %4645 = vmatpush.bf16.msra.mxu2 %v7335_v30  ;;  %v8181_v42 = vld [vmem:[#allocation2 + $0x1f0] sm:$0xf0]  ;;  %v3191_v56 = vsel %vm2148_vm7, %v11770_v46, %v3190_v25  ;;  %3233 = vst [vmem:[#allocation2 + $0x398] sm:$0xf] %v3192_v34 }
 0x807   : > { %4732 = vmatpush.bf16.msrb.mxu3 %v7339_v48  ;;  %v7311_v54 = vor.u32 %v8181_v42, %v7310_v33  ;;  %v8180_v39 = vld [vmem:[#allocation2 + $0x1e8] sm:$0xf0]  ;;  %v7304_v10 = vld [vmem:[#allocation2 + $0x1ec] sm:$0xf0]  ;;  %3232 = vst [vmem:[#allocation2 + $0x390] sm:$0xff] %v3191_v56  ;;  %v4397_v30 = vpop.f32.mrf.mxu3 }
 0x808   : > { %v7303_v44 = vor.u32 %v8180_v39, %v7302_v2  ;;  %v7307_v48 = vor.u32 %v8177_v51, %v7304_v10  ;;  %v7282_v2 = vld [vmem:[#allocation2 + $0x1a0] sm:$0xf]  ;;  %v8236_v25 = vld [vmem:[#allocation2 + $0x3a8] sm:$0xf0]  ;;  %v8174_v39 = vld [vmem:[#allocation2 + $0x1b8] sm:$0xf0] }
 0x809   : > { %v8237_v51 = vld [vmem:[#allocation2 + $0x3b0] sm:$0xf0] }
 0x80a   : > { %v4373_v59 = vpop.f32.mrf.mxu1  ;;  %4559 = vmatpush.bf16.msra.mxu0 %v7303_v44  ;;  %4646 = vmatpush.bf16.msra.mxu2 %v7307_v48  ;;  %v12221_v63 = vpop.permute.xlu0 %3421  ;;  %v7283_v44 = vor.u32 %v8174_v39, %v7282_v2 }
 0x80b   : > { %4733 = vmatpush.bf16.msrb.mxu3 %v7311_v54  ;;  %v12223_v12 = vpop.permute.xlu1 %3436  ;;  %v4445_v35 = vpop.f32.mrf.mxu0 }
 0x80c   : > { %v4369_v46 = vadd.f32 %v12182_v55, %v12223_v12  ;;  %v4426_v33 = vpop.f32.mrf.mxu2 }
 0x80d   : > { %4541 = vmatmul.bf16.gmra.mxu2 %v15315_v22  ;;  %4560 = vmatmul.bf16.vlgmr.msra.gmra.mxu0 %v11244_v61  ;;  %v7534_v49 = vld [vmem:[#allocation2 + $0x398] sm:$0xf] }
 0x80e   : > { %4674 = vmatpush.bf16.msrb.mxu0 %v7559_v18  ;;  %4761 = vmatpush.bf16.msrb.mxu2 %v7563_v27  ;;  %v4398_v34 = vadd.f32 %v4397_v30, %v4369_v46  ;;  %v7535_v42 = vor.u32 %v8237_v51, %v7534_v49  ;;  %v7526_v7 = vld [vmem:[#allocation2 + $0x390] sm:$0xf]  ;;  %v8233_v41 = vld [vmem:[#allocation2 + $0x394] sm:$0xf]  ;;  %v8167_v18 = vld [vmem:[#allocation2 + $0x180] sm:$0xf0] }
 0x80f   : > { %4628 = vmatmul.bf16.gmra.mxu3 %v15315_v22  ;;  %v7528_v27 = vld [vmem:[#allocation2 + $0x3ac] sm:$0xf0]  ;;  %v12230_v56 = vpop.f32.mrf.mxu3  ;;  %v7527_v55 = vor.u32 %v8236_v25, %v7526_v7  ;;  %v7254_v46 = vld [vmem:[#allocation2 + $0x168] sm:$0xf]  ;;  %v8160_v25 = vld [vmem:[#allocation2 + $0x148] sm:$0xf0] }
 0x810   : > { %v7531_v54 = vor.u32 %v8233_v41, %v7528_v27  ;;  %v12232_v10 = vadd.f32 %v4426_v33, %v4398_v34  ;;  %v7255_v51 = vor.u32 %v8167_v18, %v7254_v46  ;;  %v4359_v46 = vadd.f32 %v12074_v4, %v12138_v5 }
 0x811   : > { %4588 = vmatpush.bf16.msrb.mxu1 %v7527_v55  ;;  %v7198_v55 = vld [vmem:[#allocation2 + $0xf8] sm:$0xf] }
 0x812   : > { %4762 = vmatpush.bf16.msrb.mxu2 %v7535_v42  ;;  %v12234_v48 = vpop.f32.mrf.mxu1  ;;  %4675 = vmatpush.bf16.msrb.mxu0 %v7531_v54  ;;  %v12236_v30 = vpop.permute.xlu0 %3446  ;;  %v7226_v42 = vld [vmem:[#allocation2 + $0x130] sm:$0xf]  ;;  %v8153_v54 = vld [vmem:[#allocation2 + $0x110] sm:$0xf0] }
 0x813   : > { %15392 = vst [vmem:[#allocation149_spill] sm:$0xff] %v12234_v48  ;;  %v4374_v33 = vadd.f32 %v4373_v59, %v12236_v30  ;;  %v4447_v2 = vpop.f32.mrf.mxu0  ;;  %v7227_v41 = vor.u32 %v8160_v25, %v7226_v42  ;;  %v8146_v59 = vld [vmem:[#allocation2 + $0xd8] sm:$0xf0]  ;;  %v7170_v25 = vld [vmem:[#allocation2 + $0xc0] sm:$0xf]  ;;  %v4187_v42 = vadd.f32 %v11855_v26, %v12221_v63 }
 0x814   : > { %v12238_v49 = vpop.f32.mrf.mxu2  ;;  %7580 = vmatmul.msk.bf16.vlgmr.msrb.gmra.mxu1 %vm4162_vm9, %v11234_v38  ;;  %v7142_v48 = vld [vmem:[#allocation2 + $0x88] sm:$0xf] }
 0x815   : > { %4697 = vmatpush.bf16.msra.mxu1 %v7283_v44  ;;  %15393 = vst [vmem:[#allocation154_spill] sm:$0xff] %v12238_v49  ;;  %v7199_v44 = vor.u32 %v8153_v54, %v7198_v55  ;;  %v4388_v55 = vadd.f32 %v12116_v53, %v4359_v46  ;;  %v8139_v54 = vld [vmem:[#allocation2 + $0xa0] sm:$0xf0]  ;;  %v4216_v26 = vadd.f32 %v12076_v8, %v4187_v42  ;;  %v8132_v46 = vld [vmem:[#allocation2 + $0x68] sm:$0xf0] }
 0x816   : > { %v7143_v4 = vor.u32 %v8139_v54, %v7142_v48  ;;  %v8125_v54 = vld [vmem:[#allocation2 + $0x30] sm:$0xf0]  ;;  %v7086_v42 = vld [vmem:[#allocation2 + $0x18] sm:$0xf] }
 0x817   : > { %v4402_v34 = vpop.f32.mrf.mxu3 }
 0x818   : > { %v4403_v7 = vadd.f32 %v4402_v34, %v4374_v33  ;;  %v7171_v33 = vor.u32 %v8146_v59, %v7170_v25  ;;  %v4361_v59 = vadd.f32 %v12098_v3, %v12221_v63  ;;  %v12271_v3 = vadd.f32 %v11784_v40, %v4216_v26 }
 0x819   : > { %4698 = vmatpush.bf16.msra.mxu1 %v7255_v51 }
 0x81a   : > { %v4474_v27 = vpop.f32.mrf.mxu1  ;;  %v4390_v48 = vadd.f32 %v12150_v58, %v4361_v59  ;;  %v7087_v58 = vor.u32 %v8125_v54, %v7086_v42 }
 0x81b   : > { %v4450_v34 = vpop.f32.mrf.mxu0 }
 0x81c   : > { %v4431_v39 = vpop.f32.mrf.mxu2  ;;  %v12284_v40 = vadd.f32 %v12159_v23, %v4390_v48 }
 0x81d   : > { %4699 = vmatpush.bf16.msra.mxu1 %v7227_v41  ;;  %4546 = vmatmul.bf16.gmra.mxu2 %v15319_v14  ;;  %v12245_v18 = vadd.f32 %v4431_v39, %v4403_v7  ;;  %v4274_v7 = vadd.f32 %v11828_v15, %v12221_v63  ;;  %v4446_v39 = vadd.f32 %v4445_v35, %v12138_v5 }
 0x81e   : > { %4565 = vmatmul.bf16.gmra.mxu0 %v11441_v24  ;;  %15399 = vst [vmem:[#allocation195_spill] sm:$0xff] %v12284_v40 }
 0x81f   : > { %15394 = vst [vmem:[#allocation153_spill] sm:$0xff] %v12245_v18  ;;  %4633 = vmatmul.bf16.gmra.mxu3 %v15319_v14  ;;  %v12250_v51 = vpop.f32.mrf.mxu3  ;;  %v4475_v25 = vadd.f32 %v4474_v27, %v4446_v39  ;;  %v4303_v15 = vadd.f32 %v11925_v20, %v4274_v7  ;;  %v4448_v7 = vadd.f32 %v4447_v2, %v12221_v63 }
 0x820   : > { %15395 = vst [vmem:[#allocation155_spill] sm:$0xff] %v12250_v51  ;;  %v12264_v51 = vadd.f32 %v12126_v11, %v4388_v55  ;;  %v4364_v55 = vadd.f32 %v12124_v9, %v12209_v60  ;;  %v14715_v9 = vmax.f32 %v12284_v40, 0.0 }
 0x821   : > { %4700 = vmatpush.bf16.msra.mxu1 %v7199_v44  ;;  %v7114_v44 = vld [vmem:[#allocation2 + $0x50] sm:$0xf]  ;;  %v12276_v27 = vadd.f32 %v12146_v32, %v4303_v15 }
 0x822   : > { %v4476_v41 = vpop.f32.mrf.mxu1  ;;  %15396 = vst [vmem:[#allocation156_spill] sm:$0xff] %v12264_v51  ;;  %v14717_v8 = vmax.f32 %v12264_v51, 0.0 }
 0x823   : > { %15398 = vst [vmem:[#allocation191_spill] sm:$0xff] %v12276_v27  ;;  %v12278_v20 = vpop.f32.mrf.mxu0  ;;  %v4477_v32 = vadd.f32 %v4476_v41, %v4448_v7  ;;  %v4451_v41 = vadd.f32 %v4450_v34, %v12209_v60 }
 0x824   : > { %7581 = vmatmul.msk.bf16.gmra.mxu1 %vm4162_vm9, %v15314_v16 }
 0x825   : > { %4701 = vmatpush.bf16.msra.mxu1 %v7171_v33  ;;  %v7115_v33 = vor.u32 %v8132_v46, %v7114_v44 }
 0x827   : > { %v4503_v53 = vpop.f32.mrf.mxu3 }
 0x828   : > { %v12267_v35 = vadd.f32 %v4503_v53, %v4475_v25 }
 0x829   : > { %4702 = vmatpush.bf16.msra.mxu1 %v7143_v4  ;;  %v14718_v4 = vmax.f32 %v12276_v27, 0.0  ;;  %v4190_v27 = vadd.f32 %v11874_v50, %v12209_v60 }
 0x82a   : > { %15397 = vst [vmem:[#allocation159_spill] sm:$0xff] %v12267_v35  ;;  %v4479_v49 = vpop.f32.mrf.mxu1  ;;  %v14716_v11 = vmax.f32 %v12267_v35, 0.0 }
 0x82b   : > { %v4455_v25 = vpop.f32.mrf.mxu0  ;;  %v4480_v15 = vadd.f32 %v4479_v49, %v4451_v41 }
 0x82c   : > { %v8452_v44 = vpack.i.bf16 %v14716_v11, %v14717_v8  ;;  %v4456_v48 = vadd.f32 %v4455_v25, %v12223_v12 }
 0x82d   : > { %4703 = vmatpush.bf16.msra.mxu1 %v7115_v33  ;;  %4647 = vmatmul.bf16.vlgmr.msra.gmra.mxu2 %v11244_v61 }
 0x82e   : > { %4570 = vmatmul.bf16.gmra.mxu0 %v11546_v29  ;;  %8453 = vrot.lane.b32.xlu0 %v8452_v44, %s8779_s18 }
 0x82f   : > { %4734 = vmatmul.bf16.vlgmr.msrb.gmra.mxu3 %v11244_v61  ;;  %v4505_v2 = vpop.f32.mrf.mxu3  ;;  %v4393_v61 = vadd.f32 %v12177_v17, %v4364_v55  ;;  %v8462_v17 = vpack.i.bf16 %v14715_v9, %v14718_v4 }
 0x830   : > { %v12295_v59 = vadd.f32 %v4505_v2, %v4477_v32 }
 0x831   : > { %4704 = vmatpush.bf16.msra.mxu1 %v7087_v58  ;;  %v12307_v53 = vadd.f32 %v12184_v43, %v4393_v61  ;;  %8463 = vrot.lane.b32.xlu2 %v8462_v17, %s8779_s18 }
 0x832   : > { %v12297_v23 = vpop.f32.mrf.mxu1 }
 0x833   : > { %15400 = vst [vmem:[#allocation193_spill] sm:$0xff] %v12307_v53  ;;  %v14713_v34 = vmax.f32 %v12307_v53, 0.0  ;;  %v12322_v43 = vpop.f32.mrf.mxu0 }
 0x834   : > { %7582 = vmatmul.msk.bf16.gmra.mxu1 %vm4162_vm9, %v15318_v45 }
 0x837   : > { %v4508_v46 = vpop.f32.mrf.mxu3 }
 0x838   : > { %v12309_v33 = vadd.f32 %v4508_v46, %v4480_v15 }
 0x83a   : > { %15401 = vst [vmem:[#allocation194_spill] sm:$0xff] %v12309_v33  ;;  %v4484_v54 = vpop.f32.mrf.mxu1  ;;  %v14714_v42 = vmax.f32 %v12309_v33, 0.0 }
 0x83b   : > { %v4485_v7 = vadd.f32 %v4484_v54, %v4456_v48  ;;  %v4460_v32 = vpop.f32.mrf.mxu0 }
 0x83c   : > { %v8477_v58 = vpack.i.bf16 %v14714_v42, %v14713_v34 }
 0x83d   : > { %4652 = vmatmul.bf16.gmra.mxu2 %v11441_v24 }
 0x83e   : > { %4575 = vmatmul.bf16.gmra.mxu0 %v11616_v37  ;;  %8478 = vrot.lane.b32.xlu2 %v8477_v58, %s8779_s18 }
 0x83f   : > { %4739 = vmatmul.bf16.gmra.mxu3 %v11441_v24  ;;  %v12324_v49 = vpop.f32.mrf.mxu3  ;;  %v4461_v24 = vadd.f32 %v4460_v32, %v12236_v30 }
 0x842   : > { %v12330_v55 = vpop.f32.mrf.mxu1 }
 0x844   : > { %7583 = vmatmul.msk.bf16.gmra.mxu1 %vm4162_vm9, %v15325_v19 }
 0x847   : > { %v4513_v2 = vpop.f32.mrf.mxu3 }
 0x848   : > { %v12335_v44 = vadd.f32 %v4513_v2, %v4485_v7 }
 0x84a   : > { %v4489_v61 = vpop.f32.mrf.mxu1 }
 0x84b   : > { %v4490_v15 = vadd.f32 %v4489_v61, %v4461_v24 }
 0x84d   : > { %4657 = vmatmul.bf16.gmra.mxu2 %v11546_v29 }
 0x84e   : > { %7584 = vmatmul.msk.bf16.vlgmr.msrb.gmra.mxu0 %vm4162_vm9, %v11234_v38 }
 0x84f   : > { %4744 = vmatmul.bf16.gmra.mxu3 %v11546_v29  ;;  %v12344_v46 = vpop.f32.mrf.mxu3  ;;  %v12356_v29 = vpop.f32.mrf.mxu2 }
 0x850   : > { %15403 = vst [vmem:[#allocation144_spill] sm:$0xff] %v12356_v29  ;;  %v4277_v29 = vadd.f32 %v11844_v57, %v12209_v60 }
 0x852   : > { %v12376_v24 = vpop.f32.mrf.mxu1 }
 0x853   : > { %15406 = vst [vmem:[#allocation169_spill] sm:$0xff] %v12376_v24 }
 0x854   : > { %4705 = vmatmul.bf16.vlgmr.msra.gmra.mxu1 %v11128_v0 }
 0x857   : > { %v4518_v48 = vpop.f32.mrf.mxu3 }
 0x858   : > { %v12347_v17 = vadd.f32 %v4518_v48, %v4490_v15 }
 0x85a   : > { %15402 = vst [vmem:[#allocation19_spill] sm:$0xff] %v12347_v17 }
 0x85d   : > { %4662 = vmatmul.bf16.gmra.mxu2 %v11616_v37 }
 0x85e   : > { %7585 = vmatmul.msk.bf16.gmra.mxu0 %vm4162_vm9, %v15314_v16 }
 0x85f   : > { %4749 = vmatmul.bf16.gmra.mxu3 %v11616_v37  ;;  %v12363_v32 = vpop.f32.mrf.mxu3 }
 0x860   : > { %15404 = vst [vmem:[#allocation12_spill] sm:$0xff] %v12363_v32 }
 0x864   : > { %4710 = vmatmul.bf16.gmra.mxu1 %v15312_v62  ;;  %v12371_v62 = vpop.f32.mrf.mxu0 }
 0x865   : > { %15405 = vst [vmem:[#allocation170_spill] sm:$0xff] %v12371_v62 }
 0x86d   : > { %7588 = vmatmul.msk.bf16.vlgmr.msrb.gmra.mxu2 %vm4162_vm9, %v11234_v38 }
 0x86e   : > { %7586 = vmatmul.msk.bf16.gmra.mxu0 %vm4162_vm9, %v15318_v45 }
 0x870   : > { %v4532_v0 = vpop.f32.mrf.mxu2 }
 0x871   : > { %v4619_v2 = vpop.f32.mrf.mxu3 }
 0x874   : > { %4715 = vmatmul.bf16.gmra.mxu1 %v15315_v22 }
 0x878   : > { %v4534_v58 = vpop.f32.mrf.mxu2 }
 0x879   : > { %v4621_v61 = vpop.f32.mrf.mxu3 }
 0x87d   : > { %7589 = vmatmul.msk.bf16.gmra.mxu2 %vm4162_vm9, %v15314_v16 }
 0x87e   : > { %7587 = vmatmul.msk.bf16.gmra.mxu0 %vm4162_vm9, %v15325_v19 }
 0x880   : > { %v12369_v37 = vpop.f32.mrf.mxu2 }
 0x881   : > { %v12382_v34 = vpop.f32.mrf.mxu3 }
 0x884   : > { %4720 = vmatmul.bf16.gmra.mxu1 %v15319_v14 }
 0x888   : > { %v12374_v38 = vpop.f32.mrf.mxu2 }
 0x889   : > { %v12390_v9 = vpop.f32.mrf.mxu3 }
 0x88a   : > { %v4561_v22 = vpop.f32.mrf.mxu0 }
 0x88d   : > { %7590 = vmatmul.msk.bf16.gmra.mxu2 %vm4162_vm9, %v15318_v45 }
 0x890   : > { %v12380_v15 = vpop.f32.mrf.mxu2 }
 0x891   : > { %v4590_v16 = vpop.f32.mrf.mxu1 }
 0x892   : > { %v4563_v48 = vpop.f32.mrf.mxu0  ;;  %v12402_v41 = vpop.f32.mrf.mxu3 }
 0x898   : > { %v12384_v42 = vpop.f32.mrf.mxu2 }
 0x899   : > { %15407 = vst [vmem:[#allocation171_spill] sm:$0xff] %v12384_v42  ;;  %v4592_v14 = vpop.f32.mrf.mxu1 }
 0x89b   : > { %v12386_v7 = vpop.f32.mrf.mxu0 }
 0x89d   : > { %7591 = vmatmul.msk.bf16.gmra.mxu2 %vm4162_vm9, %v15325_v19  ;;  %v12408_v19 = vpop.f32.mrf.mxu3 }
 0x89e   : > { %15410 = vst [vmem:[#allocation28_spill] sm:$0xff] %v12408_v19 }
 0x8a0   : > { %v4547_v54 = vpop.f32.mrf.mxu2 }
 0x8a1   : > { %v12394_v45 = vpop.f32.mrf.mxu1  ;;  %v4548_v17 = vadd.f32 %v4547_v54, %v12236_v30  ;;  %v4533_v54 = vadd.f32 %v4532_v0, %v12138_v5 }
 0x8a3   : > { %v12392_v11 = vpop.f32.mrf.mxu0  ;;  %v4562_v19 = vadd.f32 %v4561_v22, %v4533_v54 }
 0x8a5   : > { %v12413_v35 = vpop.f32.mrf.mxu3  ;;  %v12433_v42 = vadd.f32 %v4590_v16, %v4562_v19  ;;  %v4535_v16 = vadd.f32 %v4534_v58, %v12221_v63  ;;  %v4622_v19 = vadd.f32 %v4621_v61, %v12221_v63 }
 0x8a7   : > { %15413 = vst [vmem:[#allocation10_spill] sm:$0xff] %v12433_v42  ;;  %v4564_v54 = vadd.f32 %v4563_v48, %v4535_v16  ;;  %v15421_v48 = vld [vmem:[#allocation70_spill] sm:$0xff] }
 0x8a8   : > { %v12396_v8 = vpop.f32.mrf.mxu2 }
 0x8a9   : > { %15408 = vst [vmem:[#allocation173_spill] sm:$0xff] %v12396_v8  ;;  %v12400_v25 = vpop.f32.mrf.mxu1 }
 0x8ab   : > { %v12398_v4 = vpop.f32.mrf.mxu0 }
 0x8ad   : > { %v12435_v57 = vpop.f32.mrf.mxu3 }
 0x8b0   : > { %v4648_v26 = vpop.f32.mrf.mxu2 }
 0x8b1   : > { %v12406_v53 = vpop.f32.mrf.mxu1 }
 0x8b3   : > { %v12404_v39 = vpop.f32.mrf.mxu0 }
 0x8b4   : > { %15409 = vst [vmem:[#allocation30_spill] sm:$0xff] %v12404_v39  ;;  %v4620_v39 = vadd.f32 %v4619_v2, %v12138_v5  ;;  %v15416_v2 = vld [vmem:[#allocation74_spill] sm:$0xff] }
 0x8b8   : > { %v4650_v33 = vpop.f32.mrf.mxu2 }
 0x8b9   : > { %v12411_v40 = vpop.f32.mrf.mxu1 }
 0x8ba   : > { %15411 = vst [vmem:[#allocation25_spill] sm:$0xff] %v12411_v40  ;;  %v4219_v40 = vadd.f32 %v11904_v28, %v4190_v27  ;;  %v15415_v27 = vld [vmem:[#allocation91_spill] sm:$0xff] }
 0x8bb   : > { %v4576_v18 = vpop.f32.mrf.mxu0 }
 0x8bc   : > { %v4577_v8 = vadd.f32 %v4576_v18, %v4548_v17  ;;  %v4306_v18 = vadd.f32 %v11948_v36, %v4277_v29  ;;  %v12428_v17 = vpop.permute.xlu2 %3431  ;;  %v12440_v0 = vadd.f32 %v11794_v1, %v4219_v40  ;;  %v4651_v40 = vadd.f32 %v4650_v33, %v4622_v19 }
 0x8bd   : > { %v4192_v29 = vadd.f32 %v15415_v27, %v12428_v17  ;;  %v4279_v22 = vadd.f32 %v15416_v2, %v12428_v17  ;;  %v4366_v1 = vadd.f32 %v12153_v47, %v12428_v17  ;;  %v15417_v27 = vld [vmem:[#allocation89_spill] sm:$0xff] }
 0x8be   : > { %v12443_v28 = vadd.f32 %v12180_v31, %v4306_v18  ;;  %v4453_v31 = vadd.f32 %v12278_v20, %v12428_v17  ;;  %v12469_v20 = vadd.f32 %v4592_v14, %v4564_v54  ;;  %v15426_v54 = vld [vmem:[#allocation190_spill] sm:$0xff] }
 0x8bf   : > { %v4395_v18 = vadd.f32 %v12204_v52, %v4366_v1  ;;  %v4221_v2 = vadd.f32 %v15417_v27, %v4192_v29  ;;  %v4282_v52 = vadd.f32 %v15421_v48, %v12223_v12  ;;  %v15422_v29 = vmax.f32 %v12433_v42, 0.0 }
 0x8c0   : > { %v12415_v51 = vpop.f32.mrf.mxu2  ;;  %v4482_v58 = vadd.f32 %v12297_v23, %v4453_v31  ;;  %15419 = vst [vmem:[#allocation58_spill] sm:$0xff] %v12469_v20  ;;  %v15425_v31 = vld [vmem:[#allocation92_spill] sm:$0xff]  ;;  %v4538_v27 = vadd.f32 %v12369_v37, %v12209_v60 }
 0x8c1   : > { %v4605_v24 = vpop.f32.mrf.mxu1  ;;  %v12488_v19 = vadd.f32 %v12213_v21, %v4395_v18  ;;  %v15427_v18 = vld [vmem:[#allocation99_spill] sm:$0xff]  ;;  %v15429_v37 = vld [vmem:[#allocation88_spill] sm:$0xff]  ;;  %v15435_v21 = vmax.f32 %v12295_v59, 0.0 }
 0x8c2   : > { %v12423_v62 = vadd.f32 %v4605_v24, %v4577_v8  ;;  %v12476_v23 = vadd.f32 %v12324_v49, %v4482_v58  ;;  %v12491_v49 = vadd.f32 %v15426_v54, %v4221_v2  ;;  %v15428_v2 = vld [vmem:[#allocation117_spill] sm:$0xff] }
 0x8c3   : > { %v12421_v32 = vpop.f32.mrf.mxu0 }
 0x8c4   : > { %15412 = vst [vmem:[#allocation24_spill] sm:$0xff] %v12421_v32  ;;  %v4649_v32 = vadd.f32 %v4648_v26, %v4620_v39  ;;  %v15418_v26 = vld [vmem:[#allocation95_spill] sm:$0xff]  ;;  %v12467_v39 = vpop.permute.xlu2 %3441 }
 0x8c5   : > { %v4308_v47 = vadd.f32 %v15418_v26, %v4279_v22  ;;  %v15423_v22 = vmax.f32 %v12271_v3, 0.0 }
 0x8c7   : > { %v8457_v26 = vpack.i.bf16 %v15423_v22, %v15422_v29  ;;  %v12494_v58 = vadd.f32 %v12211_v13, %v4308_v47  ;;  %v4625_v13 = vadd.f32 %v12382_v34, %v12209_v60  ;;  %v4567_v47 = vadd.f32 %v12386_v7, %v4538_v27  ;;  %v15431_v34 = vld [vmem:[#allocation68_spill] sm:$0xff]  ;;  %v15432_v7 = vld [vmem:[#allocation118_spill] sm:$0xff] }
 0x8c8   : > { %v12431_v50 = vpop.f32.mrf.mxu2  ;;  %v4284_v29 = vadd.f32 %v15429_v37, %v12467_v39  ;;  %v14735_v22 = vmax.f32 %v12488_v19, 0.0  ;;  %v15434_v37 = vmax.f32 %v12443_v28, 0.0 }
 0x8c9   : > { %v12437_v8 = vpop.f32.mrf.mxu1  ;;  %8458 = vrot.lane.b32.xlu1 %v8457_v26, %s8779_s18  ;;  %v14733_v26 = vmax.f32 %v12491_v49, 0.0 }
 0x8cb   : > { %v4677_v24 = vpop.f32.mrf.mxu0 }
 0x8cc   : > { %v12445_v36 = vadd.f32 %v4677_v24, %v4649_v32  ;;  %v15420_v32 = vld [vmem:[#allocation93_spill] sm:$0xff] }
 0x8cd   : > { %v4195_v61 = vadd.f32 %v15420_v32, %v12223_v12  ;;  %v4197_v32 = vadd.f32 %v15425_v31, %v12467_v39 }
 0x8ce   : > { %15414 = vst [vmem:[#allocation55_spill] sm:$0xff] %v12445_v36  ;;  %v4735_v36 = vpop.f32.mrf.mxu3 }
 0x8d0   : > { %v12463_v24 = vpop.f32.mrf.mxu2 }
 0x8d1   : > { %v4706_v1 = vpop.f32.mrf.mxu1 }
 0x8d2   : > { %v4707_v33 = vadd.f32 %v4706_v1, %v12138_v5  ;;  %v4311_v1 = vadd.f32 %v15428_v2, %v4282_v52  ;;  %v4654_v52 = vadd.f32 %v12415_v51, %v4625_v13  ;;  %v15433_v2 = vmax.f32 %v12440_v0, 0.0  ;;  %v15436_v51 = vld [vmem:[#allocation102_spill] sm:$0xff] }
 0x8d3   : > { %v4679_v16 = vpop.f32.mrf.mxu0  ;;  %v4226_v13 = vadd.f32 %v15436_v51, %v4197_v32 }
 0x8d4   : > { %v12482_v14 = vadd.f32 %v4679_v16, %v4651_v40  ;;  %v14731_v40 = vmax.f32 %v12469_v20, 0.0  ;;  %v12500_v5 = vadd.f32 %v4735_v36, %v4707_v33  ;;  %v4224_v16 = vadd.f32 %v15427_v18, %v4195_v61 }
 0x8d5   : > { %v14738_v33 = vmax.f32 %v12494_v58, 0.0  ;;  %v12517_v61 = vadd.f32 %v12394_v45, %v4567_v47  ;;  %v12524_v27 = vadd.f32 %v15432_v7, %v4311_v1  ;;  %v8472_v48 = vpack.i.bf16 %v15434_v37, %v15433_v2  ;;  %v15437_v47 = vld [vmem:[#allocation129_spill] sm:$0xff]  ;;  %v15438_v37 = vld [vmem:[#allocation66_spill] sm:$0xff] }
 0x8d6   : > { %15424 = vst [vmem:[#allocation83_spill] sm:$0xff] %v12482_v14  ;;  %v12521_v54 = vadd.f32 %v15431_v34, %v4224_v16  ;;  %v8467_v45 = vpack.i.bf16 %v14731_v40, %v15435_v21  ;;  %v4313_v16 = vadd.f32 %v15437_v47, %v4284_v29  ;;  %v4540_v1 = vadd.f32 %v12374_v38, %v12428_v17 }
 0x8d7   : > { %15430 = vst [vmem:[#allocation86_spill] sm:$0xff] %v12517_v61  ;;  %8473 = vrot.lane.b32.xlu1 %v8472_v48, %s8779_s18  ;;  %v4458_v34 = vadd.f32 %v12322_v43, %v12467_v39  ;;  %v14737_v32 = vmax.f32 %v12524_v27, 0.0  ;;  %v4627_v29 = vadd.f32 %v12390_v9, %v12428_v17  ;;  %v4635_v38 = vadd.f32 %v12413_v35, %v12236_v30 }
 0x8d8   : > { %v12512_v36 = vpop.f32.mrf.mxu2  ;;  %8468 = vrot.lane.b32.xlu0 %v8467_v45, %s8779_s18  ;;  %v14736_v21 = vmax.f32 %v12521_v54, 0.0  ;;  %v4569_v7 = vadd.f32 %v12392_v11, %v4540_v1  ;;  %v12554_v48 = vadd.f32 %v15438_v37, %v4226_v13  ;;  %v15439_v45 = vld [vmem:[#allocation124_spill] sm:$0xff]  ;;  %v4371_v9 = vadd.f32 %v12207_v6, %v12467_v39 }
 0x8d9   : > { %v12557_v51 = vadd.f32 %v15439_v45, %v4313_v16  ;;  %v4656_v47 = vadd.f32 %v12431_v50, %v4627_v29  ;;  %v4487_v35 = vadd.f32 %v12330_v55, %v4458_v34  ;;  %v8449_v55 = vpop.permute.xlu2 %8448  ;;  %v4543_v34 = vadd.f32 %v12380_v15, %v12223_v12  ;;  %v12585_v29 = vpop.permute.xlu0 %8453 }
 0x8da   : > { %v12560_v43 = vadd.f32 %v12400_v25, %v4569_v7  ;;  %v8487_v25 = vpack.i.bf16 %v14735_v22, %v14738_v33  ;;  %v4400_v50 = vadd.f32 %v12230_v56, %v4371_v9  ;;  %v14742_v6 = vmax.f32 %v12554_v48, 0.0  ;;  %v15454_v33 = vld [vmem:[#allocation30_spill] sm:$0xff] }
 0x8db   : > { %v4682_v31 = vpop.f32.mrf.mxu0  ;;  %v12580_v1 = vadd.f32 %v12344_v46, %v4487_v35  ;;  %v14741_v56 = vmax.f32 %v12557_v51, 0.0  ;;  %v15441_v46 = vld [vmem:[#allocation154_spill] sm:$0xff]  ;;  %v4630_v37 = vadd.f32 %v12402_v41, %v12223_v12  ;;  %v4572_v15 = vadd.f32 %v12398_v4, %v4543_v34  ;;  %v12649_v4 = vpop.permute.xlu1 %3451 }
 0x8dc   : > { %v12526_v18 = vadd.f32 %v4682_v31, %v4654_v52  ;;  %v14732_v52 = vmax.f32 %v12517_v61, 0.0  ;;  %15440 = vst [vmem:[#allocation57_spill] sm:$0xff] %v12560_v43  ;;  %v14739_v9 = vunpack.i.l.bf16 %v12585_v29  ;;  %v15444_v41 = vld [vmem:[#allocation94_spill] sm:$0xff]  ;;  %v15445_v7 = vmax.f32 %v12232_v10, 0.0  ;;  %v15486_v61 = vld [vmem:[#allocation156_spill] sm:$0xff] }
 0x8dd   : > { %v15446_v31 = vmax.f32 %v12335_v44, 0.0  ;;  %v15492_v20 = vmax.f32 %v12271_v3, 0.0 }
 0x8de   : > { %v8482_v13 = vpack.i.bf16 %v14733_v26, %v14732_v52  ;;  %v4287_v52 = vadd.f32 %v15444_v41, %v12236_v30  ;;  %v15455_v41 = vld [vmem:[#allocation147_spill] sm:$0xff] }
 0x8df   : > { %8488 = vrot.lane.b32.xlu1 %v8487_v25, %s8779_s18  ;;  %v4659_v25 = vadd.f32 %v12463_v24, %v4630_v37  ;;  %v8502_v26 = vpack.i.bf16 %v15446_v31, %v15445_v7  ;;  %v15448_v31 = vld [vmem:[#allocation171_spill] sm:$0xff]  ;;  %v15456_v45 = vmax.f32 %v15455_v41, 0.0 }
 0x8e0   : > { %v4663_v2 = vpop.f32.mrf.mxu2  ;;  %8483 = vrot.lane.b32.xlu0 %v8482_v13, %s8779_s18  ;;  %v12603_v13 = vadd.f32 %v12406_v53, %v4572_v15  ;;  %v15447_v53 = vmax.f32 %v12476_v23, 0.0  ;;  %v8497_v15 = vpack.i.bf16 %v14737_v32, %v14736_v21  ;;  %v4545_v7 = vadd.f32 %v15448_v31, %v12467_v39  ;;  %v15451_v21 = vld [vmem:[#allocation28_spill] sm:$0xff] }
 0x8e1   : > { %v12563_v40 = vadd.f32 %v4663_v2, %v4635_v38  ;;  %v14734_v38 = vmax.f32 %v12560_v43, 0.0  ;;  %v12593_v2 = vadd.f32 %v15441_v46, %v4400_v50  ;;  %v15443_v50 = vld [vmem:[#allocation116_spill] sm:$0xff] }
 0x8e2   : > { %15442 = vst [vmem:[#allocation53_spill] sm:$0xff] %v12603_v13  ;;  %v4200_v46 = vadd.f32 %v15443_v50, %v12236_v30 }
 0x8e3   : > { %v4684_v11 = vpop.f32.mrf.mxu0  ;;  %v8492_v24 = vpack.i.bf16 %v14734_v38, %v15447_v53  ;;  %v15450_v38 = vld [vmem:[#allocation128_spill] sm:$0xff] }
 0x8e4   : > { %v12572_v16 = vadd.f32 %v4684_v11, %v4656_v47  ;;  %v8451_v47 = vunpack.i.h.bf16 %v8449_v55  ;;  %v8450_v11 = vunpack.i.l.bf16 %v8449_v55  ;;  %v4316_v22 = vadd.f32 %v15450_v38, %v4287_v52 }
 0x8e5   : > { %8493 = vrot.lane.b32.xlu2 %v8492_v24, %s8779_s18 }
 0x8e6   : > { %v5097_v37 = vsel %vm489_vm0, %v8451_v47, %v14739_v9  ;;  %v5096_v50 = vsel %vm489_vm0, %v8450_v11, %v8451_v47  ;;  %v4632_v47 = vadd.f32 %v15451_v21, %v12467_v39  ;;  %v15452_v11 = vld [vmem:[#allocation148_spill] sm:$0xff]  ;;  %v4574_v9 = vadd.f32 %v15454_v33, %v4545_v7  ;;  %v15460_v33 = vld [vmem:[#allocation121_spill] sm:$0xff] }
 0x8e7   : > { %8503 = vrot.lane.b32.xlu1 %v8502_v26, %s8779_s18  ;;  %v15453_v32 = vmax.f32 %v15452_v11, 0.0  ;;  %v12647_v24 = vmax.f32 %v15456_v45, %v5096_v50  ;;  %v12662_v7 = vadd.f32 %v15460_v33, %v4316_v22  ;;  %v15466_v33 = vld [vmem:[#allocation125_spill] sm:$0xff]  ;;  %v15470_v22 = vld [vmem:[#allocation12_spill] sm:$0xff] }
 0x8e8   : > { %v12600_v35 = vpop.f32.mrf.mxu2  ;;  %8498 = vrot.lane.b32.xlu0 %v8497_v15, %s8779_s18  ;;  %v15457_v15 = vld [vmem:[#allocation25_spill] sm:$0xff]  ;;  %v4661_v52 = vadd.f32 %v12512_v36, %v4632_v47 }
 0x8e9   : > { %v12642_v31 = vmax.f32 %v15453_v32, %v5097_v37  ;;  %v15459_v32 = vld [vmem:[#allocation67_spill] sm:$0xff] }
 0x8eb   : > { %v4687_v34 = vpop.f32.mrf.mxu0 }
 0x8ec   : > { %v12615_v55 = vadd.f32 %v4687_v34, %v4659_v25  ;;  %v14740_v25 = vmax.f32 %v12603_v13, 0.0  ;;  %v15449_v34 = vld [vmem:[#allocation120_spill] sm:$0xff] }
 0x8ed   : > { %v4229_v53 = vadd.f32 %v15449_v34, %v4200_v46  ;;  %v12652_v46 = vadd.f32 %v15457_v15, %v4574_v9  ;;  %v15461_v9 = vld [vmem:[#allocation123_spill] sm:$0xff]  ;;  %v15463_v34 = vmax.f32 %v12593_v2, 0.0  ;;  %v15464_v15 = vld [vmem:[#allocation170_spill] sm:$0xff] }
 0x8ee   : > { %v8507_v45 = vpack.i.bf16 %v14742_v6, %v14740_v25  ;;  %v4202_v36 = vadd.f32 %v15461_v9, %v12649_v4  ;;  %v15468_v25 = vld [vmem:[#allocation169_spill] sm:$0xff]  ;;  %v4708_v6 = vpop.f32.mrf.mxu1 }
 0x8ef   : > { %15458 = vst [vmem:[#allocation48_spill] sm:$0xff] %v12652_v46  ;;  %v12659_v37 = vadd.f32 %v15459_v32, %v4229_v53  ;;  %v8512_v53 = vpack.i.bf16 %v15463_v34, %v14741_v56  ;;  %v15469_v56 = vld [vmem:[#allocation155_spill] sm:$0xff] }
 0x8f0   : > { %v4764_v26 = vpop.f32.mrf.mxu2  ;;  %8508 = vrot.lane.b32.xlu2 %v8507_v45, %s8779_s18  ;;  %v4231_v9 = vadd.f32 %v15466_v33, %v4202_v36  ;;  %v8522_v36 = vpack.i.bf16 %v12642_v31, %v12647_v24 }
 0x8f1   : > { %v12656_v21 = vadd.f32 %v4764_v26, %v12500_v5  ;;  %v15462_v5 = vld [vmem:[#allocation100_spill] sm:$0xff]  ;;  %8513 = vrot.lane.b32.xlu0 %v8512_v53, %s8779_s18 }
 0x8f2   : > { %v4289_v41 = vadd.f32 %v15462_v5, %v12649_v4  ;;  %v15467_v5 = vld [vmem:[#allocation145_spill] sm:$0xff] }
 0x8f3   : > { %v4689_v38 = vpop.f32.mrf.mxu0 }
 0x8f4   : > { %v12668_v50 = vadd.f32 %v4689_v38, %v4661_v52  ;;  %v4463_v52 = vadd.f32 %v15464_v15, %v12649_v4  ;;  %v15465_v38 = vld [vmem:[#allocation149_spill] sm:$0xff]  ;;  %v4318_v34 = vadd.f32 %v15467_v5, %v4289_v41  ;;  %v15472_v15 = vmax.f32 %v12580_v1, 0.0  ;;  %v4737_v5 = vpop.f32.mrf.mxu3 }
 0x8f5   : > { %v4376_v32 = vadd.f32 %v15465_v38, %v12649_v4  ;;  %v15473_v38 = vmax.f32 %v12652_v46, 0.0  ;;  %v15474_v41 = vld [vmem:[#allocation69_spill] sm:$0xff] }
 0x8f6   : > { %v4492_v47 = vadd.f32 %v15468_v25, %v4463_v52  ;;  %v12705_v25 = vadd.f32 %v15474_v41, %v4231_v9 }
 0x8f7   : > { %v4405_v45 = vadd.f32 %v15469_v56, %v4376_v32  ;;  %v8517_v13 = vpack.i.bf16 %v15473_v38, %v15472_v15  ;;  %v15475_v56 = vld [vmem:[#allocation146_spill] sm:$0xff]  ;;  %v15476_v32 = vld [vmem:[#allocation144_spill] sm:$0xff] }
 0x8f8   : > { %v12693_v11 = vadd.f32 %v15470_v22, %v4492_v47  ;;  %v12708_v52 = vadd.f32 %v15475_v56, %v4318_v34  ;;  %v4709_v47 = vadd.f32 %v4708_v6, %v12221_v63  ;;  %8523 = vrot.lane.b32.xlu2 %v8522_v36, %s8782_s20  ;;  %v15479_v63 = vmax.f32 %v12659_v37, 0.0 }
 0x8f9   : > { %v12711_v22 = vadd.f32 %v15476_v32, %v4405_v45  ;;  %8518 = vrot.lane.b32.xlu1 %v8517_v13, %s8779_s18  ;;  %v15480_v6 = vmax.f32 %v12662_v7, 0.0  ;;  %v15481_v32 = vmax.f32 %v12482_v14, 0.0 }
 0x8fa   : > { %v4738_v15 = vadd.f32 %v4737_v5, %v4709_v47  ;;  %v14745_v38 = vmax.f32 %v12708_v52, 0.0  ;;  %v8464_v5 = vpop.permute.xlu2 %8463 }
 0x8fb   : > { %v4692_v53 = vpop.f32.mrf.mxu0  ;;  %15477 = vst [vmem:[#allocation114_spill] sm:$0xff] %v12711_v22  ;;  %v14744_v34 = vmax.f32 %v12711_v22, 0.0  ;;  %v8537_v13 = vpack.i.bf16 %v15480_v6, %v15479_v63  ;;  %v8465_v63 = vunpack.i.l.bf16 %v8464_v5  ;;  %v8456_v6 = vunpack.i.h.bf16 %v12585_v29 }
 0x8fc   : > { %v12696_v26 = vadd.f32 %v4692_v53, %v12563_v40  ;;  %v4766_v53 = vpop.f32.mrf.mxu2  ;;  %v12743_v33 = vpop.f32.mrf.mxu3  ;;  %v15484_v40 = vld [vmem:[#allocation191_spill] sm:$0xff] }
 0x8fd   : > { %v12722_v41 = vadd.f32 %v4766_v53, %v4738_v15  ;;  %v8552_v56 = vpack.i.bf16 %v14744_v34, %v14745_v38  ;;  %v4711_v53 = vpop.f32.mrf.mxu1  ;;  %v8466_v15 = vunpack.i.h.bf16 %v8464_v5  ;;  %v15483_v38 = vunpack.i.l.bf16 %v12585_v29 }
 0x8fe   : > { %15471 = vst [vmem:[#allocation111_spill] sm:$0xff] %v12696_v26  ;;  %v15485_v46 = vmax.f32 %v15484_v40, 0.0  ;;  %v15487_v29 = vmax.f32 %v15486_v61, 0.0  ;;  %v15494_v61 = vld [vmem:[#allocation173_spill] sm:$0xff] }
 0x8ff   : > { %15478 = vst [vmem:[#allocation85_spill] sm:$0xff] %v12722_v41  ;;  %v14746_v36 = vmax.f32 %v12722_v41, 0.0  ;;  %v15506_v41 = vld [vmem:[#allocation19_spill] sm:$0xff] }
 0x900   : > { %8538 = vrot.lane.b32.xlu2 %v8537_v13, %s8779_s18 }
 0x901   : > { %v8567_v47 = vpack.i.bf16 %v14746_v36, %v15481_v32  ;;  %v5098_v32 = vsel %vm489_vm0, %v15483_v38, %v8456_v6  ;;  %v15489_v38 = vld [vmem:[#allocation159_spill] sm:$0xff] }
 0x902   : > { %v12741_v13 = vpop.permute.xlu2 %8478  ;;  %v12765_v26 = vmax.f32 %v15487_v29, %v5098_v32  ;;  %v15490_v42 = vmax.f32 %v15489_v38, 0.0 }
 0x903   : > { %v4694_v40 = vpop.f32.mrf.mxu0 }
 0x904   : > { %v12753_v9 = vpop.f32.mrf.mxu2  ;;  %15488 = vst [vmem:[#allocation142_spill] sm:$0xff] %v12765_v26 }
 0x908   : > { %8553 = vrot.lane.b32.xlu2 %v8552_v56, %s8779_s18  ;;  %v5103_v56 = vsel %vm489_vm0, %v8465_v63, %v8466_v15 }
 0x909   : > { %v12761_v43 = vmax.f32 %v15485_v46, %v5103_v56 }
 0x910   : > { %8568 = vrot.lane.b32.xlu2 %v8567_v47, %s8779_s18 }
 0x93b   : > { %v12745_v34 = vpop.permute.xlu1 %8458 }
 0x93c   : > { %15482 = vst [vmem:[#allocation139_spill] sm:$0xff] %v12745_v34  ;;  %v8461_v47 = vunpack.i.h.bf16 %v12745_v34  ;;  %v14757_v36 = vunpack.i.l.bf16 %v12745_v34  ;;  %v12775_v34 = vpop.f32.mrf.mxu1 }
 0x93e   : > { %v5099_v5 = vsel %vm489_vm0, %v8456_v6, %v14757_v36  ;;  %v5102_v45 = vsel %vm489_vm0, %v8461_v47, %v8465_v63  ;;  %v4637_v63 = vadd.f32 %v12435_v57, %v12649_v4  ;;  %v4550_v6 = vadd.f32 %v15494_v61, %v12649_v4  ;;  %v12786_v47 = vpop.f32.mrf.mxu3 }
 0x93f   : > { %v12769_v14 = vmax.f32 %v15490_v42, %v5099_v5  ;;  %v12773_v22 = vmax.f32 %v15492_v20, %v5102_v45  ;;  %v12779_v46 = vpop.permute.xlu2 %8493  ;;  %v15496_v45 = vld [vmem:[#allocation24_spill] sm:$0xff] }
 0x940   : > { %15493 = vst [vmem:[#allocation78_spill] sm:$0xff] %v12779_v46  ;;  %v4666_v56 = vadd.f32 %v12600_v35, %v4637_v63  ;;  %v4579_v5 = vadd.f32 %v15496_v45, %v4550_v6  ;;  %v8495_v35 = vunpack.i.l.bf16 %v12779_v46  ;;  %v15502_v45 = vmax.f32 %v12295_v59, 0.0 }
 0x941   : > { %15491 = vst [vmem:[#allocation79_spill] sm:$0xff] %v12769_v14  ;;  %v8527_v29 = vpack.i.bf16 %v12773_v22, %v12765_v26  ;;  %v12804_v14 = vpop.f32.mrf.mxu2 }
 0x942   : > { %v12791_v57 = vadd.f32 %v4694_v40, %v4666_v56  ;;  %v12802_v36 = vadd.f32 %v12437_v8, %v4579_v5  ;;  %v15499_v40 = vld [vmem:[#allocation195_spill] sm:$0xff]  ;;  %v8480_v5 = vunpack.i.l.bf16 %v12741_v13 }
 0x943   : > { %v15500_v6 = vmax.f32 %v15499_v40, 0.0  ;;  %8528 = vrot.lane.b32.xlu0 %v8527_v29, %s8782_s20  ;;  %v15508_v40 = vunpack.i.h.bf16 %v12779_v46  ;;  %v4712_v29 = vadd.f32 %v4711_v53, %v12209_v60  ;;  %v15509_v46 = vmax.f32 %v12476_v23, 0.0 }
 0x944   : > { %15497 = vst [vmem:[#allocation109_spill] sm:$0xff] %v12791_v57  ;;  %v15511_v23 = vmax.f32 %v12488_v19, 0.0  ;;  %v15514_v19 = vmax.f32 %v12443_v28, 0.0  ;;  %v15516_v28 = vmax.f32 %v12705_v25, 0.0 }
 0x945   : > { %15498 = vst [vmem:[#allocation104_spill] sm:$0xff] %v12802_v36 }
 0x949   : > { %v8474_v32 = vpop.permute.xlu1 %8473 }
 0x94a   : > { %v12784_v42 = vpop.permute.xlu0 %8468  ;;  %v8475_v59 = vunpack.i.l.bf16 %v8474_v32 }
 0x94b   : > { %15495 = vst [vmem:[#allocation181_spill] sm:$0xff] %v12784_v42  ;;  %v14762_v3 = vunpack.i.h.bf16 %v12784_v42  ;;  %v8470_v20 = vunpack.i.l.bf16 %v12784_v42  ;;  %v15507_v42 = vmax.f32 %v15506_v41, 0.0 }
 0x94d   : > { %v5104_v63 = vsel %vm489_vm0, %v8466_v15, %v8470_v20  ;;  %v5105_v61 = vsel %vm489_vm0, %v8470_v20, %v14762_v3  ;;  %v15504_v15 = vld [vmem:[#allocation153_spill] sm:$0xff]  ;;  %v4716_v3 = vpop.f32.mrf.mxu1 }
 0x94e   : > { %v12808_v56 = vmax.f32 %v15500_v6, %v5104_v63  ;;  %v12812_v38 = vmax.f32 %v15502_v45, %v5105_v61  ;;  %v15505_v26 = vmax.f32 %v15504_v15, 0.0  ;;  %v5117_v63 = vsel %vm489_vm0, %v8495_v35, %v15508_v40  ;;  %v4745_v61 = vpop.f32.mrf.mxu3 }
 0x94f   : > { %v8476_v6 = vunpack.i.h.bf16 %v8474_v32  ;;  %v4717_v41 = vadd.f32 %v4716_v3, %v12223_v12  ;;  %v12833_v40 = vmax.f32 %v15509_v46, %v5117_v63  ;;  %v15510_v12 = vmax.f32 %v12494_v58, 0.0 }
 0x950   : > { %15501 = vst [vmem:[#allocation141_spill] sm:$0xff] %v12808_v56  ;;  %v8542_v20 = vpack.i.bf16 %v15507_v42, %v15505_v26  ;;  %v8532_v32 = vpack.i.bf16 %v12808_v56, %v12761_v43  ;;  %v15512_v63 = vmax.f32 %v12491_v49, 0.0  ;;  %v15513_v58 = vmax.f32 %v12440_v0, 0.0 }
 0x951   : > { %15503 = vst [vmem:[#allocation84_spill] sm:$0xff] %v12812_v38  ;;  %v8489_v45 = vpop.permute.xlu1 %8488  ;;  %v5108_v60 = vsel %vm489_vm0, %v8475_v59, %v8476_v6  ;;  %v5109_v15 = vsel %vm489_vm0, %v8476_v6, %v8480_v5  ;;  %v4714_v0 = vadd.f32 %v12775_v34, %v12428_v17 }
 0x952   : > { %v12826_v38 = vpop.permute.xlu0 %8483  ;;  %v8491_v42 = vunpack.i.h.bf16 %v8489_v45  ;;  %v8490_v8 = vunpack.i.l.bf16 %v8489_v45  ;;  %8533 = vrot.lane.b32.xlu1 %v8532_v32, %s8782_s20  ;;  %8543 = vrot.lane.b32.xlu0 %v8542_v20, %s8779_s18  ;;  %v12859_v6 = vmax.f32 %v15513_v58, %v5108_v60  ;;  %v12863_v59 = vmax.f32 %v15514_v19, %v5109_v15 }
 0x953   : > { %v8486_v57 = vunpack.i.h.bf16 %v12826_v38  ;;  %v14774_v49 = vunpack.i.l.bf16 %v12826_v38  ;;  %v15520_v58 = vmax.f32 %v12521_v54, 0.0 }
 0x954   : > { %v5115_v53 = vsel %vm489_vm0, %v8490_v8, %v8491_v42  ;;  %v5116_v26 = vsel %vm489_vm0, %v8491_v42, %v8495_v35  ;;  %v4741_v35 = vadd.f32 %v12743_v33, %v4712_v29  ;;  %v8481_v33 = vunpack.i.h.bf16 %v12741_v13 }
 0x955   : > { %v5114_v45 = vsel %vm489_vm0, %v8486_v57, %v8490_v8  ;;  %v12844_v3 = vmax.f32 %v15510_v12, %v5115_v53  ;;  %v12848_v46 = vmax.f32 %v15511_v23, %v5116_v26  ;;  %v4746_v57 = vadd.f32 %v4745_v61, %v4717_v41  ;;  %v4774_v8 = vpop.f32.mrf.mxu2 }
 0x956   : > { %v12852_v56 = vmax.f32 %v15512_v63, %v5114_v45  ;;  %v12867_v26 = vadd.f32 %v12753_v9, %v4741_v35  ;;  %v15515_v61 = vmax.f32 %v12423_v62, 0.0  ;;  %v5111_v9 = vsel %vm489_vm0, %v8481_v33, %v14774_v49 }
 0x957   : > { %v12870_v29 = vadd.f32 %v4774_v8, %v4746_v57  ;;  %v15517_v13 = vmax.f32 %v12693_v11, 0.0  ;;  %v15518_v53 = vmax.f32 %v12802_v36, 0.0  ;;  %v8582_v12 = vpack.i.bf16 %v12848_v46, %v12844_v3 }
 0x958   : > { %v8547_v15 = vpack.i.bf16 %v15516_v28, %v15515_v61  ;;  %v14773_v17 = vmax.f32 %v12867_v26, 0.0  ;;  %v5110_v63 = vsel %vm489_vm0, %v8480_v5, %v8481_v33  ;;  %v15519_v57 = vmax.f32 %v12524_v27, 0.0  ;;  %v12904_v61 = vpop.permute.xlu2 %8508  ;;  %v15521_v28 = vld [vmem:[#allocation194_spill] sm:$0xff] }
 0x959   : > { %v8504_v42 = vpop.permute.xlu1 %8503  ;;  %v8557_v45 = vpack.i.bf16 %v15518_v53, %v15517_v13  ;;  %v14769_v35 = vmax.f32 %v12870_v29, 0.0  ;;  %8583 = vrot.lane.b32.xlu2 %v8582_v12, %s8782_s20  ;;  %v15522_v5 = vmax.f32 %v15521_v28, 0.0  ;;  %v15528_v13 = vmax.f32 %v12656_v21, 0.0  ;;  %v4718_v12 = vpop.f32.mrf.mxu1 }
 0x95a   : > { %v8505_v41 = vunpack.i.l.bf16 %v8504_v42  ;;  %v8499_v20 = vpop.permute.xlu0 %8498  ;;  %8548 = vrot.lane.b32.xlu1 %v8547_v15, %s8779_s18  ;;  %v15523_v15 = vld [vmem:[#allocation193_spill] sm:$0xff]  ;;  %v14772_v28 = vunpack.i.l.bf16 %v12904_v61 }
 0x95b   : > { %v8501_v32 = vunpack.i.h.bf16 %v8499_v20  ;;  %v8500_v60 = vunpack.i.l.bf16 %v8499_v20  ;;  %8558 = vrot.lane.b32.xlu0 %v8557_v45, %s8779_s18  ;;  %v4743_v20 = vadd.f32 %v12786_v47, %v4714_v0  ;;  %v12908_v33 = vmax.f32 %v15522_v5, %v5111_v9  ;;  %v4747_v5 = vpop.f32.mrf.mxu3 }
 0x95c   : > { %v15524_v27 = vmax.f32 %v15523_v15, 0.0  ;;  %v8511_v47 = vunpack.i.h.bf16 %v12904_v61 }
 0x95d   : > { %v5121_v34 = vsel %vm489_vm0, %v8501_v32, %v8505_v41  ;;  %v5120_v23 = vsel %vm489_vm0, %v8500_v60, %v8501_v32  ;;  %v15526_v60 = vld [vmem:[#allocation55_spill] sm:$0xff]  ;;  %v12919_v45 = vadd.f32 %v12804_v14, %v4743_v20 }
 0x95e   : > { %v12895_v8 = vmax.f32 %v15519_v57, %v5121_v34  ;;  %v12899_v19 = vmax.f32 %v15520_v58, %v5120_v23  ;;  %v12912_v32 = vmax.f32 %v15524_v27, %v5110_v63  ;;  %v15527_v54 = vmax.f32 %v15526_v60, 0.0 }
 0x95f   : > { %v8506_v34 = vunpack.i.h.bf16 %v8504_v42  ;;  %v8572_v57 = vpack.i.bf16 %v12863_v59, %v12859_v6  ;;  %v4719_v58 = vadd.f32 %v4718_v12, %v12467_v39  ;;  %v14771_v42 = vmax.f32 %v12919_v45, 0.0 }
 0x960   : > { %15525 = vst [vmem:[#allocation189_spill] sm:$0xff] %v12912_v32  ;;  %v8562_v53 = vpack.i.bf16 %v15528_v13, %v15527_v54  ;;  %v8597_v63 = vpack.i.bf16 %v12895_v8, %v12899_v19  ;;  %v15529_v27 = vmax.f32 %v12554_v48, 0.0  ;;  %v15530_v13 = vmax.f32 %v12557_v51, 0.0 }
 0x961   : > { %v5122_v15 = vsel %vm489_vm0, %v8505_v41, %v8506_v34  ;;  %v5123_v39 = vsel %vm489_vm0, %v8506_v34, %v14772_v28  ;;  %v4748_v12 = vadd.f32 %v4747_v5, %v4719_v58  ;;  %v15533_v41 = vmax.f32 %v12335_v44, 0.0 }
 0x962   : > { %8563 = vrot.lane.b32.xlu1 %v8562_v53, %s8779_s18  ;;  %8598 = vrot.lane.b32.xlu2 %v8597_v63, %s8782_s20  ;;  %v15534_v51 = vmax.f32 %v12526_v18, 0.0 }
 0x963   : > { %v8514_v0 = vpop.permute.xlu0 %8513  ;;  %8573 = vrot.lane.b32.xlu0 %v8572_v57, %s8782_s20  ;;  %v12954_v63 = vmax.f32 %v15533_v41, %v5123_v39  ;;  %v15536_v39 = vmax.f32 %v12593_v2, 0.0 }
 0x964   : > { %v8516_v23 = vunpack.i.h.bf16 %v8514_v0  ;;  %v8515_v9 = vunpack.i.l.bf16 %v8514_v0  ;;  %v8587_v58 = vpack.i.bf16 %v14773_v17, %v15534_v51  ;;  %v7762_v51 = vld [vmem:[%s14356_s5 + $0x70] sm:$0xf] }
 0x966   : > { %v5126_v14 = vsel %vm489_vm0, %v8511_v47, %v8515_v9  ;;  %v5127_v20 = vsel %vm489_vm0, %v8515_v9, %v8516_v23  ;;  %v4776_v47 = vpop.f32.mrf.mxu2  ;;  %v15531_v9 = vmax.f32 %v12232_v10, 0.0 }
 0x967   : > { %v12940_v54 = vmax.f32 %v15529_v27, %v5126_v14  ;;  %v12944_v53 = vmax.f32 %v15530_v13, %v5127_v20  ;;  %v15535_v14 = vmax.f32 %v12615_v55, 0.0  ;;  %v8577_v20 = vpack.i.bf16 %v12852_v56, %v12912_v32 }
 0x968   : > { %v12950_v57 = vmax.f32 %v15531_v9, %v5122_v15  ;;  %v12968_v44 = vadd.f32 %v4776_v47, %v4748_v12  ;;  %v15538_v13 = vmax.f32 %v12580_v1, 0.0  ;;  %v15539_v47 = vmax.f32 %v12572_v16, 0.0 }
 0x969   : > { %v8612_v10 = vpack.i.bf16 %v14769_v35, %v15535_v14  ;;  %v15540_v1 = vmax.f32 %v12668_v50, 0.0  ;;  %v7826_v14 = vld [vmem:[%s14356_s5 + $0xf0] sm:$0xf]  ;;  %v8274_v35 = vld [vmem:[%s14356_s5 + $0x4] sm:$0xf0] }
 0x96a   : > { %15532 = vst [vmem:[#allocation136_spill] sm:$0xff] %v12950_v57  ;;  %8578 = vrot.lane.b32.xlu1 %v8577_v20, %s8782_s20  ;;  %v8592_v9 = vpack.i.bf16 %v14771_v42, %v15539_v47  ;;  %v8602_v41 = vpack.i.bf16 %v12940_v54, %v12950_v57  ;;  %v8304_v20 = vld [vmem:[%s14356_s5 + $0xf4] sm:$0xf0]  ;;  %v8302_v47 = vld [vmem:[%s14356_s5 + $0xe4] sm:$0xf0] }
 0x96b   : > { %v12946_v0 = vpop.permute.xlu1 %8518  ;;  %8588 = vrot.lane.b32.xlu0 %v8587_v58, %s8779_s18  ;;  %8613 = vrot.lane.b32.xlu2 %v8612_v10, %s8779_s18  ;;  %v8288_v58 = vld [vmem:[%s14356_s5 + $0x74] sm:$0xf0]  ;;  %v7770_v42 = vld [vmem:[%s14356_s5 + $0x80] sm:$0xf] }
 0x96c   : > { %v14770_v48 = vunpack.i.h.bf16 %v12946_v0  ;;  %v8520_v34 = vunpack.i.l.bf16 %v12946_v0  ;;  %v7763_v10 = vor.u32 %v8288_v58, %v7762_v51  ;;  %v7810_v51 = vld [vmem:[%s14356_s5 + $0xd0] sm:$0xf] }
 0x96e   : > { %v5128_v5 = vsel %vm489_vm0, %v8516_v23, %v8520_v34  ;;  %v5129_v15 = vsel %vm489_vm0, %v8520_v34, %v14770_v48  ;;  %v14768_v23 = vmax.f32 %v12968_v44, 0.0  ;;  %6510 = vmatpush.bf16.msra.mxu0 %v7763_v10  ;;  %v7738_v10 = vld [vmem:[%s14356_s5 + $0x40] sm:$0xf]  ;;  %v4779_v48 = vpop.f32.mrf.mxu2 }
 0x96f   : > { %v12979_v27 = vmax.f32 %v15536_v39, %v5128_v5  ;;  %v12983_v12 = vmax.f32 %v15538_v13, %v5129_v15  ;;  %v7754_v5 = vld [vmem:[%s14356_s5 + $0x60] sm:$0xf]  ;;  %v8286_v15 = vld [vmem:[%s14356_s5 + $0x64] sm:$0xf0]  ;;  %v7827_v39 = vor.u32 %v8304_v20, %v7826_v14  ;;  %v8300_v14 = vld [vmem:[%s14356_s5 + $0xd4] sm:$0xf0] }
 0x970   : > { %v8617_v34 = vpack.i.bf16 %v14768_v23, %v15540_v1  ;;  %v7818_v13 = vld [vmem:[%s14356_s5 + $0xe0] sm:$0xf]  ;;  %v7746_v1 = vld [vmem:[%s14356_s5 + $0x50] sm:$0xf]  ;;  %v8282_v20 = vld [vmem:[%s14356_s5 + $0x44] sm:$0xf0] }
 0x971   : > { %15537 = vst [vmem:[#allocation133_spill] sm:$0xff] %v12979_v27  ;;  %v8607_v2 = vpack.i.bf16 %v12979_v27, %v12944_v53  ;;  %6539 = vmatpush.bf16.msrb.mxu1 %v7827_v39  ;;  %v8298_v39 = vld [vmem:[%s14356_s5 + $0xc4] sm:$0xf0]  ;;  %v7706_v23 = vld [vmem:[%s14356_s5] sm:$0xf] }
 0x972   : > { %8593 = vrot.lane.b32.xlu1 %v8592_v9, %s8779_s18  ;;  %v7755_v9 = vor.u32 %v8286_v15, %v7754_v5  ;;  %v7811_v5 = vor.u32 %v8300_v14, %v7810_v51  ;;  %v7802_v15 = vld [vmem:[%s14356_s5 + $0xc0] sm:$0xf] }
 0x973   : > { %8603 = vrot.lane.b32.xlu0 %v8602_v41, %s8782_s20  ;;  %v7819_v41 = vor.u32 %v8302_v47, %v7818_v13  ;;  %v7739_v13 = vor.u32 %v8282_v20, %v7738_v10  ;;  %v7803_v47 = vor.u32 %v8298_v39, %v7802_v15  ;;  %v7722_v14 = vld [vmem:[%s14356_s5 + $0x20] sm:$0xf]  ;;  %v8278_v10 = vld [vmem:[%s14356_s5 + $0x24] sm:$0xf0]  ;;  %v4721_v39 = vpop.f32.mrf.mxu1 }
 0x974   : > { %6511 = vmatpush.bf16.msra.mxu0 %v7755_v9  ;;  %v8294_v15 = vld [vmem:[%s14356_s5 + $0xa4] sm:$0xf0] }
 0x975   : > { %6540 = vmatpush.bf16.msrb.mxu1 %v7819_v41  ;;  %v7730_v41 = vld [vmem:[%s14356_s5 + $0x30] sm:$0xf] }
 0x979   : > { %6541 = vmatpush.bf16.msrb.mxu1 %v7811_v5  ;;  %v7786_v5 = vld [vmem:[%s14356_s5 + $0xa0] sm:$0xf] }
 0x97a   : > { %8608 = vrot.lane.b32.xlu1 %v8607_v2, %s8782_s20  ;;  %v8524_v2 = vpop.permute.xlu2 %8523 }
 0x97b   : > { %8618 = vrot.lane.b32.xlu0 %v8617_v34, %s8779_s18  ;;  %v8284_v34 = vld [vmem:[%s14356_s5 + $0x54] sm:$0xf0]  ;;  %v4723_v28 = vpop.f32.mrf.mxu1 }
 0x97c   : > { %v7747_v58 = vor.u32 %v8284_v34, %v7746_v1  ;;  %v8280_v1 = vld [vmem:[%s14356_s5 + $0x34] sm:$0xf0]  ;;  %v7794_v34 = vld [vmem:[%s14356_s5 + $0xb0] sm:$0xf] }
 0x97d   : > { %6542 = vmatpush.bf16.msrb.mxu1 %v7803_v47  ;;  %v7731_v51 = vor.u32 %v8280_v1, %v7730_v41  ;;  %v7787_v47 = vor.u32 %v8294_v15, %v7786_v5  ;;  %v7714_v41 = vld [vmem:[%s14356_s5 + $0x10] sm:$0xf]  ;;  %v8276_v1 = vld [vmem:[%s14356_s5 + $0x14] sm:$0xf0]  ;;  %v8525_v5 = vunpack.i.l.bf16 %v8524_v2 }
 0x97e   : > { %6512 = vmatpush.bf16.msra.mxu0 %v7747_v58  ;;  %v8296_v58 = vld [vmem:[%s14356_s5 + $0xb4] sm:$0xf0] }
 0x97f   : > { %v7795_v20 = vor.u32 %v8296_v58, %v7794_v34  ;;  %v7778_v34 = vld [vmem:[%s14356_s5 + $0x90] sm:$0xf]  ;;  %v8292_v58 = vld [vmem:[%s14356_s5 + $0x94] sm:$0xf0] }
 0x980   : > { %v7779_v15 = vor.u32 %v8292_v58, %v7778_v34 }
 0x981   : > { %6543 = vmatpush.bf16.msrb.mxu1 %v7795_v20  ;;  %v8526_v20 = vunpack.i.h.bf16 %v8524_v2 }
 0x982   : > { %6513 = vmatpush.bf16.msra.mxu0 %v7739_v13  ;;  %v13050_v9 = vpop.permute.xlu2 %8538  ;;  %v7723_v13 = vor.u32 %v8278_v10, %v7722_v14  ;;  %v7715_v10 = vor.u32 %v8276_v1, %v7714_v41  ;;  %v4722_v41 = vadd.f32 %v4721_v39, %v12236_v30 }
 0x983   : > { %v5512_v1 = vsel %vm963_vm2, %v8525_v5, %v8526_v20  ;;  %v8540_v39 = vunpack.i.l.bf16 %v13050_v9 }
 0x984   : > { %v5616_v49 = vmax.f32 %v12647_v24, %v5512_v1 }
 0x985   : > { %6544 = vmatpush.bf16.msrb.mxu1 %v7787_v47  ;;  %v7707_v47 = vor.u32 %v8274_v35, %v7706_v23  ;;  %v4724_v35 = vadd.f32 %v4723_v28, %v12649_v4  ;;  %v8541_v23 = vunpack.i.h.bf16 %v13050_v9 }
 0x986   : > { %6514 = vmatpush.bf16.msra.mxu0 %v7731_v51  ;;  %v4750_v51 = vpop.f32.mrf.mxu3 }
 0x989   : > { %6545 = vmatpush.bf16.msrb.mxu1 %v7779_v15 }
 0x98a   : > { %v13088_v14 = vpop.permute.xlu2 %8553  ;;  %6515 = vmatpush.bf16.msra.mxu0 %v7723_v13  ;;  %v8290_v13 = vld [vmem:[%s14356_s5 + $0x84] sm:$0xf0] }
 0x98b   : > { %v7771_v58 = vor.u32 %v8290_v13, %v7770_v42  ;;  %v4781_v13 = vpop.f32.mrf.mxu2  ;;  %v8556_v9 = vunpack.i.h.bf16 %v13088_v14 }
 0x98d   : > { %6546 = vmatpush.bf16.msrb.mxu1 %v7771_v58 }
 0x98e   : > { %6516 = vmatpush.bf16.msra.mxu0 %v7715_v10  ;;  %v4751_v10 = vadd.f32 %v4750_v51, %v4722_v41  ;;  %v4752_v30 = vpop.f32.mrf.mxu3  ;;  %v5132_v51 = vsel %vm489_vm0, %v8540_v39, %v8541_v23 }
 0x98f   : > { %v4753_v24 = vadd.f32 %v4752_v30, %v4724_v35 }
 0x990   : > { %v13115_v15 = vadd.f32 %v4779_v48, %v4751_v10 }
 0x992   : > { %6517 = vmatpush.bf16.msra.mxu0 %v7707_v47  ;;  %v8569_v42 = vpop.permute.xlu2 %8568  ;;  %v13126_v47 = vadd.f32 %v4781_v13, %v4753_v24  ;;  %v15542_v13 = vmax.f32 %v12662_v7, 0.0  ;;  %v15544_v7 = vld [vmem:[#allocation181_spill] sm:$0xff] }
 0x9b5   : > { %v13102_v2 = vpop.permute.xlu0 %8528 }
 0x9b6   : > { %v14776_v34 = vunpack.i.l.bf16 %v13102_v2 }
 0x9b8   : > { %v5513_v17 = vsel %vm963_vm2, %v8526_v20, %v14776_v34  ;;  %v13144_v34 = vpop.permute.xlu2 %8583 }
 0x9b9   : > { %v5617_v27 = vmax.f32 %v12642_v31, %v5513_v17  ;;  %v8531_v31 = vunpack.i.h.bf16 %v13102_v2 }
 0x9bb   : > { %v5672_v5 = vpack.c.bf16 %v5617_v27, %v5616_v49  ;;  %v8555_v49 = vunpack.i.l.bf16 %v13088_v14  ;;  %v15541_v14 = vmax.f32 %v12659_v37, 0.0  ;;  %v15543_v37 = vmax.f32 %v12708_v52, 0.0 }
 0x9bd   : > { %5704 = vst [vmem:[#allocation3] sm:$0xff] %v5672_v5  ;;  %v13137_v39 = vmax.f32 %v15541_v14, %v5132_v51  ;;  %v8570_v5 = vunpack.i.l.bf16 %v8569_v42 }
 0x9c4   : > { %v13117_v20 = vpop.permute.xlu1 %8533  ;;  %v8544_v28 = vpop.permute.xlu0 %8543 }
 0x9c5   : > { %v14777_v17 = vunpack.i.h.bf16 %v13117_v20  ;;  %v8535_v4 = vunpack.i.l.bf16 %v13117_v20  ;;  %v8545_v48 = vunpack.i.l.bf16 %v8544_v28  ;;  %v8546_v35 = vunpack.i.h.bf16 %v8544_v28 }
 0x9c7   : > { %v5518_v41 = vsel %vm963_vm2, %v8531_v31, %v8535_v4  ;;  %v5519_v1 = vsel %vm963_vm2, %v8535_v4, %v14777_v17  ;;  %v5133_v30 = vsel %vm489_vm0, %v8541_v23, %v8545_v48  ;;  %v5139_v31 = vsel %vm489_vm0, %v8555_v49, %v8556_v9 }
 0x9c8   : > { %v5623_v58 = vmax.f32 %v12773_v22, %v5518_v41  ;;  %v5624_v10 = vmax.f32 %v12761_v43, %v5519_v1  ;;  %v13141_v24 = vmax.f32 %v15542_v13, %v5133_v30  ;;  %v8571_v22 = vunpack.i.h.bf16 %v8569_v42  ;;  %v15547_v13 = vld [vmem:[#allocation153_spill] sm:$0xff] }
 0x9c9   : > { %v5134_v23 = vsel %vm489_vm0, %v8545_v48, %v8546_v35  ;;  %v13152_v51 = vmax.f32 %v15543_v37, %v5139_v31  ;;  %v15545_v41 = vunpack.i.h.bf16 %v15544_v7  ;;  %v15548_v52 = vmax.f32 %v15547_v13, 0.0  ;;  %v15550_v7 = vld [vmem:[#allocation19_spill] sm:$0xff]  ;;  %v15554_v13 = vld [vmem:[#allocation85_spill] sm:$0xff] }
 0x9ca   : > { %v5676_v4 = vpack.c.bf16 %v5624_v10, %v5623_v58  ;;  %v5107_v14 = vsel %vm489_vm0, %v8570_v5, %v8571_v22  ;;  %v15553_v43 = vmax.f32 %v12705_v25, 0.0  ;;  %v8622_v25 = vpack.i.bf16 %v13141_v24, %v13137_v39 }
 0x9cb   : > { %v5106_v1 = vsel %vm489_vm0, %v15545_v41, %v8570_v5  ;;  %v13166_v31 = vmax.f32 %v15548_v52, %v5134_v23  ;;  %v15551_v41 = vmax.f32 %v15550_v7, 0.0  ;;  %v15555_v52 = vmax.f32 %v15554_v13, 0.0 }
 0x9cc   : > { %5709 = vst [vmem:[#allocation3 + $0x1c] sm:$0xff] %v5676_v4  ;;  %v13148_v28 = vpop.permute.xlu1 %8548  ;;  %8623 = vrot.lane.b32.xlu1 %v8622_v25, %s8782_s20  ;;  %v15568_v25 = vld [vmem:[#allocation139_spill] sm:$0xff] }
 0x9cd   : > { %v8551_v30 = vunpack.i.h.bf16 %v13148_v28  ;;  %v14780_v58 = vunpack.i.l.bf16 %v13148_v28  ;;  %v13159_v42 = vpop.permute.xlu0 %8558  ;;  %15549 = vst [vmem:[#allocation168_spill] sm:$0xff] %v13166_v31  ;;  %v13186_v32 = vmax.f32 %v15555_v52, %v8571_v22  ;;  %v7594_v22 = vld [vmem:[#allocation3] sm:$0xf]  ;;  %v8245_v52 = vld [vmem:[#allocation3 + $0x4] sm:$0xf] }
 0x9ce   : > { %15546 = vst [vmem:[#allocation188_spill] sm:$0xff] %v13159_v42  ;;  %v14779_v10 = vunpack.i.h.bf16 %v13159_v42  ;;  %v8560_v48 = vunpack.i.l.bf16 %v13159_v42 }
 0x9cf   : > { %v5135_v4 = vsel %vm489_vm0, %v8546_v35, %v14780_v58  ;;  %v5138_v37 = vsel %vm489_vm0, %v8551_v30, %v8555_v49  ;;  %v15556_v35 = vld [vmem:[#allocation114_spill] sm:$0xff]  ;;  %v15572_v58 = vmax.f32 %v15526_v60, 0.0  ;;  %v15577_v60 = vunpack.i.h.bf16 %v13144_v34 }
 0x9d0   : > { %v13174_v17 = vmax.f32 %v15551_v41, %v5135_v4  ;;  %v13178_v27 = vmax.f32 %v15553_v43, %v5138_v37  ;;  %v5140_v5 = vsel %vm489_vm0, %v8556_v9, %v8560_v48  ;;  %v5141_v23 = vsel %vm489_vm0, %v8560_v48, %v14779_v10  ;;  %v15561_v9 = vld [vmem:[#allocation58_spill] sm:$0xff]  ;;  %v15564_v48 = vld [vmem:[#allocation83_spill] sm:$0xff] }
 0x9d1   : > { %v15557_v49 = vmax.f32 %v15556_v35, 0.0  ;;  %v15559_v4 = vmax.f32 %v12693_v11, 0.0  ;;  %v15562_v43 = vmax.f32 %v15561_v9, 0.0  ;;  %v15565_v41 = vmax.f32 %v15564_v48, 0.0  ;;  %v13207_v11 = vpop.permute.xlu2 %8598 }
 0x9d2   : > { %15552 = vst [vmem:[#allocation164_spill] sm:$0xff] %v13174_v17  ;;  %v15569_v48 = vunpack.i.l.bf16 %v15568_v25  ;;  %v8627_v25 = vpack.i.bf16 %v13178_v27, %v13166_v31 }
 0x9d3   : > { %v13190_v30 = vmax.f32 %v15557_v49, %v5140_v5  ;;  %v13194_v7 = vmax.f32 %v15559_v4, %v5141_v23  ;;  %v13200_v37 = vmax.f32 %v15562_v43, %v5106_v1  ;;  %v13204_v13 = vmax.f32 %v15565_v41, %v5107_v14  ;;  %v8248_v5 = vld [vmem:[#allocation3 + $0x18] sm:$0xf0]  ;;  %v7596_v35 = vld [vmem:[#allocation3 + $0x1c] sm:$0xf0] }
 0x9d4   : > { %v8564_v23 = vpop.permute.xlu1 %8563  ;;  %v13209_v49 = vor.u32 %v8248_v5, %v7594_v22  ;;  %v13211_v4 = vor.u32 %v8245_v52, %v7596_v35  ;;  %v8585_v5 = vunpack.i.l.bf16 %v13144_v34  ;;  %v15570_v52 = vld [vmem:[#allocation10_spill] sm:$0xff]  ;;  %8628 = vrot.lane.b32.xlu2 %v8627_v25, %s8782_s20 }
 0x9d5   : > { %15558 = vst [vmem:[#allocation140_spill] sm:$0xff] %v13190_v30  ;;  %v8566_v9 = vunpack.i.h.bf16 %v8564_v23  ;;  %v8565_v1 = vunpack.i.l.bf16 %v8564_v23  ;;  %v8574_v43 = vpop.permute.xlu0 %8573  ;;  %v8632_v22 = vpack.i.bf16 %v13190_v30, %v13152_v51  ;;  %v15571_v35 = vmax.f32 %v15570_v52, 0.0 }
 0x9d6   : > { %15560 = vst [vmem:[#allocation180_spill] sm:$0xff] %v13194_v7  ;;  %6518 = vmatmul.bf16.vlgmr.msra.gmra.mxu0 %v13209_v49  ;;  %6547 = vmatmul.bf16.vlgmr.msrb.gmra.mxu1 %v13211_v4  ;;  %v8576_v14 = vunpack.i.h.bf16 %v8574_v43  ;;  %v15575_v30 = vmax.f32 %v13115_v15, 0.0 }
 0x9d7   : > { %15563 = vst [vmem:[#allocation166_spill] sm:$0xff] %v13200_v37  ;;  %v5100_v41 = vsel %vm489_vm0, %v15569_v48, %v8565_v1  ;;  %v5101_v10 = vsel %vm489_vm0, %v8565_v1, %v8566_v9  ;;  %v8575_v48 = vunpack.i.l.bf16 %v8574_v43  ;;  %8633 = vrot.lane.b32.xlu0 %v8632_v22, %s8782_s20  ;;  %v15573_v1 = vld [vmem:[#allocation111_spill] sm:$0xff] }
 0x9d8   : > { %15566 = vst [vmem:[#allocation196_spill] sm:$0xff] %v13209_v49  ;;  %v13225_v23 = vmax.f32 %v15571_v35, %v5100_v41  ;;  %v15574_v49 = vmax.f32 %v15573_v1, 0.0  ;;  %v15576_v41 = vmax.f32 %v12656_v21, 0.0  ;;  %v15578_v21 = vld [vmem:[#allocation84_spill] sm:$0xff]  ;;  %v15580_v1 = vunpack.i.l.bf16 %v12826_v38 }
 0x9d9   : > { %15567 = vst [vmem:[#allocation22_spill] sm:$0xff] %v13211_v4  ;;  %v13229_v4 = vmax.f32 %v15572_v58, %v5101_v10  ;;  %v5531_v58 = vsel %vm963_vm2, %v8585_v5, %v15577_v60  ;;  %v5524_v43 = vsel %vm963_vm2, %v8575_v48, %v8576_v14  ;;  %v13251_v7 = vpop.permute.xlu2 %8613  ;;  %v15583_v38 = vmax.f32 %v12526_v18, 0.0 }
 0x9da   : > { %v8647_v52 = vpack.i.bf16 %v15575_v30, %v15574_v49  ;;  %v13241_v35 = vmax.f32 %v15576_v41, %v8566_v9  ;;  %v8642_v9 = vpack.i.bf16 %v13200_v37, %v15578_v21  ;;  %v15579_v41 = vld [vmem:[#allocation79_spill] sm:$0xff]  ;;  %v5638_v60 = vmax.f32 %v12844_v3, %v5531_v58 }
 0x9db   : > { %v8637_v17 = vpack.i.bf16 %v13225_v23, %v15579_v41  ;;  %v5630_v42 = vmax.f32 %v12859_v6, %v5524_v43  ;;  %v8601_v3 = vunpack.i.h.bf16 %v13207_v11  ;;  %v8600_v58 = vunpack.i.l.bf16 %v13207_v11  ;;  %v15581_v43 = vld [vmem:[#allocation86_spill] sm:$0xff] }
 0x9dc   : > { %v13246_v10 = vpop.permute.xlu1 %8578  ;;  %8643 = vrot.lane.b32.xlu2 %v8642_v9, %s8782_s20  ;;  %v8616_v18 = vunpack.i.h.bf16 %v13251_v7 }
 0x9dd   : > { %v8581_v22 = vunpack.i.h.bf16 %v13246_v10  ;;  %v14793_v25 = vunpack.i.l.bf16 %v13246_v10  ;;  %v8589_v31 = vpop.permute.xlu0 %8588  ;;  %8638 = vrot.lane.b32.xlu1 %v8637_v17, %s8782_s20  ;;  %v15584_v17 = vmax.f32 %v12867_v26, 0.0  ;;  %v5536_v26 = vsel %vm963_vm2, %v8600_v58, %v8601_v3  ;;  %v15592_v58 = vld [vmem:[#allocation57_spill] sm:$0xff] }
 0x9de   : > { %v8591_v30 = vunpack.i.h.bf16 %v8589_v31  ;;  %v8590_v49 = vunpack.i.l.bf16 %v8589_v31 }
 0x9df   : > { %v5525_v48 = vsel %vm963_vm2, %v8576_v14, %v14793_v25  ;;  %v5530_v36 = vsel %vm963_vm2, %v8581_v22, %v8585_v5  ;;  %v8615_v14 = vunpack.i.l.bf16 %v13251_v7  ;;  %8648 = vrot.lane.b32.xlu0 %v8647_v52, %s8779_s18  ;;  %v15585_v22 = vld [vmem:[#allocation109_spill] sm:$0xff]  ;;  %v15587_v52 = vmax.f32 %v13126_v47, 0.0 }
 0x9e0   : > { %v5631_v57 = vmax.f32 %v12863_v59, %v5525_v48  ;;  %v5637_v31 = vmax.f32 %v12852_v56, %v5530_v36  ;;  %v5112_v37 = vsel %vm489_vm0, %v15580_v1, %v8590_v49  ;;  %v5113_v5 = vsel %vm489_vm0, %v8590_v49, %v8591_v30 }
 0x9e1   : > { %v15582_v36 = vmax.f32 %v15581_v43, 0.0  ;;  %v13280_v1 = vmax.f32 %v15583_v38, %v5113_v5  ;;  %v13285_v11 = vmax.f32 %v15584_v17, %v8591_v30  ;;  %v15586_v49 = vmax.f32 %v15585_v22, 0.0  ;;  %v15589_v43 = vld [vmem:[#allocation78_spill] sm:$0xff] }
 0x9e2   : > { %v5680_v6 = vpack.c.bf16 %v5631_v57, %v5630_v42  ;;  %v5684_v59 = vpack.c.bf16 %v5638_v60, %v5637_v31  ;;  %v15588_v30 = vunpack.i.l.bf16 %v12904_v61  ;;  %v15591_v38 = vmax.f32 %v12919_v45, 0.0 }
 0x9e3   : > { %v13276_v56 = vmax.f32 %v15582_v36, %v5112_v37  ;;  %v8652_v57 = vpack.i.bf16 %v15587_v52, %v15586_v49  ;;  %v8662_v37 = vpack.i.bf16 %v13186_v32, %v13204_v13  ;;  %v15590_v36 = vunpack.i.h.bf16 %v15589_v43  ;;  %v15595_v43 = vld [vmem:[#allocation53_spill] sm:$0xff] }
 0x9e4   : > { %5713 = vst [vmem:[#allocation3 + $0x38] sm:$0xff] %v5680_v6  ;;  %v8594_v42 = vpop.permute.xlu1 %8593  ;;  %v5124_v31 = vsel %vm489_vm0, %v15588_v30, %v8615_v14  ;;  %v8657_v6 = vpack.i.bf16 %v13241_v35, %v13229_v4  ;;  %v15593_v49 = vmax.f32 %v15592_v58, 0.0  ;;  %v15594_v52 = vmax.f32 %v12572_v16, 0.0 }
 0x9e5   : > { %5717 = vst [vmem:[#allocation3 + $0x54] sm:$0xff] %v5684_v59  ;;  %v8596_v60 = vunpack.i.h.bf16 %v8594_v42  ;;  %v8595_v48 = vunpack.i.l.bf16 %v8594_v42  ;;  %v13294_v9 = vpop.permute.xlu0 %8603  ;;  %8653 = vrot.lane.b32.xlu1 %v8652_v57, %s8779_s18  ;;  %v5125_v45 = vsel %vm489_vm0, %v8615_v14, %v8616_v18  ;;  %v15596_v16 = vmax.f32 %v15595_v43, 0.0 }
 0x9e6   : > { %v14796_v5 = vunpack.i.l.bf16 %v13294_v9  ;;  %8658 = vrot.lane.b32.xlu2 %v8657_v6, %s8782_s20  ;;  %v15606_v25 = vunpack.i.h.bf16 %v13144_v34 }
 0x9e7   : > { %v5118_v7 = vsel %vm489_vm0, %v15590_v36, %v8595_v48  ;;  %v5119_v59 = vsel %vm489_vm0, %v8595_v48, %v8596_v60  ;;  %v13309_v17 = vmax.f32 %v15591_v38, %v8596_v60  ;;  %v5644_v48 = vmax.f32 %v12899_v19, %v5536_v26  ;;  %8663 = vrot.lane.b32.xlu0 %v8662_v37, %s8782_s20 }
 0x9e8   : > { %v13313_v61 = vmax.f32 %v15593_v49, %v5118_v7  ;;  %v13317_v42 = vmax.f32 %v15594_v52, %v5119_v59  ;;  %v5537_v30 = vsel %vm963_vm2, %v8601_v3, %v14796_v5  ;;  %v13330_v36 = vmax.f32 %v15596_v16, %v5124_v31 }
 0x9e9   : > { %v5645_v60 = vmax.f32 %v12895_v8, %v5537_v30  ;;  %v15597_v3 = vmax.f32 %v12615_v55, 0.0  ;;  %v8606_v19 = vunpack.i.h.bf16 %v13294_v9 }
 0x9ea   : > { %v8672_v30 = vpack.i.bf16 %v13313_v61, %v12833_v40 }
 0x9eb   : > { %v5688_v7 = vpack.c.bf16 %v5645_v60, %v5644_v48  ;;  %v7622_v59 = vld [vmem:[#allocation3 + $0x38] sm:$0xf]  ;;  %v8252_v38 = vld [vmem:[#allocation3 + $0x3c] sm:$0xf]  ;;  %v13334_v57 = vmax.f32 %v15597_v3, %v5125_v45  ;;  %v8667_v48 = vpack.i.bf16 %v13276_v56, %v12908_v33  ;;  %v8677_v45 = vpack.i.bf16 %v13285_v11, %v13280_v1 }
 0x9ec   : > { %v13337_v14 = vpop.permute.xlu1 %8608  ;;  %v8255_v8 = vld [vmem:[#allocation3 + $0x50] sm:$0xf0]  ;;  %v7624_v26 = vld [vmem:[#allocation3 + $0x54] sm:$0xf0]  ;;  %v15599_v3 = vmax.f32 %v12870_v29, 0.0  ;;  %v15603_v29 = vmax.f32 %v12968_v44, 0.0 }
 0x9ed   : > { %5721 = vst [vmem:[#allocation3 + $0x70] sm:$0xff] %v5688_v7  ;;  %v14792_v37 = vunpack.i.h.bf16 %v13337_v14  ;;  %v8610_v6 = vunpack.i.l.bf16 %v13337_v14  ;;  %v8619_v31 = vpop.permute.xlu0 %8618  ;;  %v13341_v58 = vor.u32 %v8255_v8, %v7622_v59  ;;  %v13343_v49 = vor.u32 %v8252_v38, %v7624_v26  ;;  %8668 = vrot.lane.b32.xlu1 %v8667_v48, %s8782_s20  ;;  %v15600_v26 = vld [vmem:[#allocation48_spill] sm:$0xff] }
 0x9ee   : > { %v8621_v52 = vunpack.i.h.bf16 %v8619_v31  ;;  %v8620_v55 = vunpack.i.l.bf16 %v8619_v31  ;;  %v15598_v59 = vunpack.i.h.bf16 %v12946_v0  ;;  %8673 = vrot.lane.b32.xlu2 %v8672_v30, %s8782_s20 }
 0x9ef   : > { %v5542_v60 = vsel %vm963_vm2, %v8606_v19, %v8610_v6  ;;  %v5543_v43 = vsel %vm963_vm2, %v8610_v6, %v14792_v37  ;;  %6523 = vmatmul.bf16.gmra.mxu0 %v13341_v58  ;;  %6552 = vmatmul.bf16.gmra.mxu1 %v13343_v49  ;;  %v13365_v19 = vmax.f32 %v15599_v3, %v8616_v18  ;;  %v15601_v6 = vmax.f32 %v15600_v26, 0.0  ;;  %v7954_v3 = vld [vmem:[%s14356_s5 + $0x1f0] sm:$0xf]  ;;  %v8336_v26 = vld [vmem:[%s14356_s5 + $0x1f4] sm:$0xf0] }
 0x9f0   : > { %v5651_v16 = vmax.f32 %v12940_v54, %v5542_v60  ;;  %v5652_v7 = vmax.f32 %v12944_v53, %v5543_v43  ;;  %v5130_v38 = vsel %vm489_vm0, %v15598_v59, %v8620_v55  ;;  %v5131_v8 = vsel %vm489_vm0, %v8620_v55, %v8621_v52  ;;  %8678 = vrot.lane.b32.xlu0 %v8677_v45, %s8782_s20  ;;  %v7890_v59 = vld [vmem:[%s14356_s5 + $0x170] sm:$0xf] }
 0x9f1   : > { %v13370_v31 = vmax.f32 %v15601_v6, %v5130_v38  ;;  %v15602_v53 = vmax.f32 %v12668_v50, 0.0  ;;  %v13380_v18 = vmax.f32 %v15603_v29, %v8621_v52  ;;  %v8682_v55 = vpack.i.bf16 %v13309_v17, %v13317_v42  ;;  %v8320_v38 = vld [vmem:[%s14356_s5 + $0x174] sm:$0xf0]  ;;  %v7882_v6 = vld [vmem:[%s14356_s5 + $0x160] sm:$0xf] }
 0x9f2   : > { %v5692_v54 = vpack.c.bf16 %v5652_v7, %v5651_v16  ;;  %v8687_v45 = vpack.i.bf16 %v13330_v36, %v12954_v63  ;;  %v8697_v16 = vpack.i.bf16 %v13365_v19, %v13334_v57  ;;  %v7946_v29 = vld [vmem:[%s14356_s5 + $0x1e0] sm:$0xf] }
 0x9f3   : > { %v13375_v0 = vmax.f32 %v15602_v53, %v5131_v8  ;;  %v8692_v48 = vpack.i.bf16 %v13370_v31, %v12983_v12  ;;  %v7891_v8 = vor.u32 %v8320_v38, %v7890_v59  ;;  %v7955_v53 = vor.u32 %v8336_v26, %v7954_v3  ;;  %v8018_v59 = vld [vmem:[%s14356_s5 + $0x270] sm:$0xf]  ;;  %v8352_v38 = vld [vmem:[%s14356_s5 + $0x274] sm:$0xf0] }
 0x9f4   : > { %5725 = vst [vmem:[#allocation3 + $0x8c] sm:$0xff] %v5692_v54  ;;  %v7650_v50 = vld [vmem:[#allocation3 + $0x70] sm:$0xf]  ;;  %v8259_v44 = vld [vmem:[#allocation3 + $0x74] sm:$0xf] }
 0x9f5   : > { %8683 = vrot.lane.b32.xlu1 %v8682_v55, %s8782_s20  ;;  %v8702_v7 = vpack.i.bf16 %v13380_v18, %v13375_v0  ;;  %v8318_v54 = vld [vmem:[%s14356_s5 + $0x164] sm:$0xf0]  ;;  %6568 = vmatpush.bf16.msra.mxu3 %v7891_v8  ;;  %v8019_v8 = vor.u32 %v8352_v38, %v8018_v59  ;;  %v8082_v26 = vld [vmem:[%s14356_s5 + $0x2f0] sm:$0xf] }
 0x9f6   : > { %8688 = vrot.lane.b32.xlu2 %v8687_v45, %s8782_s20  ;;  %v8334_v55 = vld [vmem:[%s14356_s5 + $0x1e4] sm:$0xf0]  ;;  %6597 = vmatpush.bf16.msra.mxu2 %v7955_v53 }
 0x9f7   : > { %v7947_v45 = vor.u32 %v8334_v55, %v7946_v29  ;;  %v8314_v29 = vld [vmem:[%s14356_s5 + $0x144] sm:$0xf0]  ;;  %v7930_v55 = vld [vmem:[%s14356_s5 + $0x1c0] sm:$0xf]  ;;  %6626 = vmatpush.bf16.msrb.mxu0 %v8019_v8 }
 0x9f8   : > { %8693 = vrot.lane.b32.xlu0 %v8692_v48, %s8782_s20  ;;  %v7883_v48 = vor.u32 %v8318_v54, %v7882_v6  ;;  %v8368_v6 = vld [vmem:[%s14356_s5 + $0x2f4] sm:$0xf0]  ;;  %v7866_v54 = vld [vmem:[%s14356_s5 + $0x140] sm:$0xf] }
 0x9f9   : > { %v8083_v53 = vor.u32 %v8368_v6, %v8082_v26 }
 0x9fa   : > { %6569 = vmatpush.bf16.msra.mxu3 %v7883_v48  ;;  %6598 = vmatpush.bf16.msra.mxu2 %v7947_v45  ;;  %v8330_v48 = vld [vmem:[%s14356_s5 + $0x1c4] sm:$0xf0]  ;;  %v7867_v45 = vor.u32 %v8314_v29, %v7866_v54  ;;  %v8312_v54 = vld [vmem:[%s14356_s5 + $0x134] sm:$0xf0]  ;;  %v15604_v29 = vunpack.i.h.bf16 %v13117_v20  ;;  %v15605_v20 = vld [vmem:[#allocation141_spill] sm:$0xff] }
 0x9fb   : > { %v8262_v30 = vld [vmem:[#allocation3 + $0x88] sm:$0xf0]  ;;  %v7652_v52 = vld [vmem:[#allocation3 + $0x8c] sm:$0xf0]  ;;  %6655 = vmatpush.bf16.msra.mxu1 %v8083_v53  ;;  %v7922_v53 = vld [vmem:[%s14356_s5 + $0x1b0] sm:$0xf] }
 0x9fc   : > { %v13391_v60 = vor.u32 %v8262_v30, %v7650_v50  ;;  %v13393_v43 = vor.u32 %v8259_v44, %v7652_v52  ;;  %v7874_v30 = vld [vmem:[%s14356_s5 + $0x150] sm:$0xf]  ;;  %v8316_v44 = vld [vmem:[%s14356_s5 + $0x154] sm:$0xf0] }
 0x9fd   : > { %8698 = vrot.lane.b32.xlu1 %v8697_v16, %s8782_s20  ;;  %v7938_v52 = vld [vmem:[%s14356_s5 + $0x1d0] sm:$0xf]  ;;  %v7875_v16 = vor.u32 %v8316_v44, %v7874_v30  ;;  %v8010_v30 = vld [vmem:[%s14356_s5 + $0x260] sm:$0xf]  ;;  %v8350_v44 = vld [vmem:[%s14356_s5 + $0x264] sm:$0xf0] }
 0x9fe   : > { %8703 = vrot.lane.b32.xlu2 %v8702_v7, %s8782_s20  ;;  %v8332_v7 = vld [vmem:[%s14356_s5 + $0x1d4] sm:$0xf0]  ;;  %v8011_v59 = vor.u32 %v8350_v44, %v8010_v30  ;;  %v8002_v44 = vld [vmem:[%s14356_s5 + $0x250] sm:$0xf] }
 0x9ff   : > { %6528 = vmatmul.bf16.gmra.mxu0 %v13391_v60  ;;  %6557 = vmatmul.bf16.gmra.mxu1 %v13393_v43  ;;  %v7939_v3 = vor.u32 %v8332_v7, %v7938_v52  ;;  %v8074_v52 = vld [vmem:[%s14356_s5 + $0x2e0] sm:$0xf]  ;;  %v7931_v7 = vor.u32 %v8330_v48, %v7930_v55  ;;  %v8328_v30 = vld [vmem:[%s14356_s5 + $0x1b4] sm:$0xf0] }
 0xa00   : > { %6570 = vmatpush.bf16.msra.mxu3 %v7875_v16  ;;  %v8366_v16 = vld [vmem:[%s14356_s5 + $0x2e4] sm:$0xf0]  ;;  %6627 = vmatpush.bf16.msrb.mxu0 %v8011_v59 }
 0xa01   : > { %6599 = vmatpush.bf16.msra.mxu2 %v7939_v3  ;;  %v8075_v38 = vor.u32 %v8366_v16, %v8074_v52  ;;  %v7858_v3 = vld [vmem:[%s14356_s5 + $0x130] sm:$0xf]  ;;  %v8348_v52 = vld [vmem:[%s14356_s5 + $0x254] sm:$0xf0]  ;;  %v7923_v16 = vor.u32 %v8328_v30, %v7922_v53  ;;  %v7914_v53 = vld [vmem:[%s14356_s5 + $0x1a0] sm:$0xf] }
 0xa03   : > { %6656 = vmatpush.bf16.msra.mxu1 %v8075_v38  ;;  %v8003_v38 = vor.u32 %v8348_v52, %v8002_v44  ;;  %v8346_v52 = vld [vmem:[%s14356_s5 + $0x244] sm:$0xf0] }
 0xa04   : > { %6571 = vmatpush.bf16.msra.mxu3 %v7867_v45  ;;  %v7859_v45 = vor.u32 %v8312_v54, %v7858_v3  ;;  %v8364_v3 = vld [vmem:[%s14356_s5 + $0x2d4] sm:$0xf0]  ;;  %v7850_v54 = vld [vmem:[%s14356_s5 + $0x120] sm:$0xf] }
 0xa05   : > { %6600 = vmatpush.bf16.msra.mxu2 %v7931_v7  ;;  %6628 = vmatpush.bf16.msrb.mxu0 %v8003_v38 }
 0xa08   : > { %6572 = vmatpush.bf16.msra.mxu3 %v7859_v45  ;;  %v7994_v45 = vld [vmem:[%s14356_s5 + $0x240] sm:$0xf] }
 0xa09   : > { %6601 = vmatpush.bf16.msra.mxu2 %v7923_v16 }
 0xa2e   : > { %v13427_v50 = vpop.permute.xlu2 %8628 }
 0xa36   : > { %v13477_v8 = vpop.permute.xlu2 %8643 }
 0xa37   : > { %v14795_v26 = vunpack.i.h.bf16 %v13477_v8  ;;  %v8645_v6 = vunpack.i.l.bf16 %v13477_v8 }
 0xa39   : > { %v5520_v55 = vsel %vm963_vm2, %v15604_v29, %v8645_v6  ;;  %v5521_v48 = vsel %vm963_vm2, %v8645_v6, %v14795_v26  ;;  %v8066_v6 = vld [vmem:[%s14356_s5 + $0x2d0] sm:$0xf] }
 0xa3a   : > { %v5625_v7 = vmax.f32 %v15605_v20, %v5520_v55  ;;  %v5626_v59 = vmax.f32 %v15578_v21, %v5521_v48  ;;  %v8067_v29 = vor.u32 %v8364_v3, %v8066_v6  ;;  %v8310_v21 = vld [vmem:[%s14356_s5 + $0x124] sm:$0xf0]  ;;  %v8058_v20 = vld [vmem:[%s14356_s5 + $0x2c0] sm:$0xf]  ;;  %v7995_v6 = vor.u32 %v8346_v52, %v7994_v45  ;;  %v8324_v52 = vld [vmem:[%s14356_s5 + $0x194] sm:$0xf0] }
 0xa3b   : > { %v8326_v55 = vld [vmem:[%s14356_s5 + $0x1a4] sm:$0xf0]  ;;  %v7851_v30 = vor.u32 %v8310_v21, %v7850_v54  ;;  %v14791_v54 = vunpack.i.l.bf16 %v13427_v50 }
 0xa3c   : > { %v5677_v48 = vpack.c.bf16 %v5626_v59, %v5625_v7  ;;  %v7915_v44 = vor.u32 %v8326_v55, %v7914_v53  ;;  %6657 = vmatpush.bf16.msra.mxu1 %v8067_v29  ;;  %v8362_v7 = vld [vmem:[%s14356_s5 + $0x2c4] sm:$0xf0]  ;;  %6629 = vmatpush.bf16.msrb.mxu0 %v7995_v6  ;;  %v7842_v55 = vld [vmem:[%s14356_s5 + $0x110] sm:$0xf]  ;;  %v8344_v6 = vld [vmem:[%s14356_s5 + $0x234] sm:$0xf0] }
 0xa3d   : > { %v8059_v16 = vor.u32 %v8362_v7, %v8058_v20  ;;  %6573 = vmatpush.bf16.msra.mxu3 %v7851_v30  ;;  %v7906_v30 = vld [vmem:[%s14356_s5 + $0x190] sm:$0xf] }
 0xa3e   : > { %5710 = vst [vmem:[#allocation3 + $0x24] sm:$0xff] %v5677_v48  ;;  %v8624_v3 = vpop.permute.xlu1 %8623  ;;  %6602 = vmatpush.bf16.msra.mxu2 %v7915_v44  ;;  %v8308_v48 = vld [vmem:[%s14356_s5 + $0x114] sm:$0xf0]  ;;  %v7986_v20 = vld [vmem:[%s14356_s5 + $0x230] sm:$0xf] }
 0xa3f   : > { %v8626_v21 = vunpack.i.h.bf16 %v8624_v3  ;;  %v8625_v53 = vunpack.i.l.bf16 %v8624_v3 }
 0xa40   : > { %v13537_v59 = vpop.permute.xlu2 %8658  ;;  %6658 = vmatpush.bf16.msra.mxu1 %v8059_v16 }
 0xa41   : > { %v8661_v38 = vunpack.i.h.bf16 %v13537_v59  ;;  %v5549_v44 = vsel %vm963_vm2, %v8626_v21, %v14791_v54  ;;  %v5548_v45 = vsel %vm963_vm2, %v8625_v53, %v8626_v21  ;;  %v7907_v54 = vor.u32 %v8324_v52, %v7906_v30  ;;  %v8050_v21 = vld [vmem:[%s14356_s5 + $0x2b0] sm:$0xf]  ;;  %v8360_v53 = vld [vmem:[%s14356_s5 + $0x2b4] sm:$0xf0]  ;;  %v7898_v30 = vld [vmem:[%s14356_s5 + $0x180] sm:$0xf] }
 0xa42   : > { %v5659_v16 = vmax.f32 %v13141_v24, %v5549_v44  ;;  %v5658_v3 = vmax.f32 %v13137_v39, %v5548_v45  ;;  %v8051_v24 = vor.u32 %v8360_v53, %v8050_v21  ;;  %v8306_v39 = vld [vmem:[%s14356_s5 + $0x104] sm:$0xf0]  ;;  %v8631_v53 = vunpack.i.h.bf16 %v13427_v50 }
 0xa43   : > { %v5622_v29 = vmax.f32 %v13241_v35, %v8661_v38  ;;  %v7843_v35 = vor.u32 %v8308_v48, %v7842_v55  ;;  %v7834_v55 = vld [vmem:[%s14356_s5 + $0x100] sm:$0xf]  ;;  %v8660_v48 = vunpack.i.l.bf16 %v13537_v59  ;;  %v8322_v44 = vld [vmem:[%s14356_s5 + $0x184] sm:$0xf0]  ;;  %6603 = vmatpush.bf16.msra.mxu2 %v7907_v54 }
 0xa44   : > { %v5696_v45 = vpack.c.bf16 %v5659_v16, %v5658_v3  ;;  %v8342_v21 = vld [vmem:[%s14356_s5 + $0x224] sm:$0xf0]  ;;  %6659 = vmatpush.bf16.msra.mxu1 %v8051_v24  ;;  %v8042_v3 = vld [vmem:[%s14356_s5 + $0x2a0] sm:$0xf] }
 0xa45   : > { %v5675_v7 = vpack.c.bf16 %v5622_v29, %v5622_v29  ;;  %6574 = vmatpush.bf16.msra.mxu3 %v7843_v35  ;;  %v7987_v29 = vor.u32 %v8344_v6, %v7986_v20  ;;  %v7835_v35 = vor.u32 %v8306_v39, %v7834_v55  ;;  %v7899_v20 = vor.u32 %v8322_v44, %v7898_v30  ;;  %v7978_v6 = vld [vmem:[%s14356_s5 + $0x220] sm:$0xf]  ;;  %v8358_v55 = vld [vmem:[%s14356_s5 + $0x2a4] sm:$0xf0] }
 0xa46   : > { %v7979_v54 = vor.u32 %v8342_v21, %v7978_v6  ;;  %5729 = vst [vmem:[#allocation3 + $0xa8] sm:$0xff] %v5696_v45  ;;  %v8043_v44 = vor.u32 %v8358_v55, %v8042_v3  ;;  %v5517_v24 = vsel %vm963_vm2, %v8660_v48, %v8661_v38  ;;  %v8340_v45 = vld [vmem:[%s14356_s5 + $0x214] sm:$0xf0]  ;;  %v8034_v3 = vld [vmem:[%s14356_s5 + $0x290] sm:$0xf] }
 0xa47   : > { %5708 = vst.msk [vmem:[#allocation3 + $0x18] sm:$0xf] %vm5707_vm10, %v5675_v7  ;;  %6630 = vmatpush.bf16.msrb.mxu0 %v7987_v29  ;;  %v7970_v29 = vld [vmem:[%s14356_s5 + $0x210] sm:$0xf]  ;;  %v8356_v55 = vld [vmem:[%s14356_s5 + $0x294] sm:$0xf0]  ;;  %6604 = vmatpush.bf16.msra.mxu2 %v7899_v20 }
 0xa48   : > { %v13597_v16 = vpop.permute.xlu2 %8673  ;;  %6660 = vmatpush.bf16.msra.mxu1 %v8043_v44  ;;  %v7971_v5 = vor.u32 %v8340_v45, %v7970_v29  ;;  %v8035_v34 = vor.u32 %v8356_v55, %v8034_v3  ;;  %v8026_v20 = vld [vmem:[%s14356_s5 + $0x280] sm:$0xf] }
 0xa49   : > { %v13586_v52 = vpop.permute.xlu0 %8633  ;;  %v8676_v39 = vunpack.i.h.bf16 %v13597_v16  ;;  %v8675_v30 = vunpack.i.l.bf16 %v13597_v16  ;;  %6575 = vmatpush.bf16.msra.mxu3 %v7835_v35 }
 0xa4a   : > { %v14794_v37 = vunpack.i.h.bf16 %v13586_v52  ;;  %v8635_v7 = vunpack.i.l.bf16 %v13586_v52 }
 0xa4b   : > { %v5532_v35 = vsel %vm963_vm2, %v15606_v25, %v8675_v30  ;;  %6631 = vmatpush.bf16.msrb.mxu0 %v7979_v54  ;;  %v8338_v25 = vld [vmem:[%s14356_s5 + $0x204] sm:$0xf0] }
 0xa4c   : > { %v5554_v6 = vsel %vm963_vm2, %v8631_v53, %v8635_v7  ;;  %v5555_v21 = vsel %vm963_vm2, %v8635_v7, %v14794_v37  ;;  %v5533_v7 = vsel %vm963_vm2, %v8675_v30, %v8676_v39  ;;  %v5639_v37 = vmax.f32 %v12848_v46, %v5532_v35  ;;  %6661 = vmatpush.bf16.msra.mxu1 %v8035_v34 }
 0xa4d   : > { %v5665_v38 = vmax.f32 %v13178_v27, %v5554_v6  ;;  %v5666_v53 = vmax.f32 %v13152_v51, %v5555_v21  ;;  %v5640_v26 = vmax.f32 %v12833_v40, %v5533_v7  ;;  %v7962_v27 = vld [vmem:[%s14356_s5 + $0x200] sm:$0xf]  ;;  %v8354_v40 = vld [vmem:[%s14356_s5 + $0x284] sm:$0xf0]  ;;  %v5621_v30 = vmax.f32 %v13229_v4, %v5517_v24 }
 0xa4e   : > { %v7963_v55 = vor.u32 %v8338_v25, %v7962_v27  ;;  %v15608_v35 = vmax.f32 %v13115_v15, 0.0  ;;  %v15613_v15 = vunpack.i.l.bf16 %v13294_v9 }
 0xa4f   : > { %v5700_v51 = vpack.c.bf16 %v5666_v53, %v5665_v38  ;;  %v5685_v46 = vpack.c.bf16 %v5640_v26, %v5639_v37  ;;  %v8639_v54 = vpop.permute.xlu1 %8638  ;;  %6632 = vmatpush.bf16.msrb.mxu0 %v7971_v5  ;;  %v8027_v38 = vor.u32 %v8354_v40, %v8026_v20  ;;  %v15607_v26 = vunpack.i.l.bf16 %v13102_v2  ;;  %v15611_v2 = vld [vmem:[#allocation111_spill] sm:$0xff] }
 0xa50   : > { %v8641_v29 = vunpack.i.h.bf16 %v8639_v54  ;;  %v8640_v6 = vunpack.i.l.bf16 %v8639_v54  ;;  %v13649_v3 = vpop.permute.xlu2 %8688  ;;  %v15609_v5 = vunpack.i.l.bf16 %v13148_v28  ;;  %v15612_v40 = vmax.f32 %v15611_v2, 0.0 }
 0xa51   : > { %5733 = vst [vmem:[#allocation3 + $0xc4] sm:$0xff] %v5700_v51  ;;  %v8649_v44 = vpop.permute.xlu0 %8648  ;;  %v8691_v53 = vunpack.i.h.bf16 %v13649_v3  ;;  %v8690_v37 = vunpack.i.l.bf16 %v13649_v3  ;;  %6662 = vmatpush.bf16.msra.mxu1 %v8027_v38 }
 0xa52   : > { %5718 = vst [vmem:[#allocation3 + $0x5c] sm:$0xff] %v5685_v46  ;;  %v8651_v21 = vunpack.i.h.bf16 %v8649_v44  ;;  %v8650_v45 = vunpack.i.l.bf16 %v8649_v44  ;;  %v5516_v4 = vsel %vm963_vm2, %v8641_v29, %v8660_v48  ;;  %v5514_v24 = vsel %vm963_vm2, %v15607_v26, %v8640_v6  ;;  %v15614_v44 = vld [vmem:[#allocation136_spill] sm:$0xff] }
 0xa53   : > { %v5620_v34 = vmax.f32 %v13225_v23, %v5516_v4  ;;  %v6519_v25 = vpop.f32.mrf.mxu0  ;;  %v6548_v59 = vpop.f32.mrf.mxu1  ;;  %v15610_v48 = vmax.f32 %v12423_v62, 0.0  ;;  %v5538_v28 = vsel %vm963_vm2, %v15613_v15, %v8690_v37  ;;  %v5539_v54 = vsel %vm963_vm2, %v8690_v37, %v8691_v53  ;;  %6633 = vmatpush.bf16.msrb.mxu0 %v7963_v55  ;;  %v15615_v4 = vld [vmem:[#allocation142_spill] sm:$0xff]  ;;  %v8266_v55 = vld [vmem:[#allocation3 + $0xac] sm:$0xf] }
 0xa54   : > { %v13661_v7 = vmax.f32 %v15608_v35, %v8651_v21  ;;  %v5136_v27 = vsel %vm489_vm0, %v15609_v5, %v8650_v45  ;;  %v5137_v51 = vsel %vm489_vm0, %v8650_v45, %v8651_v21  ;;  %v5646_v23 = vmax.f32 %v15614_v44, %v5538_v28  ;;  %v7678_v5 = vld [vmem:[#allocation3 + $0xa8] sm:$0xf] }
 0xa55   : > { %v13670_v20 = vmax.f32 %v15610_v48, %v5136_v27  ;;  %v13674_v46 = vmax.f32 %v15612_v40, %v5137_v51  ;;  %v5647_v21 = vmax.f32 %v12954_v63, %v5539_v54  ;;  %v5674_v45 = vpack.c.bf16 %v5621_v30, %v5620_v34 }
 0xa56   : > { %v5515_v62 = vsel %vm963_vm2, %v8640_v6, %v8641_v29  ;;  %v5618_v26 = vmax.f32 %v15615_v4, %v5514_v24  ;;  %v13686_v35 = vadd.f32 %v6548_v59, %v6519_v25  ;;  %v15616_v59 = vmax.f32 %v13126_v47, 0.0  ;;  %v15620_v4 = vld [vmem:[#allocation166_spill] sm:$0xff] }
 0xa57   : > { %v5689_v9 = vpack.c.bf16 %v5647_v21, %v5646_v23  ;;  %5706 = vst [vmem:[#allocation3 + $0x10] sm:$0xff] %v5674_v45  ;;  %v5619_v27 = vmax.f32 %v15579_v41, %v5515_v62  ;;  %v8654_v51 = vpop.permute.xlu1 %8653  ;;  %v8717_v41 = vpack.i.bf16 %v13661_v7, %v13674_v46  ;;  %v15617_v54 = vunpack.i.h.bf16 %v13477_v8  ;;  %v15618_v21 = vld [vmem:[#allocation188_spill] sm:$0xff] }
 0xa58   : > { %v8269_v37 = vld [vmem:[#allocation3 + $0xc0] sm:$0xf0]  ;;  %v7680_v48 = vld [vmem:[#allocation3 + $0xc4] sm:$0xf0]  ;;  %v8656_v40 = vunpack.i.h.bf16 %v8654_v51  ;;  %v8655_v63 = vunpack.i.l.bf16 %v8654_v51  ;;  %v13691_v34 = vpop.permute.xlu2 %8703  ;;  %v15619_v45 = vunpack.i.h.bf16 %v15618_v21 }
 0xa59   : > { %v8664_v2 = vpop.permute.xlu0 %8663  ;;  %v13689_v30 = vor.u32 %v8269_v37, %v7678_v5  ;;  %5722 = vst [vmem:[#allocation3 + $0x78] sm:$0xff] %v5689_v9  ;;  %v5673_v29 = vpack.c.bf16 %v5619_v27, %v5618_v26  ;;  %v13693_v38 = vor.u32 %v8266_v55, %v7680_v48  ;;  %v8706_v25 = vunpack.i.h.bf16 %v13691_v34  ;;  %8718 = vrot.lane.b32.xlu2 %v8717_v41, %s8782_s20  ;;  %v15621_v51 = vld [vmem:[#allocation104_spill] sm:$0xff] }
 0xa5a   : > { %v8666_v6 = vunpack.i.h.bf16 %v8664_v2  ;;  %v8665_v24 = vunpack.i.l.bf16 %v8664_v2  ;;  %v13700_v15 = vmax.f32 %v15616_v59, %v8656_v40  ;;  %v5142_v62 = vsel %vm489_vm0, %v15619_v45, %v8655_v63 }
 0xa5b   : > { %6533 = vmatmul.bf16.gmra.mxu0 %v13689_v30  ;;  %5705 = vst [vmem:[#allocation3 + $0x8] sm:$0xff] %v5673_v29  ;;  %v5657_v5 = vmax.f32 %v13380_v18, %v8706_v25  ;;  %6562 = vmatmul.bf16.gmra.mxu1 %v13693_v38  ;;  %v15622_v37 = vmax.f32 %v15621_v51, 0.0  ;;  %v15623_v2 = vmax.f32 %v15585_v22, 0.0  ;;  %v8705_v18 = vunpack.i.l.bf16 %v13691_v34 }
 0xa5c   : > { %v5629_v28 = vmax.f32 %v13186_v32, %v8666_v6  ;;  %v5522_v44 = vsel %vm963_vm2, %v15617_v54, %v8665_v24  ;;  %v5523_v23 = vsel %vm963_vm2, %v8665_v24, %v8666_v6  ;;  %v5143_v32 = vsel %vm489_vm0, %v8655_v63, %v8656_v40  ;;  %v13728_v6 = vpop.f32.mrf.mxu0  ;;  %v15624_v24 = vld [vmem:[#allocation164_spill] sm:$0xff] }
 0xa5d   : > { %v5627_v26 = vmax.f32 %v15620_v4, %v5522_v44  ;;  %v5628_v47 = vmax.f32 %v13204_v13, %v5523_v23  ;;  %v5695_v27 = vpack.c.bf16 %v5657_v5, %v5657_v5  ;;  %v13719_v48 = vmax.f32 %v15622_v37, %v5142_v62 }
 0xa5e   : > { %v5679_v9 = vpack.c.bf16 %v5629_v28, %v5629_v28  ;;  %v13723_v55 = vmax.f32 %v15623_v2, %v5143_v32  ;;  %v8707_v41 = vpack.i.bf16 %v13670_v20, %v15624_v24  ;;  %v13732_v28 = vpop.f32.mrf.mxu1  ;;  %v15625_v54 = vunpack.i.l.bf16 %v13246_v10 }
 0xa5f   : > { %v5678_v8 = vpack.c.bf16 %v5628_v47, %v5627_v26  ;;  %v8669_v13 = vpop.permute.xlu1 %8668  ;;  %5728 = vst.msk [vmem:[#allocation3 + $0xa4] sm:$0xf] %vm5707_vm10, %v5695_v27  ;;  %v15626_v47 = vld [vmem:[#allocation189_spill] sm:$0xff]  ;;  %v7604_v27 = vld [vmem:[#allocation3 + $0x24] sm:$0xf0] }
 0xa60   : > { %5712 = vst.msk [vmem:[#allocation3 + $0x34] sm:$0xf] %vm5707_vm10, %v5679_v9  ;;  %v8671_v40 = vunpack.i.h.bf16 %v8669_v13  ;;  %v8670_v63 = vunpack.i.l.bf16 %v8669_v13  ;;  %8708 = vrot.lane.b32.xlu0 %v8707_v41, %s8782_s20  ;;  %v8247_v41 = vld [vmem:[#allocation3 + $0x14] sm:$0xf] }
 0xa61   : > { %5711 = vst [vmem:[#allocation3 + $0x2c] sm:$0xff] %v5678_v8  ;;  %v8249_v8 = vld [vmem:[#allocation3 + $0x20] sm:$0xf0] }
 0xa62   : > { %v8679_v29 = vpop.permute.xlu0 %8678  ;;  %v5526_v44 = vsel %vm963_vm2, %v15625_v54, %v8670_v63  ;;  %v5527_v23 = vsel %vm963_vm2, %v8670_v63, %v8671_v40  ;;  %v7602_v21 = vld [vmem:[#allocation3 + $0x8] sm:$0xf]  ;;  %v8246_v45 = vld [vmem:[#allocation3 + $0xc] sm:$0xf]  ;;  %v7610_v63 = vld [vmem:[#allocation3 + $0x10] sm:$0xf] }
 0xa63   : > { %v8681_v59 = vunpack.i.h.bf16 %v8679_v29  ;;  %v8680_v22 = vunpack.i.l.bf16 %v8679_v29  ;;  %v5632_v5 = vmax.f32 %v15626_v47, %v5526_v44  ;;  %v5633_v32 = vmax.f32 %v12908_v33, %v5527_v23 }
 0xa64   : > { %v13746_v37 = vor.u32 %v8249_v8, %v7602_v21  ;;  %v13748_v2 = vor.u32 %v8246_v45, %v7604_v27  ;;  %v8722_v33 = vpack.i.bf16 %v13700_v15, %v13723_v55  ;;  %v15628_v27 = vunpack.i.h.bf16 %v13337_v14 }
 0xa65   : > { %v5636_v62 = vmax.f32 %v13285_v11, %v8681_v59  ;;  %v5529_v4 = vsel %vm963_vm2, %v8680_v22, %v8681_v59  ;;  %v5528_v26 = vsel %vm963_vm2, %v8671_v40, %v8680_v22  ;;  %v15627_v11 = vld [vmem:[#allocation180_spill] sm:$0xff]  ;;  %v5681_v40 = vpack.c.bf16 %v5633_v32, %v5632_v5 }
 0xa66   : > { %v5635_v9 = vmax.f32 %v13280_v1, %v5529_v4  ;;  %v5634_v10 = vmax.f32 %v13276_v56, %v5528_v26  ;;  %v8712_v13 = vpack.i.bf16 %v13719_v48, %v15627_v11  ;;  %v5547_v56 = vsel %vm963_vm2, %v8705_v18, %v8706_v25  ;;  %6576 = vmatmul.bf16.vlgmr.msra.gmra.mxu3 %v13746_v37 }
 0xa67   : > { %v5683_v51 = vpack.c.bf16 %v5636_v62, %v5636_v62  ;;  %6605 = vmatmul.bf16.vlgmr.msra.gmra.mxu2 %v13748_v2  ;;  %v8684_v1 = vpop.permute.xlu1 %8683  ;;  %5714 = vst [vmem:[#allocation3 + $0x40] sm:$0xff] %v5681_v40 }
 0xa68   : > { %v5682_v29 = vpack.c.bf16 %v5635_v9, %v5634_v10  ;;  %v8250_v59 = vld [vmem:[#allocation3 + $0x28] sm:$0xf0]  ;;  %v7612_v22 = vld [vmem:[#allocation3 + $0x2c] sm:$0xf0]  ;;  %8713 = vrot.lane.b32.xlu1 %v8712_v13, %s8782_s20  ;;  %v8686_v54 = vunpack.i.h.bf16 %v8684_v1  ;;  %v8685_v44 = vunpack.i.l.bf16 %v8684_v1  ;;  %v5656_v9 = vmax.f32 %v13375_v0, %v5547_v56  ;;  %8723 = vrot.lane.b32.xlu0 %v8722_v33, %s8782_s20 }
 0xa69   : > { %5716 = vst.msk [vmem:[#allocation3 + $0x50] sm:$0xf] %vm5707_vm10, %v5683_v51  ;;  %v13761_v23 = vor.u32 %v8250_v59, %v7610_v63  ;;  %v13763_v25 = vor.u32 %v8247_v41, %v7612_v22  ;;  %v15629_v0 = vld [vmem:[#allocation133_spill] sm:$0xff] }
 0xa6a   : > { %5715 = vst [vmem:[#allocation3 + $0x48] sm:$0xff] %v5682_v29  ;;  %v8694_v21 = vpop.permute.xlu0 %8693  ;;  %v5643_v26 = vmax.f32 %v13309_v17, %v8686_v54  ;;  %v5534_v47 = vsel %vm963_vm2, %v8676_v39, %v8685_v44  ;;  %v5535_v10 = vsel %vm963_vm2, %v8685_v44, %v8686_v54  ;;  %v8256_v54 = vld [vmem:[#allocation3 + $0x58] sm:$0xf0]  ;;  %v7632_v44 = vld [vmem:[#allocation3 + $0x5c] sm:$0xf0] }
 0xa6b   : > { %v8696_v62 = vunpack.i.h.bf16 %v8694_v21  ;;  %v8695_v4 = vunpack.i.l.bf16 %v8694_v21  ;;  %6634 = vmatmul.bf16.vlgmr.msrb.gmra.mxu0 %v13761_v23  ;;  %v5641_v32 = vmax.f32 %v13313_v61, %v5534_v47  ;;  %6663 = vmatmul.bf16.vlgmr.msra.gmra.mxu1 %v13763_v25  ;;  %v5642_v40 = vmax.f32 %v13317_v42, %v5535_v10 }
 0xa6c   : > { %v6524_v45 = vpop.f32.mrf.mxu0  ;;  %v6553_v5 = vpop.f32.mrf.mxu1  ;;  %v5687_v51 = vpack.c.bf16 %v5643_v26, %v5643_v26 }
 0xa6d   : > { %v13774_v8 = vadd.f32 %v6553_v5, %v6524_v45  ;;  %v5544_v17 = vsel %vm963_vm2, %v15628_v27, %v8695_v4  ;;  %v5545_v16 = vsel %vm963_vm2, %v8695_v4, %v8696_v62  ;;  %v5546_v39 = vsel %vm963_vm2, %v8696_v62, %v8705_v18 }
 0xa6e   : > { %v5653_v13 = vmax.f32 %v15629_v0, %v5544_v17  ;;  %v5654_v29 = vmax.f32 %v12983_v12, %v5545_v16  ;;  %v5655_v61 = vmax.f32 %v13370_v31, %v5546_v39  ;;  %5720 = vst.msk [vmem:[#allocation3 + $0x6c] sm:$0xf] %vm5707_vm10, %v5687_v51  ;;  %v5686_v41 = vpack.c.bf16 %v5642_v40, %v5641_v32  ;;  %v7630_v18 = vld [vmem:[#allocation3 + $0x40] sm:$0xf]  ;;  %v8253_v1 = vld [vmem:[#allocation3 + $0x44] sm:$0xf] }
 0xa6f   : > { %v8699_v56 = vpop.permute.xlu1 %8698  ;;  %v13800_v62 = vor.u32 %v8256_v54, %v7630_v18  ;;  %v13802_v4 = vor.u32 %v8253_v1, %v7632_v44  ;;  %v7658_v16 = vld [vmem:[#allocation3 + $0x78] sm:$0xf]  ;;  %v8260_v39 = vld [vmem:[#allocation3 + $0x7c] sm:$0xf]  ;;  %v8285_v44 = vld [vmem:[%s14356_s5 + $0x64] sm:$0xf] }
 0xa70   : > { %v5693_v14 = vpack.c.bf16 %v5654_v29, %v5653_v13  ;;  %v5694_v63 = vpack.c.bf16 %v5656_v9, %v5655_v61  ;;  %v8701_v34 = vunpack.i.h.bf16 %v8699_v56  ;;  %v8700_v33 = vunpack.i.l.bf16 %v8699_v56  ;;  %5719 = vst [vmem:[#allocation3 + $0x64] sm:$0xff] %v5686_v41  ;;  %v8090_v41 = vld [vmem:[%s14356_s5 + $0x300] sm:$0xf]  ;;  %v8370_v56 = vld [vmem:[%s14356_s5 + $0x304] sm:$0xf0] }
 0xa72   : > { %5726 = vst [vmem:[#allocation3 + $0x94] sm:$0xff] %v5693_v14  ;;  %v5650_v12 = vmax.f32 %v13365_v19, %v8701_v34  ;;  %v5540_v42 = vsel %vm963_vm2, %v8691_v53, %v8700_v33  ;;  %v5541_v31 = vsel %vm963_vm2, %v8700_v33, %v8701_v34  ;;  %v7638_v53 = vld [vmem:[#allocation3 + $0x48] sm:$0xf]  ;;  %v8091_v34 = vor.u32 %v8370_v56, %v8090_v41  ;;  %v8315_v41 = vld [vmem:[%s14356_s5 + $0x154] sm:$0xf] }
 0xa73   : > { %5727 = vst [vmem:[#allocation3 + $0x9c] sm:$0xff] %v5694_v63  ;;  %v5648_v21 = vmax.f32 %v13330_v36, %v5540_v42  ;;  %v5649_v45 = vmax.f32 %v13334_v57, %v5541_v31  ;;  %v8254_v36 = vld [vmem:[#allocation3 + $0x4c] sm:$0xf]  ;;  %v8287_v42 = vld [vmem:[%s14356_s5 + $0x74] sm:$0xf] }
 0xa74   : > { %v13789_v59 = vpop.f32.mrf.mxu0  ;;  %v13796_v22 = vpop.f32.mrf.mxu1  ;;  %v5691_v19 = vpack.c.bf16 %v5650_v12, %v5650_v12  ;;  %6691 = vmatpush.bf16.msrb.mxu3 %v8091_v34  ;;  %v7764_v31 = vld [vmem:[%s14356_s5 + $0x78] sm:$0xf0] }
 0xa75   : > { %v5690_v26 = vpack.c.bf16 %v5649_v45, %v5648_v21  ;;  %v7767_v54 = vor.u32 %v8287_v42, %v7764_v31  ;;  %v8303_v21 = vld [vmem:[%s14356_s5 + $0xf4] sm:$0xf]  ;;  %v7876_v56 = vld [vmem:[%s14356_s5 + $0x158] sm:$0xf0]  ;;  %v7740_v42 = vld [vmem:[%s14356_s5 + $0x48] sm:$0xf0] }
 0xa76   : > { %5724 = vst.msk [vmem:[#allocation3 + $0x88] sm:$0xf] %vm5707_vm10, %v5691_v19  ;;  %6581 = vmatmul.bf16.gmra.mxu3 %v13800_v62  ;;  %v7828_v19 = vld [vmem:[%s14356_s5 + $0xf8] sm:$0xf0]  ;;  %v8297_v31 = vld [vmem:[%s14356_s5 + $0xc4] sm:$0xf] }
 0xa77   : > { %5723 = vst [vmem:[#allocation3 + $0x80] sm:$0xff] %v5690_v26  ;;  %6610 = vmatmul.bf16.gmra.mxu2 %v13802_v4  ;;  %v8257_v5 = vld [vmem:[#allocation3 + $0x60] sm:$0xf0]  ;;  %v7640_v9 = vld [vmem:[#allocation3 + $0x64] sm:$0xf0] }
 0xa78   : > { %v13809_v10 = vor.u32 %v8257_v5, %v7638_v53  ;;  %v13811_v32 = vor.u32 %v8254_v36, %v7640_v9  ;;  %6713 = vmatpush.bf16.msrb.mxu2 %v7767_v54  ;;  %v8319_v26 = vld [vmem:[%s14356_s5 + $0x174] sm:$0xf]  ;;  %v7831_v53 = vor.u32 %v8303_v21, %v7828_v19  ;;  %v8301_v5 = vld [vmem:[%s14356_s5 + $0xe4] sm:$0xf]  ;;  %v7820_v36 = vld [vmem:[%s14356_s5 + $0xe8] sm:$0xf0] }
 0xa79   : > { %v8263_v27 = vld [vmem:[#allocation3 + $0x90] sm:$0xf0]  ;;  %v7660_v17 = vld [vmem:[#allocation3 + $0x94] sm:$0xf0]  ;;  %v7868_v21 = vld [vmem:[%s14356_s5 + $0x148] sm:$0xf0] }
 0xa7a   : > { %v13815_v51 = vor.u32 %v8263_v27, %v7658_v16  ;;  %v13817_v0 = vor.u32 %v8260_v39, %v7660_v17  ;;  %v8264_v61 = vld [vmem:[#allocation3 + $0x98] sm:$0xf0]  ;;  %v7668_v40 = vld [vmem:[#allocation3 + $0x9c] sm:$0xf0]  ;;  %v8317_v9 = vld [vmem:[%s14356_s5 + $0x164] sm:$0xf]  ;;  %6742 = vmatpush.bf16.msra.mxu0 %v7831_v53  ;;  %v7823_v39 = vor.u32 %v8301_v5, %v7820_v36 }
 0xa7b   : > { %6639 = vmatmul.bf16.gmra.mxu0 %v13809_v10  ;;  %6668 = vmatmul.bf16.gmra.mxu1 %v13811_v32  ;;  %v7884_v27 = vld [vmem:[%s14356_s5 + $0x168] sm:$0xf0]  ;;  %v8283_v17 = vld [vmem:[%s14356_s5 + $0x54] sm:$0xf]  ;;  %v7748_v16 = vld [vmem:[%s14356_s5 + $0x58] sm:$0xf0] }
 0xa7c   : > { %v6529_v3 = vpop.f32.mrf.mxu0  ;;  %v6558_v47 = vpop.f32.mrf.mxu1  ;;  %v7732_v5 = vld [vmem:[%s14356_s5 + $0x38] sm:$0xf0]  ;;  %v8295_v36 = vld [vmem:[%s14356_s5 + $0xb4] sm:$0xf] }
 0xa7d   : > { %v13807_v57 = vadd.f32 %v6558_v47, %v6529_v3  ;;  %v7892_v3 = vld [vmem:[%s14356_s5 + $0x178] sm:$0xf0] }
 0xa7e   : > { %v7666_v13 = vld [vmem:[#allocation3 + $0x80] sm:$0xf]  ;;  %v8261_v29 = vld [vmem:[#allocation3 + $0x84] sm:$0xf]  ;;  %v7895_v47 = vor.u32 %v8319_v26, %v7892_v3  ;;  %6743 = vmatpush.bf16.msra.mxu0 %v7823_v39 }
 0xa7f   : > { %v13821_v14 = vor.u32 %v8264_v61, %v7666_v13  ;;  %v13823_v63 = vor.u32 %v8261_v29, %v7668_v40  ;;  %v7887_v13 = vor.u32 %v8317_v9, %v7884_v27  ;;  %v7751_v29 = vor.u32 %v8283_v17, %v7748_v16  ;;  %v8299_v61 = vld [vmem:[%s14356_s5 + $0xd4] sm:$0xf]  ;;  %v7812_v40 = vld [vmem:[%s14356_s5 + $0xd8] sm:$0xf0] }
 0xa80   : > { %6771 = vmatpush.bf16.msrb.mxu1 %v7895_v47  ;;  %v7815_v34 = vor.u32 %v8299_v61, %v7812_v40  ;;  %v8279_v47 = vld [vmem:[%s14356_s5 + $0x34] sm:$0xf]  ;;  %v7796_v9 = vld [vmem:[%s14356_s5 + $0xb8] sm:$0xf0]  ;;  %v8277_v61 = vld [vmem:[%s14356_s5 + $0x24] sm:$0xf] }
 0xa81   : > { %v8311_v27 = vld [vmem:[%s14356_s5 + $0x134] sm:$0xf]  ;;  %v7860_v17 = vld [vmem:[%s14356_s5 + $0x138] sm:$0xf0]  ;;  %v7724_v40 = vld [vmem:[%s14356_s5 + $0x28] sm:$0xf0] }
 0xa82   : > { %6744 = vmatpush.bf16.msra.mxu0 %v7815_v34  ;;  %v7727_v34 = vor.u32 %v8277_v61, %v7724_v40 }
 0xa84   : > { %6772 = vmatpush.bf16.msrb.mxu1 %v7887_v13  ;;  %v13913_v26 = vpop.f32.mrf.mxu1  ;;  %v7799_v13 = vor.u32 %v8295_v36, %v7796_v9 }
 0xa86   : > { %6586 = vmatmul.bf16.gmra.mxu3 %v13815_v51 }
 0xa87   : > { %6615 = vmatmul.bf16.gmra.mxu2 %v13817_v0 }
 0xa8b   : > { %6644 = vmatmul.bf16.gmra.mxu0 %v13821_v14  ;;  %6673 = vmatmul.bf16.gmra.mxu1 %v13823_v63 }
 0xab3   : > { %v13833_v33 = vpop.permute.xlu2 %8718 }
 0xab4   : > { %v8721_v18 = vunpack.i.h.bf16 %v13833_v33  ;;  %v8720_v19 = vunpack.i.l.bf16 %v13833_v33  ;;  %v7735_v33 = vor.u32 %v8279_v47, %v7732_v5  ;;  %v15631_v5 = vld [vmem:[#allocation168_spill] sm:$0xff] }
 0xab6   : > { %v5664_v1 = vmax.f32 %v13661_v7, %v8721_v18  ;;  %v7756_v7 = vld [vmem:[%s14356_s5 + $0x68] sm:$0xf0]  ;;  %v5553_v16 = vsel %vm963_vm2, %v8720_v19, %v8721_v18 }
 0xab7   : > { %v7759_v45 = vor.u32 %v8285_v44, %v7756_v7  ;;  %v7804_v44 = vld [vmem:[%s14356_s5 + $0xc8] sm:$0xf0]  ;;  %v8313_v7 = vld [vmem:[%s14356_s5 + $0x144] sm:$0xf] }
 0xab8   : > { %v5699_v12 = vpack.c.bf16 %v5664_v1, %v5664_v1  ;;  %v7879_v1 = vor.u32 %v8315_v41, %v7876_v56  ;;  %v7807_v3 = vor.u32 %v8297_v31, %v7804_v44  ;;  %v7871_v53 = vor.u32 %v8313_v7, %v7868_v21  ;;  %v8293_v41 = vld [vmem:[%s14356_s5 + $0xa4] sm:$0xf] }
 0xab9   : > { %6714 = vmatpush.bf16.msrb.mxu2 %v7759_v45  ;;  %v13910_v45 = vpop.f32.mrf.mxu0  ;;  %v5663_v31 = vmax.f32 %v13674_v46, %v5553_v16  ;;  %v15630_v7 = vunpack.i.l.bf16 %v13427_v50  ;;  %v8275_v50 = vld [vmem:[%s14356_s5 + $0x14] sm:$0xf]  ;;  %v7716_v46 = vld [vmem:[%s14356_s5 + $0x18] sm:$0xf0] }
 0xaba   : > { %5732 = vst.msk [vmem:[#allocation3 + $0xc0] sm:$0xf] %vm5707_vm10, %v5699_v12  ;;  %v8281_v12 = vld [vmem:[%s14356_s5 + $0x44] sm:$0xf]  ;;  %6773 = vmatpush.bf16.msrb.mxu1 %v7879_v1  ;;  %6745 = vmatpush.bf16.msra.mxu0 %v7807_v3  ;;  %v7788_v1 = vld [vmem:[%s14356_s5 + $0xa8] sm:$0xf0] }
 0xabb   : > { %v7743_v54 = vor.u32 %v8281_v12, %v7740_v42  ;;  %v8309_v12 = vld [vmem:[%s14356_s5 + $0x124] sm:$0xf]  ;;  %v7852_v42 = vld [vmem:[%s14356_s5 + $0x128] sm:$0xf0]  ;;  %v7791_v44 = vor.u32 %v8293_v41, %v7788_v1 }
 0xabc   : > { %v7855_v47 = vor.u32 %v8309_v12, %v7852_v42 }
 0xabd   : > { %6715 = vmatpush.bf16.msrb.mxu2 %v7751_v29  ;;  %v7863_v29 = vor.u32 %v8311_v27, %v7860_v17 }
 0xabe   : > { %6774 = vmatpush.bf16.msrb.mxu1 %v7871_v53  ;;  %6746 = vmatpush.bf16.msra.mxu0 %v7799_v13  ;;  %v7844_v13 = vld [vmem:[%s14356_s5 + $0x118] sm:$0xf0] }
 0xac1   : > { %6716 = vmatpush.bf16.msrb.mxu2 %v7743_v54 }
 0xac2   : > { %6775 = vmatpush.bf16.msrb.mxu1 %v7863_v29  ;;  %6747 = vmatpush.bf16.msra.mxu0 %v7791_v44  ;;  %v8289_v44 = vld [vmem:[%s14356_s5 + $0x84] sm:$0xf] }
 0xac5   : > { %6717 = vmatpush.bf16.msrb.mxu2 %v7735_v33 }
 0xac6   : > { %6776 = vmatpush.bf16.msrb.mxu1 %v7855_v47  ;;  %v7772_v47 = vld [vmem:[%s14356_s5 + $0x88] sm:$0xf0] }
 0xac9   : > { %6718 = vmatpush.bf16.msrb.mxu2 %v7727_v34  ;;  %v15632_v34 = vunpack.i.h.bf16 %v13586_v52 }
 0xad2   : > { %v8709_v39 = vpop.permute.xlu0 %8708 }
 0xad3   : > { %v8711_v56 = vunpack.i.h.bf16 %v8709_v39  ;;  %v8710_v18 = vunpack.i.l.bf16 %v8709_v39  ;;  %v8307_v39 = vld [vmem:[%s14356_s5 + $0x114] sm:$0xf] }
 0xad4   : > { %v7847_v42 = vor.u32 %v8307_v39, %v7844_v13 }
 0xad5   : > { %v5550_v21 = vsel %vm963_vm2, %v15630_v7, %v8710_v18  ;;  %v5551_v3 = vsel %vm963_vm2, %v8710_v18, %v8711_v56  ;;  %v5552_v53 = vsel %vm963_vm2, %v8711_v56, %v8720_v19  ;;  %v8291_v19 = vld [vmem:[%s14356_s5 + $0x94] sm:$0xf] }
 0xad6   : > { %v5660_v36 = vmax.f32 %v15631_v5, %v5550_v21  ;;  %v5661_v33 = vmax.f32 %v15624_v24, %v5551_v3  ;;  %v5662_v9 = vmax.f32 %v13670_v20, %v5552_v53  ;;  %v7719_v24 = vor.u32 %v8275_v50, %v7716_v46  ;;  %v7780_v20 = vld [vmem:[%s14356_s5 + $0x98] sm:$0xf0]  ;;  %6777 = vmatpush.bf16.msrb.mxu1 %v7847_v42 }
 0xad7   : > { %v7783_v56 = vor.u32 %v8291_v19, %v7780_v20  ;;  %v15633_v3 = vld [vmem:[#allocation140_spill] sm:$0xff] }
 0xad8   : > { %v6534_v54 = vpop.f32.mrf.mxu0  ;;  %v6563_v27 = vpop.f32.mrf.mxu1  ;;  %v5697_v29 = vpack.c.bf16 %v5661_v33, %v5660_v36  ;;  %v5698_v61 = vpack.c.bf16 %v5663_v31, %v5662_v9  ;;  %6719 = vmatpush.bf16.msrb.mxu2 %v7719_v24  ;;  %v7708_v31 = vld [vmem:[%s14356_s5 + $0x8] sm:$0xf0]  ;;  %v7775_v33 = vor.u32 %v8289_v44, %v7772_v47  ;;  %v8305_v9 = vld [vmem:[%s14356_s5 + $0x104] sm:$0xf] }
 0xad9   : > { %v13970_v16 = vadd.f32 %v6563_v27, %v6534_v54  ;;  %v8273_v54 = vld [vmem:[%s14356_s5 + $0x4] sm:$0xf]  ;;  %6748 = vmatpush.bf16.msra.mxu0 %v7783_v56 }
 0xada   : > { %v8714_v17 = vpop.permute.xlu1 %8713  ;;  %5730 = vst [vmem:[#allocation3 + $0xb0] sm:$0xff] %v5697_v29  ;;  %v8724_v18 = vpop.permute.xlu0 %8723  ;;  %v7711_v36 = vor.u32 %v8273_v54, %v7708_v31 }
 0xadb   : > { %v8716_v40 = vunpack.i.h.bf16 %v8714_v17  ;;  %v8715_v41 = vunpack.i.l.bf16 %v8714_v17  ;;  %5731 = vst [vmem:[#allocation3 + $0xb8] sm:$0xff] %v5698_v61  ;;  %v8726_v7 = vunpack.i.h.bf16 %v8724_v18  ;;  %v8725_v21 = vunpack.i.l.bf16 %v8724_v18 }
 0xadc   : > { %6720 = vmatpush.bf16.msrb.mxu2 %v7711_v36 }
 0xadd   : > { %v5556_v1 = vsel %vm963_vm2, %v15632_v34, %v8715_v41  ;;  %v5557_v12 = vsel %vm963_vm2, %v8715_v41, %v8716_v40  ;;  %v5671_v27 = vmax.f32 %v13700_v15, %v8726_v7  ;;  %v5559_v50 = vsel %vm963_vm2, %v8725_v21, %v8726_v7  ;;  %6749 = vmatpush.bf16.msra.mxu0 %v7775_v33 }
 0xade   : > { %v5667_v52 = vmax.f32 %v15633_v3, %v5556_v1  ;;  %v5668_v53 = vmax.f32 %v15627_v11, %v5557_v12  ;;  %v7836_v11 = vld [vmem:[%s14356_s5 + $0x108] sm:$0xf0]  ;;  %v5558_v46 = vsel %vm963_vm2, %v8716_v40, %v8725_v21  ;;  %v5670_v17 = vmax.f32 %v13723_v55, %v5559_v50  ;;  %v8335_v50 = vld [vmem:[%s14356_s5 + $0x1f4] sm:$0xf] }
 0xadf   : > { %v5669_v24 = vmax.f32 %v13719_v48, %v5558_v46  ;;  %v7839_v39 = vor.u32 %v8305_v9, %v7836_v11  ;;  %v5703_v13 = vpack.c.bf16 %v5671_v27, %v5671_v27  ;;  %v7956_v46 = vld [vmem:[%s14356_s5 + $0x1f8] sm:$0xf0] }
 0xae0   : > { %v13999_v5 = vpop.f32.mrf.mxu0  ;;  %v5701_v19 = vpack.c.bf16 %v5668_v53, %v5667_v52  ;;  %v14012_v20 = vpop.f32.mrf.mxu1 }
 0xae1   : > { %v5702_v29 = vpack.c.bf16 %v5670_v17, %v5669_v24  ;;  %5736 = vst.msk [vmem:[#allocation3 + $0xdc] sm:$0xf] %vm5707_vm10, %v5703_v13  ;;  %6778 = vmatpush.bf16.msrb.mxu1 %v7839_v39  ;;  %v7686_v61 = vld [vmem:[#allocation3 + $0xb0] sm:$0xf]  ;;  %v8267_v41 = vld [vmem:[#allocation3 + $0xb4] sm:$0xf] }
 0xae2   : > { %5734 = vst [vmem:[#allocation3 + $0xcc] sm:$0xff] %v5701_v19  ;;  %v7694_v42 = vld [vmem:[#allocation3 + $0xb8] sm:$0xf]  ;;  %v8268_v31 = vld [vmem:[#allocation3 + $0xbc] sm:$0xf]  ;;  %v7959_v19 = vor.u32 %v8335_v50, %v7956_v46 }
 0xae3   : > { %5735 = vst [vmem:[#allocation3 + $0xd4] sm:$0xff] %v5702_v29  ;;  %v8251_v24 = vld [vmem:[#allocation3 + $0x30] sm:$0xf0]  ;;  %v8351_v39 = vld [vmem:[%s14356_s5 + $0x274] sm:$0xf] }
 0xae4   : > { %6800 = vmatpush.bf16.msra.mxu3 %v7959_v19  ;;  %v8020_v13 = vld [vmem:[%s14356_s5 + $0x278] sm:$0xf0]  ;;  %v8333_v29 = vld [vmem:[%s14356_s5 + $0x1e4] sm:$0xf]  ;;  %v8076_v46 = vld [vmem:[%s14356_s5 + $0x2e8] sm:$0xf0]  ;;  %v6556_v19 = vadd.f32 %v13796_v22, %v13789_v59 }
 0xae5   : > { %v7940_v50 = vld [vmem:[%s14356_s5 + $0x1d8] sm:$0xf0] }
 0xae6   : > { %v8068_v22 = vld [vmem:[%s14356_s5 + $0x2d8] sm:$0xf0] }
 0xae8   : > { %v6635_v15 = vpop.f32.mrf.mxu0  ;;  %v6664_v40 = vpop.f32.mrf.mxu1 }
 0xae9   : > { %v8270_v55 = vld [vmem:[#allocation3 + $0xc8] sm:$0xf0]  ;;  %v7688_v48 = vld [vmem:[#allocation3 + $0xcc] sm:$0xf0]  ;;  %v6577_v18 = vpop.f32.mrf.mxu3 }
 0xaea   : > { %v6606_v34 = vpop.f32.mrf.mxu2  ;;  %v14015_v56 = vor.u32 %v8270_v55, %v7686_v61  ;;  %v14017_v1 = vor.u32 %v8267_v41, %v7688_v48  ;;  %v6578_v12 = vadd.f32 %v6577_v18, %v13686_v35  ;;  %v8271_v54 = vld [vmem:[#allocation3 + $0xd0] sm:$0xf0]  ;;  %v7696_v7 = vld [vmem:[#allocation3 + $0xd4] sm:$0xf0]  ;;  %v6551_v35 = vadd.f32 %v13732_v28, %v13728_v6  ;;  %v7948_v41 = vld [vmem:[%s14356_s5 + $0x1e8] sm:$0xf0] }
 0xaeb   : > { %v14022_v3 = vor.u32 %v8271_v54, %v7694_v42  ;;  %v14024_v52 = vor.u32 %v8268_v31, %v7696_v7  ;;  %v7618_v6 = vld [vmem:[#allocation3 + $0x18] sm:$0xf]  ;;  %v8023_v55 = vor.u32 %v8351_v39, %v8020_v13  ;;  %v8349_v48 = vld [vmem:[%s14356_s5 + $0x264] sm:$0xf]  ;;  %v8012_v18 = vld [vmem:[%s14356_s5 + $0x268] sm:$0xf0]  ;;  %v7951_v42 = vor.u32 %v8333_v29, %v7948_v41 }
 0xaec   : > { %6591 = vmatmul.bf16.gmra.mxu3 %v14015_v56  ;;  %6620 = vmatmul.bf16.gmra.mxu2 %v14017_v1  ;;  %v6607_v21 = vadd.f32 %v6606_v34, %v6578_v12  ;;  %v8367_v54 = vld [vmem:[%s14356_s5 + $0x2f4] sm:$0xf]  ;;  %v8084_v31 = vld [vmem:[%s14356_s5 + $0x2f8] sm:$0xf0]  ;;  %v7932_v41 = vld [vmem:[%s14356_s5 + $0x1c8] sm:$0xf0] }
 0xaed   : > { %6649 = vmatmul.bf16.gmra.mxu0 %v14022_v3  ;;  %6678 = vmatmul.bf16.gmra.mxu1 %v14024_v52  ;;  %v8347_v39 = vld [vmem:[%s14356_s5 + $0x254] sm:$0xf]  ;;  %v8004_v13 = vld [vmem:[%s14356_s5 + $0x258] sm:$0xf0] }
 0xaee   : > { %v6636_v53 = vadd.f32 %v6635_v15, %v6607_v21  ;;  %v15634_v21 = vld [vmem:[#allocation196_spill] sm:$0xff]  ;;  %6829 = vmatpush.bf16.msra.mxu2 %v8023_v55  ;;  %6801 = vmatpush.bf16.msra.mxu3 %v7951_v42  ;;  %v8363_v29 = vld [vmem:[%s14356_s5 + $0x2d4] sm:$0xf]  ;;  %v8007_v59 = vor.u32 %v8347_v39, %v8004_v13  ;;  %v8329_v55 = vld [vmem:[%s14356_s5 + $0x1c4] sm:$0xf] }
 0xaef   : > { %v7996_v42 = vld [vmem:[%s14356_s5 + $0x248] sm:$0xf0]  ;;  %v8343_v39 = vld [vmem:[%s14356_s5 + $0x234] sm:$0xf] }
 0xaf0   : > { %v14030_v44 = vadd.f32 %v6664_v40, %v6636_v53  ;;  %v6637_v47 = vpop.f32.mrf.mxu0  ;;  %v6666_v36 = vpop.f32.mrf.mxu1  ;;  %v14049_v40 = vor.u32 %v8251_v24, %v7618_v6  ;;  %v8087_v53 = vor.u32 %v8367_v54, %v8084_v31  ;;  %v8361_v31 = vld [vmem:[%s14356_s5 + $0x2c4] sm:$0xf] }
 0xaf1   : > { %v6579_v33 = vpop.f32.mrf.mxu3 }
 0xaf2   : > { %v6608_v9 = vpop.f32.mrf.mxu2  ;;  %v6580_v11 = vadd.f32 %v6579_v33, %v6551_v35  ;;  %6858 = vmatpush.bf16.msrb.mxu0 %v8087_v53  ;;  %v8369_v33 = vld [vmem:[%s14356_s5 + $0x304] sm:$0xf] }
 0xaf4   : > { %v6609_v27 = vadd.f32 %v6608_v9, %v6580_v11  ;;  %v8092_v9 = vld [vmem:[%s14356_s5 + $0x308] sm:$0xf0]  ;;  %v8331_v11 = vld [vmem:[%s14356_s5 + $0x1d4] sm:$0xf] }
 0xaf5   : > { %v7943_v24 = vor.u32 %v8331_v11, %v7940_v50 }
 0xaf6   : > { %v6638_v17 = vadd.f32 %v6637_v47, %v6609_v27  ;;  %v8095_v27 = vor.u32 %v8369_v33, %v8092_v9  ;;  %v7646_v9 = vld [vmem:[#allocation3 + $0x50] sm:$0xf] }
 0xaf7   : > { %6802 = vmatpush.bf16.msra.mxu3 %v7943_v24 }
 0xaf8   : > { %v14038_v28 = vadd.f32 %v6666_v36, %v6638_v17  ;;  %v6640_v12 = vpop.f32.mrf.mxu0  ;;  %v6669_v7 = vpop.f32.mrf.mxu1  ;;  %v15635_v36 = vld [vmem:[#allocation22_spill] sm:$0xff]  ;;  %6894 = vmatpush.bf16.msra.mxu1 %v8095_v27 }
 0xaf9   : > { %v6582_v15 = vpop.f32.mrf.mxu3 }
 0xafa   : > { %v6611_v61 = vpop.f32.mrf.mxu2  ;;  %v6583_v34 = vadd.f32 %v6582_v15, %v13774_v8  ;;  %v8015_v8 = vor.u32 %v8349_v48, %v8012_v18  ;;  %v8071_v18 = vor.u32 %v8363_v29, %v8068_v22  ;;  %v8052_v29 = vld [vmem:[%s14356_s5 + $0x2b8] sm:$0xf0]  ;;  %v8325_v22 = vld [vmem:[%s14356_s5 + $0x1a4] sm:$0xf] }
 0xafc   : > { %8096 = vmatmul.msk.bf16.vlgmr.msrb.gmra.mxu3 %vm6497_vm11, %v14049_v40  ;;  %6721 = vmatmul.bf16.vlgmr.msrb.gmra.mxu2 %v15634_v21  ;;  %v6612_v35 = vadd.f32 %v6611_v61, %v6583_v34  ;;  %v7935_v34 = vor.u32 %v8329_v55, %v7932_v41  ;;  %v7916_v55 = vld [vmem:[%s14356_s5 + $0x1a8] sm:$0xf0]  ;;  %v8341_v41 = vld [vmem:[%s14356_s5 + $0x224] sm:$0xf] }
 0xafd   : > { %6750 = vmatmul.bf16.vlgmr.msra.gmra.mxu0 %v15635_v36  ;;  %6779 = vmatmul.bf16.vlgmr.msrb.gmra.mxu1 %v13746_v37  ;;  %v8365_v37 = vld [vmem:[%s14356_s5 + $0x2e4] sm:$0xf] }
 0xafe   : > { %v6641_v47 = vadd.f32 %v6640_v12, %v6612_v35  ;;  %6830 = vmatpush.bf16.msra.mxu2 %v8015_v8  ;;  %v8079_v6 = vor.u32 %v8365_v37, %v8076_v46  ;;  %v8345_v12 = vld [vmem:[%s14356_s5 + $0x244] sm:$0xf]  ;;  %6803 = vmatpush.bf16.msra.mxu3 %v7935_v34 }
 0xaff   : > { %v7999_v53 = vor.u32 %v8345_v12, %v7996_v42  ;;  %v8357_v34 = vld [vmem:[%s14356_s5 + $0x2a4] sm:$0xf]  ;;  %v8044_v12 = vld [vmem:[%s14356_s5 + $0x2a8] sm:$0xf0] }
 0xb00   : > { %v14092_v17 = vadd.f32 %v6669_v7, %v6641_v47  ;;  %6859 = vmatpush.bf16.msrb.mxu0 %v8079_v6  ;;  %v6642_v54 = vpop.f32.mrf.mxu0  ;;  %v8060_v7 = vld [vmem:[%s14356_s5 + $0x2c8] sm:$0xf0]  ;;  %v6671_v35 = vpop.f32.mrf.mxu1  ;;  %v8258_v47 = vld [vmem:[#allocation3 + $0x68] sm:$0xf0]  ;;  %v8327_v6 = vld [vmem:[%s14356_s5 + $0x1b4] sm:$0xf] }
 0xb01   : > { %v6584_v15 = vpop.f32.mrf.mxu3  ;;  %v8063_v36 = vor.u32 %v8361_v31, %v8060_v7  ;;  %v14126_v27 = vor.u32 %v8258_v47, %v7646_v9  ;;  %v8323_v31 = vld [vmem:[%s14356_s5 + $0x194] sm:$0xf]  ;;  %v7908_v7 = vld [vmem:[%s14356_s5 + $0x198] sm:$0xf0] }
 0xb02   : > { %v6613_v61 = vpop.f32.mrf.mxu2  ;;  %v6585_v48 = vadd.f32 %v6584_v15, %v6556_v19  ;;  %6831 = vmatpush.bf16.msra.mxu2 %v8007_v59  ;;  %v7911_v47 = vor.u32 %v8323_v31, %v7908_v7 }
 0xb04   : > { %v6614_v21 = vadd.f32 %v6613_v61, %v6585_v48  ;;  %6860 = vmatpush.bf16.msrb.mxu0 %v8071_v18  ;;  %v7919_v48 = vor.u32 %v8325_v22, %v7916_v55  ;;  %v7980_v18 = vld [vmem:[%s14356_s5 + $0x228] sm:$0xf0] }
 0xb05   : > { %v7983_v42 = vor.u32 %v8341_v41, %v7980_v18 }
 0xb06   : > { %v6643_v8 = vadd.f32 %v6642_v54, %v6614_v21  ;;  %6832 = vmatpush.bf16.msra.mxu2 %v7999_v53  ;;  %v8047_v54 = vor.u32 %v8357_v34, %v8044_v12  ;;  %v8339_v21 = vld [vmem:[%s14356_s5 + $0x214] sm:$0xf]  ;;  %v7972_v53 = vld [vmem:[%s14356_s5 + $0x218] sm:$0xf0] }
 0xb07   : > { %v7975_v9 = vor.u32 %v8339_v21, %v7972_v53 }
 0xb08   : > { %v14124_v33 = vadd.f32 %v6671_v35, %v6643_v8  ;;  %6861 = vmatpush.bf16.msrb.mxu0 %v8063_v36  ;;  %v6645_v19 = vpop.f32.mrf.mxu0  ;;  %v8355_v35 = vld [vmem:[%s14356_s5 + $0x294] sm:$0xf]  ;;  %v8036_v8 = vld [vmem:[%s14356_s5 + $0x298] sm:$0xf0]  ;;  %v7674_v36 = vld [vmem:[#allocation3 + $0x88] sm:$0xf] }
 0xb09   : > { %v6587_v11 = vpop.f32.mrf.mxu3 }
 0xb0a   : > { %v6588_v50 = vadd.f32 %v6587_v11, %v13807_v57  ;;  %v6616_v37 = vpop.f32.mrf.mxu2  ;;  %v7924_v57 = vld [vmem:[%s14356_s5 + $0x1b8] sm:$0xf0]  ;;  %v8039_v11 = vor.u32 %v8355_v35, %v8036_v8 }
 0xb0b   : > { %v7927_v13 = vor.u32 %v8327_v6, %v7924_v57  ;;  %v8353_v6 = vld [vmem:[%s14356_s5 + $0x284] sm:$0xf]  ;;  %v8028_v57 = vld [vmem:[%s14356_s5 + $0x288] sm:$0xf0] }
 0xb0c   : > { %8097 = vmatmul.msk.bf16.gmra.mxu3 %vm6497_vm11, %v14126_v27  ;;  %6726 = vmatmul.bf16.gmra.mxu2 %v13341_v58  ;;  %v6617_v46 = vadd.f32 %v6616_v37, %v6588_v50  ;;  %v6674_v58 = vpop.f32.mrf.mxu1  ;;  %v8321_v50 = vld [vmem:[%s14356_s5 + $0x184] sm:$0xf]  ;;  %v7900_v37 = vld [vmem:[%s14356_s5 + $0x188] sm:$0xf0] }
 0xb0d   : > { %6755 = vmatmul.bf16.gmra.mxu0 %v13343_v49  ;;  %6784 = vmatmul.bf16.gmra.mxu1 %v13800_v62  ;;  %v7988_v49 = vld [vmem:[%s14356_s5 + $0x238] sm:$0xf0]  ;;  %v8359_v62 = vld [vmem:[%s14356_s5 + $0x2b4] sm:$0xf] }
 0xb0e   : > { %v6646_v24 = vadd.f32 %v6645_v19, %v6617_v46  ;;  %v7991_v61 = vor.u32 %v8343_v39, %v7988_v49  ;;  %v8055_v59 = vor.u32 %v8359_v62, %v8052_v29  ;;  %6804 = vmatpush.bf16.msra.mxu3 %v7927_v13  ;;  %v8265_v46 = vld [vmem:[#allocation3 + $0xa0] sm:$0xf0]  ;;  %v8337_v19 = vld [vmem:[%s14356_s5 + $0x204] sm:$0xf]  ;;  %v8031_v49 = vor.u32 %v8353_v6, %v8028_v57  ;;  %v8272_v62 = vld [vmem:[#allocation3 + $0xd8] sm:$0xf0] }
 0xb0f   : > { %v7675_v39 = vor.u32 %v8265_v46, %v7674_v36  ;;  %v7702_v29 = vld [vmem:[#allocation3 + $0xc0] sm:$0xf] }
 0xb10   : > { %v14152_v15 = vadd.f32 %v6674_v58, %v6646_v24  ;;  %6833 = vmatpush.bf16.msra.mxu2 %v7991_v61  ;;  %6862 = vmatpush.bf16.msrb.mxu0 %v8055_v59  ;;  %v7964_v24 = vld [vmem:[%s14356_s5 + $0x208] sm:$0xf0]  ;;  %v7903_v58 = vor.u32 %v8321_v50, %v7900_v37  ;;  %v7703_v61 = vor.u32 %v8272_v62, %v7702_v29 }
 0xb11   : > { %v7967_v13 = vor.u32 %v8337_v19, %v7964_v24 }
 0xb12   : > { %6805 = vmatpush.bf16.msra.mxu3 %v7919_v48 }
 0xb14   : > { %6834 = vmatpush.bf16.msra.mxu2 %v7983_v42  ;;  %6863 = vmatpush.bf16.msrb.mxu0 %v8047_v54 }
 0xb16   : > { %6806 = vmatpush.bf16.msra.mxu3 %v7911_v47 }
 0xb18   : > { %6835 = vmatpush.bf16.msra.mxu2 %v7975_v9  ;;  %6864 = vmatpush.bf16.msrb.mxu0 %v8039_v11 }
 0xb1a   : > { %6807 = vmatpush.bf16.msra.mxu3 %v7903_v58 }
 0xb1c   : > { %8098 = vmatmul.msk.bf16.gmra.mxu3 %vm6497_vm11, %v7675_v39  ;;  %6731 = vmatmul.bf16.gmra.mxu2 %v13391_v60  ;;  %v14230_v60 = vpop.f32.mrf.mxu0 }
 0xb1d   : > { %6760 = vmatmul.bf16.gmra.mxu0 %v13393_v43  ;;  %6789 = vmatmul.bf16.gmra.mxu1 %v13815_v51  ;;  %v14232_v43 = vpop.f32.mrf.mxu1 }
 0xb1e   : > { %6836 = vmatpush.bf16.msra.mxu2 %v7967_v13  ;;  %6865 = vmatpush.bf16.msrb.mxu0 %v8031_v49 }
 0xb2c   : > { %8099 = vmatmul.msk.bf16.gmra.mxu3 %vm6497_vm11, %v7703_v61  ;;  %6736 = vmatmul.bf16.gmra.mxu2 %v13689_v30  ;;  %v14234_v30 = vpop.f32.mrf.mxu3 }
 0xb2d   : > { %6765 = vmatmul.bf16.gmra.mxu0 %v13693_v38  ;;  %6794 = vmatmul.bf16.gmra.mxu1 %v14015_v56  ;;  %v14236_v38 = vpop.f32.mrf.mxu2 }
 0xb3c   : > { %6808 = vmatmul.bf16.vlgmr.msra.gmra.mxu3 %v13748_v2  ;;  %6837 = vmatmul.bf16.vlgmr.msra.gmra.mxu2 %v13761_v23 }
 0xb3d   : > { %6866 = vmatmul.bf16.vlgmr.msrb.gmra.mxu0 %v13763_v25  ;;  %8100 = vmatmul.msk.bf16.vlgmr.msra.gmra.mxu1 %vm6497_vm11, %v14049_v40 }
 0xb4c   : > { %6813 = vmatmul.bf16.gmra.mxu3 %v13802_v4  ;;  %6842 = vmatmul.bf16.gmra.mxu2 %v13809_v10 }
 0xb4d   : > { %6871 = vmatmul.bf16.gmra.mxu0 %v13811_v32  ;;  %8101 = vmatmul.msk.bf16.gmra.mxu1 %vm6497_vm11, %v14126_v27 }
 0xb5c   : > { %6818 = vmatmul.bf16.gmra.mxu3 %v13817_v0  ;;  %6847 = vmatmul.bf16.gmra.mxu2 %v13821_v14 }
 0xb5d   : > { %6876 = vmatmul.bf16.gmra.mxu0 %v13823_v63  ;;  %8102 = vmatmul.msk.bf16.gmra.mxu1 %vm6497_vm11, %v7675_v39  ;;  %v6566_v63 = vadd.f32 %v14012_v20, %v13999_v5 }
 0xb6a   : > { %v6650_v2 = vpop.f32.mrf.mxu0  ;;  %v6679_v23 = vpop.f32.mrf.mxu1 }
 0xb6c   : > { %6823 = vmatmul.bf16.gmra.mxu3 %v14017_v1  ;;  %6852 = vmatmul.bf16.gmra.mxu2 %v14022_v3 }
 0xb6d   : > { %6881 = vmatmul.bf16.gmra.mxu0 %v14024_v52  ;;  %8103 = vmatmul.msk.bf16.gmra.mxu1 %vm6497_vm11, %v7703_v61 }
 0xb6f   : > { %v6592_v25 = vpop.f32.mrf.mxu3  ;;  %v6621_v4 = vpop.f32.mrf.mxu2 }
 0xb70   : > { %v6593_v10 = vadd.f32 %v6592_v25, %v13970_v16 }
 0xb72   : > { %v6622_v32 = vadd.f32 %v6621_v4, %v6593_v10  ;;  %v6652_v0 = vpop.f32.mrf.mxu0  ;;  %v6681_v14 = vpop.f32.mrf.mxu1 }
 0xb74   : > { %v6651_v51 = vadd.f32 %v6650_v2, %v6622_v32 }
 0xb76   : > { %v6680_v56 = vadd.f32 %v6679_v23, %v6651_v51 }
 0xb77   : > { %v6594_v40 = vpop.f32.mrf.mxu3  ;;  %v6623_v1 = vpop.f32.mrf.mxu2 }
 0xb78   : > { %v6595_v27 = vadd.f32 %v6594_v40, %v6566_v63 }
 0xb7a   : > { %v6624_v3 = vadd.f32 %v6623_v1, %v6595_v27  ;;  %v6751_v52 = vpop.f32.mrf.mxu0  ;;  %v6780_v22 = vpop.f32.mrf.mxu1 }
 0xb7c   : > { %v6653_v59 = vadd.f32 %v6652_v0, %v6624_v3 }
 0xb7e   : > { %v6682_v55 = vadd.f32 %v6681_v14, %v6653_v59 }
 0xb7f   : > { %v6693_v41 = vpop.f32.mrf.mxu3  ;;  %v6722_v48 = vpop.f32.mrf.mxu2 }
 0xb80   : > { %v6694_v16 = vadd.f32 %v6693_v41, %v14030_v44  ;;  %v6752_v29 = vadd.f32 %v6751_v52, %v6722_v48 }
 0xb82   : > { %v6753_v18 = vpop.f32.mrf.mxu0  ;;  %v6782_v34 = vpop.f32.mrf.mxu1  ;;  %v6781_v23 = vadd.f32 %v6780_v22, %v6752_v29 }
 0xb87   : > { %v6695_v12 = vpop.f32.mrf.mxu3  ;;  %v6724_v42 = vpop.f32.mrf.mxu2 }
 0xb88   : > { %v14247_v54 = vadd.f32 %v6695_v12, %v14038_v28  ;;  %v6754_v32 = vadd.f32 %v6753_v18, %v6724_v42 }
 0xb8a   : > { %v6756_v5 = vpop.f32.mrf.mxu0  ;;  %v6785_v20 = vpop.f32.mrf.mxu1  ;;  %v6783_v40 = vadd.f32 %v6782_v34, %v6754_v32 }
 0xb8f   : > { %v6698_v31 = vpop.f32.mrf.mxu3  ;;  %v6727_v7 = vpop.f32.mrf.mxu2 }
 0xb90   : > { %v14250_v21 = vadd.f32 %v6698_v31, %v14092_v17  ;;  %v6757_v22 = vadd.f32 %v6756_v5, %v6727_v7 }
 0xb92   : > { %v6758_v53 = vpop.f32.mrf.mxu0  ;;  %v14252_v35 = vpop.f32.mrf.mxu1  ;;  %v6786_v12 = vadd.f32 %v6785_v20, %v6757_v22 }
 0xb97   : > { %v6700_v8 = vpop.f32.mrf.mxu3  ;;  %v6729_v47 = vpop.f32.mrf.mxu2 }
 0xb98   : > { %v14255_v44 = vadd.f32 %v6700_v8, %v14124_v33 }
 0xb9a   : > { %v14257_v36 = vpop.f32.mrf.mxu0  ;;  %v14259_v9 = vpop.f32.mrf.mxu1 }
 0xb9f   : > { %v6703_v28 = vpop.f32.mrf.mxu3  ;;  %v6732_v11 = vpop.f32.mrf.mxu2 }
 0xba0   : > { %v14262_v50 = vadd.f32 %v6703_v28, %v14152_v15 }
 0xba2   : > { %v14264_v37 = vpop.f32.mrf.mxu0  ;;  %v14266_v17 = vpop.f32.mrf.mxu1 }
 0xba7   : > { %v14268_v46 = vpop.f32.mrf.mxu3  ;;  %v14270_v19 = vpop.f32.mrf.mxu2 }
 0xbaa   : > { %v14272_v24 = vpop.f32.mrf.mxu0  ;;  %v14274_v33 = vpop.f32.mrf.mxu1 }
 0xbaf   : > { %v6708_v6 = vpop.f32.mrf.mxu3  ;;  %v14276_v57 = vpop.f32.mrf.mxu2 }
 0xbb0   : > { %v14278_v39 = vadd.f32 %v6708_v6, %v6680_v56  ;;  %v6759_v6 = vadd.f32 %v6758_v53, %v6729_v47 }
 0xbb2   : > { %v14280_v15 = vpop.f32.mrf.mxu0  ;;  %v14282_v58 = vpop.f32.mrf.mxu1 }
 0xbb7   : > { %v6710_v13 = vpop.f32.mrf.mxu3  ;;  %v14284_v49 = vpop.f32.mrf.mxu2 }
 0xbb8   : > { %v14286_v62 = vadd.f32 %v6710_v13, %v6682_v55 }
 0xbba   : > { %v6867_v61 = vpop.f32.mrf.mxu0  ;;  %v6896_v2 = vpop.f32.mrf.mxu1 }
 0xbbf   : > { %v6809_v25 = vpop.f32.mrf.mxu3  ;;  %v6838_v4 = vpop.f32.mrf.mxu2 }
 0xbc0   : > { %v6810_v10 = vadd.f32 %v6809_v25, %v6781_v23 }
 0xbc2   : > { %v6839_v51 = vadd.f32 %v6838_v4, %v6810_v10  ;;  %v6869_v14 = vpop.f32.mrf.mxu0  ;;  %v6898_v63 = vpop.f32.mrf.mxu1  ;;  %v6561_v10 = vadd.f32 %v13913_v26, %v13910_v45 }
 0xbc4   : > { %v6868_v0 = vadd.f32 %v6867_v61, %v6839_v51  ;;  %v6788_v61 = vadd.f32 %v14252_v35, %v6759_v6 }
 0xbc6   : > { %v6897_v56 = vadd.f32 %v6896_v2, %v6868_v0 }
 0xbc7   : > { %v6811_v27 = vpop.f32.mrf.mxu3  ;;  %v6840_v3 = vpop.f32.mrf.mxu2 }
 0xbc8   : > { %v6916_v59 = vpack.c.bf16 %v6897_v56, %v6694_v16  ;;  %v6812_v52 = vadd.f32 %v6811_v27, %v6783_v40 }
 0xbca   : > { %6927 = vst.msk [vmem:[%s14292_s29] sm:$0xff] %vm14295_vm13, %v6916_v59  ;;  %v6841_v55 = vadd.f32 %v6840_v3, %v6812_v52  ;;  %v6872_v48 = vpop.f32.mrf.mxu0  ;;  %v6901_v18 = vpop.f32.mrf.mxu1 }
 0xbcc   : > { %v6870_v41 = vadd.f32 %v6869_v14, %v6841_v55 }
 0xbce   : > { %v6899_v34 = vadd.f32 %v6898_v63, %v6870_v41 }
 0xbcf   : > { %v6814_v42 = vpop.f32.mrf.mxu3  ;;  %v6843_v31 = vpop.f32.mrf.mxu2 }
 0xbd0   : > { %v6917_v8 = vpack.c.bf16 %v6899_v34, %v14247_v54  ;;  %v6815_v28 = vadd.f32 %v6814_v42, %v6786_v12  ;;  %v6762_v54 = vadd.f32 %v14257_v36, %v6732_v11  ;;  %v6764_v11 = vadd.f32 %v14264_v37, %v14270_v19 }
 0xbd1   : > { %v6767_v19 = vadd.f32 %v14272_v24, %v14276_v57  ;;  %v6769_v24 = vadd.f32 %v14280_v15, %v14284_v49 }
 0xbd2   : > { %6928 = vst.msk [vmem:[%s14292_s29 + $0x8] sm:$0xff] %vm14295_vm13, %v6917_v8  ;;  %v6844_v16 = vadd.f32 %v6843_v31, %v6815_v28  ;;  %v6874_v7 = vpop.f32.mrf.mxu0  ;;  %v6903_v13 = vpop.f32.mrf.mxu1  ;;  %v6791_v35 = vadd.f32 %v14259_v9, %v6762_v54  ;;  %v6793_v27 = vadd.f32 %v14266_v17, %v6764_v11 }
 0xbd3   : > { %v6798_v31 = vadd.f32 %v14282_v58, %v6769_v24 }
 0xbd4   : > { %v6873_v5 = vadd.f32 %v6872_v48, %v6844_v16 }
 0xbd6   : > { %v6902_v29 = vadd.f32 %v6901_v18, %v6873_v5 }
 0xbd7   : > { %v6816_v2 = vpop.f32.mrf.mxu3  ;;  %v6845_v23 = vpop.f32.mrf.mxu2 }
 0xbd8   : > { %v6918_v20 = vpack.c.bf16 %v6902_v29, %v14250_v21  ;;  %v6817_v25 = vadd.f32 %v6816_v2, %v6788_v61  ;;  %v6590_v21 = vadd.f32 %v14234_v30, %v6561_v10 }
 0xbda   : > { %6929 = vst.msk [vmem:[%s14292_s29 + $0x10] sm:$0xff] %vm14295_vm13, %v6918_v20  ;;  %v6846_v53 = vadd.f32 %v6845_v23, %v6817_v25  ;;  %v6877_v4 = vpop.f32.mrf.mxu0  ;;  %v6906_v51 = vpop.f32.mrf.mxu1  ;;  %v6619_v45 = vadd.f32 %v14236_v38, %v6590_v21 }
 0xbdc   : > { %v6875_v47 = vadd.f32 %v6874_v7, %v6846_v53 }
 0xbde   : > { %v6904_v32 = vadd.f32 %v6903_v13, %v6875_v47 }
 0xbdf   : > { %v6819_v0 = vpop.f32.mrf.mxu3  ;;  %v6848_v14 = vpop.f32.mrf.mxu2 }
 0xbe0   : > { %v6919_v63 = vpack.c.bf16 %v6904_v32, %v14255_v44  ;;  %v6820_v36 = vadd.f32 %v6819_v0, %v6791_v35  ;;  %v6648_v44 = vadd.f32 %v14230_v60, %v6619_v45  ;;  %v6796_v60 = vadd.f32 %v14274_v33, %v6767_v19 }
 0xbe2   : > { %6930 = vst.msk [vmem:[%s14292_s29 + $0x18] sm:$0xff] %vm14295_vm13, %v6919_v63  ;;  %v6849_v56 = vadd.f32 %v6848_v14, %v6820_v36  ;;  %v6879_v9 = vpop.f32.mrf.mxu0  ;;  %v6908_v37 = vpop.f32.mrf.mxu1  ;;  %v6677_v22 = vadd.f32 %v14232_v43, %v6648_v44 }
 0xbe4   : > { %v6878_v26 = vadd.f32 %v6877_v4, %v6849_v56  ;;  %v6706_v17 = vadd.f32 %v14268_v46, %v6677_v22 }
 0xbe6   : > { %v6907_v40 = vadd.f32 %v6906_v51, %v6878_v26 }
 0xbe7   : > { %v6821_v3 = vpop.f32.mrf.mxu3  ;;  %v6850_v30 = vpop.f32.mrf.mxu2 }
 0xbe8   : > { %v6920_v59 = vpack.c.bf16 %v6907_v40, %v14262_v50  ;;  %v6822_v52 = vadd.f32 %v6821_v3, %v6793_v27 }
 0xbea   : > { %6931 = vst.msk [vmem:[%s14292_s29 + $0x20] sm:$0xff] %vm14295_vm13, %v6920_v59  ;;  %v6851_v38 = vadd.f32 %v6850_v30, %v6822_v52  ;;  %v6882_v12 = vpop.f32.mrf.mxu0  ;;  %v6911_v43 = vpop.f32.mrf.mxu1 }
 0xbec   : > { %v6880_v55 = vadd.f32 %v6879_v9, %v6851_v38 }
 0xbee   : > { %v6909_v41 = vadd.f32 %v6908_v37, %v6880_v55 }
 0xbef   : > { %v6824_v48 = vpop.f32.mrf.mxu3  ;;  %v6853_v50 = vpop.f32.mrf.mxu2 }
 0xbf0   : > { %v6921_v18 = vpack.c.bf16 %v6909_v41, %v6706_v17  ;;  %v6825_v34 = vadd.f32 %v6824_v48, %v6796_v60 }
 0xbf2   : > { %6932 = vst.msk [vmem:[%s14292_s29 + $0x28] sm:$0xff] %vm14295_vm13, %v6921_v18  ;;  %v6854_v57 = vadd.f32 %v6853_v50, %v6825_v34  ;;  %v6884_v15 = vpop.f32.mrf.mxu0  ;;  %v6913_v5 = vpop.f32.mrf.mxu1 }
 0xbf4   : > { %v6883_v42 = vadd.f32 %v6882_v12, %v6854_v57 }
 0xbf6   : > { %v6912_v46 = vadd.f32 %v6911_v43, %v6883_v42 }
 0xbf7   : > { %v6826_v33 = vpop.f32.mrf.mxu3  ;;  %v6855_v6 = vpop.f32.mrf.mxu2 }
 0xbf8   : > { %v6922_v8 = vpack.c.bf16 %v6912_v46, %v14278_v39  ;;  %v6827_v28 = vadd.f32 %v6826_v33, %v6798_v31 }
 0xbfa   : > { %6933 = vst.msk [vmem:[%s14292_s29 + $0x30] sm:$0xff] %vm14295_vm13, %v6922_v8  ;;  %v6856_v16 = vadd.f32 %v6855_v6, %v6827_v28 }
 0xbfc   : > { %v6885_v49 = vadd.f32 %v6884_v15, %v6856_v16 }
 0xbfe   : > { %v6914_v7 = vadd.f32 %v6913_v5, %v6885_v49 }
 0xc00   : > { %v6923_v13 = vpack.c.bf16 %v6914_v7, %v14286_v62 }
 0xc02   : > { %6934 = vst.msk [vmem:[%s14292_s29 + $0x38] sm:$0xff] %vm14295_vm13, %v6923_v13 }
 0xc03 PF: > { %s17_s21 = sadd.s32 1, %s8771_s21  }
 0xc04   : > { %p14_p7 = scmp.ge.s32.totalorder %s17_s21, 4  }
 0xc06   :  { %16 = sbr.rel (!%p14_p7) target bundleno = 1 (0x1), region = 79 }
 0xc0b   :  { %6956 = vsyncpa [#allocation5], 1 }
 0xc0c   :  { %6958 = vsyncpa [#allocation5 + $0x1], 1 }

// kernel: mnist_forward.3
= control target key start
LH: loop header
LB: loop body
LE: loop exit
PB: predicated region body
PF: predicated region fallthrough
CT: control target
= control target key end

     0   :  { %10 = vsyncpa [#allocation3], 0  ;;  %s9246_s0 = inlined_call_operand.vmem [shape: bf16[8,9216], index: 0, kind: input, shape index: {}]   ;;  %s9247_s1 = inlined_call_operand.hbm [shape: bf16[9216,128], index: 1, kind: input, shape index: {}]   ;;  %s9248_s2 = inlined_call_operand.hbm [shape: f32[1,128], index: 2, kind: input, shape index: {}]   ;;  %s9249_s3 = inlined_call_operand.hbm [shape: bf16[128,128], index: 3, kind: input, shape index: {}]   ;;  %s9250_s4 = inlined_call_operand.hbm [shape: f32[1,128], index: 4, kind: input, shape index: {}]   ;;  %s9251_s5 = inlined_call_operand.vmem [shape: f32[8,128], index: 5, kind: output, shape index: {}]  }
   0x1   :  { %11 = vsyncpa [#allocation5], 0  ;;  %s33_s20 = sshll.u32 %s9248_s2, 4  ;;  %s34_s20 = int_to_ptr.hbm [resolvable:$true] %s33_s20 }
   0x2   :  { %12 = vsyncpa [#allocation8], 0  ;;  %s9051_s21 = smov [#allocation4]   ;;  %s19_s25 = sshll.u32 %s9247_s1, 4  ;;  %s20_s25 = int_to_ptr.hbm [resolvable:$true] %s19_s25 }
   0x3   :  { %s35_s22 = sshll.u32 %s9051_s21, 4  ;;  %s9052_s26 = smov [#allocation2]   ;;  %s36_s22 = int_to_ptr.vmem [resolvable:$true] %s35_s22 }
   0x4   :  { %38 = dma.hbm_to_vmem [thread:$0]  %s34_s20, 16, %s36_s22, [#allocation5]  }
   0x5   :  { %s21_s27 = sshll.u32 %s9052_s26, 4  ;;  %s9053_s28 = smov 64   ;;  %s22_s27 = int_to_ptr.vmem [resolvable:$true] %s21_s27 }
   0x6   :  { %s9054_s29 = smov 4   ;;  %s43_s2 = sshll.u32 %s9249_s3, 4  ;;  %s44_s2 = int_to_ptr.hbm [resolvable:$true] %s43_s2 }
   0x7   :  { %27 = dma.hbm_to_vmem [thread:$0]  %s20_s25, 73728, %s22_s27, [#allocation3], %s9053_s28, %s9053_s28, %s9054_s29  }
   0x8   :  { %s9055_s7 = smov [#allocation6]   ;;  %s57_s1 = sshll.u32 %s9250_s4, 4  ;;  %s58_s1 = int_to_ptr.hbm [resolvable:$true] %s57_s1 }
   0x9   :  { %s45_s8 = sshll.u32 %s9055_s7, 4  ;;  %s9056_s11 = smov [#allocation7]   ;;  %s46_s8 = int_to_ptr.vmem [resolvable:$true] %s45_s8 }
   0xa   :  { %51 = dma.hbm_to_vmem [thread:$0]  %s44_s2, 1024, %s46_s8, [#allocation5], %s9053_s28, %s9053_s28, %s9054_s29  }
   0xb   :  { %s59_s12 = sshll.u32 %s9056_s11, 4  ;;  %s60_s12 = int_to_ptr.vmem [resolvable:$true] %s59_s12 }
   0xc   :  { %62 = dma.hbm_to_vmem [thread:$0]  %s58_s1, 16, %s60_s12, [#allocation8]  }
   0xd   :  { %9045 = dma.done.wait [#allocation3], 73728  }
   0xe   :  { %9046 = vsyncadd [#allocation3], 4294893568 }
   0xf   :  { %9047 = dma.done.wait [#allocation5], 1040  }
  0x10   :  { %9048 = vsyncadd [#allocation5], 4294966256 }
  0x11   :  { %9049 = dma.done.wait [#allocation8], 16  }
  0x12   :  { %9050 = vsyncadd [#allocation8], 4294967280  ;;  %v8360_v0 = vld [vmem:[#allocation2 + $0x38] sm:$0xff]  ;;  %v8359_v4 = vld [vmem:[#allocation2 + $0x30] sm:$0xff] }
  0x13   :  { %v8368_v1 = vld [vmem:[#allocation2 + $0x78] sm:$0xff]  ;;  %4979 = vmatpush.bf16.msra.mxu0 %v8360_v0  ;;  %v8367_v5 = vld [vmem:[#allocation2 + $0x70] sm:$0xff]  ;;  %v8358_v8 = vld [vmem:[#allocation2 + $0x28] sm:$0xff] }
  0x14   :  { %v8376_v2 = vld [vmem:[#allocation2 + $0xb8] sm:$0xff]  ;;  %4992 = vmatpush.bf16.msra.mxu1 %v8368_v1  ;;  %v8375_v6 = vld [vmem:[#allocation2 + $0xb0] sm:$0xff]  ;;  %v8366_v9 = vld [vmem:[#allocation2 + $0x68] sm:$0xff] }
  0x15   :  { %v8384_v3 = vld [vmem:[#allocation2 + $0xf8] sm:$0xff]  ;;  %5005 = vmatpush.bf16.msra.mxu2 %v8376_v2  ;;  %v8383_v7 = vld [vmem:[#allocation2 + $0xf0] sm:$0xff]  ;;  %v8374_v10 = vld [vmem:[#allocation2 + $0xa8] sm:$0xff] }
  0x16   :  { %5018 = vmatpush.bf16.msra.mxu3 %v8384_v3  ;;  %v8382_v11 = vld [vmem:[#allocation2 + $0xe8] sm:$0xff]  ;;  %v8357_v12 = vld [vmem:[#allocation2 + $0x20] sm:$0xff]  ;;  %v8356_v16 = vld [vmem:[#allocation2 + $0x18] sm:$0xff] }
  0x17   :  { %4980 = vmatpush.bf16.msra.mxu0 %v8359_v4  ;;  %v8365_v13 = vld [vmem:[#allocation2 + $0x60] sm:$0xff]  ;;  %v8364_v17 = vld [vmem:[#allocation2 + $0x58] sm:$0xff]  ;;  %v8355_v20 = vld [vmem:[#allocation2 + $0x10] sm:$0xff] }
  0x18   :  { %4993 = vmatpush.bf16.msra.mxu1 %v8367_v5  ;;  %v8373_v14 = vld [vmem:[#allocation2 + $0xa0] sm:$0xff]  ;;  %v8372_v18 = vld [vmem:[#allocation2 + $0x98] sm:$0xff]  ;;  %v8363_v21 = vld [vmem:[#allocation2 + $0x50] sm:$0xff] }
  0x19   :  { %5006 = vmatpush.bf16.msra.mxu2 %v8375_v6  ;;  %v8381_v15 = vld [vmem:[#allocation2 + $0xe0] sm:$0xff]  ;;  %v8380_v19 = vld [vmem:[#allocation2 + $0xd8] sm:$0xff]  ;;  %v8371_v22 = vld [vmem:[#allocation2 + $0x90] sm:$0xff] }
  0x1a   :  { %5019 = vmatpush.bf16.msra.mxu3 %v8383_v7  ;;  %v8379_v23 = vld [vmem:[#allocation2 + $0xd0] sm:$0xff]  ;;  %v8354_v24 = vld [vmem:[#allocation2 + $0x8] sm:$0xff]  ;;  %v79_v29 = vld [vmem:[%s9246_s0] sm:$0xff] }
  0x1b   :  { %4981 = vmatpush.bf16.msra.mxu0 %v8358_v8  ;;  %v8362_v25 = vld [vmem:[#allocation2 + $0x48] sm:$0xff]  ;;  %v8353_v30 = vld [vmem:[#allocation2] sm:$0xff]  ;;  %v1307_v33 = vunpack.c.l.b16 %v79_v29  ;;  %v1308_v37 = vunpack.c.h.b16 %v79_v29  ;;  %v8392_v38 = vld [vmem:[#allocation2 + $0x138] sm:$0xff] }
  0x1c   :  { %4994 = vmatpush.bf16.msra.mxu1 %v8366_v9  ;;  %v8370_v26 = vld [vmem:[#allocation2 + $0x88] sm:$0xff]  ;;  %v8361_v31 = vld [vmem:[#allocation2 + $0x40] sm:$0xff]  ;;  %v8400_v39 = vld [vmem:[#allocation2 + $0x178] sm:$0xff] }
  0x1d   :  { %5007 = vmatpush.bf16.msra.mxu2 %v8374_v10  ;;  %v8378_v27 = vld [vmem:[#allocation2 + $0xc8] sm:$0xff]  ;;  %v8369_v34 = vld [vmem:[#allocation2 + $0x80] sm:$0xff]  ;;  %v8408_v40 = vld [vmem:[#allocation2 + $0x1b8] sm:$0xff]  ;;  %v1379_v43 = vpack.c.b16 %v1307_v33, %v1307_v33  ;;  %v1380_v45 = vpack.c.b16 %v1308_v37, %v1308_v37 }
  0x1e   :  { %5020 = vmatpush.bf16.msra.mxu3 %v8382_v11  ;;  %v80_v28 = vld [vmem:[%s9246_s0 + $0x8] sm:$0xff]  ;;  %v8377_v35 = vld [vmem:[#allocation2 + $0xc0] sm:$0xff]  ;;  %v8416_v41 = vld [vmem:[#allocation2 + $0x1f8] sm:$0xff] }
  0x1f   :  { %4982 = vmatpush.bf16.msra.mxu0 %v8357_v12  ;;  %v1309_v32 = vunpack.c.l.b16 %v80_v28  ;;  %v1310_v36 = vunpack.c.h.b16 %v80_v28  ;;  %v8391_v46 = vld [vmem:[#allocation2 + $0x130] sm:$0xff]  ;;  %v8390_v50 = vld [vmem:[#allocation2 + $0x128] sm:$0xff]  ;;  %v8389_v54 = vld [vmem:[#allocation2 + $0x120] sm:$0xff] }
  0x20   :  { %4995 = vmatpush.bf16.msra.mxu1 %v8365_v13  ;;  %v8399_v47 = vld [vmem:[#allocation2 + $0x170] sm:$0xff]  ;;  %v8398_v51 = vld [vmem:[#allocation2 + $0x168] sm:$0xff]  ;;  %v8397_v55 = vld [vmem:[#allocation2 + $0x160] sm:$0xff] }
  0x21   :  { %5008 = vmatpush.bf16.msra.mxu2 %v8373_v14  ;;  %v1381_v42 = vpack.c.b16 %v1309_v32, %v1309_v32  ;;  %v1382_v44 = vpack.c.b16 %v1310_v36, %v1310_v36  ;;  %v8407_v48 = vld [vmem:[#allocation2 + $0x1b0] sm:$0xff]  ;;  %v8406_v52 = vld [vmem:[#allocation2 + $0x1a8] sm:$0xff]  ;;  %v8405_v56 = vld [vmem:[#allocation2 + $0x1a0] sm:$0xff] }
  0x22   :  { %5021 = vmatpush.bf16.msra.mxu3 %v8381_v15  ;;  %v8415_v49 = vld [vmem:[#allocation2 + $0x1f0] sm:$0xff]  ;;  %v8414_v53 = vld [vmem:[#allocation2 + $0x1e8] sm:$0xff]  ;;  %v8413_v57 = vld [vmem:[#allocation2 + $0x1e0] sm:$0xff] }
  0x23   :  { %4983 = vmatpush.bf16.msra.mxu0 %v8356_v16  ;;  %v8388_v58 = vld [vmem:[#allocation2 + $0x118] sm:$0xff]  ;;  %v8387_v62 = vld [vmem:[#allocation2 + $0x110] sm:$0xff]  ;;  %v8386_v2 = vld [vmem:[#allocation2 + $0x108] sm:$0xff] }
  0x24   :  { %4996 = vmatpush.bf16.msra.mxu1 %v8364_v17  ;;  %v8396_v59 = vld [vmem:[#allocation2 + $0x158] sm:$0xff]  ;;  %v8395_v63 = vld [vmem:[#allocation2 + $0x150] sm:$0xff]  ;;  %v8394_v3 = vld [vmem:[#allocation2 + $0x148] sm:$0xff] }
  0x25   :  { %5009 = vmatpush.bf16.msra.mxu2 %v8372_v18  ;;  %v8404_v60 = vld [vmem:[#allocation2 + $0x198] sm:$0xff]  ;;  %v8403_v0 = vld [vmem:[#allocation2 + $0x190] sm:$0xff]  ;;  %v8402_v4 = vld [vmem:[#allocation2 + $0x188] sm:$0xff] }
  0x26   :  { %5022 = vmatpush.bf16.msra.mxu3 %v8380_v19  ;;  %v8412_v61 = vld [vmem:[#allocation2 + $0x1d8] sm:$0xff]  ;;  %v8411_v1 = vld [vmem:[#allocation2 + $0x1d0] sm:$0xff]  ;;  %v8410_v5 = vld [vmem:[#allocation2 + $0x1c8] sm:$0xff] }
  0x27   :  { %4984 = vmatpush.bf16.msra.mxu0 %v8355_v20  ;;  %v82_v6 = vld [vmem:[%s9246_s0 + $0x18] sm:$0xff]  ;;  %v81_v7 = vld [vmem:[%s9246_s0 + $0x10] sm:$0xff]  ;;  %v8385_v8 = vld [vmem:[#allocation2 + $0x100] sm:$0xff] }
  0x28   :  { %4997 = vmatpush.bf16.msra.mxu1 %v8363_v21  ;;  %v8393_v9 = vld [vmem:[#allocation2 + $0x140] sm:$0xff]  ;;  %v1313_v10 = vunpack.c.l.b16 %v82_v6  ;;  %v1311_v11 = vunpack.c.l.b16 %v81_v7  ;;  %v1314_v14 = vunpack.c.h.b16 %v82_v6  ;;  %v1312_v15 = vunpack.c.h.b16 %v81_v7  ;;  %v8424_v16 = vld [vmem:[#allocation2 + $0x238] sm:$0xff]  ;;  %v8422_v28 = vld [vmem:[#allocation2 + $0x228] sm:$0xff] }
  0x29   :  { %5010 = vmatpush.bf16.msra.mxu2 %v8371_v22  ;;  %v8401_v12 = vld [vmem:[#allocation2 + $0x180] sm:$0xff]  ;;  %v8432_v17 = vld [vmem:[#allocation2 + $0x278] sm:$0xff]  ;;  %v8430_v29 = vld [vmem:[#allocation2 + $0x268] sm:$0xff] }
  0x2a   :  { %5023 = vmatpush.bf16.msra.mxu3 %v8379_v23  ;;  %v8409_v13 = vld [vmem:[#allocation2 + $0x1c0] sm:$0xff]  ;;  %v8440_v18 = vld [vmem:[#allocation2 + $0x2b8] sm:$0xff]  ;;  %v1385_v20 = vpack.c.b16 %v1313_v10, %v1313_v10  ;;  %v1383_v21 = vpack.c.b16 %v1311_v11, %v1311_v11  ;;  %v1386_v22 = vpack.c.b16 %v1314_v14, %v1314_v14  ;;  %v1384_v23 = vpack.c.b16 %v1312_v15, %v1312_v15  ;;  %v8454_v6 = vld [vmem:[#allocation2 + $0x328] sm:$0xff] }
  0x2b   :  { %4985 = vmatpush.bf16.msra.mxu0 %v8354_v24  ;;  %v8448_v19 = vld [vmem:[#allocation2 + $0x2f8] sm:$0xff]  ;;  %v8423_v24 = vld [vmem:[#allocation2 + $0x230] sm:$0xff]  ;;  %v8421_v32 = vld [vmem:[#allocation2 + $0x220] sm:$0xff] }
  0x2c   :  { %4998 = vmatpush.bf16.msra.mxu1 %v8362_v25  ;;  %v8431_v25 = vld [vmem:[#allocation2 + $0x270] sm:$0xff]  ;;  %v8429_v33 = vld [vmem:[#allocation2 + $0x260] sm:$0xff]  ;;  %v8420_v36 = vld [vmem:[#allocation2 + $0x218] sm:$0xff] }
  0x2d   :  { %5011 = vmatpush.bf16.msra.mxu2 %v8370_v26  ;;  %v8439_v26 = vld [vmem:[#allocation2 + $0x2b0] sm:$0xff]  ;;  %v8428_v37 = vld [vmem:[#allocation2 + $0x258] sm:$0xff]  ;;  %v8462_v7 = vld [vmem:[#allocation2 + $0x368] sm:$0xff] }
  0x2e   :  { %5024 = vmatpush.bf16.msra.mxu3 %v8378_v27  ;;  %v8447_v27 = vld [vmem:[#allocation2 + $0x2f0] sm:$0xff]  ;;  %v8453_v10 = vld [vmem:[#allocation2 + $0x320] sm:$0xff]  ;;  %v8452_v14 = vld [vmem:[#allocation2 + $0x318] sm:$0xff] }
  0x2f   :  { %4986 = vmatpush.bf16.msra.mxu0 %v8353_v30  ;;  %v8438_v30 = vld [vmem:[#allocation2 + $0x2a8] sm:$0xff]  ;;  %v8461_v11 = vld [vmem:[#allocation2 + $0x360] sm:$0xff]  ;;  %v8460_v15 = vld [vmem:[#allocation2 + $0x358] sm:$0xff] }
  0x30   :  { %4999 = vmatpush.bf16.msra.mxu1 %v8361_v31  ;;  %v8446_v31 = vld [vmem:[#allocation2 + $0x2e8] sm:$0xff] }
  0x31   :  { %5012 = vmatpush.bf16.msra.mxu2 %v8369_v34  ;;  %v8437_v34 = vld [vmem:[#allocation2 + $0x2a0] sm:$0xff] }
  0x32   :  { %5025 = vmatpush.bf16.msra.mxu3 %v8377_v35  ;;  %4987 = vmatmul.bf16.vlgmr.msra.gmra.mxu0 %v1379_v43  ;;  %v8445_v35 = vld [vmem:[#allocation2 + $0x2e0] sm:$0xff]  ;;  %v8443_v43 = vld [vmem:[#allocation2 + $0x2d0] sm:$0xff] }
  0x33   :  { %5031 = vmatpush.bf16.msrb.mxu0 %v8392_v38  ;;  %5000 = vmatmul.bf16.vlgmr.msra.gmra.mxu1 %v1380_v45  ;;  %v8436_v38 = vld [vmem:[#allocation2 + $0x298] sm:$0xff]  ;;  %v8426_v45 = vld [vmem:[#allocation2 + $0x248] sm:$0xff] }
  0x34   :  { %5044 = vmatpush.bf16.msrb.mxu1 %v8400_v39  ;;  %5013 = vmatmul.bf16.vlgmr.msra.gmra.mxu2 %v1381_v42  ;;  %v8444_v39 = vld [vmem:[#allocation2 + $0x2d8] sm:$0xff]  ;;  %v8435_v42 = vld [vmem:[#allocation2 + $0x290] sm:$0xff] }
  0x35   :  { %5057 = vmatpush.bf16.msrb.mxu2 %v8408_v40  ;;  %5026 = vmatmul.bf16.vlgmr.msra.gmra.mxu3 %v1382_v44  ;;  %v8419_v40 = vld [vmem:[#allocation2 + $0x210] sm:$0xff]  ;;  %v8418_v44 = vld [vmem:[#allocation2 + $0x208] sm:$0xff] }
  0x36   :  { %5070 = vmatpush.bf16.msrb.mxu3 %v8416_v41  ;;  %v8427_v41 = vld [vmem:[#allocation2 + $0x250] sm:$0xff] }
  0x37   :  { %5032 = vmatpush.bf16.msrb.mxu0 %v8391_v46  ;;  %v8434_v46 = vld [vmem:[#allocation2 + $0x288] sm:$0xff] }
  0x38   :  { %5045 = vmatpush.bf16.msrb.mxu1 %v8399_v47  ;;  %v8442_v47 = vld [vmem:[#allocation2 + $0x2c8] sm:$0xff] }
  0x39   :  { %5058 = vmatpush.bf16.msrb.mxu2 %v8407_v48  ;;  %v83_v48 = vld [vmem:[%s9246_s0 + $0x20] sm:$0xff] }
  0x3a   :  { %5071 = vmatpush.bf16.msrb.mxu3 %v8415_v49  ;;  %v84_v49 = vld [vmem:[%s9246_s0 + $0x28] sm:$0xff] }
  0x3b   :  { %5033 = vmatpush.bf16.msrb.mxu0 %v8390_v50  ;;  %v8417_v50 = vld [vmem:[#allocation2 + $0x200] sm:$0xff] }
  0x3c   :  { %5046 = vmatpush.bf16.msrb.mxu1 %v8398_v51  ;;  %v8425_v51 = vld [vmem:[#allocation2 + $0x240] sm:$0xff] }
  0x3d   :  { %5059 = vmatpush.bf16.msrb.mxu2 %v8406_v52  ;;  %v1315_v52 = vunpack.c.l.b16 %v83_v48 }
  0x3e   :  { %5072 = vmatpush.bf16.msrb.mxu3 %v8414_v53  ;;  %v1317_v53 = vunpack.c.l.b16 %v84_v49 }
  0x3f   :  { %5034 = vmatpush.bf16.msrb.mxu0 %v8389_v54  ;;  %v8433_v54 = vld [vmem:[#allocation2 + $0x280] sm:$0xff] }
  0x40   :  { %5047 = vmatpush.bf16.msrb.mxu1 %v8397_v55  ;;  %v8441_v55 = vld [vmem:[#allocation2 + $0x2c0] sm:$0xff] }
  0x41   :  { %5060 = vmatpush.bf16.msrb.mxu2 %v8405_v56  ;;  %v1316_v56 = vunpack.c.h.b16 %v83_v48  ;;  %v8486_v48 = vld [vmem:[#allocation2 + $0x428] sm:$0xff] }
  0x42   :  { %5073 = vmatpush.bf16.msrb.mxu3 %v8413_v57  ;;  %v1318_v57 = vunpack.c.h.b16 %v84_v49  ;;  %v8494_v49 = vld [vmem:[#allocation2 + $0x468] sm:$0xff] }
  0x43   :  { %5035 = vmatpush.bf16.msrb.mxu0 %v8388_v58  ;;  %v8456_v58 = vld [vmem:[#allocation2 + $0x338] sm:$0xff] }
  0x44   :  { %5048 = vmatpush.bf16.msrb.mxu1 %v8396_v59  ;;  %v8464_v59 = vld [vmem:[#allocation2 + $0x378] sm:$0xff] }
  0x45   :  { %5061 = vmatpush.bf16.msrb.mxu2 %v8404_v60  ;;  %v8472_v60 = vld [vmem:[#allocation2 + $0x3b8] sm:$0xff] }
  0x46   :  { %5074 = vmatpush.bf16.msrb.mxu3 %v8412_v61  ;;  %v8480_v61 = vld [vmem:[#allocation2 + $0x3f8] sm:$0xff] }
  0x47   :  { %5036 = vmatpush.bf16.msrb.mxu0 %v8387_v62  ;;  %v1387_v62 = vpack.c.b16 %v1315_v52, %v1315_v52  ;;  %v8485_v52 = vld [vmem:[#allocation2 + $0x420] sm:$0xff] }
  0x48   :  { %5049 = vmatpush.bf16.msrb.mxu1 %v8395_v63  ;;  %v1389_v63 = vpack.c.b16 %v1317_v53, %v1317_v53  ;;  %v8493_v53 = vld [vmem:[#allocation2 + $0x460] sm:$0xff] }
  0x49   :  { %5062 = vmatpush.bf16.msrb.mxu2 %v8403_v0  ;;  %v1388_v0 = vpack.c.b16 %v1316_v56, %v1316_v56  ;;  %v8484_v56 = vld [vmem:[#allocation2 + $0x418] sm:$0xff] }
  0x4a   :  { %5075 = vmatpush.bf16.msrb.mxu3 %v8411_v1  ;;  %v1390_v1 = vpack.c.b16 %v1318_v57, %v1318_v57  ;;  %v8492_v57 = vld [vmem:[#allocation2 + $0x458] sm:$0xff] }
  0x4b   :  { %5037 = vmatpush.bf16.msrb.mxu0 %v8386_v2  ;;  %v8455_v2 = vld [vmem:[#allocation2 + $0x330] sm:$0xff] }
  0x4c   :  { %5050 = vmatpush.bf16.msrb.mxu1 %v8394_v3  ;;  %v8463_v3 = vld [vmem:[#allocation2 + $0x370] sm:$0xff] }
  0x4d   :  { %5063 = vmatpush.bf16.msrb.mxu2 %v8402_v4  ;;  %v8471_v4 = vld [vmem:[#allocation2 + $0x3b0] sm:$0xff] }
  0x4e   :  { %5076 = vmatpush.bf16.msrb.mxu3 %v8410_v5  ;;  %v8479_v5 = vld [vmem:[#allocation2 + $0x3f0] sm:$0xff] }
  0x4f   :  { %5038 = vmatpush.bf16.msrb.mxu0 %v8385_v8  ;;  %v8470_v8 = vld [vmem:[#allocation2 + $0x3a8] sm:$0xff] }
  0x50   :  { %5051 = vmatpush.bf16.msrb.mxu1 %v8393_v9  ;;  %v8478_v9 = vld [vmem:[#allocation2 + $0x3e8] sm:$0xff] }
  0x51   :  { %5064 = vmatpush.bf16.msrb.mxu2 %v8401_v12  ;;  %v8469_v12 = vld [vmem:[#allocation2 + $0x3a0] sm:$0xff] }
  0x52   :  { %5077 = vmatpush.bf16.msrb.mxu3 %v8409_v13  ;;  %5039 = vmatmul.bf16.vlgmr.msrb.gmra.mxu0 %v1383_v21  ;;  %v8477_v13 = vld [vmem:[#allocation2 + $0x3e0] sm:$0xff]  ;;  %v8475_v21 = vld [vmem:[#allocation2 + $0x3d0] sm:$0xff] }
  0x53   :  { %5083 = vmatpush.bf16.msra.mxu0 %v8424_v16  ;;  %5052 = vmatmul.bf16.vlgmr.msrb.gmra.mxu1 %v1384_v23  ;;  %v8468_v16 = vld [vmem:[#allocation2 + $0x398] sm:$0xff]  ;;  %v8458_v23 = vld [vmem:[#allocation2 + $0x348] sm:$0xff] }
  0x54   :  { %5096 = vmatpush.bf16.msra.mxu1 %v8432_v17  ;;  %5065 = vmatmul.bf16.vlgmr.msrb.gmra.mxu2 %v1385_v20  ;;  %v8476_v17 = vld [vmem:[#allocation2 + $0x3d8] sm:$0xff]  ;;  %v8467_v20 = vld [vmem:[#allocation2 + $0x390] sm:$0xff] }
  0x55   :  { %5109 = vmatpush.bf16.msra.mxu2 %v8440_v18  ;;  %5078 = vmatmul.bf16.vlgmr.msrb.gmra.mxu3 %v1386_v22  ;;  %v8451_v18 = vld [vmem:[#allocation2 + $0x310] sm:$0xff]  ;;  %v8450_v22 = vld [vmem:[#allocation2 + $0x308] sm:$0xff] }
  0x56   :  { %5122 = vmatpush.bf16.msra.mxu3 %v8448_v19  ;;  %v8459_v19 = vld [vmem:[#allocation2 + $0x350] sm:$0xff] }
  0x57   :  { %5084 = vmatpush.bf16.msra.mxu0 %v8423_v24  ;;  %v8466_v24 = vld [vmem:[#allocation2 + $0x388] sm:$0xff] }
  0x58   :  { %5097 = vmatpush.bf16.msra.mxu1 %v8431_v25  ;;  %v8474_v25 = vld [vmem:[#allocation2 + $0x3c8] sm:$0xff] }
  0x59   :  { %5110 = vmatpush.bf16.msra.mxu2 %v8439_v26  ;;  %v85_v26 = vld [vmem:[%s9246_s0 + $0x30] sm:$0xff] }
  0x5a   :  { %5123 = vmatpush.bf16.msra.mxu3 %v8447_v27  ;;  %v86_v27 = vld [vmem:[%s9246_s0 + $0x38] sm:$0xff] }
  0x5b   :  { %5085 = vmatpush.bf16.msra.mxu0 %v8422_v28  ;;  %v8449_v28 = vld [vmem:[#allocation2 + $0x300] sm:$0xff] }
  0x5c   :  { %5098 = vmatpush.bf16.msra.mxu1 %v8430_v29  ;;  %v8457_v29 = vld [vmem:[#allocation2 + $0x340] sm:$0xff] }
  0x5d   :  { %5111 = vmatpush.bf16.msra.mxu2 %v8438_v30  ;;  %v1319_v30 = vunpack.c.l.b16 %v85_v26 }
  0x5e   :  { %5124 = vmatpush.bf16.msra.mxu3 %v8446_v31  ;;  %v1321_v31 = vunpack.c.l.b16 %v86_v27 }
  0x5f   :  { %5086 = vmatpush.bf16.msra.mxu0 %v8421_v32  ;;  %v8465_v32 = vld [vmem:[#allocation2 + $0x380] sm:$0xff] }
  0x60   :  { %5099 = vmatpush.bf16.msra.mxu1 %v8429_v33  ;;  %v8473_v33 = vld [vmem:[#allocation2 + $0x3c0] sm:$0xff] }
  0x61   :  { %5112 = vmatpush.bf16.msra.mxu2 %v8437_v34  ;;  %v1320_v34 = vunpack.c.h.b16 %v85_v26  ;;  %v8518_v26 = vld [vmem:[#allocation2 + $0x528] sm:$0xff] }
  0x62   :  { %5125 = vmatpush.bf16.msra.mxu3 %v8445_v35  ;;  %v1322_v35 = vunpack.c.h.b16 %v86_v27  ;;  %v8526_v27 = vld [vmem:[#allocation2 + $0x568] sm:$0xff] }
  0x63   :  { %5087 = vmatpush.bf16.msra.mxu0 %v8420_v36  ;;  %v8488_v36 = vld [vmem:[#allocation2 + $0x438] sm:$0xff] }
  0x64   :  { %5100 = vmatpush.bf16.msra.mxu1 %v8428_v37  ;;  %v8496_v37 = vld [vmem:[#allocation2 + $0x478] sm:$0xff] }
  0x65   :  { %5113 = vmatpush.bf16.msra.mxu2 %v8436_v38  ;;  %v8504_v38 = vld [vmem:[#allocation2 + $0x4b8] sm:$0xff] }
  0x66   :  { %5126 = vmatpush.bf16.msra.mxu3 %v8444_v39  ;;  %v8512_v39 = vld [vmem:[#allocation2 + $0x4f8] sm:$0xff] }
  0x67   :  { %5088 = vmatpush.bf16.msra.mxu0 %v8419_v40  ;;  %v1391_v40 = vpack.c.b16 %v1319_v30, %v1319_v30  ;;  %v8542_v30 = vld [vmem:[#allocation2 + $0x5e8] sm:$0xff] }
  0x68   :  { %5101 = vmatpush.bf16.msra.mxu1 %v8427_v41  ;;  %v1393_v41 = vpack.c.b16 %v1321_v31, %v1321_v31 }
  0x69   :  { %5114 = vmatpush.bf16.msra.mxu2 %v8435_v42  ;;  %v1392_v42 = vpack.c.b16 %v1320_v34, %v1320_v34 }
  0x6a   :  { %5127 = vmatpush.bf16.msra.mxu3 %v8443_v43  ;;  %v1394_v43 = vpack.c.b16 %v1322_v35, %v1322_v35 }
  0x6b   :  { %5089 = vmatpush.bf16.msra.mxu0 %v8418_v44  ;;  %v8487_v44 = vld [vmem:[#allocation2 + $0x430] sm:$0xff] }
  0x6c   :  { %5102 = vmatpush.bf16.msra.mxu1 %v8426_v45  ;;  %v8495_v45 = vld [vmem:[#allocation2 + $0x470] sm:$0xff] }
  0x6d   :  { %5115 = vmatpush.bf16.msra.mxu2 %v8434_v46  ;;  %v8503_v46 = vld [vmem:[#allocation2 + $0x4b0] sm:$0xff] }
  0x6e   :  { %5128 = vmatpush.bf16.msra.mxu3 %v8442_v47  ;;  %v8511_v47 = vld [vmem:[#allocation2 + $0x4f0] sm:$0xff] }
  0x6f   :  { %5090 = vmatpush.bf16.msra.mxu0 %v8417_v50  ;;  %v8502_v50 = vld [vmem:[#allocation2 + $0x4a8] sm:$0xff] }
  0x70   :  { %5103 = vmatpush.bf16.msra.mxu1 %v8425_v51  ;;  %v8510_v51 = vld [vmem:[#allocation2 + $0x4e8] sm:$0xff] }
  0x71   :  { %5116 = vmatpush.bf16.msra.mxu2 %v8433_v54  ;;  %v8501_v54 = vld [vmem:[#allocation2 + $0x4a0] sm:$0xff] }
  0x72   :  { %5129 = vmatpush.bf16.msra.mxu3 %v8441_v55  ;;  %5091 = vmatmul.bf16.vlgmr.msra.gmra.mxu0 %v1387_v62  ;;  %v8509_v55 = vld [vmem:[#allocation2 + $0x4e0] sm:$0xff]  ;;  %v8499_v62 = vld [vmem:[#allocation2 + $0x490] sm:$0xff] }
  0x73   :  { %5135 = vmatpush.bf16.msrb.mxu0 %v8456_v58  ;;  %5104 = vmatmul.bf16.vlgmr.msra.gmra.mxu1 %v1388_v0  ;;  %v8500_v58 = vld [vmem:[#allocation2 + $0x498] sm:$0xff]  ;;  %v8482_v0 = vld [vmem:[#allocation2 + $0x408] sm:$0xff] }
  0x74   :  { %5148 = vmatpush.bf16.msrb.mxu1 %v8464_v59  ;;  %5117 = vmatmul.bf16.vlgmr.msra.gmra.mxu2 %v1389_v63  ;;  %v8508_v59 = vld [vmem:[#allocation2 + $0x4d8] sm:$0xff]  ;;  %v8507_v63 = vld [vmem:[#allocation2 + $0x4d0] sm:$0xff] }
  0x75   :  { %5161 = vmatpush.bf16.msrb.mxu2 %v8472_v60  ;;  %5130 = vmatmul.bf16.vlgmr.msra.gmra.mxu3 %v1390_v1  ;;  %v8483_v60 = vld [vmem:[#allocation2 + $0x410] sm:$0xff]  ;;  %v8490_v1 = vld [vmem:[#allocation2 + $0x448] sm:$0xff] }
  0x76   :  { %5174 = vmatpush.bf16.msrb.mxu3 %v8480_v61  ;;  %v8491_v61 = vld [vmem:[#allocation2 + $0x450] sm:$0xff] }
  0x77   :  { %5136 = vmatpush.bf16.msrb.mxu0 %v8455_v2  ;;  %v8498_v2 = vld [vmem:[#allocation2 + $0x488] sm:$0xff] }
  0x78   :  { %5149 = vmatpush.bf16.msrb.mxu1 %v8463_v3  ;;  %v8506_v3 = vld [vmem:[#allocation2 + $0x4c8] sm:$0xff] }
  0x79   :  { %5162 = vmatpush.bf16.msrb.mxu2 %v8471_v4  ;;  %v87_v4 = vld [vmem:[%s9246_s0 + $0x40] sm:$0xff] }
  0x7a   :  { %5175 = vmatpush.bf16.msrb.mxu3 %v8479_v5  ;;  %v88_v5 = vld [vmem:[%s9246_s0 + $0x48] sm:$0xff] }
  0x7b   :  { %5137 = vmatpush.bf16.msrb.mxu0 %v8454_v6  ;;  %v8481_v6 = vld [vmem:[#allocation2 + $0x400] sm:$0xff] }
  0x7c   :  { %5150 = vmatpush.bf16.msrb.mxu1 %v8462_v7  ;;  %v8489_v7 = vld [vmem:[#allocation2 + $0x440] sm:$0xff] }
  0x7d   :  { %5163 = vmatpush.bf16.msrb.mxu2 %v8470_v8  ;;  %v1323_v8 = vunpack.c.l.b16 %v87_v4 }
  0x7e   :  { %5176 = vmatpush.bf16.msrb.mxu3 %v8478_v9  ;;  %v1325_v9 = vunpack.c.l.b16 %v88_v5 }
  0x7f   :  { %5138 = vmatpush.bf16.msrb.mxu0 %v8453_v10  ;;  %v8497_v10 = vld [vmem:[#allocation2 + $0x480] sm:$0xff] }
  0x80   :  { %5151 = vmatpush.bf16.msrb.mxu1 %v8461_v11  ;;  %v8505_v11 = vld [vmem:[#allocation2 + $0x4c0] sm:$0xff] }
  0x81   :  { %5164 = vmatpush.bf16.msrb.mxu2 %v8469_v12  ;;  %v1324_v12 = vunpack.c.h.b16 %v87_v4 }
  0x82   :  { %5177 = vmatpush.bf16.msrb.mxu3 %v8477_v13  ;;  %v1326_v13 = vunpack.c.h.b16 %v88_v5  ;;  %v8552_v5 = vld [vmem:[#allocation2 + $0x638] sm:$0xff] }
  0x83   :  { %5139 = vmatpush.bf16.msrb.mxu0 %v8452_v14  ;;  %v8520_v14 = vld [vmem:[#allocation2 + $0x538] sm:$0xff] }
  0x84   :  { %5152 = vmatpush.bf16.msrb.mxu1 %v8460_v15  ;;  %v8528_v15 = vld [vmem:[#allocation2 + $0x578] sm:$0xff] }
  0x85   :  { %5165 = vmatpush.bf16.msrb.mxu2 %v8468_v16  ;;  %v8536_v16 = vld [vmem:[#allocation2 + $0x5b8] sm:$0xff] }
  0x86   :  { %5178 = vmatpush.bf16.msrb.mxu3 %v8476_v17  ;;  %v8544_v17 = vld [vmem:[#allocation2 + $0x5f8] sm:$0xff] }
  0x87   :  { %5140 = vmatpush.bf16.msrb.mxu0 %v8451_v18  ;;  %v1395_v18 = vpack.c.b16 %v1323_v8, %v1323_v8  ;;  %v8576_v8 = vld [vmem:[#allocation2 + $0x6f8] sm:$0xff] }
  0x88   :  { %5153 = vmatpush.bf16.msrb.mxu1 %v8459_v19  ;;  %v1397_v19 = vpack.c.b16 %v1325_v9, %v1325_v9 }
  0x89   :  { %5166 = vmatpush.bf16.msrb.mxu2 %v8467_v20  ;;  %v1396_v20 = vpack.c.b16 %v1324_v12, %v1324_v12 }
  0x8a   :  { %5179 = vmatpush.bf16.msrb.mxu3 %v8475_v21  ;;  %v1398_v21 = vpack.c.b16 %v1326_v13, %v1326_v13  ;;  %v8551_v13 = vld [vmem:[#allocation2 + $0x630] sm:$0xff] }
  0x8b   :  { %5141 = vmatpush.bf16.msrb.mxu0 %v8450_v22  ;;  %v8519_v22 = vld [vmem:[#allocation2 + $0x530] sm:$0xff] }
  0x8c   :  { %5154 = vmatpush.bf16.msrb.mxu1 %v8458_v23  ;;  %v8527_v23 = vld [vmem:[#allocation2 + $0x570] sm:$0xff] }
  0x8d   :  { %5167 = vmatpush.bf16.msrb.mxu2 %v8466_v24  ;;  %v8535_v24 = vld [vmem:[#allocation2 + $0x5b0] sm:$0xff] }
  0x8e   :  { %5180 = vmatpush.bf16.msrb.mxu3 %v8474_v25  ;;  %v8543_v25 = vld [vmem:[#allocation2 + $0x5f0] sm:$0xff] }
  0x8f   :  { %5142 = vmatpush.bf16.msrb.mxu0 %v8449_v28  ;;  %v8943_v28 = vld [vmem:[#allocation4] ss:$0 sm:$0xff] }
  0x90   :  { %5155 = vmatpush.bf16.msrb.mxu1 %v8457_v29  ;;  %v8534_v29 = vld [vmem:[#allocation2 + $0x5a8] sm:$0xff] }
  0x91   :  { %5168 = vmatpush.bf16.msrb.mxu2 %v8465_v32  ;;  %v8517_v32 = vld [vmem:[#allocation2 + $0x520] sm:$0xff] }
  0x92   :  { %5181 = vmatpush.bf16.msrb.mxu3 %v8473_v33  ;;  %5143 = vmatmul.bf16.vlgmr.msrb.gmra.mxu0 %v1391_v40  ;;  %v8525_v33 = vld [vmem:[#allocation2 + $0x560] sm:$0xff]  ;;  %v8524_v40 = vld [vmem:[#allocation2 + $0x558] sm:$0xff] }
  0x93   :  { %5187 = vmatpush.bf16.msra.mxu0 %v8488_v36  ;;  %5156 = vmatmul.bf16.vlgmr.msrb.gmra.mxu1 %v1392_v42  ;;  %v8533_v36 = vld [vmem:[#allocation2 + $0x5a0] sm:$0xff]  ;;  %v8540_v42 = vld [vmem:[#allocation2 + $0x5d8] sm:$0xff] }
  0x94   :  { %5200 = vmatpush.bf16.msra.mxu1 %v8496_v37  ;;  %5169 = vmatmul.bf16.vlgmr.msrb.gmra.mxu2 %v1393_v41  ;;  %v8541_v37 = vld [vmem:[#allocation2 + $0x5e0] sm:$0xff]  ;;  %v8532_v41 = vld [vmem:[#allocation2 + $0x598] sm:$0xff] }
  0x95   :  { %5213 = vmatpush.bf16.msra.mxu2 %v8504_v38  ;;  %5182 = vmatmul.bf16.vlgmr.msrb.gmra.mxu3 %v1394_v43 }
  0x96   :  { %5226 = vmatpush.bf16.msra.mxu3 %v8512_v39  ;;  %v8516_v39 = vld [vmem:[#allocation2 + $0x518] sm:$0xff] }
  0x97   :  { %5188 = vmatpush.bf16.msra.mxu0 %v8487_v44 }
  0x98   :  { %5201 = vmatpush.bf16.msra.mxu1 %v8495_v45 }
  0x99   :  { %5214 = vmatpush.bf16.msra.mxu2 %v8503_v46 }
  0x9a   :  { %5227 = vmatpush.bf16.msra.mxu3 %v8511_v47  ;;  %v8515_v47 = vld [vmem:[#allocation2 + $0x510] sm:$0xff] }
  0x9b   :  { %5189 = vmatpush.bf16.msra.mxu0 %v8486_v48  ;;  %v8523_v48 = vld [vmem:[#allocation2 + $0x550] sm:$0xff] }
  0x9c   :  { %5202 = vmatpush.bf16.msra.mxu1 %v8494_v49 }
  0x9d   :  { %5215 = vmatpush.bf16.msra.mxu2 %v8502_v50 }
  0x9e   :  { %5228 = vmatpush.bf16.msra.mxu3 %v8510_v51  ;;  %v8531_v51 = vld [vmem:[#allocation2 + $0x590] sm:$0xff] }
  0x9f   :  { %5190 = vmatpush.bf16.msra.mxu0 %v8485_v52  ;;  %v8539_v52 = vld [vmem:[#allocation2 + $0x5d0] sm:$0xff] }
  0xa0   :  { %5203 = vmatpush.bf16.msra.mxu1 %v8493_v53  ;;  %v8514_v53 = vld [vmem:[#allocation2 + $0x508] sm:$0xff] }
  0xa1   :  { %5216 = vmatpush.bf16.msra.mxu2 %v8501_v54  ;;  %v8522_v54 = vld [vmem:[#allocation2 + $0x548] sm:$0xff] }
  0xa2   :  { %5229 = vmatpush.bf16.msra.mxu3 %v8509_v55  ;;  %v8530_v55 = vld [vmem:[#allocation2 + $0x588] sm:$0xff] }
  0xa3   :  { %5191 = vmatpush.bf16.msra.mxu0 %v8484_v56  ;;  %v8538_v56 = vld [vmem:[#allocation2 + $0x5c8] sm:$0xff] }
  0xa4   :  { %5204 = vmatpush.bf16.msra.mxu1 %v8492_v57  ;;  %v89_v57 = vld [vmem:[%s9246_s0 + $0x50] sm:$0xff] }
  0xa5   :  { %5217 = vmatpush.bf16.msra.mxu2 %v8500_v58  ;;  %v90_v58 = vld [vmem:[%s9246_s0 + $0x58] sm:$0xff] }
  0xa6   :  { %5230 = vmatpush.bf16.msra.mxu3 %v8508_v59  ;;  %v1330_v4 = vunpack.c.h.b16 %v90_v58 }
  0xa7   :  { %5192 = vmatpush.bf16.msra.mxu0 %v8483_v60 }
  0xa8   :  { %5205 = vmatpush.bf16.msra.mxu1 %v8491_v61  ;;  %v8513_v61 = vld [vmem:[#allocation2 + $0x500] sm:$0xff]  ;;  %v1402_v12 = vpack.c.b16 %v1330_v4, %v1330_v4  ;;  %v8591_v4 = vld [vmem:[#allocation2 + $0x770] sm:$0xff] }
  0xa9   :  { %5218 = vmatpush.bf16.msra.mxu2 %v8499_v62  ;;  %v8521_v62 = vld [vmem:[#allocation2 + $0x540] sm:$0xff] }
  0xaa   :  { %5231 = vmatpush.bf16.msra.mxu3 %v8507_v63  ;;  %v1327_v63 = vunpack.c.l.b16 %v89_v57 }
  0xab   :  { %5193 = vmatpush.bf16.msra.mxu0 %v8482_v0  ;;  %v1329_v0 = vunpack.c.l.b16 %v90_v58 }
  0xac   :  { %5206 = vmatpush.bf16.msra.mxu1 %v8490_v1  ;;  %v8529_v1 = vld [vmem:[#allocation2 + $0x580] sm:$0xff]  ;;  %v1399_v9 = vpack.c.b16 %v1327_v63, %v1327_v63 }
  0xad   :  { %5219 = vmatpush.bf16.msra.mxu2 %v8498_v2  ;;  %v8537_v2 = vld [vmem:[#allocation2 + $0x5c0] sm:$0xff] }
  0xae   :  { %5232 = vmatpush.bf16.msra.mxu3 %v8506_v3  ;;  %v1328_v3 = vunpack.c.h.b16 %v89_v57 }
  0xaf   :  { %5194 = vmatpush.bf16.msra.mxu0 %v8481_v6  ;;  %v4988_v31 = vpop.f32.mrf.mxu0  ;;  %v8560_v6 = vld [vmem:[#allocation2 + $0x678] sm:$0xff] }
  0xb0   :  { %5207 = vmatpush.bf16.msra.mxu1 %v8489_v7  ;;  %v4989_v34 = vadd.f32 %v8943_v28, %v4988_v31  ;;  %v5001_v35 = vpop.f32.mrf.mxu1  ;;  %v8568_v7 = vld [vmem:[#allocation2 + $0x6b8] sm:$0xff] }
  0xb1   :  { %5220 = vmatpush.bf16.msra.mxu2 %v8497_v10  ;;  %v1401_v10 = vpack.c.b16 %v1329_v0, %v1329_v0  ;;  %v8564_v31 = vld [vmem:[#allocation2 + $0x698] sm:$0xff] }
  0xb2   :  { %5233 = vmatpush.bf16.msra.mxu3 %v8505_v11  ;;  %5195 = vmatmul.bf16.vlgmr.msra.gmra.mxu0 %v1395_v18  ;;  %v5002_v38 = vadd.f32 %v5001_v35, %v4989_v34  ;;  %v1400_v11 = vpack.c.b16 %v1328_v3, %v1328_v3  ;;  %v8558_v18 = vld [vmem:[#allocation2 + $0x668] sm:$0xff]  ;;  %v8583_v3 = vld [vmem:[#allocation2 + $0x730] sm:$0xff] }
  0xb3   :  { %5239 = vmatpush.bf16.msrb.mxu0 %v8520_v14  ;;  %5208 = vmatmul.bf16.vlgmr.msra.gmra.mxu1 %v1396_v20  ;;  %v8559_v14 = vld [vmem:[#allocation2 + $0x670] sm:$0xff]  ;;  %v8574_v20 = vld [vmem:[#allocation2 + $0x6e8] sm:$0xff] }
  0xb4   :  { %5252 = vmatpush.bf16.msrb.mxu1 %v8528_v15  ;;  %5221 = vmatmul.bf16.vlgmr.msra.gmra.mxu2 %v1397_v19  ;;  %v8567_v15 = vld [vmem:[#allocation2 + $0x6b0] sm:$0xff]  ;;  %v8566_v19 = vld [vmem:[#allocation2 + $0x6a8] sm:$0xff] }
  0xb5   :  { %5265 = vmatpush.bf16.msrb.mxu2 %v8536_v16  ;;  %5234 = vmatmul.bf16.vlgmr.msra.gmra.mxu3 %v1398_v21  ;;  %v8575_v16 = vld [vmem:[#allocation2 + $0x6f0] sm:$0xff] }
  0xb6   :  { %5278 = vmatpush.bf16.msrb.mxu3 %v8544_v17  ;;  %v8550_v17 = vld [vmem:[#allocation2 + $0x628] sm:$0xff] }
  0xb7   :  { %5240 = vmatpush.bf16.msrb.mxu0 %v8519_v22  ;;  %v5014_v43 = vpop.f32.mrf.mxu2  ;;  %v4990_v46 = vpop.f32.mrf.mxu0  ;;  %v8549_v22 = vld [vmem:[#allocation2 + $0x620] sm:$0xff] }
  0xb8   :  { %5253 = vmatpush.bf16.msrb.mxu1 %v8527_v23  ;;  %v5015_v44 = vadd.f32 %v5014_v43, %v5002_v38  ;;  %v5027_v45 = vpop.f32.mrf.mxu3  ;;  %v5003_v50 = vpop.f32.mrf.mxu1  ;;  %v8557_v23 = vld [vmem:[#allocation2 + $0x660] sm:$0xff]  ;;  %v8555_v38 = vld [vmem:[#allocation2 + $0x650] sm:$0xff]  ;;  %v8546_v43 = vld [vmem:[#allocation2 + $0x608] sm:$0xff] }
  0xb9   :  { %5266 = vmatpush.bf16.msrb.mxu2 %v8535_v24  ;;  %v8570_v46 = vld [vmem:[#allocation2 + $0x6c8] sm:$0xff] }
  0xba   :  { %5279 = vmatpush.bf16.msrb.mxu3 %v8543_v25  ;;  %v9129_v49 = vadd.f32 %v5027_v45, %v5015_v44  ;;  %v8554_v44 = vld [vmem:[#allocation2 + $0x648] sm:$0xff] }
  0xbb   :  { %5241 = vmatpush.bf16.msrb.mxu0 %v8518_v26  ;;  %v8565_v26 = vld [vmem:[#allocation2 + $0x6a0] sm:$0xff]  ;;  %v8562_v45 = vld [vmem:[#allocation2 + $0x688] sm:$0xff] }
  0xbc   :  { %5254 = vmatpush.bf16.msrb.mxu1 %v8526_v27  ;;  %v8573_v27 = vld [vmem:[#allocation2 + $0x6e0] sm:$0xff] }
  0xbd   :  { %5267 = vmatpush.bf16.msrb.mxu2 %v8534_v29  ;;  %v8548_v29 = vld [vmem:[#allocation2 + $0x618] sm:$0xff] }
  0xbe   :  { %5280 = vmatpush.bf16.msrb.mxu3 %v8542_v30  ;;  %v8556_v30 = vld [vmem:[#allocation2 + $0x658] sm:$0xff] }
  0xbf   :  { %5242 = vmatpush.bf16.msrb.mxu0 %v8517_v32  ;;  %v5016_v59 = vpop.f32.mrf.mxu2  ;;  %v8572_v32 = vld [vmem:[#allocation2 + $0x6d8] sm:$0xff] }
  0xc0   :  { %5255 = vmatpush.bf16.msrb.mxu1 %v8525_v33  ;;  %v5029_v60 = vpop.f32.mrf.mxu3  ;;  %v8584_v59 = vld [vmem:[#allocation2 + $0x738] sm:$0xff] }
  0xc1   :  { %5268 = vmatpush.bf16.msrb.mxu2 %v8533_v36  ;;  %v8592_v60 = vld [vmem:[#allocation2 + $0x778] sm:$0xff] }
  0xc2   :  { %5281 = vmatpush.bf16.msrb.mxu3 %v8541_v37  ;;  %v8547_v37 = vld [vmem:[#allocation2 + $0x610] sm:$0xff] }
  0xc3   :  { %5243 = vmatpush.bf16.msrb.mxu0 %v8516_v39 }
  0xc4   :  { %5256 = vmatpush.bf16.msrb.mxu1 %v8524_v40 }
  0xc5   :  { %5269 = vmatpush.bf16.msrb.mxu2 %v8532_v41  ;;  %v8563_v41 = vld [vmem:[#allocation2 + $0x690] sm:$0xff] }
  0xc6   :  { %5282 = vmatpush.bf16.msrb.mxu3 %v8540_v42  ;;  %v8571_v42 = vld [vmem:[#allocation2 + $0x6d0] sm:$0xff] }
  0xc7   :  { %5244 = vmatpush.bf16.msrb.mxu0 %v8515_v47  ;;  %v91_v47 = vld [vmem:[%s9246_s0 + $0x60] sm:$0xff] }
  0xc8   :  { %5257 = vmatpush.bf16.msrb.mxu1 %v8523_v48  ;;  %v92_v48 = vld [vmem:[%s9246_s0 + $0x68] sm:$0xff]  ;;  %v1332_v57 = vunpack.c.h.b16 %v91_v47 }
  0xc9   :  { %5270 = vmatpush.bf16.msrb.mxu2 %v8531_v51  ;;  %v8545_v51 = vld [vmem:[#allocation2 + $0x600] sm:$0xff]  ;;  %v1334_v58 = vunpack.c.h.b16 %v92_v48 }
  0xca   :  { %5283 = vmatpush.bf16.msrb.mxu3 %v8539_v52  ;;  %v8553_v52 = vld [vmem:[#allocation2 + $0x640] sm:$0xff] }
  0xcb   :  { %5245 = vmatpush.bf16.msrb.mxu0 %v8514_v53  ;;  %v1331_v53 = vunpack.c.l.b16 %v91_v47 }
  0xcc   :  { %5258 = vmatpush.bf16.msrb.mxu1 %v8522_v54  ;;  %v1333_v54 = vunpack.c.l.b16 %v92_v48 }
  0xcd   :  { %5271 = vmatpush.bf16.msrb.mxu2 %v8530_v55  ;;  %v8561_v55 = vld [vmem:[#allocation2 + $0x680] sm:$0xff]  ;;  %v1403_v63 = vpack.c.b16 %v1331_v53, %v1331_v53 }
  0xce   :  { %5284 = vmatpush.bf16.msrb.mxu3 %v8538_v56  ;;  %v8569_v56 = vld [vmem:[#allocation2 + $0x6c0] sm:$0xff]  ;;  %v1405_v0 = vpack.c.b16 %v1333_v54, %v1333_v54 }
  0xcf   :  { %5246 = vmatpush.bf16.msrb.mxu0 %v8513_v61  ;;  %v5040_v21 = vpop.f32.mrf.mxu0  ;;  %v8600_v61 = vld [vmem:[#allocation2 + $0x7b8] sm:$0xff] }
  0xd0   :  { %5259 = vmatpush.bf16.msrb.mxu1 %v8521_v62  ;;  %v5041_v24 = vadd.f32 %v5040_v21, %v9129_v49  ;;  %v5053_v25 = vpop.f32.mrf.mxu1  ;;  %v8608_v62 = vld [vmem:[#allocation2 + $0x7f8] sm:$0xff] }
  0xd1   :  { %5272 = vmatpush.bf16.msrb.mxu2 %v8529_v1  ;;  %v1404_v1 = vpack.c.b16 %v1332_v57, %v1332_v57  ;;  %v8596_v21 = vld [vmem:[#allocation2 + $0x798] sm:$0xff]  ;;  %v8615_v57 = vld [vmem:[#allocation2 + $0x830] sm:$0xff] }
  0xd2   :  { %5285 = vmatpush.bf16.msrb.mxu3 %v8537_v2  ;;  %5247 = vmatmul.bf16.vlgmr.msrb.gmra.mxu0 %v1399_v9  ;;  %v5054_v28 = vadd.f32 %v5053_v25, %v5041_v24  ;;  %v1406_v2 = vpack.c.b16 %v1334_v58, %v1334_v58  ;;  %v8598_v9 = vld [vmem:[#allocation2 + $0x7a8] sm:$0xff]  ;;  %v8623_v58 = vld [vmem:[#allocation2 + $0x870] sm:$0xff] }
  0xd3   :  { %5291 = vmatpush.bf16.msra.mxu0 %v8552_v5  ;;  %5260 = vmatmul.bf16.vlgmr.msrb.gmra.mxu1 %v1400_v11  ;;  %v8599_v5 = vld [vmem:[#allocation2 + $0x7b0] sm:$0xff] }
  0xd4   :  { %5304 = vmatpush.bf16.msra.mxu1 %v8560_v6  ;;  %5273 = vmatmul.bf16.vlgmr.msrb.gmra.mxu2 %v1401_v10  ;;  %v8607_v6 = vld [vmem:[#allocation2 + $0x7f0] sm:$0xff]  ;;  %v8606_v10 = vld [vmem:[#allocation2 + $0x7e8] sm:$0xff] }
  0xd5   :  { %5317 = vmatpush.bf16.msra.mxu2 %v8568_v7  ;;  %5286 = vmatmul.bf16.vlgmr.msrb.gmra.mxu3 %v1402_v12  ;;  %v8582_v7 = vld [vmem:[#allocation2 + $0x728] sm:$0xff] }
  0xd6   :  { %5330 = vmatpush.bf16.msra.mxu3 %v8576_v8  ;;  %v8590_v8 = vld [vmem:[#allocation2 + $0x768] sm:$0xff] }
  0xd7   :  { %5292 = vmatpush.bf16.msra.mxu0 %v8551_v13  ;;  %v5066_v33 = vpop.f32.mrf.mxu2  ;;  %v5042_v36 = vpop.f32.mrf.mxu0  ;;  %v8581_v13 = vld [vmem:[#allocation2 + $0x720] sm:$0xff] }
  0xd8   :  { %5305 = vmatpush.bf16.msra.mxu1 %v8559_v14  ;;  %v5067_v34 = vadd.f32 %v5066_v33, %v5054_v28  ;;  %v5079_v35 = vpop.f32.mrf.mxu3  ;;  %v5055_v40 = vpop.f32.mrf.mxu1  ;;  %v8589_v14 = vld [vmem:[#allocation2 + $0x760] sm:$0xff]  ;;  %v8579_v28 = vld [vmem:[#allocation2 + $0x710] sm:$0xff]  ;;  %v8578_v33 = vld [vmem:[#allocation2 + $0x708] sm:$0xff] }
  0xd9   :  { %5318 = vmatpush.bf16.msra.mxu2 %v8567_v15  ;;  %v8602_v36 = vld [vmem:[#allocation2 + $0x7c8] sm:$0xff] }
  0xda   :  { %5331 = vmatpush.bf16.msra.mxu3 %v8575_v16  ;;  %v9138_v39 = vadd.f32 %v5079_v35, %v5067_v34  ;;  %v8597_v16 = vld [vmem:[#allocation2 + $0x7a0] sm:$0xff]  ;;  %v8586_v34 = vld [vmem:[#allocation2 + $0x748] sm:$0xff] }
  0xdb   :  { %5293 = vmatpush.bf16.msra.mxu0 %v8550_v17  ;;  %v8605_v17 = vld [vmem:[#allocation2 + $0x7e0] sm:$0xff]  ;;  %v8594_v35 = vld [vmem:[#allocation2 + $0x788] sm:$0xff] }
  0xdc   :  { %5306 = vmatpush.bf16.msra.mxu1 %v8558_v18 }
  0xdd   :  { %5319 = vmatpush.bf16.msra.mxu2 %v8566_v19  ;;  %v8580_v19 = vld [vmem:[#allocation2 + $0x718] sm:$0xff] }
  0xde   :  { %5332 = vmatpush.bf16.msra.mxu3 %v8574_v20  ;;  %v8588_v20 = vld [vmem:[#allocation2 + $0x758] sm:$0xff] }
  0xdf   :  { %5294 = vmatpush.bf16.msra.mxu0 %v8549_v22  ;;  %v5068_v49 = vpop.f32.mrf.mxu2  ;;  %v8604_v22 = vld [vmem:[#allocation2 + $0x7d8] sm:$0xff] }
  0xe0   :  { %5307 = vmatpush.bf16.msra.mxu1 %v8557_v23  ;;  %v5081_v50 = vpop.f32.mrf.mxu3  ;;  %v8616_v49 = vld [vmem:[#allocation2 + $0x838] sm:$0xff] }
  0xe1   :  { %5320 = vmatpush.bf16.msra.mxu2 %v8565_v26  ;;  %v8624_v50 = vld [vmem:[#allocation2 + $0x878] sm:$0xff] }
  0xe2   :  { %5333 = vmatpush.bf16.msra.mxu3 %v8573_v27 }
  0xe3   :  { %5295 = vmatpush.bf16.msra.mxu0 %v8548_v29  ;;  %v8587_v29 = vld [vmem:[#allocation2 + $0x750] sm:$0xff] }
  0xe4   :  { %5308 = vmatpush.bf16.msra.mxu1 %v8556_v30 }
  0xe5   :  { %5321 = vmatpush.bf16.msra.mxu2 %v8564_v31  ;;  %v8595_v31 = vld [vmem:[#allocation2 + $0x790] sm:$0xff] }
  0xe6   :  { %5334 = vmatpush.bf16.msra.mxu3 %v8572_v32  ;;  %v8603_v32 = vld [vmem:[#allocation2 + $0x7d0] sm:$0xff] }
  0xe7   :  { %5296 = vmatpush.bf16.msra.mxu0 %v8547_v37  ;;  %v93_v37 = vld [vmem:[%s9246_s0 + $0x70] sm:$0xff] }
  0xe8   :  { %5309 = vmatpush.bf16.msra.mxu1 %v8555_v38  ;;  %v94_v38 = vld [vmem:[%s9246_s0 + $0x78] sm:$0xff]  ;;  %v1336_v47 = vunpack.c.h.b16 %v93_v37 }
  0xe9   :  { %5322 = vmatpush.bf16.msra.mxu2 %v8563_v41  ;;  %v8577_v41 = vld [vmem:[#allocation2 + $0x700] sm:$0xff]  ;;  %v1338_v48 = vunpack.c.h.b16 %v94_v38 }
  0xea   :  { %5335 = vmatpush.bf16.msra.mxu3 %v8571_v42  ;;  %v8585_v42 = vld [vmem:[#allocation2 + $0x740] sm:$0xff] }
  0xeb   :  { %5297 = vmatpush.bf16.msra.mxu0 %v8546_v43  ;;  %v1335_v43 = vunpack.c.l.b16 %v93_v37 }
  0xec   :  { %5310 = vmatpush.bf16.msra.mxu1 %v8554_v44  ;;  %v1337_v44 = vunpack.c.l.b16 %v94_v38 }
  0xed   :  { %5323 = vmatpush.bf16.msra.mxu2 %v8562_v45  ;;  %v8593_v45 = vld [vmem:[#allocation2 + $0x780] sm:$0xff]  ;;  %v1407_v53 = vpack.c.b16 %v1335_v43, %v1335_v43 }
  0xee   :  { %5336 = vmatpush.bf16.msra.mxu3 %v8570_v46  ;;  %v8601_v46 = vld [vmem:[#allocation2 + $0x7c0] sm:$0xff]  ;;  %v1409_v54 = vpack.c.b16 %v1337_v44, %v1337_v44 }
  0xef   :  { %5298 = vmatpush.bf16.msra.mxu0 %v8545_v51  ;;  %v5092_v11 = vpop.f32.mrf.mxu0  ;;  %v8632_v51 = vld [vmem:[#allocation2 + $0x8b8] sm:$0xff] }
  0xf0   :  { %5311 = vmatpush.bf16.msra.mxu1 %v8553_v52  ;;  %v5093_v12 = vadd.f32 %v5092_v11, %v9138_v39  ;;  %v5105_v15 = vpop.f32.mrf.mxu1  ;;  %v8640_v52 = vld [vmem:[#allocation2 + $0x8f8] sm:$0xff] }
  0xf1   :  { %5324 = vmatpush.bf16.msra.mxu2 %v8561_v55  ;;  %v1408_v55 = vpack.c.b16 %v1336_v47, %v1336_v47  ;;  %v8628_v11 = vld [vmem:[#allocation2 + $0x898] sm:$0xff]  ;;  %v8647_v47 = vld [vmem:[#allocation2 + $0x930] sm:$0xff] }
  0xf2   :  { %5337 = vmatpush.bf16.msra.mxu3 %v8569_v56  ;;  %5299 = vmatmul.bf16.vlgmr.msra.gmra.mxu0 %v1403_v63  ;;  %v5106_v18 = vadd.f32 %v5105_v15, %v5093_v12  ;;  %v1410_v56 = vpack.c.b16 %v1338_v48, %v1338_v48  ;;  %v8630_v63 = vld [vmem:[#allocation2 + $0x8a8] sm:$0xff]  ;;  %v8636_v12 = vld [vmem:[#allocation2 + $0x8d8] sm:$0xff]  ;;  %v8655_v48 = vld [vmem:[#allocation2 + $0x970] sm:$0xff] }
  0xf3   :  { %5343 = vmatpush.bf16.msrb.mxu0 %v8584_v59  ;;  %5312 = vmatmul.bf16.vlgmr.msra.gmra.mxu1 %v1404_v1  ;;  %v8631_v59 = vld [vmem:[#allocation2 + $0x8b0] sm:$0xff] }
  0xf4   :  { %5356 = vmatpush.bf16.msrb.mxu1 %v8592_v60  ;;  %5325 = vmatmul.bf16.vlgmr.msra.gmra.mxu2 %v1405_v0  ;;  %v8639_v60 = vld [vmem:[#allocation2 + $0x8f0] sm:$0xff]  ;;  %v8638_v0 = vld [vmem:[#allocation2 + $0x8e8] sm:$0xff] }
  0xf5   :  { %5369 = vmatpush.bf16.msrb.mxu2 %v8600_v61  ;;  %5338 = vmatmul.bf16.vlgmr.msra.gmra.mxu3 %v1406_v2  ;;  %v8614_v61 = vld [vmem:[#allocation2 + $0x828] sm:$0xff] }
  0xf6   :  { %5382 = vmatpush.bf16.msrb.mxu3 %v8608_v62  ;;  %v8622_v62 = vld [vmem:[#allocation2 + $0x868] sm:$0xff] }
  0xf7   :  { %5344 = vmatpush.bf16.msrb.mxu0 %v8583_v3  ;;  %v5118_v23 = vpop.f32.mrf.mxu2  ;;  %v5094_v26 = vpop.f32.mrf.mxu0  ;;  %v8613_v3 = vld [vmem:[#allocation2 + $0x820] sm:$0xff] }
  0xf8   :  { %5357 = vmatpush.bf16.msrb.mxu1 %v8591_v4  ;;  %v5119_v24 = vadd.f32 %v5118_v23, %v5106_v18  ;;  %v5131_v25 = vpop.f32.mrf.mxu3  ;;  %v5107_v30 = vpop.f32.mrf.mxu1  ;;  %v8621_v4 = vld [vmem:[#allocation2 + $0x860] sm:$0xff]  ;;  %v8611_v18 = vld [vmem:[#allocation2 + $0x810] sm:$0xff]  ;;  %v8610_v23 = vld [vmem:[#allocation2 + $0x808] sm:$0xff] }
  0xf9   :  { %5370 = vmatpush.bf16.msrb.mxu2 %v8599_v5  ;;  %v8634_v26 = vld [vmem:[#allocation2 + $0x8c8] sm:$0xff] }
  0xfa   :  { %5383 = vmatpush.bf16.msrb.mxu3 %v8607_v6  ;;  %v9147_v27 = vadd.f32 %v5131_v25, %v5119_v24  ;;  %v8629_v6 = vld [vmem:[#allocation2 + $0x8a0] sm:$0xff]  ;;  %v8618_v24 = vld [vmem:[#allocation2 + $0x848] sm:$0xff] }
  0xfb   :  { %5345 = vmatpush.bf16.msrb.mxu0 %v8582_v7  ;;  %v8637_v7 = vld [vmem:[#allocation2 + $0x8e0] sm:$0xff]  ;;  %v8626_v25 = vld [vmem:[#allocation2 + $0x888] sm:$0xff] }
  0xfc   :  { %5358 = vmatpush.bf16.msrb.mxu1 %v8590_v8 }
  0xfd   :  { %5371 = vmatpush.bf16.msrb.mxu2 %v8598_v9  ;;  %v8612_v9 = vld [vmem:[#allocation2 + $0x818] sm:$0xff] }
  0xfe   :  { %5384 = vmatpush.bf16.msrb.mxu3 %v8606_v10  ;;  %v8620_v10 = vld [vmem:[#allocation2 + $0x858] sm:$0xff] }
  0xff   :  { %5346 = vmatpush.bf16.msrb.mxu0 %v8581_v13  ;;  %v5120_v39 = vpop.f32.mrf.mxu2 }
 0x100   :  { %5359 = vmatpush.bf16.msrb.mxu1 %v8589_v14  ;;  %v5133_v40 = vpop.f32.mrf.mxu3  ;;  %v8648_v39 = vld [vmem:[#allocation2 + $0x938] sm:$0xff] }
 0x101   :  { %5372 = vmatpush.bf16.msrb.mxu2 %v8597_v16  ;;  %v8656_v40 = vld [vmem:[#allocation2 + $0x978] sm:$0xff] }
 0x102   :  { %5385 = vmatpush.bf16.msrb.mxu3 %v8605_v17 }
 0x103   :  { %5347 = vmatpush.bf16.msrb.mxu0 %v8580_v19  ;;  %v8619_v19 = vld [vmem:[#allocation2 + $0x850] sm:$0xff] }
 0x104   :  { %5360 = vmatpush.bf16.msrb.mxu1 %v8588_v20 }
 0x105   :  { %5373 = vmatpush.bf16.msrb.mxu2 %v8596_v21  ;;  %v8627_v21 = vld [vmem:[#allocation2 + $0x890] sm:$0xff] }
 0x106   :  { %5386 = vmatpush.bf16.msrb.mxu3 %v8604_v22  ;;  %v8635_v22 = vld [vmem:[#allocation2 + $0x8d0] sm:$0xff] }
 0x107   :  { %5348 = vmatpush.bf16.msrb.mxu0 %v8579_v28  ;;  %v96_v28 = vld [vmem:[%s9246_s0 + $0x88] sm:$0xff] }
 0x108   :  { %5361 = vmatpush.bf16.msrb.mxu1 %v8587_v29  ;;  %v1342_v38 = vunpack.c.h.b16 %v96_v28 }
 0x109   :  { %5374 = vmatpush.bf16.msrb.mxu2 %v8595_v31  ;;  %v8609_v31 = vld [vmem:[#allocation2 + $0x800] sm:$0xff] }
 0x10a   :  { %5387 = vmatpush.bf16.msrb.mxu3 %v8603_v32  ;;  %v8617_v32 = vld [vmem:[#allocation2 + $0x840] sm:$0xff] }
 0x10b   :  { %5349 = vmatpush.bf16.msrb.mxu0 %v8578_v33 }
 0x10c   :  { %5362 = vmatpush.bf16.msrb.mxu1 %v8586_v34  ;;  %v1341_v34 = vunpack.c.l.b16 %v96_v28 }
 0x10d   :  { %5375 = vmatpush.bf16.msrb.mxu2 %v8594_v35  ;;  %v8625_v35 = vld [vmem:[#allocation2 + $0x880] sm:$0xff] }
 0x10e   :  { %5388 = vmatpush.bf16.msrb.mxu3 %v8602_v36  ;;  %v8633_v36 = vld [vmem:[#allocation2 + $0x8c0] sm:$0xff]  ;;  %v1413_v44 = vpack.c.b16 %v1341_v34, %v1341_v34 }
 0x10f   :  { %5350 = vmatpush.bf16.msrb.mxu0 %v8577_v41  ;;  %v5144_v1 = vpop.f32.mrf.mxu0  ;;  %v8664_v41 = vld [vmem:[#allocation2 + $0x9b8] sm:$0xff] }
 0x110   :  { %5363 = vmatpush.bf16.msrb.mxu1 %v8585_v42  ;;  %v5145_v2 = vadd.f32 %v5144_v1, %v9147_v27  ;;  %v5157_v5 = vpop.f32.mrf.mxu1  ;;  %v95_v27 = vld [vmem:[%s9246_s0 + $0x80] sm:$0xff]  ;;  %v8672_v42 = vld [vmem:[#allocation2 + $0x9f8] sm:$0xff] }
 0x111   :  { %5376 = vmatpush.bf16.msrb.mxu2 %v8593_v45  ;;  %v1339_v33 = vunpack.c.l.b16 %v95_v27  ;;  %v1340_v37 = vunpack.c.h.b16 %v95_v27  ;;  %v8660_v1 = vld [vmem:[#allocation2 + $0x998] sm:$0xff] }
 0x112   :  { %5389 = vmatpush.bf16.msrb.mxu3 %v8601_v46  ;;  %5351 = vmatmul.bf16.vlgmr.msrb.gmra.mxu0 %v1407_v53  ;;  %v5158_v8 = vadd.f32 %v5157_v5, %v5145_v2  ;;  %v1414_v46 = vpack.c.b16 %v1342_v38, %v1342_v38  ;;  %v8662_v53 = vld [vmem:[#allocation2 + $0x9a8] sm:$0xff]  ;;  %v8668_v2 = vld [vmem:[#allocation2 + $0x9d8] sm:$0xff]  ;;  %v8687_v38 = vld [vmem:[#allocation2 + $0xa70] sm:$0xff] }
 0x113   :  { %5395 = vmatpush.bf16.msra.mxu0 %v8616_v49  ;;  %5364 = vmatmul.bf16.vlgmr.msrb.gmra.mxu1 %v1408_v55  ;;  %v1411_v43 = vpack.c.b16 %v1339_v33, %v1339_v33  ;;  %v1412_v45 = vpack.c.b16 %v1340_v37, %v1340_v37  ;;  %v8663_v49 = vld [vmem:[#allocation2 + $0x9b0] sm:$0xff] }
 0x114   :  { %5408 = vmatpush.bf16.msra.mxu1 %v8624_v50  ;;  %5377 = vmatmul.bf16.vlgmr.msrb.gmra.mxu2 %v1409_v54  ;;  %v8671_v50 = vld [vmem:[#allocation2 + $0x9f0] sm:$0xff]  ;;  %v8670_v54 = vld [vmem:[#allocation2 + $0x9e8] sm:$0xff] }
 0x115   :  { %5421 = vmatpush.bf16.msra.mxu2 %v8632_v51  ;;  %5390 = vmatmul.bf16.vlgmr.msrb.gmra.mxu3 %v1410_v56  ;;  %v8646_v51 = vld [vmem:[#allocation2 + $0x928] sm:$0xff]  ;;  %v8679_v37 = vld [vmem:[#allocation2 + $0xa30] sm:$0xff] }
 0x116   :  { %5434 = vmatpush.bf16.msra.mxu3 %v8640_v52  ;;  %v8654_v52 = vld [vmem:[#allocation2 + $0x968] sm:$0xff] }
 0x117   :  { %5396 = vmatpush.bf16.msra.mxu0 %v8615_v57  ;;  %v5170_v13 = vpop.f32.mrf.mxu2  ;;  %v5146_v16 = vpop.f32.mrf.mxu0  ;;  %v8645_v57 = vld [vmem:[#allocation2 + $0x920] sm:$0xff] }
 0x118   :  { %5409 = vmatpush.bf16.msra.mxu1 %v8623_v58  ;;  %v5171_v14 = vadd.f32 %v5170_v13, %v5158_v8  ;;  %v5183_v15 = vpop.f32.mrf.mxu3  ;;  %v5159_v20 = vpop.f32.mrf.mxu1  ;;  %v8653_v58 = vld [vmem:[#allocation2 + $0x960] sm:$0xff]  ;;  %v8643_v8 = vld [vmem:[#allocation2 + $0x910] sm:$0xff]  ;;  %v8642_v13 = vld [vmem:[#allocation2 + $0x908] sm:$0xff] }
 0x119   :  { %5422 = vmatpush.bf16.msra.mxu2 %v8631_v59  ;;  %v8666_v16 = vld [vmem:[#allocation2 + $0x9c8] sm:$0xff] }
 0x11a   :  { %5435 = vmatpush.bf16.msra.mxu3 %v8639_v60  ;;  %v9156_v17 = vadd.f32 %v5183_v15, %v5171_v14  ;;  %v8661_v60 = vld [vmem:[#allocation2 + $0x9a0] sm:$0xff]  ;;  %v8650_v14 = vld [vmem:[#allocation2 + $0x948] sm:$0xff] }
 0x11b   :  { %5397 = vmatpush.bf16.msra.mxu0 %v8614_v61  ;;  %v8669_v61 = vld [vmem:[#allocation2 + $0x9e0] sm:$0xff]  ;;  %v8658_v15 = vld [vmem:[#allocation2 + $0x988] sm:$0xff] }
 0x11c   :  { %5410 = vmatpush.bf16.msra.mxu1 %v8622_v62 }
 0x11d   :  { %5423 = vmatpush.bf16.msra.mxu2 %v8630_v63  ;;  %v8644_v63 = vld [vmem:[#allocation2 + $0x918] sm:$0xff] }
 0x11e   :  { %5436 = vmatpush.bf16.msra.mxu3 %v8638_v0  ;;  %v8652_v0 = vld [vmem:[#allocation2 + $0x958] sm:$0xff] }
 0x11f   :  { %5398 = vmatpush.bf16.msra.mxu0 %v8613_v3  ;;  %v5172_v29 = vpop.f32.mrf.mxu2 }
 0x120   :  { %5411 = vmatpush.bf16.msra.mxu1 %v8621_v4  ;;  %v5185_v30 = vpop.f32.mrf.mxu3  ;;  %v8680_v29 = vld [vmem:[#allocation2 + $0xa38] sm:$0xff] }
 0x121   :  { %5424 = vmatpush.bf16.msra.mxu2 %v8629_v6  ;;  %v8688_v30 = vld [vmem:[#allocation2 + $0xa78] sm:$0xff] }
 0x122   :  { %5437 = vmatpush.bf16.msra.mxu3 %v8637_v7 }
 0x123   :  { %5399 = vmatpush.bf16.msra.mxu0 %v8612_v9  ;;  %v8651_v9 = vld [vmem:[#allocation2 + $0x950] sm:$0xff] }
 0x124   :  { %5412 = vmatpush.bf16.msra.mxu1 %v8620_v10 }
 0x125   :  { %5425 = vmatpush.bf16.msra.mxu2 %v8628_v11  ;;  %v8659_v11 = vld [vmem:[#allocation2 + $0x990] sm:$0xff] }
 0x126   :  { %5438 = vmatpush.bf16.msra.mxu3 %v8636_v12  ;;  %v8667_v12 = vld [vmem:[#allocation2 + $0x9d0] sm:$0xff] }
 0x127   :  { %5400 = vmatpush.bf16.msra.mxu0 %v8611_v18  ;;  %v98_v18 = vld [vmem:[%s9246_s0 + $0x98] sm:$0xff] }
 0x128   :  { %5413 = vmatpush.bf16.msra.mxu1 %v8619_v19  ;;  %v1346_v28 = vunpack.c.h.b16 %v98_v18 }
 0x129   :  { %5426 = vmatpush.bf16.msra.mxu2 %v8627_v21  ;;  %v8641_v21 = vld [vmem:[#allocation2 + $0x900] sm:$0xff] }
 0x12a   :  { %5439 = vmatpush.bf16.msra.mxu3 %v8635_v22  ;;  %v8649_v22 = vld [vmem:[#allocation2 + $0x940] sm:$0xff] }
 0x12b   :  { %5401 = vmatpush.bf16.msra.mxu0 %v8610_v23 }
 0x12c   :  { %5414 = vmatpush.bf16.msra.mxu1 %v8618_v24  ;;  %v1345_v24 = vunpack.c.l.b16 %v98_v18 }
 0x12d   :  { %5427 = vmatpush.bf16.msra.mxu2 %v8626_v25  ;;  %v8657_v25 = vld [vmem:[#allocation2 + $0x980] sm:$0xff] }
 0x12e   :  { %5440 = vmatpush.bf16.msra.mxu3 %v8634_v26  ;;  %v8665_v26 = vld [vmem:[#allocation2 + $0x9c0] sm:$0xff]  ;;  %v1417_v34 = vpack.c.b16 %v1345_v24, %v1345_v24 }
 0x12f   :  { %5402 = vmatpush.bf16.msra.mxu0 %v8609_v31  ;;  %v5196_v55 = vpop.f32.mrf.mxu0  ;;  %v8696_v31 = vld [vmem:[#allocation2 + $0xab8] sm:$0xff] }
 0x130   :  { %5415 = vmatpush.bf16.msra.mxu1 %v8617_v32  ;;  %v5197_v56 = vadd.f32 %v5196_v55, %v9156_v17  ;;  %v5209_v59 = vpop.f32.mrf.mxu1  ;;  %v97_v17 = vld [vmem:[%s9246_s0 + $0x90] sm:$0xff]  ;;  %v8704_v32 = vld [vmem:[#allocation2 + $0xaf8] sm:$0xff] }
 0x131   :  { %5428 = vmatpush.bf16.msra.mxu2 %v8625_v35  ;;  %v1343_v23 = vunpack.c.l.b16 %v97_v17  ;;  %v1344_v27 = vunpack.c.h.b16 %v97_v17  ;;  %v8692_v55 = vld [vmem:[#allocation2 + $0xa98] sm:$0xff] }
 0x132   :  { %5441 = vmatpush.bf16.msra.mxu3 %v8633_v36  ;;  %5403 = vmatmul.bf16.vlgmr.msra.gmra.mxu0 %v1411_v43  ;;  %v5210_v62 = vadd.f32 %v5209_v59, %v5197_v56  ;;  %v1418_v36 = vpack.c.b16 %v1346_v28, %v1346_v28  ;;  %v8694_v43 = vld [vmem:[#allocation2 + $0xaa8] sm:$0xff]  ;;  %v8700_v56 = vld [vmem:[#allocation2 + $0xad8] sm:$0xff]  ;;  %v8719_v28 = vld [vmem:[#allocation2 + $0xb70] sm:$0xff] }
 0x133   :  { %5447 = vmatpush.bf16.msrb.mxu0 %v8648_v39  ;;  %5416 = vmatmul.bf16.vlgmr.msra.gmra.mxu1 %v1412_v45  ;;  %v1415_v33 = vpack.c.b16 %v1343_v23, %v1343_v23  ;;  %v1416_v35 = vpack.c.b16 %v1344_v27, %v1344_v27  ;;  %v8695_v39 = vld [vmem:[#allocation2 + $0xab0] sm:$0xff] }
 0x134   :  { %5460 = vmatpush.bf16.msrb.mxu1 %v8656_v40  ;;  %5429 = vmatmul.bf16.vlgmr.msra.gmra.mxu2 %v1413_v44  ;;  %v8703_v40 = vld [vmem:[#allocation2 + $0xaf0] sm:$0xff]  ;;  %v8702_v44 = vld [vmem:[#allocation2 + $0xae8] sm:$0xff] }
 0x135   :  { %5473 = vmatpush.bf16.msrb.mxu2 %v8664_v41  ;;  %5442 = vmatmul.bf16.vlgmr.msra.gmra.mxu3 %v1414_v46  ;;  %v8678_v41 = vld [vmem:[#allocation2 + $0xa28] sm:$0xff]  ;;  %v8711_v27 = vld [vmem:[#allocation2 + $0xb30] sm:$0xff] }
 0x136   :  { %5486 = vmatpush.bf16.msrb.mxu3 %v8672_v42  ;;  %v8686_v42 = vld [vmem:[#allocation2 + $0xa68] sm:$0xff] }
 0x137   :  { %5448 = vmatpush.bf16.msrb.mxu0 %v8647_v47  ;;  %v5222_v3 = vpop.f32.mrf.mxu2  ;;  %v5198_v6 = vpop.f32.mrf.mxu0  ;;  %v8677_v47 = vld [vmem:[#allocation2 + $0xa20] sm:$0xff] }
 0x138   :  { %5461 = vmatpush.bf16.msrb.mxu1 %v8655_v48  ;;  %v5223_v4 = vadd.f32 %v5222_v3, %v5210_v62  ;;  %v5235_v5 = vpop.f32.mrf.mxu3  ;;  %v5211_v10 = vpop.f32.mrf.mxu1  ;;  %v8685_v48 = vld [vmem:[#allocation2 + $0xa60] sm:$0xff]  ;;  %v8675_v62 = vld [vmem:[#allocation2 + $0xa10] sm:$0xff]  ;;  %v8674_v3 = vld [vmem:[#allocation2 + $0xa08] sm:$0xff] }
 0x139   :  { %5474 = vmatpush.bf16.msrb.mxu2 %v8663_v49  ;;  %v8698_v6 = vld [vmem:[#allocation2 + $0xac8] sm:$0xff] }
 0x13a   :  { %5487 = vmatpush.bf16.msrb.mxu3 %v8671_v50  ;;  %v9165_v7 = vadd.f32 %v5235_v5, %v5223_v4  ;;  %v8693_v50 = vld [vmem:[#allocation2 + $0xaa0] sm:$0xff]  ;;  %v8682_v4 = vld [vmem:[#allocation2 + $0xa48] sm:$0xff] }
 0x13b   :  { %5449 = vmatpush.bf16.msrb.mxu0 %v8646_v51  ;;  %v8701_v51 = vld [vmem:[#allocation2 + $0xae0] sm:$0xff]  ;;  %v8690_v5 = vld [vmem:[#allocation2 + $0xa88] sm:$0xff] }
 0x13c   :  { %5462 = vmatpush.bf16.msrb.mxu1 %v8654_v52 }
 0x13d   :  { %5475 = vmatpush.bf16.msrb.mxu2 %v8662_v53  ;;  %v8676_v53 = vld [vmem:[#allocation2 + $0xa18] sm:$0xff] }
 0x13e   :  { %5488 = vmatpush.bf16.msrb.mxu3 %v8670_v54  ;;  %v8684_v54 = vld [vmem:[#allocation2 + $0xa58] sm:$0xff] }
 0x13f   :  { %5450 = vmatpush.bf16.msrb.mxu0 %v8645_v57  ;;  %v5224_v19 = vpop.f32.mrf.mxu2 }
 0x140   :  { %5463 = vmatpush.bf16.msrb.mxu1 %v8653_v58  ;;  %v5237_v20 = vpop.f32.mrf.mxu3  ;;  %v8712_v19 = vld [vmem:[#allocation2 + $0xb38] sm:$0xff] }
 0x141   :  { %5476 = vmatpush.bf16.msrb.mxu2 %v8661_v60  ;;  %v8720_v20 = vld [vmem:[#allocation2 + $0xb78] sm:$0xff] }
 0x142   :  { %5489 = vmatpush.bf16.msrb.mxu3 %v8669_v61 }
 0x143   :  { %5451 = vmatpush.bf16.msrb.mxu0 %v8644_v63  ;;  %v8683_v63 = vld [vmem:[#allocation2 + $0xa50] sm:$0xff] }
 0x144   :  { %5464 = vmatpush.bf16.msrb.mxu1 %v8652_v0 }
 0x145   :  { %5477 = vmatpush.bf16.msrb.mxu2 %v8660_v1  ;;  %v8691_v1 = vld [vmem:[#allocation2 + $0xa90] sm:$0xff] }
 0x146   :  { %5490 = vmatpush.bf16.msrb.mxu3 %v8668_v2  ;;  %v8699_v2 = vld [vmem:[#allocation2 + $0xad0] sm:$0xff] }
 0x147   :  { %5452 = vmatpush.bf16.msrb.mxu0 %v8643_v8  ;;  %v100_v8 = vld [vmem:[%s9246_s0 + $0xa8] sm:$0xff] }
 0x148   :  { %5465 = vmatpush.bf16.msrb.mxu1 %v8651_v9  ;;  %v1350_v18 = vunpack.c.h.b16 %v100_v8 }
 0x149   :  { %5478 = vmatpush.bf16.msrb.mxu2 %v8659_v11  ;;  %v8673_v11 = vld [vmem:[#allocation2 + $0xa00] sm:$0xff] }
 0x14a   :  { %5491 = vmatpush.bf16.msrb.mxu3 %v8667_v12  ;;  %v8681_v12 = vld [vmem:[#allocation2 + $0xa40] sm:$0xff] }
 0x14b   :  { %5453 = vmatpush.bf16.msrb.mxu0 %v8642_v13 }
 0x14c   :  { %5466 = vmatpush.bf16.msrb.mxu1 %v8650_v14  ;;  %v1349_v14 = vunpack.c.l.b16 %v100_v8 }
 0x14d   :  { %5479 = vmatpush.bf16.msrb.mxu2 %v8658_v15  ;;  %v8689_v15 = vld [vmem:[#allocation2 + $0xa80] sm:$0xff] }
 0x14e   :  { %5492 = vmatpush.bf16.msrb.mxu3 %v8666_v16  ;;  %v8697_v16 = vld [vmem:[#allocation2 + $0xac0] sm:$0xff]  ;;  %v1421_v24 = vpack.c.b16 %v1349_v14, %v1349_v14 }
 0x14f   :  { %5454 = vmatpush.bf16.msrb.mxu0 %v8641_v21  ;;  %v5248_v45 = vpop.f32.mrf.mxu0  ;;  %v8728_v21 = vld [vmem:[#allocation2 + $0xbb8] sm:$0xff] }
 0x150   :  { %5467 = vmatpush.bf16.msrb.mxu1 %v8649_v22  ;;  %v5249_v46 = vadd.f32 %v5248_v45, %v9165_v7  ;;  %v5261_v49 = vpop.f32.mrf.mxu1  ;;  %v99_v7 = vld [vmem:[%s9246_s0 + $0xa0] sm:$0xff]  ;;  %v8736_v22 = vld [vmem:[#allocation2 + $0xbf8] sm:$0xff] }
 0x151   :  { %5480 = vmatpush.bf16.msrb.mxu2 %v8657_v25  ;;  %v1347_v13 = vunpack.c.l.b16 %v99_v7  ;;  %v1348_v17 = vunpack.c.h.b16 %v99_v7  ;;  %v8724_v45 = vld [vmem:[#allocation2 + $0xb98] sm:$0xff] }
 0x152   :  { %5493 = vmatpush.bf16.msrb.mxu3 %v8665_v26  ;;  %5455 = vmatmul.bf16.vlgmr.msrb.gmra.mxu0 %v1415_v33  ;;  %v5262_v52 = vadd.f32 %v5261_v49, %v5249_v46  ;;  %v1422_v26 = vpack.c.b16 %v1350_v18, %v1350_v18  ;;  %v8726_v33 = vld [vmem:[#allocation2 + $0xba8] sm:$0xff]  ;;  %v8732_v46 = vld [vmem:[#allocation2 + $0xbd8] sm:$0xff]  ;;  %v8751_v18 = vld [vmem:[#allocation2 + $0xc70] sm:$0xff] }
 0x153   :  { %5499 = vmatpush.bf16.msra.mxu0 %v8680_v29  ;;  %5468 = vmatmul.bf16.vlgmr.msrb.gmra.mxu1 %v1416_v35  ;;  %v1419_v23 = vpack.c.b16 %v1347_v13, %v1347_v13  ;;  %v1420_v25 = vpack.c.b16 %v1348_v17, %v1348_v17  ;;  %v8727_v29 = vld [vmem:[#allocation2 + $0xbb0] sm:$0xff] }
 0x154   :  { %5512 = vmatpush.bf16.msra.mxu1 %v8688_v30  ;;  %5481 = vmatmul.bf16.vlgmr.msrb.gmra.mxu2 %v1417_v34  ;;  %v8735_v30 = vld [vmem:[#allocation2 + $0xbf0] sm:$0xff]  ;;  %v8734_v34 = vld [vmem:[#allocation2 + $0xbe8] sm:$0xff] }
 0x155   :  { %5525 = vmatpush.bf16.msra.mxu2 %v8696_v31  ;;  %5494 = vmatmul.bf16.vlgmr.msrb.gmra.mxu3 %v1418_v36  ;;  %v8710_v31 = vld [vmem:[#allocation2 + $0xb28] sm:$0xff]  ;;  %v8743_v17 = vld [vmem:[#allocation2 + $0xc30] sm:$0xff] }
 0x156   :  { %5538 = vmatpush.bf16.msra.mxu3 %v8704_v32  ;;  %v8718_v32 = vld [vmem:[#allocation2 + $0xb68] sm:$0xff] }
 0x157   :  { %5500 = vmatpush.bf16.msra.mxu0 %v8679_v37  ;;  %v5274_v57 = vpop.f32.mrf.mxu2  ;;  %v5250_v60 = vpop.f32.mrf.mxu0  ;;  %v8709_v37 = vld [vmem:[#allocation2 + $0xb20] sm:$0xff] }
 0x158   :  { %5513 = vmatpush.bf16.msra.mxu1 %v8687_v38  ;;  %v5275_v58 = vadd.f32 %v5274_v57, %v5262_v52  ;;  %v5287_v59 = vpop.f32.mrf.mxu3  ;;  %v5263_v0 = vpop.f32.mrf.mxu1  ;;  %v8717_v38 = vld [vmem:[#allocation2 + $0xb60] sm:$0xff]  ;;  %v8707_v52 = vld [vmem:[#allocation2 + $0xb10] sm:$0xff]  ;;  %v8706_v57 = vld [vmem:[#allocation2 + $0xb08] sm:$0xff] }
 0x159   :  { %5526 = vmatpush.bf16.msra.mxu2 %v8695_v39  ;;  %v8730_v60 = vld [vmem:[#allocation2 + $0xbc8] sm:$0xff] }
 0x15a   :  { %5539 = vmatpush.bf16.msra.mxu3 %v8703_v40  ;;  %v9174_v61 = vadd.f32 %v5287_v59, %v5275_v58  ;;  %v8725_v40 = vld [vmem:[#allocation2 + $0xba0] sm:$0xff]  ;;  %v8714_v58 = vld [vmem:[#allocation2 + $0xb48] sm:$0xff] }
 0x15b   :  { %5501 = vmatpush.bf16.msra.mxu0 %v8678_v41  ;;  %v8733_v41 = vld [vmem:[#allocation2 + $0xbe0] sm:$0xff]  ;;  %v8722_v59 = vld [vmem:[#allocation2 + $0xb88] sm:$0xff] }
 0x15c   :  { %5514 = vmatpush.bf16.msra.mxu1 %v8686_v42 }
 0x15d   :  { %5527 = vmatpush.bf16.msra.mxu2 %v8694_v43  ;;  %v8708_v43 = vld [vmem:[#allocation2 + $0xb18] sm:$0xff] }
 0x15e   :  { %5540 = vmatpush.bf16.msra.mxu3 %v8702_v44  ;;  %v8716_v44 = vld [vmem:[#allocation2 + $0xb58] sm:$0xff] }
 0x15f   :  { %5502 = vmatpush.bf16.msra.mxu0 %v8677_v47  ;;  %v5276_v9 = vpop.f32.mrf.mxu2 }
 0x160   :  { %5515 = vmatpush.bf16.msra.mxu1 %v8685_v48  ;;  %v5289_v10 = vpop.f32.mrf.mxu3  ;;  %v8744_v9 = vld [vmem:[#allocation2 + $0xc38] sm:$0xff] }
 0x161   :  { %5528 = vmatpush.bf16.msra.mxu2 %v8693_v50  ;;  %v8752_v10 = vld [vmem:[#allocation2 + $0xc78] sm:$0xff] }
 0x162   :  { %5541 = vmatpush.bf16.msra.mxu3 %v8701_v51 }
 0x163   :  { %5503 = vmatpush.bf16.msra.mxu0 %v8676_v53  ;;  %v8715_v53 = vld [vmem:[#allocation2 + $0xb50] sm:$0xff] }
 0x164   :  { %5516 = vmatpush.bf16.msra.mxu1 %v8684_v54 }
 0x165   :  { %5529 = vmatpush.bf16.msra.mxu2 %v8692_v55  ;;  %v8723_v55 = vld [vmem:[#allocation2 + $0xb90] sm:$0xff] }
 0x166   :  { %5542 = vmatpush.bf16.msra.mxu3 %v8700_v56  ;;  %v8731_v56 = vld [vmem:[#allocation2 + $0xbd0] sm:$0xff] }
 0x167   :  { %5504 = vmatpush.bf16.msra.mxu0 %v8675_v62  ;;  %v102_v62 = vld [vmem:[%s9246_s0 + $0xb8] sm:$0xff] }
 0x168   :  { %5517 = vmatpush.bf16.msra.mxu1 %v8683_v63  ;;  %v1354_v8 = vunpack.c.h.b16 %v102_v62 }
 0x169   :  { %5530 = vmatpush.bf16.msra.mxu2 %v8691_v1  ;;  %v8705_v1 = vld [vmem:[#allocation2 + $0xb00] sm:$0xff] }
 0x16a   :  { %5543 = vmatpush.bf16.msra.mxu3 %v8699_v2  ;;  %v8713_v2 = vld [vmem:[#allocation2 + $0xb40] sm:$0xff] }
 0x16b   :  { %5505 = vmatpush.bf16.msra.mxu0 %v8674_v3 }
 0x16c   :  { %5518 = vmatpush.bf16.msra.mxu1 %v8682_v4  ;;  %v1353_v4 = vunpack.c.l.b16 %v102_v62 }
 0x16d   :  { %5531 = vmatpush.bf16.msra.mxu2 %v8690_v5  ;;  %v8721_v5 = vld [vmem:[#allocation2 + $0xb80] sm:$0xff] }
 0x16e   :  { %5544 = vmatpush.bf16.msra.mxu3 %v8698_v6  ;;  %v8729_v6 = vld [vmem:[#allocation2 + $0xbc0] sm:$0xff]  ;;  %v1425_v14 = vpack.c.b16 %v1353_v4, %v1353_v4 }
 0x16f   :  { %5506 = vmatpush.bf16.msra.mxu0 %v8673_v11  ;;  %v5300_v35 = vpop.f32.mrf.mxu0  ;;  %v8760_v11 = vld [vmem:[#allocation2 + $0xcb8] sm:$0xff] }
 0x170   :  { %5519 = vmatpush.bf16.msra.mxu1 %v8681_v12  ;;  %v5301_v36 = vadd.f32 %v5300_v35, %v9174_v61  ;;  %v5313_v39 = vpop.f32.mrf.mxu1  ;;  %v101_v61 = vld [vmem:[%s9246_s0 + $0xb0] sm:$0xff]  ;;  %v8768_v12 = vld [vmem:[#allocation2 + $0xcf8] sm:$0xff] }
 0x171   :  { %5532 = vmatpush.bf16.msra.mxu2 %v8689_v15  ;;  %v1351_v3 = vunpack.c.l.b16 %v101_v61  ;;  %v1352_v7 = vunpack.c.h.b16 %v101_v61  ;;  %v8756_v35 = vld [vmem:[#allocation2 + $0xc98] sm:$0xff] }
 0x172   :  { %5545 = vmatpush.bf16.msra.mxu3 %v8697_v16  ;;  %5507 = vmatmul.bf16.vlgmr.msra.gmra.mxu0 %v1419_v23  ;;  %v5314_v42 = vadd.f32 %v5313_v39, %v5301_v36  ;;  %v1426_v16 = vpack.c.b16 %v1354_v8, %v1354_v8  ;;  %v8758_v23 = vld [vmem:[#allocation2 + $0xca8] sm:$0xff]  ;;  %v8764_v36 = vld [vmem:[#allocation2 + $0xcd8] sm:$0xff]  ;;  %v8783_v8 = vld [vmem:[#allocation2 + $0xd70] sm:$0xff] }
 0x173   :  { %5551 = vmatpush.bf16.msrb.mxu0 %v8712_v19  ;;  %5520 = vmatmul.bf16.vlgmr.msra.gmra.mxu1 %v1420_v25  ;;  %v1423_v13 = vpack.c.b16 %v1351_v3, %v1351_v3  ;;  %v1424_v15 = vpack.c.b16 %v1352_v7, %v1352_v7  ;;  %v8759_v19 = vld [vmem:[#allocation2 + $0xcb0] sm:$0xff] }
 0x174   :  { %5564 = vmatpush.bf16.msrb.mxu1 %v8720_v20  ;;  %5533 = vmatmul.bf16.vlgmr.msra.gmra.mxu2 %v1421_v24  ;;  %v8767_v20 = vld [vmem:[#allocation2 + $0xcf0] sm:$0xff]  ;;  %v8766_v24 = vld [vmem:[#allocation2 + $0xce8] sm:$0xff] }
 0x175   :  { %5577 = vmatpush.bf16.msrb.mxu2 %v8728_v21  ;;  %5546 = vmatmul.bf16.vlgmr.msra.gmra.mxu3 %v1422_v26  ;;  %v8742_v21 = vld [vmem:[#allocation2 + $0xc28] sm:$0xff]  ;;  %v8775_v7 = vld [vmem:[#allocation2 + $0xd30] sm:$0xff] }
 0x176   :  { %5590 = vmatpush.bf16.msrb.mxu3 %v8736_v22  ;;  %v8750_v22 = vld [vmem:[#allocation2 + $0xc68] sm:$0xff] }
 0x177   :  { %5552 = vmatpush.bf16.msrb.mxu0 %v8711_v27  ;;  %v5326_v47 = vpop.f32.mrf.mxu2  ;;  %v5302_v50 = vpop.f32.mrf.mxu0  ;;  %v8741_v27 = vld [vmem:[#allocation2 + $0xc20] sm:$0xff] }
 0x178   :  { %5565 = vmatpush.bf16.msrb.mxu1 %v8719_v28  ;;  %v5327_v48 = vadd.f32 %v5326_v47, %v5314_v42  ;;  %v5339_v49 = vpop.f32.mrf.mxu3  ;;  %v5315_v54 = vpop.f32.mrf.mxu1  ;;  %v8749_v28 = vld [vmem:[#allocation2 + $0xc60] sm:$0xff]  ;;  %v8739_v42 = vld [vmem:[#allocation2 + $0xc10] sm:$0xff]  ;;  %v8738_v47 = vld [vmem:[#allocation2 + $0xc08] sm:$0xff] }
 0x179   :  { %5578 = vmatpush.bf16.msrb.mxu2 %v8727_v29  ;;  %v8762_v50 = vld [vmem:[#allocation2 + $0xcc8] sm:$0xff] }
 0x17a   :  { %5591 = vmatpush.bf16.msrb.mxu3 %v8735_v30  ;;  %v9183_v51 = vadd.f32 %v5339_v49, %v5327_v48  ;;  %v8757_v30 = vld [vmem:[#allocation2 + $0xca0] sm:$0xff]  ;;  %v8746_v48 = vld [vmem:[#allocation2 + $0xc48] sm:$0xff] }
 0x17b   :  { %5553 = vmatpush.bf16.msrb.mxu0 %v8710_v31  ;;  %v8765_v31 = vld [vmem:[#allocation2 + $0xce0] sm:$0xff]  ;;  %v8754_v49 = vld [vmem:[#allocation2 + $0xc88] sm:$0xff] }
 0x17c   :  { %5566 = vmatpush.bf16.msrb.mxu1 %v8718_v32 }
 0x17d   :  { %5579 = vmatpush.bf16.msrb.mxu2 %v8726_v33  ;;  %v8740_v33 = vld [vmem:[#allocation2 + $0xc18] sm:$0xff] }
 0x17e   :  { %5592 = vmatpush.bf16.msrb.mxu3 %v8734_v34  ;;  %v8748_v34 = vld [vmem:[#allocation2 + $0xc58] sm:$0xff] }
 0x17f   :  { %5554 = vmatpush.bf16.msrb.mxu0 %v8709_v37  ;;  %v5328_v63 = vpop.f32.mrf.mxu2 }
 0x180   :  { %5567 = vmatpush.bf16.msrb.mxu1 %v8717_v38  ;;  %v5341_v0 = vpop.f32.mrf.mxu3  ;;  %v8776_v63 = vld [vmem:[#allocation2 + $0xd38] sm:$0xff] }
 0x181   :  { %5580 = vmatpush.bf16.msrb.mxu2 %v8725_v40  ;;  %v8784_v0 = vld [vmem:[#allocation2 + $0xd78] sm:$0xff] }
 0x182   :  { %5593 = vmatpush.bf16.msrb.mxu3 %v8733_v41 }
 0x183   :  { %5555 = vmatpush.bf16.msrb.mxu0 %v8708_v43  ;;  %v8747_v43 = vld [vmem:[#allocation2 + $0xc50] sm:$0xff] }
 0x184   :  { %5568 = vmatpush.bf16.msrb.mxu1 %v8716_v44 }
 0x185   :  { %5581 = vmatpush.bf16.msrb.mxu2 %v8724_v45  ;;  %v8755_v45 = vld [vmem:[#allocation2 + $0xc90] sm:$0xff] }
 0x186   :  { %5594 = vmatpush.bf16.msrb.mxu3 %v8732_v46  ;;  %v8763_v46 = vld [vmem:[#allocation2 + $0xcd0] sm:$0xff] }
 0x187   :  { %5556 = vmatpush.bf16.msrb.mxu0 %v8707_v52  ;;  %v104_v52 = vld [vmem:[%s9246_s0 + $0xc8] sm:$0xff] }
 0x188   :  { %5569 = vmatpush.bf16.msrb.mxu1 %v8715_v53  ;;  %v1358_v62 = vunpack.c.h.b16 %v104_v52 }
 0x189   :  { %5582 = vmatpush.bf16.msrb.mxu2 %v8723_v55  ;;  %v8737_v55 = vld [vmem:[#allocation2 + $0xc00] sm:$0xff] }
 0x18a   :  { %5595 = vmatpush.bf16.msrb.mxu3 %v8731_v56  ;;  %v8745_v56 = vld [vmem:[#allocation2 + $0xc40] sm:$0xff] }
 0x18b   :  { %5557 = vmatpush.bf16.msrb.mxu0 %v8706_v57 }
 0x18c   :  { %5570 = vmatpush.bf16.msrb.mxu1 %v8714_v58  ;;  %v1357_v58 = vunpack.c.l.b16 %v104_v52 }
 0x18d   :  { %5583 = vmatpush.bf16.msrb.mxu2 %v8722_v59  ;;  %v8753_v59 = vld [vmem:[#allocation2 + $0xc80] sm:$0xff] }
 0x18e   :  { %5596 = vmatpush.bf16.msrb.mxu3 %v8730_v60  ;;  %v8761_v60 = vld [vmem:[#allocation2 + $0xcc0] sm:$0xff]  ;;  %v1429_v4 = vpack.c.b16 %v1357_v58, %v1357_v58 }
 0x18f   :  { %5558 = vmatpush.bf16.msrb.mxu0 %v8705_v1  ;;  %v5352_v25 = vpop.f32.mrf.mxu0  ;;  %v8792_v1 = vld [vmem:[#allocation2 + $0xdb8] sm:$0xff] }
 0x190   :  { %5571 = vmatpush.bf16.msrb.mxu1 %v8713_v2  ;;  %v5353_v26 = vadd.f32 %v5352_v25, %v9183_v51  ;;  %v5365_v29 = vpop.f32.mrf.mxu1  ;;  %v103_v51 = vld [vmem:[%s9246_s0 + $0xc0] sm:$0xff]  ;;  %v8800_v2 = vld [vmem:[#allocation2 + $0xdf8] sm:$0xff] }
 0x191   :  { %5584 = vmatpush.bf16.msrb.mxu2 %v8721_v5  ;;  %v1355_v57 = vunpack.c.l.b16 %v103_v51  ;;  %v1356_v61 = vunpack.c.h.b16 %v103_v51  ;;  %v8788_v25 = vld [vmem:[#allocation2 + $0xd98] sm:$0xff] }
 0x192   :  { %5597 = vmatpush.bf16.msrb.mxu3 %v8729_v6  ;;  %5559 = vmatmul.bf16.vlgmr.msrb.gmra.mxu0 %v1423_v13  ;;  %v5366_v32 = vadd.f32 %v5365_v29, %v5353_v26  ;;  %v1430_v6 = vpack.c.b16 %v1358_v62, %v1358_v62  ;;  %v8790_v13 = vld [vmem:[#allocation2 + $0xda8] sm:$0xff]  ;;  %v8796_v26 = vld [vmem:[#allocation2 + $0xdd8] sm:$0xff]  ;;  %v8815_v62 = vld [vmem:[#allocation2 + $0xe70] sm:$0xff] }
 0x193   :  { %5603 = vmatpush.bf16.msra.mxu0 %v8744_v9  ;;  %5572 = vmatmul.bf16.vlgmr.msrb.gmra.mxu1 %v1424_v15  ;;  %v1427_v3 = vpack.c.b16 %v1355_v57, %v1355_v57  ;;  %v1428_v5 = vpack.c.b16 %v1356_v61, %v1356_v61  ;;  %v8791_v9 = vld [vmem:[#allocation2 + $0xdb0] sm:$0xff] }
 0x194   :  { %5616 = vmatpush.bf16.msra.mxu1 %v8752_v10  ;;  %5585 = vmatmul.bf16.vlgmr.msrb.gmra.mxu2 %v1425_v14  ;;  %v8799_v10 = vld [vmem:[#allocation2 + $0xdf0] sm:$0xff]  ;;  %v8798_v14 = vld [vmem:[#allocation2 + $0xde8] sm:$0xff] }
 0x195   :  { %5629 = vmatpush.bf16.msra.mxu2 %v8760_v11  ;;  %5598 = vmatmul.bf16.vlgmr.msrb.gmra.mxu3 %v1426_v16  ;;  %v8774_v11 = vld [vmem:[#allocation2 + $0xd28] sm:$0xff]  ;;  %v8807_v61 = vld [vmem:[#allocation2 + $0xe30] sm:$0xff] }
 0x196   :  { %5642 = vmatpush.bf16.msra.mxu3 %v8768_v12  ;;  %v8782_v12 = vld [vmem:[#allocation2 + $0xd68] sm:$0xff] }
 0x197   :  { %5604 = vmatpush.bf16.msra.mxu0 %v8743_v17  ;;  %v5378_v37 = vpop.f32.mrf.mxu2  ;;  %v5354_v40 = vpop.f32.mrf.mxu0  ;;  %v8773_v17 = vld [vmem:[#allocation2 + $0xd20] sm:$0xff] }
 0x198   :  { %5617 = vmatpush.bf16.msra.mxu1 %v8751_v18  ;;  %v5379_v38 = vadd.f32 %v5378_v37, %v5366_v32  ;;  %v5391_v39 = vpop.f32.mrf.mxu3  ;;  %v5367_v44 = vpop.f32.mrf.mxu1  ;;  %v8781_v18 = vld [vmem:[#allocation2 + $0xd60] sm:$0xff]  ;;  %v8771_v32 = vld [vmem:[#allocation2 + $0xd10] sm:$0xff]  ;;  %v8770_v37 = vld [vmem:[#allocation2 + $0xd08] sm:$0xff] }
 0x199   :  { %5630 = vmatpush.bf16.msra.mxu2 %v8759_v19  ;;  %v8794_v40 = vld [vmem:[#allocation2 + $0xdc8] sm:$0xff] }
 0x19a   :  { %5643 = vmatpush.bf16.msra.mxu3 %v8767_v20  ;;  %v9192_v41 = vadd.f32 %v5391_v39, %v5379_v38  ;;  %v8789_v20 = vld [vmem:[#allocation2 + $0xda0] sm:$0xff]  ;;  %v8778_v38 = vld [vmem:[#allocation2 + $0xd48] sm:$0xff] }
 0x19b   :  { %5605 = vmatpush.bf16.msra.mxu0 %v8742_v21  ;;  %v8797_v21 = vld [vmem:[#allocation2 + $0xde0] sm:$0xff]  ;;  %v8786_v39 = vld [vmem:[#allocation2 + $0xd88] sm:$0xff] }
 0x19c   :  { %5618 = vmatpush.bf16.msra.mxu1 %v8750_v22 }
 0x19d   :  { %5631 = vmatpush.bf16.msra.mxu2 %v8758_v23  ;;  %v8772_v23 = vld [vmem:[#allocation2 + $0xd18] sm:$0xff] }
 0x19e   :  { %5644 = vmatpush.bf16.msra.mxu3 %v8766_v24  ;;  %v8780_v24 = vld [vmem:[#allocation2 + $0xd58] sm:$0xff] }
 0x19f   :  { %5606 = vmatpush.bf16.msra.mxu0 %v8741_v27  ;;  %v5380_v53 = vpop.f32.mrf.mxu2 }
 0x1a0   :  { %5619 = vmatpush.bf16.msra.mxu1 %v8749_v28  ;;  %v5393_v54 = vpop.f32.mrf.mxu3  ;;  %v8808_v53 = vld [vmem:[#allocation2 + $0xe38] sm:$0xff] }
 0x1a1   :  { %5632 = vmatpush.bf16.msra.mxu2 %v8757_v30  ;;  %v8816_v54 = vld [vmem:[#allocation2 + $0xe78] sm:$0xff] }
 0x1a2   :  { %5645 = vmatpush.bf16.msra.mxu3 %v8765_v31 }
 0x1a3   :  { %5607 = vmatpush.bf16.msra.mxu0 %v8740_v33  ;;  %v8779_v33 = vld [vmem:[#allocation2 + $0xd50] sm:$0xff] }
 0x1a4   :  { %5620 = vmatpush.bf16.msra.mxu1 %v8748_v34 }
 0x1a5   :  { %5633 = vmatpush.bf16.msra.mxu2 %v8756_v35  ;;  %v8787_v35 = vld [vmem:[#allocation2 + $0xd90] sm:$0xff] }
 0x1a6   :  { %5646 = vmatpush.bf16.msra.mxu3 %v8764_v36  ;;  %v8795_v36 = vld [vmem:[#allocation2 + $0xdd0] sm:$0xff] }
 0x1a7   :  { %5608 = vmatpush.bf16.msra.mxu0 %v8739_v42  ;;  %v106_v42 = vld [vmem:[%s9246_s0 + $0xd8] sm:$0xff] }
 0x1a8   :  { %5621 = vmatpush.bf16.msra.mxu1 %v8747_v43  ;;  %v1362_v52 = vunpack.c.h.b16 %v106_v42 }
 0x1a9   :  { %5634 = vmatpush.bf16.msra.mxu2 %v8755_v45  ;;  %v8769_v45 = vld [vmem:[#allocation2 + $0xd00] sm:$0xff] }
 0x1aa   :  { %5647 = vmatpush.bf16.msra.mxu3 %v8763_v46  ;;  %v8777_v46 = vld [vmem:[#allocation2 + $0xd40] sm:$0xff] }
 0x1ab   :  { %5609 = vmatpush.bf16.msra.mxu0 %v8738_v47 }
 0x1ac   :  { %5622 = vmatpush.bf16.msra.mxu1 %v8746_v48  ;;  %v1361_v48 = vunpack.c.l.b16 %v106_v42 }
 0x1ad   :  { %5635 = vmatpush.bf16.msra.mxu2 %v8754_v49  ;;  %v8785_v49 = vld [vmem:[#allocation2 + $0xd80] sm:$0xff] }
 0x1ae   :  { %5648 = vmatpush.bf16.msra.mxu3 %v8762_v50  ;;  %v8793_v50 = vld [vmem:[#allocation2 + $0xdc0] sm:$0xff]  ;;  %v1433_v58 = vpack.c.b16 %v1361_v48, %v1361_v48 }
 0x1af   :  { %5610 = vmatpush.bf16.msra.mxu0 %v8737_v55  ;;  %v5404_v15 = vpop.f32.mrf.mxu0  ;;  %v8824_v55 = vld [vmem:[#allocation2 + $0xeb8] sm:$0xff] }
 0x1b0   :  { %5623 = vmatpush.bf16.msra.mxu1 %v8745_v56  ;;  %v5405_v16 = vadd.f32 %v5404_v15, %v9192_v41  ;;  %v5417_v19 = vpop.f32.mrf.mxu1  ;;  %v105_v41 = vld [vmem:[%s9246_s0 + $0xd0] sm:$0xff]  ;;  %v8832_v56 = vld [vmem:[#allocation2 + $0xef8] sm:$0xff] }
 0x1b1   :  { %5636 = vmatpush.bf16.msra.mxu2 %v8753_v59  ;;  %v1359_v47 = vunpack.c.l.b16 %v105_v41  ;;  %v1360_v51 = vunpack.c.h.b16 %v105_v41  ;;  %v8820_v15 = vld [vmem:[#allocation2 + $0xe98] sm:$0xff] }
 0x1b2   :  { %5649 = vmatpush.bf16.msra.mxu3 %v8761_v60  ;;  %5611 = vmatmul.bf16.vlgmr.msra.gmra.mxu0 %v1427_v3  ;;  %v5418_v22 = vadd.f32 %v5417_v19, %v5405_v16  ;;  %v1434_v60 = vpack.c.b16 %v1362_v52, %v1362_v52  ;;  %v8822_v3 = vld [vmem:[#allocation2 + $0xea8] sm:$0xff]  ;;  %v8828_v16 = vld [vmem:[#allocation2 + $0xed8] sm:$0xff]  ;;  %v8847_v52 = vld [vmem:[#allocation2 + $0xf70] sm:$0xff] }
 0x1b3   :  { %5655 = vmatpush.bf16.msrb.mxu0 %v8776_v63  ;;  %5624 = vmatmul.bf16.vlgmr.msra.gmra.mxu1 %v1428_v5  ;;  %v1431_v57 = vpack.c.b16 %v1359_v47, %v1359_v47  ;;  %v1432_v59 = vpack.c.b16 %v1360_v51, %v1360_v51  ;;  %v8823_v63 = vld [vmem:[#allocation2 + $0xeb0] sm:$0xff] }
 0x1b4   :  { %5668 = vmatpush.bf16.msrb.mxu1 %v8784_v0  ;;  %5637 = vmatmul.bf16.vlgmr.msra.gmra.mxu2 %v1429_v4  ;;  %v8831_v0 = vld [vmem:[#allocation2 + $0xef0] sm:$0xff]  ;;  %v8830_v4 = vld [vmem:[#allocation2 + $0xee8] sm:$0xff] }
 0x1b5   :  { %5681 = vmatpush.bf16.msrb.mxu2 %v8792_v1  ;;  %5650 = vmatmul.bf16.vlgmr.msra.gmra.mxu3 %v1430_v6  ;;  %v8806_v1 = vld [vmem:[#allocation2 + $0xe28] sm:$0xff]  ;;  %v8839_v51 = vld [vmem:[#allocation2 + $0xf30] sm:$0xff] }
 0x1b6   :  { %5694 = vmatpush.bf16.msrb.mxu3 %v8800_v2  ;;  %v8814_v2 = vld [vmem:[#allocation2 + $0xe68] sm:$0xff] }
 0x1b7   :  { %5656 = vmatpush.bf16.msrb.mxu0 %v8775_v7  ;;  %v5430_v27 = vpop.f32.mrf.mxu2  ;;  %v5406_v30 = vpop.f32.mrf.mxu0  ;;  %v8805_v7 = vld [vmem:[#allocation2 + $0xe20] sm:$0xff] }
 0x1b8   :  { %5669 = vmatpush.bf16.msrb.mxu1 %v8783_v8  ;;  %v5431_v28 = vadd.f32 %v5430_v27, %v5418_v22  ;;  %v5443_v29 = vpop.f32.mrf.mxu3  ;;  %v5419_v34 = vpop.f32.mrf.mxu1  ;;  %v8813_v8 = vld [vmem:[#allocation2 + $0xe60] sm:$0xff]  ;;  %v8803_v22 = vld [vmem:[#allocation2 + $0xe10] sm:$0xff]  ;;  %v8802_v27 = vld [vmem:[#allocation2 + $0xe08] sm:$0xff] }
 0x1b9   :  { %5682 = vmatpush.bf16.msrb.mxu2 %v8791_v9  ;;  %v8826_v30 = vld [vmem:[#allocation2 + $0xec8] sm:$0xff] }
 0x1ba   :  { %5695 = vmatpush.bf16.msrb.mxu3 %v8799_v10  ;;  %v9201_v31 = vadd.f32 %v5443_v29, %v5431_v28  ;;  %v8821_v10 = vld [vmem:[#allocation2 + $0xea0] sm:$0xff]  ;;  %v8810_v28 = vld [vmem:[#allocation2 + $0xe48] sm:$0xff] }
 0x1bb   :  { %5657 = vmatpush.bf16.msrb.mxu0 %v8774_v11  ;;  %v8829_v11 = vld [vmem:[#allocation2 + $0xee0] sm:$0xff]  ;;  %v8818_v29 = vld [vmem:[#allocation2 + $0xe88] sm:$0xff] }
 0x1bc   :  { %5670 = vmatpush.bf16.msrb.mxu1 %v8782_v12 }
 0x1bd   :  { %5683 = vmatpush.bf16.msrb.mxu2 %v8790_v13  ;;  %v8804_v13 = vld [vmem:[#allocation2 + $0xe18] sm:$0xff] }
 0x1be   :  { %5696 = vmatpush.bf16.msrb.mxu3 %v8798_v14  ;;  %v8812_v14 = vld [vmem:[#allocation2 + $0xe58] sm:$0xff] }
 0x1bf   :  { %5658 = vmatpush.bf16.msrb.mxu0 %v8773_v17  ;;  %v5432_v43 = vpop.f32.mrf.mxu2 }
 0x1c0   :  { %5671 = vmatpush.bf16.msrb.mxu1 %v8781_v18  ;;  %v5445_v44 = vpop.f32.mrf.mxu3  ;;  %v8840_v43 = vld [vmem:[#allocation2 + $0xf38] sm:$0xff] }
 0x1c1   :  { %5684 = vmatpush.bf16.msrb.mxu2 %v8789_v20  ;;  %v8848_v44 = vld [vmem:[#allocation2 + $0xf78] sm:$0xff] }
 0x1c2   :  { %5697 = vmatpush.bf16.msrb.mxu3 %v8797_v21 }
 0x1c3   :  { %5659 = vmatpush.bf16.msrb.mxu0 %v8772_v23  ;;  %v8811_v23 = vld [vmem:[#allocation2 + $0xe50] sm:$0xff] }
 0x1c4   :  { %5672 = vmatpush.bf16.msrb.mxu1 %v8780_v24 }
 0x1c5   :  { %5685 = vmatpush.bf16.msrb.mxu2 %v8788_v25  ;;  %v8819_v25 = vld [vmem:[#allocation2 + $0xe90] sm:$0xff] }
 0x1c6   :  { %5698 = vmatpush.bf16.msrb.mxu3 %v8796_v26  ;;  %v8827_v26 = vld [vmem:[#allocation2 + $0xed0] sm:$0xff] }
 0x1c7   :  { %5660 = vmatpush.bf16.msrb.mxu0 %v8771_v32  ;;  %v108_v32 = vld [vmem:[%s9246_s0 + $0xe8] sm:$0xff] }
 0x1c8   :  { %5673 = vmatpush.bf16.msrb.mxu1 %v8779_v33  ;;  %v1366_v42 = vunpack.c.h.b16 %v108_v32 }
 0x1c9   :  { %5686 = vmatpush.bf16.msrb.mxu2 %v8787_v35  ;;  %v8801_v35 = vld [vmem:[#allocation2 + $0xe00] sm:$0xff] }
 0x1ca   :  { %5699 = vmatpush.bf16.msrb.mxu3 %v8795_v36  ;;  %v8809_v36 = vld [vmem:[#allocation2 + $0xe40] sm:$0xff] }
 0x1cb   :  { %5661 = vmatpush.bf16.msrb.mxu0 %v8770_v37 }
 0x1cc   :  { %5674 = vmatpush.bf16.msrb.mxu1 %v8778_v38  ;;  %v1365_v38 = vunpack.c.l.b16 %v108_v32 }
 0x1cd   :  { %5687 = vmatpush.bf16.msrb.mxu2 %v8786_v39  ;;  %v8817_v39 = vld [vmem:[#allocation2 + $0xe80] sm:$0xff] }
 0x1ce   :  { %5700 = vmatpush.bf16.msrb.mxu3 %v8794_v40  ;;  %v8825_v40 = vld [vmem:[#allocation2 + $0xec0] sm:$0xff]  ;;  %v1437_v48 = vpack.c.b16 %v1365_v38, %v1365_v38 }
 0x1cf   :  { %5662 = vmatpush.bf16.msrb.mxu0 %v8769_v45  ;;  %v5456_v5 = vpop.f32.mrf.mxu0  ;;  %v8856_v45 = vld [vmem:[#allocation2 + $0xfb8] sm:$0xff] }
 0x1d0   :  { %5675 = vmatpush.bf16.msrb.mxu1 %v8777_v46  ;;  %v5457_v6 = vadd.f32 %v5456_v5, %v9201_v31  ;;  %v5469_v9 = vpop.f32.mrf.mxu1  ;;  %v107_v31 = vld [vmem:[%s9246_s0 + $0xe0] sm:$0xff]  ;;  %v8864_v46 = vld [vmem:[#allocation2 + $0xff8] sm:$0xff] }
 0x1d1   :  { %5688 = vmatpush.bf16.msrb.mxu2 %v8785_v49  ;;  %v1363_v37 = vunpack.c.l.b16 %v107_v31  ;;  %v1364_v41 = vunpack.c.h.b16 %v107_v31  ;;  %v8852_v5 = vld [vmem:[#allocation2 + $0xf98] sm:$0xff] }
 0x1d2   :  { %5701 = vmatpush.bf16.msrb.mxu3 %v8793_v50  ;;  %5663 = vmatmul.bf16.vlgmr.msrb.gmra.mxu0 %v1431_v57  ;;  %v5470_v12 = vadd.f32 %v5469_v9, %v5457_v6  ;;  %v1438_v50 = vpack.c.b16 %v1366_v42, %v1366_v42  ;;  %v8854_v57 = vld [vmem:[#allocation2 + $0xfa8] sm:$0xff]  ;;  %v8860_v6 = vld [vmem:[#allocation2 + $0xfd8] sm:$0xff]  ;;  %v8879_v42 = vld [vmem:[#allocation2 + $0x1070] sm:$0xff] }
 0x1d3   :  { %5707 = vmatpush.bf16.msra.mxu0 %v8808_v53  ;;  %5676 = vmatmul.bf16.vlgmr.msrb.gmra.mxu1 %v1432_v59  ;;  %v1435_v47 = vpack.c.b16 %v1363_v37, %v1363_v37  ;;  %v1436_v49 = vpack.c.b16 %v1364_v41, %v1364_v41  ;;  %v8855_v53 = vld [vmem:[#allocation2 + $0xfb0] sm:$0xff] }
 0x1d4   :  { %5720 = vmatpush.bf16.msra.mxu1 %v8816_v54  ;;  %5689 = vmatmul.bf16.vlgmr.msrb.gmra.mxu2 %v1433_v58  ;;  %v8863_v54 = vld [vmem:[#allocation2 + $0xff0] sm:$0xff]  ;;  %v8862_v58 = vld [vmem:[#allocation2 + $0xfe8] sm:$0xff] }
 0x1d5   :  { %5733 = vmatpush.bf16.msra.mxu2 %v8824_v55  ;;  %5702 = vmatmul.bf16.vlgmr.msrb.gmra.mxu3 %v1434_v60  ;;  %v8838_v55 = vld [vmem:[#allocation2 + $0xf28] sm:$0xff]  ;;  %v8871_v41 = vld [vmem:[#allocation2 + $0x1030] sm:$0xff] }
 0x1d6   :  { %5746 = vmatpush.bf16.msra.mxu3 %v8832_v56  ;;  %v8846_v56 = vld [vmem:[#allocation2 + $0xf68] sm:$0xff] }
 0x1d7   :  { %5708 = vmatpush.bf16.msra.mxu0 %v8807_v61  ;;  %v5482_v17 = vpop.f32.mrf.mxu2  ;;  %v5458_v20 = vpop.f32.mrf.mxu0  ;;  %v8837_v61 = vld [vmem:[#allocation2 + $0xf20] sm:$0xff] }
 0x1d8   :  { %5721 = vmatpush.bf16.msra.mxu1 %v8815_v62  ;;  %v5483_v18 = vadd.f32 %v5482_v17, %v5470_v12  ;;  %v5495_v19 = vpop.f32.mrf.mxu3  ;;  %v5471_v24 = vpop.f32.mrf.mxu1  ;;  %v8845_v62 = vld [vmem:[#allocation2 + $0xf60] sm:$0xff]  ;;  %v8835_v12 = vld [vmem:[#allocation2 + $0xf10] sm:$0xff]  ;;  %v8834_v17 = vld [vmem:[#allocation2 + $0xf08] sm:$0xff] }
 0x1d9   :  { %5734 = vmatpush.bf16.msra.mxu2 %v8823_v63  ;;  %v8858_v20 = vld [vmem:[#allocation2 + $0xfc8] sm:$0xff] }
 0x1da   :  { %5747 = vmatpush.bf16.msra.mxu3 %v8831_v0  ;;  %v9210_v21 = vadd.f32 %v5495_v19, %v5483_v18  ;;  %v8853_v0 = vld [vmem:[#allocation2 + $0xfa0] sm:$0xff]  ;;  %v8842_v18 = vld [vmem:[#allocation2 + $0xf48] sm:$0xff] }
 0x1db   :  { %5709 = vmatpush.bf16.msra.mxu0 %v8806_v1  ;;  %v8861_v1 = vld [vmem:[#allocation2 + $0xfe0] sm:$0xff]  ;;  %v8850_v19 = vld [vmem:[#allocation2 + $0xf88] sm:$0xff] }
 0x1dc   :  { %5722 = vmatpush.bf16.msra.mxu1 %v8814_v2 }
 0x1dd   :  { %5735 = vmatpush.bf16.msra.mxu2 %v8822_v3  ;;  %v8836_v3 = vld [vmem:[#allocation2 + $0xf18] sm:$0xff] }
 0x1de   :  { %5748 = vmatpush.bf16.msra.mxu3 %v8830_v4  ;;  %v8844_v4 = vld [vmem:[#allocation2 + $0xf58] sm:$0xff] }
 0x1df   :  { %5710 = vmatpush.bf16.msra.mxu0 %v8805_v7  ;;  %v5484_v33 = vpop.f32.mrf.mxu2 }
 0x1e0   :  { %5723 = vmatpush.bf16.msra.mxu1 %v8813_v8  ;;  %v5497_v34 = vpop.f32.mrf.mxu3  ;;  %v8872_v33 = vld [vmem:[#allocation2 + $0x1038] sm:$0xff] }
 0x1e1   :  { %5736 = vmatpush.bf16.msra.mxu2 %v8821_v10  ;;  %v8880_v34 = vld [vmem:[#allocation2 + $0x1078] sm:$0xff] }
 0x1e2   :  { %5749 = vmatpush.bf16.msra.mxu3 %v8829_v11 }
 0x1e3   :  { %5711 = vmatpush.bf16.msra.mxu0 %v8804_v13  ;;  %v8843_v13 = vld [vmem:[#allocation2 + $0xf50] sm:$0xff] }
 0x1e4   :  { %5724 = vmatpush.bf16.msra.mxu1 %v8812_v14 }
 0x1e5   :  { %5737 = vmatpush.bf16.msra.mxu2 %v8820_v15  ;;  %v8851_v15 = vld [vmem:[#allocation2 + $0xf90] sm:$0xff] }
 0x1e6   :  { %5750 = vmatpush.bf16.msra.mxu3 %v8828_v16  ;;  %v8859_v16 = vld [vmem:[#allocation2 + $0xfd0] sm:$0xff] }
 0x1e7   :  { %5712 = vmatpush.bf16.msra.mxu0 %v8803_v22  ;;  %v110_v22 = vld [vmem:[%s9246_s0 + $0xf8] sm:$0xff] }
 0x1e8   :  { %5725 = vmatpush.bf16.msra.mxu1 %v8811_v23  ;;  %v1370_v32 = vunpack.c.h.b16 %v110_v22 }
 0x1e9   :  { %5738 = vmatpush.bf16.msra.mxu2 %v8819_v25  ;;  %v8833_v25 = vld [vmem:[#allocation2 + $0xf00] sm:$0xff] }
 0x1ea   :  { %5751 = vmatpush.bf16.msra.mxu3 %v8827_v26  ;;  %v8841_v26 = vld [vmem:[#allocation2 + $0xf40] sm:$0xff] }
 0x1eb   :  { %5713 = vmatpush.bf16.msra.mxu0 %v8802_v27 }
 0x1ec   :  { %5726 = vmatpush.bf16.msra.mxu1 %v8810_v28  ;;  %v1369_v28 = vunpack.c.l.b16 %v110_v22 }
 0x1ed   :  { %5739 = vmatpush.bf16.msra.mxu2 %v8818_v29  ;;  %v8849_v29 = vld [vmem:[#allocation2 + $0xf80] sm:$0xff] }
 0x1ee   :  { %5752 = vmatpush.bf16.msra.mxu3 %v8826_v30  ;;  %v8857_v30 = vld [vmem:[#allocation2 + $0xfc0] sm:$0xff]  ;;  %v1441_v38 = vpack.c.b16 %v1369_v28, %v1369_v28 }
 0x1ef   :  { %5714 = vmatpush.bf16.msra.mxu0 %v8801_v35  ;;  %v5508_v59 = vpop.f32.mrf.mxu0  ;;  %v8888_v35 = vld [vmem:[#allocation2 + $0x10b8] sm:$0xff] }
 0x1f0   :  { %5727 = vmatpush.bf16.msra.mxu1 %v8809_v36  ;;  %v5509_v60 = vadd.f32 %v5508_v59, %v9210_v21  ;;  %v5521_v63 = vpop.f32.mrf.mxu1  ;;  %v109_v21 = vld [vmem:[%s9246_s0 + $0xf0] sm:$0xff]  ;;  %v8896_v36 = vld [vmem:[#allocation2 + $0x10f8] sm:$0xff] }
 0x1f1   :  { %5740 = vmatpush.bf16.msra.mxu2 %v8817_v39  ;;  %v1367_v27 = vunpack.c.l.b16 %v109_v21  ;;  %v1368_v31 = vunpack.c.h.b16 %v109_v21  ;;  %v8884_v59 = vld [vmem:[#allocation2 + $0x1098] sm:$0xff] }
 0x1f2   :  { %5753 = vmatpush.bf16.msra.mxu3 %v8825_v40  ;;  %5715 = vmatmul.bf16.vlgmr.msra.gmra.mxu0 %v1435_v47  ;;  %v5522_v2 = vadd.f32 %v5521_v63, %v5509_v60  ;;  %v1442_v40 = vpack.c.b16 %v1370_v32, %v1370_v32  ;;  %v8886_v47 = vld [vmem:[#allocation2 + $0x10a8] sm:$0xff]  ;;  %v8892_v60 = vld [vmem:[#allocation2 + $0x10d8] sm:$0xff]  ;;  %v8911_v32 = vld [vmem:[#allocation2 + $0x1170] sm:$0xff] }
 0x1f3   :  { %5759 = vmatpush.bf16.msrb.mxu0 %v8840_v43  ;;  %5728 = vmatmul.bf16.vlgmr.msra.gmra.mxu1 %v1436_v49  ;;  %v1439_v37 = vpack.c.b16 %v1367_v27, %v1367_v27  ;;  %v1440_v39 = vpack.c.b16 %v1368_v31, %v1368_v31  ;;  %v8887_v43 = vld [vmem:[#allocation2 + $0x10b0] sm:$0xff] }
 0x1f4   :  { %5772 = vmatpush.bf16.msrb.mxu1 %v8848_v44  ;;  %5741 = vmatmul.bf16.vlgmr.msra.gmra.mxu2 %v1437_v48  ;;  %v8895_v44 = vld [vmem:[#allocation2 + $0x10f0] sm:$0xff]  ;;  %v8894_v48 = vld [vmem:[#allocation2 + $0x10e8] sm:$0xff] }
 0x1f5   :  { %5785 = vmatpush.bf16.msrb.mxu2 %v8856_v45  ;;  %5754 = vmatmul.bf16.vlgmr.msra.gmra.mxu3 %v1438_v50  ;;  %v8870_v45 = vld [vmem:[#allocation2 + $0x1028] sm:$0xff]  ;;  %v8903_v31 = vld [vmem:[#allocation2 + $0x1130] sm:$0xff] }
 0x1f6   :  { %5798 = vmatpush.bf16.msrb.mxu3 %v8864_v46  ;;  %v8878_v46 = vld [vmem:[#allocation2 + $0x1068] sm:$0xff] }
 0x1f7   :  { %5760 = vmatpush.bf16.msrb.mxu0 %v8839_v51  ;;  %v5534_v7 = vpop.f32.mrf.mxu2  ;;  %v5510_v10 = vpop.f32.mrf.mxu0  ;;  %v8869_v51 = vld [vmem:[#allocation2 + $0x1020] sm:$0xff] }
 0x1f8   :  { %5773 = vmatpush.bf16.msrb.mxu1 %v8847_v52  ;;  %v5535_v8 = vadd.f32 %v5534_v7, %v5522_v2  ;;  %v5547_v9 = vpop.f32.mrf.mxu3  ;;  %v5523_v14 = vpop.f32.mrf.mxu1  ;;  %v8877_v52 = vld [vmem:[#allocation2 + $0x1060] sm:$0xff]  ;;  %v8867_v2 = vld [vmem:[#allocation2 + $0x1010] sm:$0xff]  ;;  %v8866_v7 = vld [vmem:[#allocation2 + $0x1008] sm:$0xff] }
 0x1f9   :  { %5786 = vmatpush.bf16.msrb.mxu2 %v8855_v53  ;;  %v8890_v10 = vld [vmem:[#allocation2 + $0x10c8] sm:$0xff] }
 0x1fa   :  { %5799 = vmatpush.bf16.msrb.mxu3 %v8863_v54  ;;  %v9219_v11 = vadd.f32 %v5547_v9, %v5535_v8  ;;  %v8885_v54 = vld [vmem:[#allocation2 + $0x10a0] sm:$0xff]  ;;  %v8874_v8 = vld [vmem:[#allocation2 + $0x1048] sm:$0xff] }
 0x1fb   :  { %5761 = vmatpush.bf16.msrb.mxu0 %v8838_v55  ;;  %v8893_v55 = vld [vmem:[#allocation2 + $0x10e0] sm:$0xff]  ;;  %v8882_v9 = vld [vmem:[#allocation2 + $0x1088] sm:$0xff] }
 0x1fc   :  { %5774 = vmatpush.bf16.msrb.mxu1 %v8846_v56 }
 0x1fd   :  { %5787 = vmatpush.bf16.msrb.mxu2 %v8854_v57  ;;  %v8868_v57 = vld [vmem:[#allocation2 + $0x1018] sm:$0xff] }
 0x1fe   :  { %5800 = vmatpush.bf16.msrb.mxu3 %v8862_v58  ;;  %v8876_v58 = vld [vmem:[#allocation2 + $0x1058] sm:$0xff] }
 0x1ff   :  { %5762 = vmatpush.bf16.msrb.mxu0 %v8837_v61  ;;  %v5536_v23 = vpop.f32.mrf.mxu2 }
 0x200   :  { %5775 = vmatpush.bf16.msrb.mxu1 %v8845_v62  ;;  %v5549_v24 = vpop.f32.mrf.mxu3  ;;  %v8904_v23 = vld [vmem:[#allocation2 + $0x1138] sm:$0xff] }
 0x201   :  { %5788 = vmatpush.bf16.msrb.mxu2 %v8853_v0  ;;  %v8912_v24 = vld [vmem:[#allocation2 + $0x1178] sm:$0xff] }
 0x202   :  { %5801 = vmatpush.bf16.msrb.mxu3 %v8861_v1 }
 0x203   :  { %5763 = vmatpush.bf16.msrb.mxu0 %v8836_v3  ;;  %v8875_v3 = vld [vmem:[#allocation2 + $0x1050] sm:$0xff] }
 0x204   :  { %5776 = vmatpush.bf16.msrb.mxu1 %v8844_v4 }
 0x205   :  { %5789 = vmatpush.bf16.msrb.mxu2 %v8852_v5  ;;  %v8883_v5 = vld [vmem:[#allocation2 + $0x1090] sm:$0xff] }
 0x206   :  { %5802 = vmatpush.bf16.msrb.mxu3 %v8860_v6  ;;  %v8891_v6 = vld [vmem:[#allocation2 + $0x10d0] sm:$0xff] }
 0x207   :  { %5764 = vmatpush.bf16.msrb.mxu0 %v8835_v12  ;;  %v112_v12 = vld [vmem:[%s9246_s0 + $0x108] sm:$0xff] }
 0x208   :  { %5777 = vmatpush.bf16.msrb.mxu1 %v8843_v13  ;;  %v1374_v22 = vunpack.c.h.b16 %v112_v12 }
 0x209   :  { %5790 = vmatpush.bf16.msrb.mxu2 %v8851_v15  ;;  %v8865_v15 = vld [vmem:[#allocation2 + $0x1000] sm:$0xff] }
 0x20a   :  { %5803 = vmatpush.bf16.msrb.mxu3 %v8859_v16  ;;  %v8873_v16 = vld [vmem:[#allocation2 + $0x1040] sm:$0xff] }
 0x20b   :  { %5765 = vmatpush.bf16.msrb.mxu0 %v8834_v17 }
 0x20c   :  { %5778 = vmatpush.bf16.msrb.mxu1 %v8842_v18  ;;  %v1373_v18 = vunpack.c.l.b16 %v112_v12  ;;  %v8921_v12 = vld [vmem:[#allocation2 + $0x11c0] sm:$0xff] }
 0x20d   :  { %5791 = vmatpush.bf16.msrb.mxu2 %v8850_v19  ;;  %v8881_v19 = vld [vmem:[#allocation2 + $0x1080] sm:$0xff] }
 0x20e   :  { %5804 = vmatpush.bf16.msrb.mxu3 %v8858_v20  ;;  %v8889_v20 = vld [vmem:[#allocation2 + $0x10c0] sm:$0xff]  ;;  %v1445_v28 = vpack.c.b16 %v1373_v18, %v1373_v18 }
 0x20f   :  { %5766 = vmatpush.bf16.msrb.mxu0 %v8833_v25  ;;  %v5560_v49 = vpop.f32.mrf.mxu0  ;;  %v8920_v25 = vld [vmem:[#allocation2 + $0x11b8] sm:$0xff] }
 0x210   :  { %5779 = vmatpush.bf16.msrb.mxu1 %v8841_v26  ;;  %v5561_v50 = vadd.f32 %v5560_v49, %v9219_v11  ;;  %v5573_v53 = vpop.f32.mrf.mxu1  ;;  %v111_v11 = vld [vmem:[%s9246_s0 + $0x100] sm:$0xff]  ;;  %v8928_v26 = vld [vmem:[#allocation2 + $0x11f8] sm:$0xff] }
 0x211   :  { %5792 = vmatpush.bf16.msrb.mxu2 %v8849_v29  ;;  %v1371_v17 = vunpack.c.l.b16 %v111_v11  ;;  %v1372_v21 = vunpack.c.h.b16 %v111_v11  ;;  %v8916_v49 = vld [vmem:[#allocation2 + $0x1198] sm:$0xff]  ;;  %v8913_v11 = vld [vmem:[#allocation2 + $0x1180] sm:$0xff] }
 0x212   :  { %5805 = vmatpush.bf16.msrb.mxu3 %v8857_v30  ;;  %5767 = vmatmul.bf16.vlgmr.msrb.gmra.mxu0 %v1439_v37  ;;  %v5574_v56 = vadd.f32 %v5573_v53, %v5561_v50  ;;  %v1446_v30 = vpack.c.b16 %v1374_v22, %v1374_v22  ;;  %v8918_v37 = vld [vmem:[#allocation2 + $0x11a8] sm:$0xff]  ;;  %v8924_v50 = vld [vmem:[#allocation2 + $0x11d8] sm:$0xff] }
 0x213   :  { %5811 = vmatpush.bf16.msra.mxu0 %v8872_v33  ;;  %5780 = vmatmul.bf16.vlgmr.msrb.gmra.mxu1 %v1440_v39  ;;  %v1443_v27 = vpack.c.b16 %v1371_v17, %v1371_v17  ;;  %v1444_v29 = vpack.c.b16 %v1372_v21, %v1372_v21  ;;  %v8919_v33 = vld [vmem:[#allocation2 + $0x11b0] sm:$0xff] }
 0x214   :  { %5824 = vmatpush.bf16.msra.mxu1 %v8880_v34  ;;  %5793 = vmatmul.bf16.vlgmr.msrb.gmra.mxu2 %v1441_v38  ;;  %v8927_v34 = vld [vmem:[#allocation2 + $0x11f0] sm:$0xff]  ;;  %v8926_v38 = vld [vmem:[#allocation2 + $0x11e8] sm:$0xff] }
 0x215   :  { %5837 = vmatpush.bf16.msra.mxu2 %v8888_v35  ;;  %5806 = vmatmul.bf16.vlgmr.msrb.gmra.mxu3 %v1442_v40  ;;  %v8902_v35 = vld [vmem:[#allocation2 + $0x1128] sm:$0xff] }
 0x216   :  { %5850 = vmatpush.bf16.msra.mxu3 %v8896_v36  ;;  %v8910_v36 = vld [vmem:[#allocation2 + $0x1168] sm:$0xff] }
 0x217   :  { %5812 = vmatpush.bf16.msra.mxu0 %v8871_v41  ;;  %v5586_v61 = vpop.f32.mrf.mxu2  ;;  %v5562_v0 = vpop.f32.mrf.mxu0  ;;  %v8901_v41 = vld [vmem:[#allocation2 + $0x1120] sm:$0xff] }
 0x218   :  { %5825 = vmatpush.bf16.msra.mxu1 %v8879_v42  ;;  %v5587_v62 = vadd.f32 %v5586_v61, %v5574_v56  ;;  %v5599_v63 = vpop.f32.mrf.mxu3  ;;  %v5575_v4 = vpop.f32.mrf.mxu1  ;;  %v8909_v42 = vld [vmem:[#allocation2 + $0x1160] sm:$0xff]  ;;  %v8899_v56 = vld [vmem:[#allocation2 + $0x1110] sm:$0xff]  ;;  %v8898_v61 = vld [vmem:[#allocation2 + $0x1108] sm:$0xff] }
 0x219   :  { %5838 = vmatpush.bf16.msra.mxu2 %v8887_v43  ;;  %v8914_v0 = vld [vmem:[#allocation2 + $0x1188] sm:$0xff] }
 0x21a   :  { %5851 = vmatpush.bf16.msra.mxu3 %v8895_v44  ;;  %v9228_v1 = vadd.f32 %v5599_v63, %v5587_v62  ;;  %v8917_v44 = vld [vmem:[#allocation2 + $0x11a0] sm:$0xff]  ;;  %v8906_v62 = vld [vmem:[#allocation2 + $0x1148] sm:$0xff]  ;;  %v113_v63 = vld [vmem:[%s9246_s0 + $0x110] sm:$0xff] }
 0x21b   :  { %5813 = vmatpush.bf16.msra.mxu0 %v8870_v45  ;;  %v8925_v45 = vld [vmem:[#allocation2 + $0x11e0] sm:$0xff] }
 0x21c   :  { %5826 = vmatpush.bf16.msra.mxu1 %v8878_v46 }
 0x21d   :  { %5839 = vmatpush.bf16.msra.mxu2 %v8886_v47  ;;  %v8900_v47 = vld [vmem:[#allocation2 + $0x1118] sm:$0xff] }
 0x21e   :  { %5852 = vmatpush.bf16.msra.mxu3 %v8894_v48  ;;  %v8908_v48 = vld [vmem:[#allocation2 + $0x1158] sm:$0xff] }
 0x21f   :  { %5814 = vmatpush.bf16.msra.mxu0 %v8869_v51  ;;  %v5588_v13 = vpop.f32.mrf.mxu2 }
 0x220   :  { %5827 = vmatpush.bf16.msra.mxu1 %v8877_v52  ;;  %v5601_v14 = vpop.f32.mrf.mxu3 }
 0x221   :  { %5840 = vmatpush.bf16.msra.mxu2 %v8885_v54 }
 0x222   :  { %5853 = vmatpush.bf16.msra.mxu3 %v8893_v55 }
 0x223   :  { %5815 = vmatpush.bf16.msra.mxu0 %v8868_v57  ;;  %v8907_v57 = vld [vmem:[#allocation2 + $0x1150] sm:$0xff] }
 0x224   :  { %5828 = vmatpush.bf16.msra.mxu1 %v8876_v58 }
 0x225   :  { %5841 = vmatpush.bf16.msra.mxu2 %v8884_v59  ;;  %v8915_v59 = vld [vmem:[#allocation2 + $0x1190] sm:$0xff] }
 0x226   :  { %5854 = vmatpush.bf16.msra.mxu3 %v8892_v60  ;;  %v8923_v60 = vld [vmem:[#allocation2 + $0x11d0] sm:$0xff] }
 0x227   :  { %5816 = vmatpush.bf16.msra.mxu0 %v8867_v2  ;;  %v114_v2 = vld [vmem:[%s9246_s0 + $0x118] sm:$0xff] }
 0x228   :  { %5829 = vmatpush.bf16.msra.mxu1 %v8875_v3 }
 0x229   :  { %5842 = vmatpush.bf16.msra.mxu2 %v8883_v5  ;;  %v1375_v5 = vunpack.c.l.b16 %v113_v63 }
 0x22a   :  { %5855 = vmatpush.bf16.msra.mxu3 %v8891_v6  ;;  %v1376_v6 = vunpack.c.h.b16 %v113_v63 }
 0x22b   :  { %5817 = vmatpush.bf16.msra.mxu0 %v8866_v7  ;;  %v8897_v7 = vld [vmem:[#allocation2 + $0x1100] sm:$0xff]  ;;  %v1447_v13 = vpack.c.b16 %v1375_v5, %v1375_v5 }
 0x22c   :  { %5830 = vmatpush.bf16.msra.mxu1 %v8874_v8  ;;  %v8905_v8 = vld [vmem:[#allocation2 + $0x1140] sm:$0xff]  ;;  %v1448_v14 = vpack.c.b16 %v1376_v6, %v1376_v6 }
 0x22d   :  { %5843 = vmatpush.bf16.msra.mxu2 %v8882_v9  ;;  %v1377_v9 = vunpack.c.l.b16 %v114_v2 }
 0x22e   :  { %5856 = vmatpush.bf16.msra.mxu3 %v8890_v10  ;;  %v1378_v10 = vunpack.c.h.b16 %v114_v2 }
 0x22f   :  { %5818 = vmatpush.bf16.msra.mxu0 %v8865_v15  ;;  %v5612_v39 = vpop.f32.mrf.mxu0  ;;  %v1449_v15 = vpack.c.b16 %v1377_v9, %v1377_v9 }
 0x230   :  { %5831 = vmatpush.bf16.msra.mxu1 %v8873_v16  ;;  %v5613_v40 = vadd.f32 %v5612_v39, %v9228_v1  ;;  %v5625_v43 = vpop.f32.mrf.mxu1  ;;  %v8922_v1 = vld [vmem:[#allocation2 + $0x11c8] sm:$0xff]  ;;  %v1450_v16 = vpack.c.b16 %v1378_v10, %v1378_v10 }
 0x231   :  { %5844 = vmatpush.bf16.msra.mxu2 %v8881_v19 }
 0x232   :  { %5857 = vmatpush.bf16.msra.mxu3 %v8889_v20  ;;  %5819 = vmatmul.bf16.vlgmr.msra.gmra.mxu0 %v1443_v27  ;;  %v5626_v46 = vadd.f32 %v5625_v43, %v5613_v40 }
 0x233   :  { %5863 = vmatpush.bf16.msrb.mxu0 %v8904_v23  ;;  %5832 = vmatmul.bf16.vlgmr.msra.gmra.mxu1 %v1444_v29 }
 0x234   :  { %5876 = vmatpush.bf16.msrb.mxu1 %v8912_v24  ;;  %5845 = vmatmul.bf16.vlgmr.msra.gmra.mxu2 %v1445_v28 }
 0x235   :  { %5889 = vmatpush.bf16.msrb.mxu2 %v8920_v25  ;;  %5858 = vmatmul.bf16.vlgmr.msra.gmra.mxu3 %v1446_v30 }
 0x236   :  { %5902 = vmatpush.bf16.msrb.mxu3 %v8928_v26 }
 0x237   :  { %5864 = vmatpush.bf16.msrb.mxu0 %v8903_v31  ;;  %v5638_v51 = vpop.f32.mrf.mxu2  ;;  %v5614_v54 = vpop.f32.mrf.mxu0 }
 0x238   :  { %5877 = vmatpush.bf16.msrb.mxu1 %v8911_v32  ;;  %v5639_v52 = vadd.f32 %v5638_v51, %v5626_v46  ;;  %v5651_v53 = vpop.f32.mrf.mxu3  ;;  %v5627_v58 = vpop.f32.mrf.mxu1 }
 0x239   :  { %5890 = vmatpush.bf16.msrb.mxu2 %v8919_v33 }
 0x23a   :  { %5903 = vmatpush.bf16.msrb.mxu3 %v8927_v34  ;;  %v5652_v55 = vadd.f32 %v5651_v53, %v5639_v52  ;;  %v8933_v52 = vld [vmem:[#allocation6 + $0x20] sm:$0xff]  ;;  %v8932_v53 = vld [vmem:[#allocation6 + $0x18] sm:$0xff] }
 0x23b   :  { %5865 = vmatpush.bf16.msrb.mxu0 %v8902_v35 }
 0x23c   :  { %5878 = vmatpush.bf16.msrb.mxu1 %v8910_v36 }
 0x23d   :  { %5891 = vmatpush.bf16.msrb.mxu2 %v8918_v37 }
 0x23e   :  { %5904 = vmatpush.bf16.msrb.mxu3 %v8926_v38 }
 0x23f   :  { %5866 = vmatpush.bf16.msrb.mxu0 %v8901_v41  ;;  %v5640_v3 = vpop.f32.mrf.mxu2 }
 0x240   :  { %5879 = vmatpush.bf16.msrb.mxu1 %v8909_v42  ;;  %v5653_v4 = vpop.f32.mrf.mxu3 }
 0x241   :  { %5892 = vmatpush.bf16.msrb.mxu2 %v8917_v44 }
 0x242   :  { %5905 = vmatpush.bf16.msrb.mxu3 %v8925_v45  ;;  %v8936_v45 = vld [vmem:[#allocation6 + $0x38] sm:$0xff] }
 0x243   :  { %5867 = vmatpush.bf16.msrb.mxu0 %v8900_v47 }
 0x244   :  { %5880 = vmatpush.bf16.msrb.mxu1 %v8908_v48  ;;  %v8935_v48 = vld [vmem:[#allocation6 + $0x30] sm:$0xff] }
 0x245   :  { %5893 = vmatpush.bf16.msrb.mxu2 %v8916_v49  ;;  %v8934_v49 = vld [vmem:[#allocation6 + $0x28] sm:$0xff] }
 0x246   :  { %5906 = vmatpush.bf16.msrb.mxu3 %v8924_v50 }
 0x247   :  { %5868 = vmatpush.bf16.msrb.mxu0 %v8899_v56 }
 0x248   :  { %5881 = vmatpush.bf16.msrb.mxu1 %v8907_v57  ;;  %v8930_v57 = vld [vmem:[#allocation6 + $0x8] sm:$0xff] }
 0x249   :  { %5894 = vmatpush.bf16.msrb.mxu2 %v8915_v59 }
 0x24a   :  { %5907 = vmatpush.bf16.msrb.mxu3 %v8923_v60 }
 0x24b   :  { %5869 = vmatpush.bf16.msrb.mxu0 %v8898_v61 }
 0x24c   :  { %5882 = vmatpush.bf16.msrb.mxu1 %v8906_v62  ;;  %v8929_v62 = vld [vmem:[#allocation6] sm:$0xff] }
 0x24d   :  { %5895 = vmatpush.bf16.msrb.mxu2 %v8914_v0 }
 0x24e   :  { %5908 = vmatpush.bf16.msrb.mxu3 %v8922_v1 }
 0x24f   :  { %5870 = vmatpush.bf16.msrb.mxu0 %v8897_v7  ;;  %v5664_v17 = vpop.f32.mrf.mxu0 }
 0x250   :  { %5883 = vmatpush.bf16.msrb.mxu1 %v8905_v8  ;;  %v5665_v18 = vadd.f32 %v5664_v17, %v5652_v55  ;;  %v5677_v19 = vpop.f32.mrf.mxu1  ;;  %v8931_v55 = vld [vmem:[#allocation6 + $0x10] sm:$0xff] }
 0x251   :  { %5896 = vmatpush.bf16.msrb.mxu2 %v8913_v11 }
 0x252   :  { %5909 = vmatpush.bf16.msrb.mxu3 %v8921_v12  ;;  %5871 = vmatmul.bf16.vlgmr.msrb.gmra.mxu0 %v1447_v13  ;;  %v5678_v20 = vadd.f32 %v5677_v19, %v5665_v18 }
 0x253   :  { %5884 = vmatmul.bf16.vlgmr.msrb.gmra.mxu1 %v1448_v14  ;;  %5985 = vmatpush.bf16.msra.mxu0 %v8936_v45 }
 0x254   :  { %5897 = vmatmul.bf16.vlgmr.msrb.gmra.mxu2 %v1449_v15 }
 0x255   :  { %5910 = vmatmul.bf16.vlgmr.msrb.gmra.mxu3 %v1450_v16 }
 0x257   :  { %v5690_v21 = vpop.f32.mrf.mxu2  ;;  %v5666_v24 = vpop.f32.mrf.mxu0  ;;  %5986 = vmatpush.bf16.msra.mxu0 %v8935_v48 }
 0x258   :  { %v5691_v22 = vadd.f32 %v5690_v21, %v5678_v20  ;;  %v5703_v23 = vpop.f32.mrf.mxu3  ;;  %v5679_v26 = vpop.f32.mrf.mxu1 }
 0x25a   :  { %v5704_v25 = vadd.f32 %v5703_v23, %v5691_v22  ;;  %v8944_v23 = vld [vmem:[#allocation7] ss:$0 sm:$0xff] }
 0x25b   :  { %5987 = vmatpush.bf16.msra.mxu0 %v8934_v49 }
 0x25f   :  { %v5692_v27 = vpop.f32.mrf.mxu2  ;;  %5988 = vmatpush.bf16.msra.mxu0 %v8933_v52 }
 0x260   :  { %v5705_v28 = vpop.f32.mrf.mxu3 }
 0x263   :  { %5989 = vmatpush.bf16.msra.mxu0 %v8932_v53 }
 0x267   :  { %5990 = vmatpush.bf16.msra.mxu0 %v8931_v55 }
 0x26b   :  { %5991 = vmatpush.bf16.msra.mxu0 %v8930_v57 }
 0x26f   :  { %v5716_v29 = vpop.f32.mrf.mxu0  ;;  %5992 = vmatpush.bf16.msra.mxu0 %v8929_v62 }
 0x270   :  { %v5717_v30 = vadd.f32 %v5716_v29, %v5704_v25  ;;  %v5729_v31 = vpop.f32.mrf.mxu1 }
 0x272   :  { %v5730_v32 = vadd.f32 %v5729_v31, %v5717_v30 }
 0x277   :  { %v5742_v33 = vpop.f32.mrf.mxu2  ;;  %v5718_v36 = vpop.f32.mrf.mxu0 }
 0x278   :  { %v5743_v34 = vadd.f32 %v5742_v33, %v5730_v32  ;;  %v5755_v35 = vpop.f32.mrf.mxu3  ;;  %v5731_v38 = vpop.f32.mrf.mxu1 }
 0x27a   :  { %v5756_v37 = vadd.f32 %v5755_v35, %v5743_v34 }
 0x27f   :  { %v5744_v39 = vpop.f32.mrf.mxu2 }
 0x280   :  { %v5757_v40 = vpop.f32.mrf.mxu3 }
 0x28f   :  { %v5768_v41 = vpop.f32.mrf.mxu0 }
 0x290   :  { %v5781_v42 = vpop.f32.mrf.mxu1  ;;  %v5769_v59 = vadd.f32 %v5768_v41, %v5756_v37 }
 0x292   :  { %v5782_v0 = vadd.f32 %v5781_v42, %v5769_v59 }
 0x297   :  { %v5794_v43 = vpop.f32.mrf.mxu2  ;;  %v5770_v46 = vpop.f32.mrf.mxu0 }
 0x298   :  { %v5807_v44 = vpop.f32.mrf.mxu3  ;;  %v5783_v47 = vpop.f32.mrf.mxu1  ;;  %v5795_v1 = vadd.f32 %v5794_v43, %v5782_v0 }
 0x29a   :  { %v5808_v4 = vadd.f32 %v5807_v44, %v5795_v1 }
 0x29f   :  { %v5796_v50 = vpop.f32.mrf.mxu2 }
 0x2a0   :  { %v5809_v51 = vpop.f32.mrf.mxu3 }
 0x2af   :  { %v5820_v54 = vpop.f32.mrf.mxu0 }
 0x2b0   :  { %v5833_v56 = vpop.f32.mrf.mxu1  ;;  %v5821_v5 = vadd.f32 %v5820_v54, %v5808_v4 }
 0x2b2   :  { %v5834_v6 = vadd.f32 %v5833_v56, %v5821_v5 }
 0x2b7   :  { %v5846_v58 = vpop.f32.mrf.mxu2  ;;  %v5822_v61 = vpop.f32.mrf.mxu0 }
 0x2b8   :  { %v5859_v60 = vpop.f32.mrf.mxu3  ;;  %v5835_v63 = vpop.f32.mrf.mxu1  ;;  %v5847_v7 = vadd.f32 %v5846_v58, %v5834_v6 }
 0x2ba   :  { %v5860_v8 = vadd.f32 %v5859_v60, %v5847_v7 }
 0x2bf   :  { %v5848_v2 = vpop.f32.mrf.mxu2 }
 0x2c0   :  { %v5861_v3 = vpop.f32.mrf.mxu3 }
 0x2cf   :  { %v5872_v9 = vpop.f32.mrf.mxu0 }
 0x2d0   :  { %v5885_v10 = vpop.f32.mrf.mxu1  ;;  %v5873_v11 = vadd.f32 %v5872_v9, %v5860_v8 }
 0x2d2   :  { %v5886_v12 = vadd.f32 %v5885_v10, %v5873_v11 }
 0x2d7   :  { %v5898_v13 = vpop.f32.mrf.mxu2  ;;  %v5874_v16 = vpop.f32.mrf.mxu0 }
 0x2d8   :  { %v5911_v14 = vpop.f32.mrf.mxu3  ;;  %v5899_v15 = vadd.f32 %v5898_v13, %v5886_v12  ;;  %v5887_v17 = vpop.f32.mrf.mxu1 }
 0x2da   :  { %v5912_v18 = vadd.f32 %v5911_v14, %v5899_v15 }
 0x2dc   :  { %v5915_v19 = vmax.f32 %v5912_v18, 0.0 }
 0x2de   :  { %v5916_v20 = vpack.c.bf16 %v5915_v19, %v5915_v19 }
 0x2df   :  { %v5900_v21 = vpop.f32.mrf.mxu2 }
 0x2e0   :  { %v5913_v22 = vpop.f32.mrf.mxu3  ;;  %5993 = vmatmul.bf16.vlgmr.msra.gmra.mxu0 %v5916_v20 }
 0x35d   :  { %v5994_v24 = vpop.f32.mrf.mxu0 }
 0x35e   :  { %v5995_v25 = vadd.f32 %v8944_v23, %v5994_v24 }
 0x360   :  { %5998 = vmax.xlane.f32.xlu0 %v5995_v25 }
 0x365   :  { %v5996_v26 = vpop.f32.mrf.mxu0 }
 0x3d3   :  { %v5999_v27 = vpop.xlane.xlu0 %5998 }
 0x3d4   :  { %v6000_v28 = vsub.f32 %v5995_v25, %v5999_v27 }
 0x3d6   :  { %v6001_v29 = vmul.f32 1.442695, %v6000_v28 }
 0x3d8   :  { %8945 = vpow2.f32 %v6001_v29 }
 0x3de   :  { %v8946_v30 = vpop.eup %8945 }
 0x3df   :  { %6003 = vadd.xlane.f32.xlu0 %v8946_v30 }
 0x452   :  { %v6004_v31 = vpop.xlane.xlu0 %6003 }
 0x453   :  { %8947 = vlog2.f32 %v6004_v31 }
 0x459   :  { %v8948_v32 = vpop.eup %8947 }
 0x45a   :  { %v6006_v33 = vmul.f32 0.6931472, %v8948_v32 }
 0x45c   :  { %v6007_v34 = vadd.f32 %v6006_v33, %v5999_v27 }
 0x45e   :  { %v6008_v35 = vsub.f32 %v5995_v25, %v6007_v34 }
 0x460   :  { %6009 = vst [vmem:[%s9251_s5] sm:$0xff] %v6008_v35 }
 0x461   :  { %6014 = vsyncpa [#allocation3], 1 }
 0x462   :  { %6015 = vsyncpa [#allocation5], 1 }
 0x463   :  { %6016 = vsyncpa [#allocation8], 1 }

</bundles_post_ra>
